<compile_context>
chip_gen: v7x
topology: tpu7x:2x2x1
jax: 0.10.0
libtpu: 0.0.40
codegen_flags: <defaults>
</compile_context>

<pallas_src>
import functools

import jax
import jax.numpy as jnp
from jax import lax
from jax.experimental import pallas as pl
from jax.experimental.pallas import tpu as pltpu


# Flip to True on v6e/v7x if a small numeric deviation (bf16 MXU inputs with
# f32 accumulation) is acceptable for the decoder matmuls.
USE_BF16_DECODER_MATMUL = False


# -----------------------------------------------------------------------------
# The single fused kernel.  One grid step == one batch element (all T frames).
# -----------------------------------------------------------------------------
def _frame_prediction_kernel(
    # inputs
    x_ref, pos_ref, w_enc_ref, b_enc_ref, g_in_ref, b_in_ref,
    w_kv_ref, b_kv_ref, slot_init_ref, g_sl_ref, b_sl_ref, w_q_ref, b_q_ref,
    dpos_ref, w1_ref, b1_ref, w2_ref, b2_ref, wp_ref, bp_ref,
    # outputs
    slots_t_ref, att_ref, rgb_ref, alpha_ref,
    # scratch
    kv_sc,
    *, T, C, S, N, DF, eps, scale):
  f32 = jnp.float32

  # --------------------------------------------------------------- encoder
  # 1x1 conv (C->F) as C broadcast-FMAs on the VPU (K=3 MXU matmul avoided)
  # + learned pos-embed + LayerNorm over F + K|V projection, all in the
  # transposed (channels-on-sublane, pixels-on-lane) layout.  kv is written
  # lane-dense into a VMEM scratch and reused by both attention passes.
  w_enc_t = w_enc_ref[...]            # (F, C)
  b_enc = b_enc_ref[...]              # (F, 1)
  pos_t = pos_ref[...]                # (F, HW)
  g_in = g_in_ref[...]                # (F, 1)
  b_in = b_in_ref[...]                # (F, 1)
  w_kv_t = w_kv_ref[...]              # (2S, F)
  b_kv_t = b_kv_ref[...]              # (2S, 1)
  for t in range(T):
    x_t = x_ref[0, t]                                           # (C, HW)
    feat = w_enc_t[:, 0:1] * x_t[0:1, :]                        # (F, HW)
    for c in range(1, C):
      feat = feat + w_enc_t[:, c:c + 1] * x_t[c:c + 1, :]
    feat = jnp.maximum(feat + b_enc, 0.0) + pos_t               # ReLU + pos
    mu = jnp.mean(feat, axis=0, keepdims=True)
    var = jnp.mean((feat - mu) ** 2, axis=0, keepdims=True)
    feat = (feat - mu) * lax.rsqrt(var + eps) * g_in + b_in     # input LN
    kv_sc[t] = jnp.dot(w_kv_t, feat, preferred_element_type=f32) + b_kv_t

  # ------------------------------------------------- slot LN + Q projection
  def ln_q(sl):                       # (N, S) -> (N, S)
    mu = jnp.mean(sl, axis=-1, keepdims=True)
    var = jnp.mean((sl - mu) ** 2, axis=-1, keepdims=True)
    sln = (sl - mu) * lax.rsqrt(var + eps) * g_sl_ref[...] + b_sl_ref[...]
    return jnp.dot(sln, w_q_ref[...], preferred_element_type=f32) + b_q_ref[...]

  def attend(q, t):
    """One frame of inverted attention (softmax over slots, exact division)."""
    k_t = kv_sc[t, :S, :]                                       # (S, HW)
    v_t = kv_sc[t, S:, :]                                       # (S, HW)
    logits = jnp.dot(q, k_t, preferred_element_type=f32) * scale  # (N, HW)
    m = jnp.max(logits, axis=0, keepdims=True)
    e = jnp.exp(logits - m)
    attn = e / jnp.sum(e, axis=0, keepdims=True)                # (N, HW)
    wsum = jnp.sum(attn, axis=1, keepdims=True)                 # (N, 1)
    wv = lax.dot_general(attn, v_t, (((1,), (1,)), ((), ())),
                         preferred_element_type=f32)            # (N, S)
    return attn, wsum, wv

  # ------------------------------------ full-video slot attention (no attn)
  q0 = ln_q(slot_init_ref[...])
  numer = jnp.zeros((N, S), f32)
  denom = jnp.zeros((N, 1), f32)
  for t in range(T):
    _, wsum, wv = attend(q0, t)
    numer = numer + wv
    denom = denom + wsum
  slots = numer / (denom + 1e-8)
  # TODO(synk): the reference SlotAttention also applies a GRU + residual-MLP
  # slot update after the weighted mean; this synthetic module keeps the
  # linear attention update only.

  # ------------- per-frame attention + spatial-broadcast decoder + composite
  q = ln_q(slots)                     # one Q for all T frames (slots repeated)
  w1_t = w1_ref[...]                  # (DH, S)
  # layer 1 applied to the frame/slot-invariant positional grid (hoisted):
  #   h1_n = relu(W1 @ (dec_pos + slot_n) + b1) = relu(pos_proj + (W1 @ slots^T)[:, n])
  pos_proj = jnp.dot(w1_t, dpos_ref[...], preferred_element_type=f32) + b1_ref[...]
  w2_t = w2_ref[...]                  # (DF+1, DH)
  b2 = b2_ref[...]                    # (DF+1, 1)
  wp_t = wp_ref[...]                  # (3, DF)
  bp = bp_ref[...]                    # (3, 1)
  w2_mm = w2_t.astype(jnp.bfloat16) if USE_BF16_DECODER_MATMUL else w2_t

  for t in range(T):
    attn, wsum, wv = attend(q, t)
    att_ref[0, t] = attn.astype(att_ref.dtype)                  # lane-dense (N, HW)
    upd = wv / (wsum + 1e-8)                                    # (N, S)
    slots_t_ref[0, t] = upd.astype(slots_t_ref.dtype)

    # spatial-broadcast decoder (z concat removed via linearity of layer 1)
    w1u = lax.dot_general(w1_t, upd, (((1,), (1,)), ((), ())),
                          preferred_element_type=f32)           # (DH, N)
    feats = []
    alpha_rows = []
    for n in range(N):
      h1 = jnp.maximum(pos_proj + w1u[:, n:n + 1], 0.0)         # (DH, HW)
      h1_mm = h1.astype(jnp.bfloat16) if USE_BF16_DECODER_MATMUL else h1
      dec_n = jnp.dot(w2_mm, h1_mm, preferred_element_type=f32) + b2  # (DF+1, HW)
      feats.append(dec_n[:DF, :])                               # (DF, HW)
      alpha_rows.append(dec_n[DF:DF + 1, :])                    # (1, HW)
    alpha = jnp.concatenate(alpha_rows, axis=0)                 # (N, HW)
    alpha_ref[0, t] = alpha.astype(alpha_ref.dtype)             # lane-dense

    # softmax over slots + compositing in feature space: masks sum to 1 over
    # slots, the RGB head is affine, so
    #   sum_n m_n * (Wp f_n + bp) == Wp (sum_n m_n f_n) + bp  -> one RGB matmul.
    m2 = jnp.max(alpha, axis=0, keepdims=True)
    e2 = jnp.exp(alpha - m2)
    masks = e2 / jnp.sum(e2, axis=0, keepdims=True)             # (N, HW)
    feat_c = masks[0:1, :] * feats[0]
    for n in range(1, N):
      feat_c = feat_c + masks[n:n + 1, :] * feats[n]
    rgb = jnp.dot(wp_t, feat_c, preferred_element_type=f32) + bp  # (3, HW)
    rgb_ref[0, t] = rgb.astype(rgb_ref.dtype)


# -----------------------------------------------------------------------------
# Synthetic parameters (deterministic; weights stored in the transposed
# orientation the kernel consumes: out-dim / channels on sublanes).
# -----------------------------------------------------------------------------
def init_params(key, *, C, F, N, S, H, W, D_HID, D_FEAT):
  ks = jax.random.split(key, 10)
  n = lambda k, shape, s=0.05: s * jax.random.normal(k, shape, jnp.float32)
  z = lambda shape: jnp.zeros(shape, jnp.float32)
  o = lambda shape: jnp.ones(shape, jnp.float32)
  HW = H * W
  return dict(
      # encoder: pointwise (1x1) conv C -> F
      w_enc_t=n(ks[0], (F, C)), b_enc_t=z((F, 1)),
      # learned positional embedding added to encoder features (flattened)
      pos_t=n(ks[1], (F, HW)),
      # initializer: learned slot init (conditioning is None)
      slot_init=n(ks[2], (N, S)),
      # slot attention (LN params + projections; K|V packed into one weight)
      ln_in_g=o((F, 1)), ln_in_b=z((F, 1)),
      ln_sl_g=o((1, S)), ln_sl_b=z((1, S)),
      w_q=n(ks[3], (S, S)), b_q=z((1, S)),
      w_kv_t=jnp.concatenate([n(ks[4], (S, F)), n(ks[5], (S, F))], axis=0),
      b_kv_t=z((2 * S, 1)),
      # spatial-broadcast decoder
      dec_pos_t=n(ks[6], (S, HW)),
      w_d1_t=n(ks[7], (D_HID, S)), b_d1=z((D_HID, 1)),
      w_d2_t=n(ks[8], (D_FEAT + 1, D_HID)), b_d2=z((D_FEAT + 1, 1)),
      # obj_frame_pred: per-pixel linear D_FEAT -> 3 (RGB)
      w_p_t=n(ks[9], (3, D_FEAT)), b_p=z((3, 1)),
  )


# -----------------------------------------------------------------------------
# FramePrediction.forward
# -----------------------------------------------------------------------------
def frame_prediction_forward(params, video):
  B, T, H, W, C = video.shape
  HW = H * W
  N, S = params["slot_init"].shape
  F = params["w_enc_t"].shape[0]
  DF = params["w_p_t"].shape[1]
  DF1 = params["w_d2_t"].shape[0]
  DH = params["w_d1_t"].shape[0]

  # channels-on-sublane / pixels-on-lane layout for the fused kernel
  # (tiny one-time XLA transpose of the ~24 KB input).
  x_t = video.transpose(0, 1, 4, 2, 3).reshape(B, T, C, HW)

  const = lambda shape: pl.BlockSpec(shape, lambda b, _s=len(shape): (0,) * _s)

  slots_t, att, rgb, alpha = pl.pallas_call(
      functools.partial(_frame_prediction_kernel, T=T, C=C, S=S, N=N, DF=DF,
                        eps=1e-6, scale=float(S) ** -0.5),
      out_shape=(
          jax.ShapeDtypeStruct((B, T, N, S), jnp.float32),    # slots_t
          jax.ShapeDtypeStruct((B, T, N, HW), jnp.float32),   # attention maps
          jax.ShapeDtypeStruct((B, T, 3, HW), jnp.float32),   # composited RGB
          jax.ShapeDtypeStruct((B, T, N, HW), jnp.float32),   # alpha logits
      ),
      grid=(B,),
      in_specs=[
          pl.BlockSpec((1, T, C, HW), lambda b: (b, 0, 0, 0)),
          const((F, HW)),        # pos_t
          const((F, C)),         # w_enc_t
          const((F, 1)),         # b_enc_t
          const((F, 1)),         # ln_in_g
          const((F, 1)),         # ln_in_b
          const((2 * S, F)),     # w_kv_t
          const((2 * S, 1)),     # b_kv_t
          const((N, S)),         # slot_init
          const((1, S)),         # ln_sl_g
          const((1, S)),         # ln_sl_b
          const((S, S)),         # w_q
          const((1, S)),         # b_q
          const((S, HW)),        # dec_pos_t
          const((DH, S)),        # w_d1_t
          const((DH, 1)),        # b_d1
          const((DF1, DH)),      # w_d2_t
          const((DF1, 1)),       # b_d2
          const((3, DF)),        # w_p_t
          const((3, 1)),         # b_p
      ],
      out_specs=(
          pl.BlockSpec((1, T, N, S), lambda b: (b, 0, 0, 0)),
          pl.BlockSpec((1, T, N, HW), lambda b: (b, 0, 0, 0)),
          pl.BlockSpec((1, T, 3, HW), lambda b: (b, 0, 0, 0)),
          pl.BlockSpec((1, T, N, HW), lambda b: (b, 0, 0, 0)),
      ),
      scratch_shapes=[pltpu.VMEM((T, 2 * S, HW), jnp.float32)],   # kv per batch
      compiler_params=pltpu.CompilerParams(dimension_semantics=("parallel",)),
  )(x_t, params["pos_t"], params["w_enc_t"], params["b_enc_t"],
    params["ln_in_g"], params["ln_in_b"], params["w_kv_t"], params["b_kv_t"],
    params["slot_init"], params["ln_sl_g"], params["ln_sl_b"],
    params["w_q"], params["b_q"], params["dec_pos_t"],
    params["w_d1_t"], params["b_d1"], params["w_d2_t"], params["b_d2"],
    params["w_p_t"], params["b_p"])

  # cheap XLA post-processing on tiny arrays
  pred_images = rgb.transpose(0, 1, 3, 2).reshape(B, T, H, W, 3)
  alpha_logits = alpha.reshape(B, T, N, H, W)[..., None]          # (B,T,N,H,W,1)
  pred_seg = jnp.argmax(alpha_logits, axis=2)                     # eval-mode seg
  images_flow = jnp.repeat(alpha_logits[:, :-1].sum(axis=2), 2, axis=-1)
  att_out = att.transpose(0, 1, 3, 2)                             # (B,T,HW,N)
  return pred_images, pred_seg, images_flow, slots_t, att_out


# -----------------------------------------------------------------------------
# main
# -----------------------------------------------------------------------------
if __name__ == "__main__":
  B, T, H, W, C = 2, 4, 16, 16, 3
  F = 32       # encoder feature dim
  N = 4        # number of slots
  S = 32       # slot dim
  D_HID = 64   # decoder hidden dim
  D_FEAT = 16  # broadcast-decoder feature dim fed to obj_frame_pred

  root = jax.random.PRNGKey(0)
  k_vid, k_par = jax.random.split(root)
  video = jax.random.normal(k_vid, (B, T, H, W, C), jnp.float32)
  params = init_params(k_par, C=C, F=F, N=N, S=S, H=H, W=W,
                       D_HID=D_HID, D_FEAT=D_FEAT)

  fwd = jax.jit(frame_prediction_forward)
  outs = fwd(params, video)
  jax.tree_util.tree_map(jax.block_until_ready, outs)

  pred_images, pred_seg, images_flow, slots_t, att_out = outs
  assert pred_images.shape == (B, T, H, W, 3)
  assert pred_seg.shape == (B, T, H, W, 1)
  assert images_flow.shape == (B, T - 1, H, W, 2)
  assert slots_t.shape == (B, T, N, S)
  assert att_out.shape == (B, T, H * W, N)
  print("KERNEL_OK")
</pallas_src>

<mosaic_0001>
module attributes {stable_mosaic.version = 11 : i64} {
  func.func @_frame_prediction_kernel(%arg0: i32, %arg1: memref<1x4x3x256xf32, #tpu.memory_space<vmem>>, %arg2: memref<32x256xf32, #tpu.memory_space<vmem>>, %arg3: memref<32x3xf32, #tpu.memory_space<vmem>>, %arg4: memref<32x1xf32, #tpu.memory_space<vmem>>, %arg5: memref<32x1xf32, #tpu.memory_space<vmem>>, %arg6: memref<32x1xf32, #tpu.memory_space<vmem>>, %arg7: memref<64x32xf32, #tpu.memory_space<vmem>>, %arg8: memref<64x1xf32, #tpu.memory_space<vmem>>, %arg9: memref<4x32xf32, #tpu.memory_space<vmem>>, %arg10: memref<1x32xf32, #tpu.memory_space<vmem>>, %arg11: memref<1x32xf32, #tpu.memory_space<vmem>>, %arg12: memref<32x32xf32, #tpu.memory_space<vmem>>, %arg13: memref<1x32xf32, #tpu.memory_space<vmem>>, %arg14: memref<32x256xf32, #tpu.memory_space<vmem>>, %arg15: memref<64x32xf32, #tpu.memory_space<vmem>>, %arg16: memref<64x1xf32, #tpu.memory_space<vmem>>, %arg17: memref<17x64xf32, #tpu.memory_space<vmem>>, %arg18: memref<17x1xf32, #tpu.memory_space<vmem>>, %arg19: memref<3x16xf32, #tpu.memory_space<vmem>>, %arg20: memref<3x1xf32, #tpu.memory_space<vmem>>, %arg21: memref<1x4x4x32xf32, #tpu.memory_space<vmem>>, %arg22: memref<1x4x4x256xf32, #tpu.memory_space<vmem>>, %arg23: memref<1x4x3x256xf32, #tpu.memory_space<vmem>>, %arg24: memref<1x4x4x256xf32, #tpu.memory_space<vmem>>, %arg25: memref<4x64x256xf32, #tpu.memory_space<vmem>>) attributes {dimension_semantics = [#tpu.dimension_semantics<parallel>], iteration_bounds = array<i64: 2>, scalar_prefetch = 0 : i64, scratch_operands = 1 : i64, tpu.core_type = #tpu.core_type<tc>, window_params = [{transform_indices = @transform_0, window_bounds = array<i64: 1, 4, 3, 256>}, {pipeline_mode = #tpu.pipeline_mode<synchronous>, transform_indices = @transform_1, window_bounds = array<i64: 32, 256>}, {pipeline_mode = #tpu.pipeline_mode<synchronous>, transform_indices = @transform_2, window_bounds = array<i64: 32, 3>}, {pipeline_mode = #tpu.pipeline_mode<synchronous>, transform_indices = @transform_3, window_bounds = array<i64: 32, 1>}, {pipeline_mode = #tpu.pipeline_mode<synchronous>, transform_indices = @transform_4, window_bounds = array<i64: 32, 1>}, {pipeline_mode = #tpu.pipeline_mode<synchronous>, transform_indices = @transform_5, window_bounds = array<i64: 32, 1>}, {pipeline_mode = #tpu.pipeline_mode<synchronous>, transform_indices = @transform_6, window_bounds = array<i64: 64, 32>}, {pipeline_mode = #tpu.pipeline_mode<synchronous>, transform_indices = @transform_7, window_bounds = array<i64: 64, 1>}, {pipeline_mode = #tpu.pipeline_mode<synchronous>, transform_indices = @transform_8, window_bounds = array<i64: 4, 32>}, {pipeline_mode = #tpu.pipeline_mode<synchronous>, transform_indices = @transform_9, window_bounds = array<i64: 1, 32>}, {pipeline_mode = #tpu.pipeline_mode<synchronous>, transform_indices = @transform_10, window_bounds = array<i64: 1, 32>}, {pipeline_mode = #tpu.pipeline_mode<synchronous>, transform_indices = @transform_11, window_bounds = array<i64: 32, 32>}, {pipeline_mode = #tpu.pipeline_mode<synchronous>, transform_indices = @transform_12, window_bounds = array<i64: 1, 32>}, {pipeline_mode = #tpu.pipeline_mode<synchronous>, transform_indices = @transform_13, window_bounds = array<i64: 32, 256>}, {pipeline_mode = #tpu.pipeline_mode<synchronous>, transform_indices = @transform_14, window_bounds = array<i64: 64, 32>}, {pipeline_mode = #tpu.pipeline_mode<synchronous>, transform_indices = @transform_15, window_bounds = array<i64: 64, 1>}, {pipeline_mode = #tpu.pipeline_mode<synchronous>, transform_indices = @transform_16, window_bounds = array<i64: 17, 64>}, {pipeline_mode = #tpu.pipeline_mode<synchronous>, transform_indices = @transform_17, window_bounds = array<i64: 17, 1>}, {pipeline_mode = #tpu.pipeline_mode<synchronous>, transform_indices = @transform_18, window_bounds = array<i64: 3, 16>}, {pipeline_mode = #tpu.pipeline_mode<synchronous>, transform_indices = @transform_19, window_bounds = array<i64: 3, 1>}, {transform_indices = @transform_20, window_bounds = array<i64: 1, 4, 4, 32>}, {transform_indices = @transform_21, window_bounds = array<i64: 1, 4, 4, 256>}, {transform_indices = @transform_22, window_bounds = array<i64: 1, 4, 3, 256>}, {transform_indices = @transform_23, window_bounds = array<i64: 1, 4, 4, 256>}]} {
    %c0 = arith.constant 0 : index
    %c0_0 = arith.constant 0 : index
    %0 = vector.load %arg3[%c0, %c0_0] : memref<32x3xf32, #tpu.memory_space<vmem>>, vector<32x3xf32>
    %c0_1 = arith.constant 0 : index
    %c0_2 = arith.constant 0 : index
    %1 = vector.load %arg4[%c0_1, %c0_2] : memref<32x1xf32, #tpu.memory_space<vmem>>, vector<32x1xf32>
    %c0_3 = arith.constant 0 : index
    %c0_4 = arith.constant 0 : index
    %2 = vector.load %arg2[%c0_3, %c0_4] : memref<32x256xf32, #tpu.memory_space<vmem>>, vector<32x256xf32>
    %c0_5 = arith.constant 0 : index
    %c0_6 = arith.constant 0 : index
    %3 = vector.load %arg5[%c0_5, %c0_6] : memref<32x1xf32, #tpu.memory_space<vmem>>, vector<32x1xf32>
    %c0_7 = arith.constant 0 : index
    %c0_8 = arith.constant 0 : index
    %4 = vector.load %arg6[%c0_7, %c0_8] : memref<32x1xf32, #tpu.memory_space<vmem>>, vector<32x1xf32>
    %c0_9 = arith.constant 0 : index
    %c0_10 = arith.constant 0 : index
    %5 = vector.load %arg7[%c0_9, %c0_10] : memref<64x32xf32, #tpu.memory_space<vmem>>, vector<64x32xf32>
    %c0_11 = arith.constant 0 : index
    %c0_12 = arith.constant 0 : index
    %6 = vector.load %arg8[%c0_11, %c0_12] : memref<64x1xf32, #tpu.memory_space<vmem>>, vector<64x1xf32>
    %c0_13 = arith.constant 0 : index
    %c0_14 = arith.constant 0 : index
    %c0_15 = arith.constant 0 : index
    %c0_16 = arith.constant 0 : index
    %7 = vector.load %arg1[%c0_13, %c0_14, %c0_15, %c0_16] : memref<1x4x3x256xf32, #tpu.memory_space<vmem>>, vector<1x1x3x256xf32>
    %8 = vector.shape_cast %7 : vector<1x1x3x256xf32> to vector<3x256xf32>
    %9 = vector.extract_strided_slice %0 {offsets = [0, 0], sizes = [32, 1], strides = [1, 1]} : vector<32x3xf32> to vector<32x1xf32>
    %10 = vector.extract_strided_slice %8 {offsets = [0, 0], sizes = [1, 256], strides = [1, 1]} : vector<3x256xf32> to vector<1x256xf32>
    %11 = vector.broadcast %9 : vector<32x1xf32> to vector<32x256xf32>
    %12 = vector.broadcast %10 : vector<1x256xf32> to vector<32x256xf32>
    %13 = arith.mulf %11, %12 : vector<32x256xf32>
    %14 = vector.extract_strided_slice %0 {offsets = [0, 1], sizes = [32, 1], strides = [1, 1]} : vector<32x3xf32> to vector<32x1xf32>
    %15 = vector.extract_strided_slice %8 {offsets = [1, 0], sizes = [1, 256], strides = [1, 1]} : vector<3x256xf32> to vector<1x256xf32>
    %16 = vector.broadcast %14 : vector<32x1xf32> to vector<32x256xf32>
    %17 = vector.broadcast %15 : vector<1x256xf32> to vector<32x256xf32>
    %18 = arith.mulf %16, %17 : vector<32x256xf32>
    %19 = arith.addf %13, %18 : vector<32x256xf32>
    %20 = vector.extract_strided_slice %0 {offsets = [0, 2], sizes = [32, 1], strides = [1, 1]} : vector<32x3xf32> to vector<32x1xf32>
    %21 = vector.extract_strided_slice %8 {offsets = [2, 0], sizes = [1, 256], strides = [1, 1]} : vector<3x256xf32> to vector<1x256xf32>
    %22 = vector.broadcast %20 : vector<32x1xf32> to vector<32x256xf32>
    %23 = vector.broadcast %21 : vector<1x256xf32> to vector<32x256xf32>
    %24 = arith.mulf %22, %23 : vector<32x256xf32>
    %25 = arith.addf %19, %24 : vector<32x256xf32>
    %26 = vector.broadcast %1 : vector<32x1xf32> to vector<32x256xf32>
    %27 = arith.addf %25, %26 : vector<32x256xf32>
    %cst = arith.constant 0.000000e+00 : f32
    %28 = vector.broadcast %cst : f32 to vector<32x256xf32>
    %29 = arith.maximumf %27, %28 : vector<32x256xf32>
    %30 = arith.addf %29, %2 : vector<32x256xf32>
    %cst_17 = arith.constant dense<0.000000e+00> : vector<256xf32>
    %31 = vector.multi_reduction <add>, %30, %cst_17 [0] : vector<32x256xf32> to vector<256xf32>
    %32 = vector.shape_cast %31 : vector<256xf32> to vector<1x256xf32>
    %cst_18 = arith.constant 3.200000e+01 : f32
    %33 = vector.broadcast %cst_18 : f32 to vector<1x256xf32>
    %34 = arith.divf %32, %33 : vector<1x256xf32>
    %35 = vector.broadcast %34 : vector<1x256xf32> to vector<32x256xf32>
    %36 = arith.subf %30, %35 : vector<32x256xf32>
    %37 = arith.mulf %36, %36 : vector<32x256xf32>
    %cst_19 = arith.constant dense<0.000000e+00> : vector<256xf32>
    %38 = vector.multi_reduction <add>, %37, %cst_19 [0] : vector<32x256xf32> to vector<256xf32>
    %39 = vector.shape_cast %38 : vector<256xf32> to vector<1x256xf32>
    %cst_20 = arith.constant 3.200000e+01 : f32
    %40 = vector.broadcast %cst_20 : f32 to vector<1x256xf32>
    %41 = arith.divf %39, %40 : vector<1x256xf32>
    %42 = vector.broadcast %34 : vector<1x256xf32> to vector<32x256xf32>
    %43 = arith.subf %30, %42 : vector<32x256xf32>
    %cst_21 = arith.constant 9.99999997E-7 : f32
    %44 = vector.broadcast %cst_21 : f32 to vector<1x256xf32>
    %45 = arith.addf %41, %44 : vector<1x256xf32>
    %46 = math.rsqrt %45 : vector<1x256xf32>
    %47 = vector.broadcast %46 : vector<1x256xf32> to vector<32x256xf32>
    %48 = arith.mulf %43, %47 : vector<32x256xf32>
    %49 = vector.broadcast %3 : vector<32x1xf32> to vector<32x256xf32>
    %50 = arith.mulf %48, %49 : vector<32x256xf32>
    %51 = vector.broadcast %4 : vector<32x1xf32> to vector<32x256xf32>
    %52 = arith.addf %50, %51 : vector<32x256xf32>
    %cst_22 = arith.constant dense<0.000000e+00> : vector<64x256xf32>
    %53 = tpu.matmul %5, %52, %cst_22 {dimension_numbers = #tpu.dot_dimension_numbers<[1], [0], [0], [1], [0, 0, 1, 1], [], []>} : vector<64x32xf32>, vector<32x256xf32>, vector<64x256xf32> -> vector<64x256xf32>
    %54 = vector.broadcast %6 : vector<64x1xf32> to vector<64x256xf32>
    %55 = arith.addf %53, %54 : vector<64x256xf32>
    %c0_23 = arith.constant 0 : index
    %c0_24 = arith.constant 0 : index
    %c0_25 = arith.constant 0 : index
    %56 = vector.load %arg25[%c0_23, %c0_24, %c0_25] : memref<4x64x256xf32, #tpu.memory_space<vmem>>, vector<1x64x256xf32>
    %57 = vector.shape_cast %56 : vector<1x64x256xf32> to vector<64x256xf32>
    %58 = vector.shape_cast %55 : vector<64x256xf32> to vector<1x64x256xf32>
    tpu.vector_store %arg25[%c0_23, %c0_24, %c0_25], %58 {strides = array<i32>} : memref<4x64x256xf32, #tpu.memory_space<vmem>>, vector<1x64x256xf32>,
    %c0_26 = arith.constant 0 : index
    %c1 = arith.constant 1 : index
    %c0_27 = arith.constant 0 : index
    %c0_28 = arith.constant 0 : index
    %59 = vector.load %arg1[%c0_26, %c1, %c0_27, %c0_28] : memref<1x4x3x256xf32, #tpu.memory_space<vmem>>, vector<1x1x3x256xf32>
    %60 = vector.shape_cast %59 : vector<1x1x3x256xf32> to vector<3x256xf32>
    %61 = vector.extract_strided_slice %0 {offsets = [0, 0], sizes = [32, 1], strides = [1, 1]} : vector<32x3xf32> to vector<32x1xf32>
    %62 = vector.extract_strided_slice %60 {offsets = [0, 0], sizes = [1, 256], strides = [1, 1]} : vector<3x256xf32> to vector<1x256xf32>
    %63 = vector.broadcast %61 : vector<32x1xf32> to vector<32x256xf32>
    %64 = vector.broadcast %62 : vector<1x256xf32> to vector<32x256xf32>
    %65 = arith.mulf %63, %64 : vector<32x256xf32>
    %66 = vector.extract_strided_slice %0 {offsets = [0, 1], sizes = [32, 1], strides = [1, 1]} : vector<32x3xf32> to vector<32x1xf32>
    %67 = vector.extract_strided_slice %60 {offsets = [1, 0], sizes = [1, 256], strides = [1, 1]} : vector<3x256xf32> to vector<1x256xf32>
    %68 = vector.broadcast %66 : vector<32x1xf32> to vector<32x256xf32>
    %69 = vector.broadcast %67 : vector<1x256xf32> to vector<32x256xf32>
    %70 = arith.mulf %68, %69 : vector<32x256xf32>
    %71 = arith.addf %65, %70 : vector<32x256xf32>
    %72 = vector.extract_strided_slice %0 {offsets = [0, 2], sizes = [32, 1], strides = [1, 1]} : vector<32x3xf32> to vector<32x1xf32>
    %73 = vector.extract_strided_slice %60 {offsets = [2, 0], sizes = [1, 256], strides = [1, 1]} : vector<3x256xf32> to vector<1x256xf32>
    %74 = vector.broadcast %72 : vector<32x1xf32> to vector<32x256xf32>
    %75 = vector.broadcast %73 : vector<1x256xf32> to vector<32x256xf32>
    %76 = arith.mulf %74, %75 : vector<32x256xf32>
    %77 = arith.addf %71, %76 : vector<32x256xf32>
    %78 = vector.broadcast %1 : vector<32x1xf32> to vector<32x256xf32>
    %79 = arith.addf %77, %78 : vector<32x256xf32>
    %cst_29 = arith.constant 0.000000e+00 : f32
    %80 = vector.broadcast %cst_29 : f32 to vector<32x256xf32>
    %81 = arith.maximumf %79, %80 : vector<32x256xf32>
    %82 = arith.addf %81, %2 : vector<32x256xf32>
    %cst_30 = arith.constant dense<0.000000e+00> : vector<256xf32>
    %83 = vector.multi_reduction <add>, %82, %cst_30 [0] : vector<32x256xf32> to vector<256xf32>
    %84 = vector.shape_cast %83 : vector<256xf32> to vector<1x256xf32>
    %cst_31 = arith.constant 3.200000e+01 : f32
    %85 = vector.broadcast %cst_31 : f32 to vector<1x256xf32>
    %86 = arith.divf %84, %85 : vector<1x256xf32>
    %87 = vector.broadcast %86 : vector<1x256xf32> to vector<32x256xf32>
    %88 = arith.subf %82, %87 : vector<32x256xf32>
    %89 = arith.mulf %88, %88 : vector<32x256xf32>
    %cst_32 = arith.constant dense<0.000000e+00> : vector<256xf32>
    %90 = vector.multi_reduction <add>, %89, %cst_32 [0] : vector<32x256xf32> to vector<256xf32>
    %91 = vector.shape_cast %90 : vector<256xf32> to vector<1x256xf32>
    %cst_33 = arith.constant 3.200000e+01 : f32
    %92 = vector.broadcast %cst_33 : f32 to vector<1x256xf32>
    %93 = arith.divf %91, %92 : vector<1x256xf32>
    %94 = vector.broadcast %86 : vector<1x256xf32> to vector<32x256xf32>
    %95 = arith.subf %82, %94 : vector<32x256xf32>
    %cst_34 = arith.constant 9.99999997E-7 : f32
    %96 = vector.broadcast %cst_34 : f32 to vector<1x256xf32>
    %97 = arith.addf %93, %96 : vector<1x256xf32>
    %98 = math.rsqrt %97 : vector<1x256xf32>
    %99 = vector.broadcast %98 : vector<1x256xf32> to vector<32x256xf32>
    %100 = arith.mulf %95, %99 : vector<32x256xf32>
    %101 = vector.broadcast %3 : vector<32x1xf32> to vector<32x256xf32>
    %102 = arith.mulf %100, %101 : vector<32x256xf32>
    %103 = vector.broadcast %4 : vector<32x1xf32> to vector<32x256xf32>
    %104 = arith.addf %102, %103 : vector<32x256xf32>
    %cst_35 = arith.constant dense<0.000000e+00> : vector<64x256xf32>
    %105 = tpu.matmul %5, %104, %cst_35 {dimension_numbers = #tpu.dot_dimension_numbers<[1], [0], [0], [1], [0, 0, 1, 1], [], []>} : vector<64x32xf32>, vector<32x256xf32>, vector<64x256xf32> -> vector<64x256xf32>
    %106 = vector.broadcast %6 : vector<64x1xf32> to vector<64x256xf32>
    %107 = arith.addf %105, %106 : vector<64x256xf32>
    %c1_36 = arith.constant 1 : index
    %c0_37 = arith.constant 0 : index
    %c0_38 = arith.constant 0 : index
    %108 = vector.load %arg25[%c1_36, %c0_37, %c0_38] : memref<4x64x256xf32, #tpu.memory_space<vmem>>, vector<1x64x256xf32>
    %109 = vector.shape_cast %108 : vector<1x64x256xf32> to vector<64x256xf32>
    %110 = vector.shape_cast %107 : vector<64x256xf32> to vector<1x64x256xf32>
    tpu.vector_store %arg25[%c1_36, %c0_37, %c0_38], %110 {strides = array<i32>} : memref<4x64x256xf32, #tpu.memory_space<vmem>>, vector<1x64x256xf32>,
    %c0_39 = arith.constant 0 : index
    %c2 = arith.constant 2 : index
    %c0_40 = arith.constant 0 : index
    %c0_41 = arith.constant 0 : index
    %111 = vector.load %arg1[%c0_39, %c2, %c0_40, %c0_41] : memref<1x4x3x256xf32, #tpu.memory_space<vmem>>, vector<1x1x3x256xf32>
    %112 = vector.shape_cast %111 : vector<1x1x3x256xf32> to vector<3x256xf32>
    %113 = vector.extract_strided_slice %0 {offsets = [0, 0], sizes = [32, 1], strides = [1, 1]} : vector<32x3xf32> to vector<32x1xf32>
    %114 = vector.extract_strided_slice %112 {offsets = [0, 0], sizes = [1, 256], strides = [1, 1]} : vector<3x256xf32> to vector<1x256xf32>
    %115 = vector.broadcast %113 : vector<32x1xf32> to vector<32x256xf32>
    %116 = vector.broadcast %114 : vector<1x256xf32> to vector<32x256xf32>
    %117 = arith.mulf %115, %116 : vector<32x256xf32>
    %118 = vector.extract_strided_slice %0 {offsets = [0, 1], sizes = [32, 1], strides = [1, 1]} : vector<32x3xf32> to vector<32x1xf32>
    %119 = vector.extract_strided_slice %112 {offsets = [1, 0], sizes = [1, 256], strides = [1, 1]} : vector<3x256xf32> to vector<1x256xf32>
    %120 = vector.broadcast %118 : vector<32x1xf32> to vector<32x256xf32>
    %121 = vector.broadcast %119 : vector<1x256xf32> to vector<32x256xf32>
    %122 = arith.mulf %120, %121 : vector<32x256xf32>
    %123 = arith.addf %117, %122 : vector<32x256xf32>
    %124 = vector.extract_strided_slice %0 {offsets = [0, 2], sizes = [32, 1], strides = [1, 1]} : vector<32x3xf32> to vector<32x1xf32>
    %125 = vector.extract_strided_slice %112 {offsets = [2, 0], sizes = [1, 256], strides = [1, 1]} : vector<3x256xf32> to vector<1x256xf32>
    %126 = vector.broadcast %124 : vector<32x1xf32> to vector<32x256xf32>
    %127 = vector.broadcast %125 : vector<1x256xf32> to vector<32x256xf32>
    %128 = arith.mulf %126, %127 : vector<32x256xf32>
    %129 = arith.addf %123, %128 : vector<32x256xf32>
    %130 = vector.broadcast %1 : vector<32x1xf32> to vector<32x256xf32>
    %131 = arith.addf %129, %130 : vector<32x256xf32>
    %cst_42 = arith.constant 0.000000e+00 : f32
    %132 = vector.broadcast %cst_42 : f32 to vector<32x256xf32>
    %133 = arith.maximumf %131, %132 : vector<32x256xf32>
    %134 = arith.addf %133, %2 : vector<32x256xf32>
    %cst_43 = arith.constant dense<0.000000e+00> : vector<256xf32>
    %135 = vector.multi_reduction <add>, %134, %cst_43 [0] : vector<32x256xf32> to vector<256xf32>
    %136 = vector.shape_cast %135 : vector<256xf32> to vector<1x256xf32>
    %cst_44 = arith.constant 3.200000e+01 : f32
    %137 = vector.broadcast %cst_44 : f32 to vector<1x256xf32>
    %138 = arith.divf %136, %137 : vector<1x256xf32>
    %139 = vector.broadcast %138 : vector<1x256xf32> to vector<32x256xf32>
    %140 = arith.subf %134, %139 : vector<32x256xf32>
    %141 = arith.mulf %140, %140 : vector<32x256xf32>
    %cst_45 = arith.constant dense<0.000000e+00> : vector<256xf32>
    %142 = vector.multi_reduction <add>, %141, %cst_45 [0] : vector<32x256xf32> to vector<256xf32>
    %143 = vector.shape_cast %142 : vector<256xf32> to vector<1x256xf32>
    %cst_46 = arith.constant 3.200000e+01 : f32
    %144 = vector.broadcast %cst_46 : f32 to vector<1x256xf32>
    %145 = arith.divf %143, %144 : vector<1x256xf32>
    %146 = vector.broadcast %138 : vector<1x256xf32> to vector<32x256xf32>
    %147 = arith.subf %134, %146 : vector<32x256xf32>
    %cst_47 = arith.constant 9.99999997E-7 : f32
    %148 = vector.broadcast %cst_47 : f32 to vector<1x256xf32>
    %149 = arith.addf %145, %148 : vector<1x256xf32>
    %150 = math.rsqrt %149 : vector<1x256xf32>
    %151 = vector.broadcast %150 : vector<1x256xf32> to vector<32x256xf32>
    %152 = arith.mulf %147, %151 : vector<32x256xf32>
    %153 = vector.broadcast %3 : vector<32x1xf32> to vector<32x256xf32>
    %154 = arith.mulf %152, %153 : vector<32x256xf32>
    %155 = vector.broadcast %4 : vector<32x1xf32> to vector<32x256xf32>
    %156 = arith.addf %154, %155 : vector<32x256xf32>
    %cst_48 = arith.constant dense<0.000000e+00> : vector<64x256xf32>
    %157 = tpu.matmul %5, %156, %cst_48 {dimension_numbers = #tpu.dot_dimension_numbers<[1], [0], [0], [1], [0, 0, 1, 1], [], []>} : vector<64x32xf32>, vector<32x256xf32>, vector<64x256xf32> -> vector<64x256xf32>
    %158 = vector.broadcast %6 : vector<64x1xf32> to vector<64x256xf32>
    %159 = arith.addf %157, %158 : vector<64x256xf32>
    %c2_49 = arith.constant 2 : index
    %c0_50 = arith.constant 0 : index
    %c0_51 = arith.constant 0 : index
    %160 = vector.load %arg25[%c2_49, %c0_50, %c0_51] : memref<4x64x256xf32, #tpu.memory_space<vmem>>, vector<1x64x256xf32>
    %161 = vector.shape_cast %160 : vector<1x64x256xf32> to vector<64x256xf32>
    %162 = vector.shape_cast %159 : vector<64x256xf32> to vector<1x64x256xf32>
    tpu.vector_store %arg25[%c2_49, %c0_50, %c0_51], %162 {strides = array<i32>} : memref<4x64x256xf32, #tpu.memory_space<vmem>>, vector<1x64x256xf32>,
    %c0_52 = arith.constant 0 : index
    %c3 = arith.constant 3 : index
    %c0_53 = arith.constant 0 : index
    %c0_54 = arith.constant 0 : index
    %163 = vector.load %arg1[%c0_52, %c3, %c0_53, %c0_54] : memref<1x4x3x256xf32, #tpu.memory_space<vmem>>, vector<1x1x3x256xf32>
    %164 = vector.shape_cast %163 : vector<1x1x3x256xf32> to vector<3x256xf32>
    %165 = vector.extract_strided_slice %0 {offsets = [0, 0], sizes = [32, 1], strides = [1, 1]} : vector<32x3xf32> to vector<32x1xf32>
    %166 = vector.extract_strided_slice %164 {offsets = [0, 0], sizes = [1, 256], strides = [1, 1]} : vector<3x256xf32> to vector<1x256xf32>
    %167 = vector.broadcast %165 : vector<32x1xf32> to vector<32x256xf32>
    %168 = vector.broadcast %166 : vector<1x256xf32> to vector<32x256xf32>
    %169 = arith.mulf %167, %168 : vector<32x256xf32>
    %170 = vector.extract_strided_slice %0 {offsets = [0, 1], sizes = [32, 1], strides = [1, 1]} : vector<32x3xf32> to vector<32x1xf32>
    %171 = vector.extract_strided_slice %164 {offsets = [1, 0], sizes = [1, 256], strides = [1, 1]} : vector<3x256xf32> to vector<1x256xf32>
    %172 = vector.broadcast %170 : vector<32x1xf32> to vector<32x256xf32>
    %173 = vector.broadcast %171 : vector<1x256xf32> to vector<32x256xf32>
    %174 = arith.mulf %172, %173 : vector<32x256xf32>
    %175 = arith.addf %169, %174 : vector<32x256xf32>
    %176 = vector.extract_strided_slice %0 {offsets = [0, 2], sizes = [32, 1], strides = [1, 1]} : vector<32x3xf32> to vector<32x1xf32>
    %177 = vector.extract_strided_slice %164 {offsets = [2, 0], sizes = [1, 256], strides = [1, 1]} : vector<3x256xf32> to vector<1x256xf32>
    %178 = vector.broadcast %176 : vector<32x1xf32> to vector<32x256xf32>
    %179 = vector.broadcast %177 : vector<1x256xf32> to vector<32x256xf32>
    %180 = arith.mulf %178, %179 : vector<32x256xf32>
    %181 = arith.addf %175, %180 : vector<32x256xf32>
    %182 = vector.broadcast %1 : vector<32x1xf32> to vector<32x256xf32>
    %183 = arith.addf %181, %182 : vector<32x256xf32>
    %cst_55 = arith.constant 0.000000e+00 : f32
    %184 = vector.broadcast %cst_55 : f32 to vector<32x256xf32>
    %185 = arith.maximumf %183, %184 : vector<32x256xf32>
    %186 = arith.addf %185, %2 : vector<32x256xf32>
    %cst_56 = arith.constant dense<0.000000e+00> : vector<256xf32>
    %187 = vector.multi_reduction <add>, %186, %cst_56 [0] : vector<32x256xf32> to vector<256xf32>
    %188 = vector.shape_cast %187 : vector<256xf32> to vector<1x256xf32>
    %cst_57 = arith.constant 3.200000e+01 : f32
    %189 = vector.broadcast %cst_57 : f32 to vector<1x256xf32>
    %190 = arith.divf %188, %189 : vector<1x256xf32>
    %191 = vector.broadcast %190 : vector<1x256xf32> to vector<32x256xf32>
    %192 = arith.subf %186, %191 : vector<32x256xf32>
    %193 = arith.mulf %192, %192 : vector<32x256xf32>
    %cst_58 = arith.constant dense<0.000000e+00> : vector<256xf32>
    %194 = vector.multi_reduction <add>, %193, %cst_58 [0] : vector<32x256xf32> to vector<256xf32>
    %195 = vector.shape_cast %194 : vector<256xf32> to vector<1x256xf32>
    %cst_59 = arith.constant 3.200000e+01 : f32
    %196 = vector.broadcast %cst_59 : f32 to vector<1x256xf32>
    %197 = arith.divf %195, %196 : vector<1x256xf32>
    %198 = vector.broadcast %190 : vector<1x256xf32> to vector<32x256xf32>
    %199 = arith.subf %186, %198 : vector<32x256xf32>
    %cst_60 = arith.constant 9.99999997E-7 : f32
    %200 = vector.broadcast %cst_60 : f32 to vector<1x256xf32>
    %201 = arith.addf %197, %200 : vector<1x256xf32>
    %202 = math.rsqrt %201 : vector<1x256xf32>
    %203 = vector.broadcast %202 : vector<1x256xf32> to vector<32x256xf32>
    %204 = arith.mulf %199, %203 : vector<32x256xf32>
    %205 = vector.broadcast %3 : vector<32x1xf32> to vector<32x256xf32>
    %206 = arith.mulf %204, %205 : vector<32x256xf32>
    %207 = vector.broadcast %4 : vector<32x1xf32> to vector<32x256xf32>
    %208 = arith.addf %206, %207 : vector<32x256xf32>
    %cst_61 = arith.constant dense<0.000000e+00> : vector<64x256xf32>
    %209 = tpu.matmul %5, %208, %cst_61 {dimension_numbers = #tpu.dot_dimension_numbers<[1], [0], [0], [1], [0, 0, 1, 1], [], []>} : vector<64x32xf32>, vector<32x256xf32>, vector<64x256xf32> -> vector<64x256xf32>
    %210 = vector.broadcast %6 : vector<64x1xf32> to vector<64x256xf32>
    %211 = arith.addf %209, %210 : vector<64x256xf32>
    %c3_62 = arith.constant 3 : index
    %c0_63 = arith.constant 0 : index
    %c0_64 = arith.constant 0 : index
    %212 = vector.load %arg25[%c3_62, %c0_63, %c0_64] : memref<4x64x256xf32, #tpu.memory_space<vmem>>, vector<1x64x256xf32>
    %213 = vector.shape_cast %212 : vector<1x64x256xf32> to vector<64x256xf32>
    %214 = vector.shape_cast %211 : vector<64x256xf32> to vector<1x64x256xf32>
    tpu.vector_store %arg25[%c3_62, %c0_63, %c0_64], %214 {strides = array<i32>} : memref<4x64x256xf32, #tpu.memory_space<vmem>>, vector<1x64x256xf32>,
    %c0_65 = arith.constant 0 : index
    %c0_66 = arith.constant 0 : index
    %215 = vector.load %arg9[%c0_65, %c0_66] : memref<4x32xf32, #tpu.memory_space<vmem>>, vector<4x32xf32>
    %cst_67 = arith.constant dense<0.000000e+00> : vector<4xf32>
    %216 = vector.multi_reduction <add>, %215, %cst_67 [1] : vector<4x32xf32> to vector<4xf32>
    %217 = vector.shape_cast %216 : vector<4xf32> to vector<4x1xf32>
    %cst_68 = arith.constant 3.200000e+01 : f32
    %218 = vector.broadcast %cst_68 : f32 to vector<4x1xf32>
    %219 = arith.divf %217, %218 : vector<4x1xf32>
    %220 = vector.broadcast %219 : vector<4x1xf32> to vector<4x32xf32>
    %221 = arith.subf %215, %220 : vector<4x32xf32>
    %222 = arith.mulf %221, %221 : vector<4x32xf32>
    %cst_69 = arith.constant dense<0.000000e+00> : vector<4xf32>
    %223 = vector.multi_reduction <add>, %222, %cst_69 [1] : vector<4x32xf32> to vector<4xf32>
    %224 = vector.shape_cast %223 : vector<4xf32> to vector<4x1xf32>
    %cst_70 = arith.constant 3.200000e+01 : f32
    %225 = vector.broadcast %cst_70 : f32 to vector<4x1xf32>
    %226 = arith.divf %224, %225 : vector<4x1xf32>
    %227 = vector.broadcast %219 : vector<4x1xf32> to vector<4x32xf32>
    %228 = arith.subf %215, %227 : vector<4x32xf32>
    %cst_71 = arith.constant 9.99999997E-7 : f32
    %229 = vector.broadcast %cst_71 : f32 to vector<4x1xf32>
    %230 = arith.addf %226, %229 : vector<4x1xf32>
    %231 = math.rsqrt %230 : vector<4x1xf32>
    %232 = vector.broadcast %231 : vector<4x1xf32> to vector<4x32xf32>
    %233 = arith.mulf %228, %232 : vector<4x32xf32>
    %c0_72 = arith.constant 0 : index
    %c0_73 = arith.constant 0 : index
    %234 = vector.load %arg10[%c0_72, %c0_73] : memref<1x32xf32, #tpu.memory_space<vmem>>, vector<1x32xf32>
    %235 = vector.broadcast %234 : vector<1x32xf32> to vector<4x32xf32>
    %236 = arith.mulf %233, %235 : vector<4x32xf32>
    %c0_74 = arith.constant 0 : index
    %c0_75 = arith.constant 0 : index
    %237 = vector.load %arg11[%c0_74, %c0_75] : memref<1x32xf32, #tpu.memory_space<vmem>>, vector<1x32xf32>
    %238 = vector.broadcast %237 : vector<1x32xf32> to vector<4x32xf32>
    %239 = arith.addf %236, %238 : vector<4x32xf32>
    %c0_76 = arith.constant 0 : index
    %c0_77 = arith.constant 0 : index
    %240 = vector.load %arg12[%c0_76, %c0_77] : memref<32x32xf32, #tpu.memory_space<vmem>>, vector<32x32xf32>
    %cst_78 = arith.constant dense<0.000000e+00> : vector<4x32xf32>
    %241 = tpu.matmul %239, %240, %cst_78 {dimension_numbers = #tpu.dot_dimension_numbers<[1], [0], [0], [1], [0, 0, 1, 1], [], []>} : vector<4x32xf32>, vector<32x32xf32>, vector<4x32xf32> -> vector<4x32xf32>
    %c0_79 = arith.constant 0 : index
    %c0_80 = arith.constant 0 : index
    %242 = vector.load %arg13[%c0_79, %c0_80] : memref<1x32xf32, #tpu.memory_space<vmem>>, vector<1x32xf32>
    %243 = vector.broadcast %242 : vector<1x32xf32> to vector<4x32xf32>
    %244 = arith.addf %241, %243 : vector<4x32xf32>
    %cst_81 = arith.constant 0.000000e+00 : f32
    %245 = vector.broadcast %cst_81 : f32 to vector<4x32xf32>
    %cst_82 = arith.constant 0.000000e+00 : f32
    %246 = vector.broadcast %cst_82 : f32 to vector<4x1xf32>
    %c0_83 = arith.constant 0 : index
    %c0_84 = arith.constant 0 : index
    %c0_85 = arith.constant 0 : index
    %247 = vector.load %arg25[%c0_83, %c0_84, %c0_85] : memref<4x64x256xf32, #tpu.memory_space<vmem>>, vector<1x32x256xf32>
    %248 = vector.shape_cast %247 : vector<1x32x256xf32> to vector<32x256xf32>
    %c0_86 = arith.constant 0 : index
    %c32 = arith.constant 32 : index
    %c0_87 = arith.constant 0 : index
    %249 = vector.load %arg25[%c0_86, %c32, %c0_87] : memref<4x64x256xf32, #tpu.memory_space<vmem>>, vector<1x32x256xf32>
    %250 = vector.shape_cast %249 : vector<1x32x256xf32> to vector<32x256xf32>
    %cst_88 = arith.constant dense<0.000000e+00> : vector<4x256xf32>
    %251 = tpu.matmul %244, %248, %cst_88 {dimension_numbers = #tpu.dot_dimension_numbers<[1], [0], [0], [1], [0, 0, 1, 1], [], []>} : vector<4x32xf32>, vector<32x256xf32>, vector<4x256xf32> -> vector<4x256xf32>
    %cst_89 = arith.constant 0.176776692 : f32
    %252 = vector.broadcast %cst_89 : f32 to vector<4x256xf32>
    %253 = arith.mulf %251, %252 : vector<4x256xf32>
    %cst_90 = arith.constant dense<0xFF800000> : vector<256xf32>
    %254 = vector.multi_reduction <maximumf>, %253, %cst_90 [0] : vector<4x256xf32> to vector<256xf32>
    %255 = vector.shape_cast %254 : vector<256xf32> to vector<1x256xf32>
    %256 = vector.broadcast %255 : vector<1x256xf32> to vector<4x256xf32>
    %257 = arith.subf %253, %256 : vector<4x256xf32>
    %258 = math.exp %257 : vector<4x256xf32>
    %cst_91 = arith.constant dense<0.000000e+00> : vector<256xf32>
    %259 = vector.multi_reduction <add>, %258, %cst_91 [0] : vector<4x256xf32> to vector<256xf32>
    %260 = vector.shape_cast %259 : vector<256xf32> to vector<1x256xf32>
    %261 = vector.broadcast %260 : vector<1x256xf32> to vector<4x256xf32>
    %262 = arith.divf %258, %261 : vector<4x256xf32>
    %cst_92 = arith.constant dense<0.000000e+00> : vector<4xf32>
    %263 = vector.multi_reduction <add>, %262, %cst_92 [1] : vector<4x256xf32> to vector<4xf32>
    %264 = vector.shape_cast %263 : vector<4xf32> to vector<4x1xf32>
    %cst_93 = arith.constant dense<0.000000e+00> : vector<4x32xf32>
    %265 = tpu.matmul %262, %250, %cst_93 {dimension_numbers = #tpu.dot_dimension_numbers<[1], [1], [0], [0], [0, 0, 1, 0], [], []>} : vector<4x256xf32>, vector<32x256xf32>, vector<4x32xf32> -> vector<4x32xf32>
    %266 = arith.addf %245, %265 : vector<4x32xf32>
    %267 = arith.addf %246, %264 : vector<4x1xf32>
    %c1_94 = arith.constant 1 : index
    %c0_95 = arith.constant 0 : index
    %c0_96 = arith.constant 0 : index
    %268 = vector.load %arg25[%c1_94, %c0_95, %c0_96] : memref<4x64x256xf32, #tpu.memory_space<vmem>>, vector<1x32x256xf32>
    %269 = vector.shape_cast %268 : vector<1x32x256xf32> to vector<32x256xf32>
    %c1_97 = arith.constant 1 : index
    %c32_98 = arith.constant 32 : index
    %c0_99 = arith.constant 0 : index
    %270 = vector.load %arg25[%c1_97, %c32_98, %c0_99] : memref<4x64x256xf32, #tpu.memory_space<vmem>>, vector<1x32x256xf32>
    %271 = vector.shape_cast %270 : vector<1x32x256xf32> to vector<32x256xf32>
    %cst_100 = arith.constant dense<0.000000e+00> : vector<4x256xf32>
    %272 = tpu.matmul %244, %269, %cst_100 {dimension_numbers = #tpu.dot_dimension_numbers<[1], [0], [0], [1], [0, 0, 1, 1], [], []>} : vector<4x32xf32>, vector<32x256xf32>, vector<4x256xf32> -> vector<4x256xf32>
    %cst_101 = arith.constant 0.176776692 : f32
    %273 = vector.broadcast %cst_101 : f32 to vector<4x256xf32>
    %274 = arith.mulf %272, %273 : vector<4x256xf32>
    %cst_102 = arith.constant dense<0xFF800000> : vector<256xf32>
    %275 = vector.multi_reduction <maximumf>, %274, %cst_102 [0] : vector<4x256xf32> to vector<256xf32>
    %276 = vector.shape_cast %275 : vector<256xf32> to vector<1x256xf32>
    %277 = vector.broadcast %276 : vector<1x256xf32> to vector<4x256xf32>
    %278 = arith.subf %274, %277 : vector<4x256xf32>
    %279 = math.exp %278 : vector<4x256xf32>
    %cst_103 = arith.constant dense<0.000000e+00> : vector<256xf32>
    %280 = vector.multi_reduction <add>, %279, %cst_103 [0] : vector<4x256xf32> to vector<256xf32>
    %281 = vector.shape_cast %280 : vector<256xf32> to vector<1x256xf32>
    %282 = vector.broadcast %281 : vector<1x256xf32> to vector<4x256xf32>
    %283 = arith.divf %279, %282 : vector<4x256xf32>
    %cst_104 = arith.constant dense<0.000000e+00> : vector<4xf32>
    %284 = vector.multi_reduction <add>, %283, %cst_104 [1] : vector<4x256xf32> to vector<4xf32>
    %285 = vector.shape_cast %284 : vector<4xf32> to vector<4x1xf32>
    %cst_105 = arith.constant dense<0.000000e+00> : vector<4x32xf32>
    %286 = tpu.matmul %283, %271, %cst_105 {dimension_numbers = #tpu.dot_dimension_numbers<[1], [1], [0], [0], [0, 0, 1, 0], [], []>} : vector<4x256xf32>, vector<32x256xf32>, vector<4x32xf32> -> vector<4x32xf32>
    %287 = arith.addf %266, %286 : vector<4x32xf32>
    %288 = arith.addf %267, %285 : vector<4x1xf32>
    %c2_106 = arith.constant 2 : index
    %c0_107 = arith.constant 0 : index
    %c0_108 = arith.constant 0 : index
    %289 = vector.load %arg25[%c2_106, %c0_107, %c0_108] : memref<4x64x256xf32, #tpu.memory_space<vmem>>, vector<1x32x256xf32>
    %290 = vector.shape_cast %289 : vector<1x32x256xf32> to vector<32x256xf32>
    %c2_109 = arith.constant 2 : index
    %c32_110 = arith.constant 32 : index
    %c0_111 = arith.constant 0 : index
    %291 = vector.load %arg25[%c2_109, %c32_110, %c0_111] : memref<4x64x256xf32, #tpu.memory_space<vmem>>, vector<1x32x256xf32>
    %292 = vector.shape_cast %291 : vector<1x32x256xf32> to vector<32x256xf32>
    %cst_112 = arith.constant dense<0.000000e+00> : vector<4x256xf32>
    %293 = tpu.matmul %244, %290, %cst_112 {dimension_numbers = #tpu.dot_dimension_numbers<[1], [0], [0], [1], [0, 0, 1, 1], [], []>} : vector<4x32xf32>, vector<32x256xf32>, vector<4x256xf32> -> vector<4x256xf32>
    %cst_113 = arith.constant 0.176776692 : f32
    %294 = vector.broadcast %cst_113 : f32 to vector<4x256xf32>
    %295 = arith.mulf %293, %294 : vector<4x256xf32>
    %cst_114 = arith.constant dense<0xFF800000> : vector<256xf32>
    %296 = vector.multi_reduction <maximumf>, %295, %cst_114 [0] : vector<4x256xf32> to vector<256xf32>
    %297 = vector.shape_cast %296 : vector<256xf32> to vector<1x256xf32>
    %298 = vector.broadcast %297 : vector<1x256xf32> to vector<4x256xf32>
    %299 = arith.subf %295, %298 : vector<4x256xf32>
    %300 = math.exp %299 : vector<4x256xf32>
    %cst_115 = arith.constant dense<0.000000e+00> : vector<256xf32>
    %301 = vector.multi_reduction <add>, %300, %cst_115 [0] : vector<4x256xf32> to vector<256xf32>
    %302 = vector.shape_cast %301 : vector<256xf32> to vector<1x256xf32>
    %303 = vector.broadcast %302 : vector<1x256xf32> to vector<4x256xf32>
    %304 = arith.divf %300, %303 : vector<4x256xf32>
    %cst_116 = arith.constant dense<0.000000e+00> : vector<4xf32>
    %305 = vector.multi_reduction <add>, %304, %cst_116 [1] : vector<4x256xf32> to vector<4xf32>
    %306 = vector.shape_cast %305 : vector<4xf32> to vector<4x1xf32>
    %cst_117 = arith.constant dense<0.000000e+00> : vector<4x32xf32>
    %307 = tpu.matmul %304, %292, %cst_117 {dimension_numbers = #tpu.dot_dimension_numbers<[1], [1], [0], [0], [0, 0, 1, 0], [], []>} : vector<4x256xf32>, vector<32x256xf32>, vector<4x32xf32> -> vector<4x32xf32>
    %308 = arith.addf %287, %307 : vector<4x32xf32>
    %309 = arith.addf %288, %306 : vector<4x1xf32>
    %c3_118 = arith.constant 3 : index
    %c0_119 = arith.constant 0 : index
    %c0_120 = arith.constant 0 : index
    %310 = vector.load %arg25[%c3_118, %c0_119, %c0_120] : memref<4x64x256xf32, #tpu.memory_space<vmem>>, vector<1x32x256xf32>
    %311 = vector.shape_cast %310 : vector<1x32x256xf32> to vector<32x256xf32>
    %c3_121 = arith.constant 3 : index
    %c32_122 = arith.constant 32 : index
    %c0_123 = arith.constant 0 : index
    %312 = vector.load %arg25[%c3_121, %c32_122, %c0_123] : memref<4x64x256xf32, #tpu.memory_space<vmem>>, vector<1x32x256xf32>
    %313 = vector.shape_cast %312 : vector<1x32x256xf32> to vector<32x256xf32>
    %cst_124 = arith.constant dense<0.000000e+00> : vector<4x256xf32>
    %314 = tpu.matmul %244, %311, %cst_124 {dimension_numbers = #tpu.dot_dimension_numbers<[1], [0], [0], [1], [0, 0, 1, 1], [], []>} : vector<4x32xf32>, vector<32x256xf32>, vector<4x256xf32> -> vector<4x256xf32>
    %cst_125 = arith.constant 0.176776692 : f32
    %315 = vector.broadcast %cst_125 : f32 to vector<4x256xf32>
    %316 = arith.mulf %314, %315 : vector<4x256xf32>
    %cst_126 = arith.constant dense<0xFF800000> : vector<256xf32>
    %317 = vector.multi_reduction <maximumf>, %316, %cst_126 [0] : vector<4x256xf32> to vector<256xf32>
    %318 = vector.shape_cast %317 : vector<256xf32> to vector<1x256xf32>
    %319 = vector.broadcast %318 : vector<1x256xf32> to vector<4x256xf32>
    %320 = arith.subf %316, %319 : vector<4x256xf32>
    %321 = math.exp %320 : vector<4x256xf32>
    %cst_127 = arith.constant dense<0.000000e+00> : vector<256xf32>
    %322 = vector.multi_reduction <add>, %321, %cst_127 [0] : vector<4x256xf32> to vector<256xf32>
    %323 = vector.shape_cast %322 : vector<256xf32> to vector<1x256xf32>
    %324 = vector.broadcast %323 : vector<1x256xf32> to vector<4x256xf32>
    %325 = arith.divf %321, %324 : vector<4x256xf32>
    %cst_128 = arith.constant dense<0.000000e+00> : vector<4xf32>
    %326 = vector.multi_reduction <add>, %325, %cst_128 [1] : vector<4x256xf32> to vector<4xf32>
    %327 = vector.shape_cast %326 : vector<4xf32> to vector<4x1xf32>
    %cst_129 = arith.constant dense<0.000000e+00> : vector<4x32xf32>
    %328 = tpu.matmul %325, %313, %cst_129 {dimension_numbers = #tpu.dot_dimension_numbers<[1], [1], [0], [0], [0, 0, 1, 0], [], []>} : vector<4x256xf32>, vector<32x256xf32>, vector<4x32xf32> -> vector<4x32xf32>
    %329 = arith.addf %308, %328 : vector<4x32xf32>
    %330 = arith.addf %309, %327 : vector<4x1xf32>
    %cst_130 = arith.constant 9.99999993E-9 : f32
    %331 = vector.broadcast %cst_130 : f32 to vector<4x1xf32>
    %332 = arith.addf %330, %331 : vector<4x1xf32>
    %333 = vector.broadcast %332 : vector<4x1xf32> to vector<4x32xf32>
    %334 = arith.divf %329, %333 : vector<4x32xf32>
    %cst_131 = arith.constant dense<0.000000e+00> : vector<4xf32>
    %335 = vector.multi_reduction <add>, %334, %cst_131 [1] : vector<4x32xf32> to vector<4xf32>
    %336 = vector.shape_cast %335 : vector<4xf32> to vector<4x1xf32>
    %cst_132 = arith.constant 3.200000e+01 : f32
    %337 = vector.broadcast %cst_132 : f32 to vector<4x1xf32>
    %338 = arith.divf %336, %337 : vector<4x1xf32>
    %339 = vector.broadcast %338 : vector<4x1xf32> to vector<4x32xf32>
    %340 = arith.subf %334, %339 : vector<4x32xf32>
    %341 = arith.mulf %340, %340 : vector<4x32xf32>
    %cst_133 = arith.constant dense<0.000000e+00> : vector<4xf32>
    %342 = vector.multi_reduction <add>, %341, %cst_133 [1] : vector<4x32xf32> to vector<4xf32>
    %343 = vector.shape_cast %342 : vector<4xf32> to vector<4x1xf32>
    %cst_134 = arith.constant 3.200000e+01 : f32
    %344 = vector.broadcast %cst_134 : f32 to vector<4x1xf32>
    %345 = arith.divf %343, %344 : vector<4x1xf32>
    %346 = vector.broadcast %338 : vector<4x1xf32> to vector<4x32xf32>
    %347 = arith.subf %334, %346 : vector<4x32xf32>
    %cst_135 = arith.constant 9.99999997E-7 : f32
    %348 = vector.broadcast %cst_135 : f32 to vector<4x1xf32>
    %349 = arith.addf %345, %348 : vector<4x1xf32>
    %350 = math.rsqrt %349 : vector<4x1xf32>
    %351 = vector.broadcast %350 : vector<4x1xf32> to vector<4x32xf32>
    %352 = arith.mulf %347, %351 : vector<4x32xf32>
    %c0_136 = arith.constant 0 : index
    %c0_137 = arith.constant 0 : index
    %353 = vector.load %arg10[%c0_136, %c0_137] : memref<1x32xf32, #tpu.memory_space<vmem>>, vector<1x32xf32>
    %354 = vector.broadcast %353 : vector<1x32xf32> to vector<4x32xf32>
    %355 = arith.mulf %352, %354 : vector<4x32xf32>
    %c0_138 = arith.constant 0 : index
    %c0_139 = arith.constant 0 : index
    %356 = vector.load %arg11[%c0_138, %c0_139] : memref<1x32xf32, #tpu.memory_space<vmem>>, vector<1x32xf32>
    %357 = vector.broadcast %356 : vector<1x32xf32> to vector<4x32xf32>
    %358 = arith.addf %355, %357 : vector<4x32xf32>
    %c0_140 = arith.constant 0 : index
    %c0_141 = arith.constant 0 : index
    %359 = vector.load %arg12[%c0_140, %c0_141] : memref<32x32xf32, #tpu.memory_space<vmem>>, vector<32x32xf32>
    %cst_142 = arith.constant dense<0.000000e+00> : vector<4x32xf32>
    %360 = tpu.matmul %358, %359, %cst_142 {dimension_numbers = #tpu.dot_dimension_numbers<[1], [0], [0], [1], [0, 0, 1, 1], [], []>} : vector<4x32xf32>, vector<32x32xf32>, vector<4x32xf32> -> vector<4x32xf32>
    %c0_143 = arith.constant 0 : index
    %c0_144 = arith.constant 0 : index
    %361 = vector.load %arg13[%c0_143, %c0_144] : memref<1x32xf32, #tpu.memory_space<vmem>>, vector<1x32xf32>
    %362 = vector.broadcast %361 : vector<1x32xf32> to vector<4x32xf32>
    %363 = arith.addf %360, %362 : vector<4x32xf32>
    %c0_145 = arith.constant 0 : index
    %c0_146 = arith.constant 0 : index
    %364 = vector.load %arg15[%c0_145, %c0_146] : memref<64x32xf32, #tpu.memory_space<vmem>>, vector<64x32xf32>
    %c0_147 = arith.constant 0 : index
    %c0_148 = arith.constant 0 : index
    %365 = vector.load %arg14[%c0_147, %c0_148] : memref<32x256xf32, #tpu.memory_space<vmem>>, vector<32x256xf32>
    %cst_149 = arith.constant dense<0.000000e+00> : vector<64x256xf32>
    %366 = tpu.matmul %364, %365, %cst_149 {dimension_numbers = #tpu.dot_dimension_numbers<[1], [0], [0], [1], [0, 0, 1, 1], [], []>} : vector<64x32xf32>, vector<32x256xf32>, vector<64x256xf32> -> vector<64x256xf32>
    %c0_150 = arith.constant 0 : index
    %c0_151 = arith.constant 0 : index
    %367 = vector.load %arg16[%c0_150, %c0_151] : memref<64x1xf32, #tpu.memory_space<vmem>>, vector<64x1xf32>
    %368 = vector.broadcast %367 : vector<64x1xf32> to vector<64x256xf32>
    %369 = arith.addf %366, %368 : vector<64x256xf32>
    %c0_152 = arith.constant 0 : index
    %c0_153 = arith.constant 0 : index
    %370 = vector.load %arg17[%c0_152, %c0_153] : memref<17x64xf32, #tpu.memory_space<vmem>>, vector<17x64xf32>
    %c0_154 = arith.constant 0 : index
    %c0_155 = arith.constant 0 : index
    %371 = vector.load %arg18[%c0_154, %c0_155] : memref<17x1xf32, #tpu.memory_space<vmem>>, vector<17x1xf32>
    %c0_156 = arith.constant 0 : index
    %c0_157 = arith.constant 0 : index
    %372 = vector.load %arg19[%c0_156, %c0_157] : memref<3x16xf32, #tpu.memory_space<vmem>>, vector<3x16xf32>
    %c0_158 = arith.constant 0 : index
    %c0_159 = arith.constant 0 : index
    %373 = vector.load %arg20[%c0_158, %c0_159] : memref<3x1xf32, #tpu.memory_space<vmem>>, vector<3x1xf32>
    %c0_160 = arith.constant 0 : index
    %c0_161 = arith.constant 0 : index
    %c0_162 = arith.constant 0 : index
    %374 = vector.load %arg25[%c0_160, %c0_161, %c0_162] : memref<4x64x256xf32, #tpu.memory_space<vmem>>, vector<1x32x256xf32>
    %375 = vector.shape_cast %374 : vector<1x32x256xf32> to vector<32x256xf32>
    %c0_163 = arith.constant 0 : index
    %c32_164 = arith.constant 32 : index
    %c0_165 = arith.constant 0 : index
    %376 = vector.load %arg25[%c0_163, %c32_164, %c0_165] : memref<4x64x256xf32, #tpu.memory_space<vmem>>, vector<1x32x256xf32>
    %377 = vector.shape_cast %376 : vector<1x32x256xf32> to vector<32x256xf32>
    %cst_166 = arith.constant dense<0.000000e+00> : vector<4x256xf32>
    %378 = tpu.matmul %363, %375, %cst_166 {dimension_numbers = #tpu.dot_dimension_numbers<[1], [0], [0], [1], [0, 0, 1, 1], [], []>} : vector<4x32xf32>, vector<32x256xf32>, vector<4x256xf32> -> vector<4x256xf32>
    %cst_167 = arith.constant 0.176776692 : f32
    %379 = vector.broadcast %cst_167 : f32 to vector<4x256xf32>
    %380 = arith.mulf %378, %379 : vector<4x256xf32>
    %cst_168 = arith.constant dense<0xFF800000> : vector<256xf32>
    %381 = vector.multi_reduction <maximumf>, %380, %cst_168 [0] : vector<4x256xf32> to vector<256xf32>
    %382 = vector.shape_cast %381 : vector<256xf32> to vector<1x256xf32>
    %383 = vector.broadcast %382 : vector<1x256xf32> to vector<4x256xf32>
    %384 = arith.subf %380, %383 : vector<4x256xf32>
    %385 = math.exp %384 : vector<4x256xf32>
    %cst_169 = arith.constant dense<0.000000e+00> : vector<256xf32>
    %386 = vector.multi_reduction <add>, %385, %cst_169 [0] : vector<4x256xf32> to vector<256xf32>
    %387 = vector.shape_cast %386 : vector<256xf32> to vector<1x256xf32>
    %388 = vector.broadcast %387 : vector<1x256xf32> to vector<4x256xf32>
    %389 = arith.divf %385, %388 : vector<4x256xf32>
    %cst_170 = arith.constant dense<0.000000e+00> : vector<4xf32>
    %390 = vector.multi_reduction <add>, %389, %cst_170 [1] : vector<4x256xf32> to vector<4xf32>
    %391 = vector.shape_cast %390 : vector<4xf32> to vector<4x1xf32>
    %cst_171 = arith.constant dense<0.000000e+00> : vector<4x32xf32>
    %392 = tpu.matmul %389, %377, %cst_171 {dimension_numbers = #tpu.dot_dimension_numbers<[1], [1], [0], [0], [0, 0, 1, 0], [], []>} : vector<4x256xf32>, vector<32x256xf32>, vector<4x32xf32> -> vector<4x32xf32>
    %c0_172 = arith.constant 0 : index
    %c0_173 = arith.constant 0 : index
    %c0_174 = arith.constant 0 : index
    %c0_175 = arith.constant 0 : index
    %393 = vector.load %arg22[%c0_172, %c0_173, %c0_174, %c0_175] : memref<1x4x4x256xf32, #tpu.memory_space<vmem>>, vector<1x1x4x256xf32>
    %394 = vector.shape_cast %393 : vector<1x1x4x256xf32> to vector<4x256xf32>
    %395 = vector.shape_cast %389 : vector<4x256xf32> to vector<1x1x4x256xf32>
    tpu.vector_store %arg22[%c0_172, %c0_173, %c0_174, %c0_175], %395 {strides = array<i32>} : memref<1x4x4x256xf32, #tpu.memory_space<vmem>>, vector<1x1x4x256xf32>,
    %cst_176 = arith.constant 9.99999993E-9 : f32
    %396 = vector.broadcast %cst_176 : f32 to vector<4x1xf32>
    %397 = arith.addf %391, %396 : vector<4x1xf32>
    %398 = vector.broadcast %397 : vector<4x1xf32> to vector<4x32xf32>
    %399 = arith.divf %392, %398 : vector<4x32xf32>
    %c0_177 = arith.constant 0 : index
    %c0_178 = arith.constant 0 : index
    %c0_179 = arith.constant 0 : index
    %c0_180 = arith.constant 0 : index
    %400 = vector.load %arg21[%c0_177, %c0_178, %c0_179, %c0_180] : memref<1x4x4x32xf32, #tpu.memory_space<vmem>>, vector<1x1x4x32xf32>
    %401 = vector.shape_cast %400 : vector<1x1x4x32xf32> to vector<4x32xf32>
    %402 = vector.shape_cast %399 : vector<4x32xf32> to vector<1x1x4x32xf32>
    tpu.vector_store %arg21[%c0_177, %c0_178, %c0_179, %c0_180], %402 {strides = array<i32>} : memref<1x4x4x32xf32, #tpu.memory_space<vmem>>, vector<1x1x4x32xf32>,
    %cst_181 = arith.constant dense<0.000000e+00> : vector<64x4xf32>
    %403 = tpu.matmul %364, %399, %cst_181 {dimension_numbers = #tpu.dot_dimension_numbers<[1], [1], [0], [0], [0, 0, 1, 0], [], []>} : vector<64x32xf32>, vector<4x32xf32>, vector<64x4xf32> -> vector<64x4xf32>
    %404 = vector.extract_strided_slice %403 {offsets = [0, 0], sizes = [64, 1], strides = [1, 1]} : vector<64x4xf32> to vector<64x1xf32>
    %405 = vector.broadcast %404 : vector<64x1xf32> to vector<64x256xf32>
    %406 = arith.addf %369, %405 : vector<64x256xf32>
    %cst_182 = arith.constant 0.000000e+00 : f32
    %407 = vector.broadcast %cst_182 : f32 to vector<64x256xf32>
    %408 = arith.maximumf %406, %407 : vector<64x256xf32>
    %cst_183 = arith.constant dense<0.000000e+00> : vector<17x256xf32>
    %409 = tpu.matmul %370, %408, %cst_183 {dimension_numbers = #tpu.dot_dimension_numbers<[1], [0], [0], [1], [0, 0, 1, 1], [], []>} : vector<17x64xf32>, vector<64x256xf32>, vector<17x256xf32> -> vector<17x256xf32>
    %410 = vector.broadcast %371 : vector<17x1xf32> to vector<17x256xf32>
    %411 = arith.addf %409, %410 : vector<17x256xf32>
    %412 = vector.extract_strided_slice %411 {offsets = [0, 0], sizes = [16, 256], strides = [1, 1]} : vector<17x256xf32> to vector<16x256xf32>
    %413 = vector.extract_strided_slice %411 {offsets = [16, 0], sizes = [1, 256], strides = [1, 1]} : vector<17x256xf32> to vector<1x256xf32>
    %414 = vector.extract_strided_slice %403 {offsets = [0, 1], sizes = [64, 1], strides = [1, 1]} : vector<64x4xf32> to vector<64x1xf32>
    %415 = vector.broadcast %414 : vector<64x1xf32> to vector<64x256xf32>
    %416 = arith.addf %369, %415 : vector<64x256xf32>
    %cst_184 = arith.constant 0.000000e+00 : f32
    %417 = vector.broadcast %cst_184 : f32 to vector<64x256xf32>
    %418 = arith.maximumf %416, %417 : vector<64x256xf32>
    %cst_185 = arith.constant dense<0.000000e+00> : vector<17x256xf32>
    %419 = tpu.matmul %370, %418, %cst_185 {dimension_numbers = #tpu.dot_dimension_numbers<[1], [0], [0], [1], [0, 0, 1, 1], [], []>} : vector<17x64xf32>, vector<64x256xf32>, vector<17x256xf32> -> vector<17x256xf32>
    %420 = vector.broadcast %371 : vector<17x1xf32> to vector<17x256xf32>
    %421 = arith.addf %419, %420 : vector<17x256xf32>
    %422 = vector.extract_strided_slice %421 {offsets = [0, 0], sizes = [16, 256], strides = [1, 1]} : vector<17x256xf32> to vector<16x256xf32>
    %423 = vector.extract_strided_slice %421 {offsets = [16, 0], sizes = [1, 256], strides = [1, 1]} : vector<17x256xf32> to vector<1x256xf32>
    %424 = vector.extract_strided_slice %403 {offsets = [0, 2], sizes = [64, 1], strides = [1, 1]} : vector<64x4xf32> to vector<64x1xf32>
    %425 = vector.broadcast %424 : vector<64x1xf32> to vector<64x256xf32>
    %426 = arith.addf %369, %425 : vector<64x256xf32>
    %cst_186 = arith.constant 0.000000e+00 : f32
    %427 = vector.broadcast %cst_186 : f32 to vector<64x256xf32>
    %428 = arith.maximumf %426, %427 : vector<64x256xf32>
    %cst_187 = arith.constant dense<0.000000e+00> : vector<17x256xf32>
    %429 = tpu.matmul %370, %428, %cst_187 {dimension_numbers = #tpu.dot_dimension_numbers<[1], [0], [0], [1], [0, 0, 1, 1], [], []>} : vector<17x64xf32>, vector<64x256xf32>, vector<17x256xf32> -> vector<17x256xf32>
    %430 = vector.broadcast %371 : vector<17x1xf32> to vector<17x256xf32>
    %431 = arith.addf %429, %430 : vector<17x256xf32>
    %432 = vector.extract_strided_slice %431 {offsets = [0, 0], sizes = [16, 256], strides = [1, 1]} : vector<17x256xf32> to vector<16x256xf32>
    %433 = vector.extract_strided_slice %431 {offsets = [16, 0], sizes = [1, 256], strides = [1, 1]} : vector<17x256xf32> to vector<1x256xf32>
    %434 = vector.extract_strided_slice %403 {offsets = [0, 3], sizes = [64, 1], strides = [1, 1]} : vector<64x4xf32> to vector<64x1xf32>
    %435 = vector.broadcast %434 : vector<64x1xf32> to vector<64x256xf32>
    %436 = arith.addf %369, %435 : vector<64x256xf32>
    %cst_188 = arith.constant 0.000000e+00 : f32
    %437 = vector.broadcast %cst_188 : f32 to vector<64x256xf32>
    %438 = arith.maximumf %436, %437 : vector<64x256xf32>
    %cst_189 = arith.constant dense<0.000000e+00> : vector<17x256xf32>
    %439 = tpu.matmul %370, %438, %cst_189 {dimension_numbers = #tpu.dot_dimension_numbers<[1], [0], [0], [1], [0, 0, 1, 1], [], []>} : vector<17x64xf32>, vector<64x256xf32>, vector<17x256xf32> -> vector<17x256xf32>
    %440 = vector.broadcast %371 : vector<17x1xf32> to vector<17x256xf32>
    %441 = arith.addf %439, %440 : vector<17x256xf32>
    %442 = vector.extract_strided_slice %441 {offsets = [0, 0], sizes = [16, 256], strides = [1, 1]} : vector<17x256xf32> to vector<16x256xf32>
    %443 = vector.extract_strided_slice %441 {offsets = [16, 0], sizes = [1, 256], strides = [1, 1]} : vector<17x256xf32> to vector<1x256xf32>
    %444 = tpu.concatenate %413, %423, %433, %443 in 0 : vector<1x256xf32>, vector<1x256xf32>, vector<1x256xf32>, vector<1x256xf32> -> vector<4x256xf32>
    %c0_190 = arith.constant 0 : index
    %c0_191 = arith.constant 0 : index
    %c0_192 = arith.constant 0 : index
    %c0_193 = arith.constant 0 : index
    %445 = vector.load %arg24[%c0_190, %c0_191, %c0_192, %c0_193] : memref<1x4x4x256xf32, #tpu.memory_space<vmem>>, vector<1x1x4x256xf32>
    %446 = vector.shape_cast %445 : vector<1x1x4x256xf32> to vector<4x256xf32>
    %447 = vector.shape_cast %444 : vector<4x256xf32> to vector<1x1x4x256xf32>
    tpu.vector_store %arg24[%c0_190, %c0_191, %c0_192, %c0_193], %447 {strides = array<i32>} : memref<1x4x4x256xf32, #tpu.memory_space<vmem>>, vector<1x1x4x256xf32>,
    %cst_194 = arith.constant dense<0xFF800000> : vector<256xf32>
    %448 = vector.multi_reduction <maximumf>, %444, %cst_194 [0] : vector<4x256xf32> to vector<256xf32>
    %449 = vector.shape_cast %448 : vector<256xf32> to vector<1x256xf32>
    %450 = vector.broadcast %449 : vector<1x256xf32> to vector<4x256xf32>
    %451 = arith.subf %444, %450 : vector<4x256xf32>
    %452 = math.exp %451 : vector<4x256xf32>
    %cst_195 = arith.constant dense<0.000000e+00> : vector<256xf32>
    %453 = vector.multi_reduction <add>, %452, %cst_195 [0] : vector<4x256xf32> to vector<256xf32>
    %454 = vector.shape_cast %453 : vector<256xf32> to vector<1x256xf32>
    %455 = vector.broadcast %454 : vector<1x256xf32> to vector<4x256xf32>
    %456 = arith.divf %452, %455 : vector<4x256xf32>
    %457 = vector.extract_strided_slice %456 {offsets = [0, 0], sizes = [1, 256], strides = [1, 1]} : vector<4x256xf32> to vector<1x256xf32>
    %458 = vector.broadcast %457 : vector<1x256xf32> to vector<16x256xf32>
    %459 = arith.mulf %458, %412 : vector<16x256xf32>
    %460 = vector.extract_strided_slice %456 {offsets = [1, 0], sizes = [1, 256], strides = [1, 1]} : vector<4x256xf32> to vector<1x256xf32>
    %461 = vector.broadcast %460 : vector<1x256xf32> to vector<16x256xf32>
    %462 = arith.mulf %461, %422 : vector<16x256xf32>
    %463 = arith.addf %459, %462 : vector<16x256xf32>
    %464 = vector.extract_strided_slice %456 {offsets = [2, 0], sizes = [1, 256], strides = [1, 1]} : vector<4x256xf32> to vector<1x256xf32>
    %465 = vector.broadcast %464 : vector<1x256xf32> to vector<16x256xf32>
    %466 = arith.mulf %465, %432 : vector<16x256xf32>
    %467 = arith.addf %463, %466 : vector<16x256xf32>
    %468 = vector.extract_strided_slice %456 {offsets = [3, 0], sizes = [1, 256], strides = [1, 1]} : vector<4x256xf32> to vector<1x256xf32>
    %469 = vector.broadcast %468 : vector<1x256xf32> to vector<16x256xf32>
    %470 = arith.mulf %469, %442 : vector<16x256xf32>
    %471 = arith.addf %467, %470 : vector<16x256xf32>
    %cst_196 = arith.constant dense<0.000000e+00> : vector<3x256xf32>
    %472 = tpu.matmul %372, %471, %cst_196 {dimension_numbers = #tpu.dot_dimension_numbers<[1], [0], [0], [1], [0, 0, 1, 1], [], []>} : vector<3x16xf32>, vector<16x256xf32>, vector<3x256xf32> -> vector<3x256xf32>
    %473 = vector.broadcast %373 : vector<3x1xf32> to vector<3x256xf32>
    %474 = arith.addf %472, %473 : vector<3x256xf32>
    %c0_197 = arith.constant 0 : index
    %c0_198 = arith.constant 0 : index
    %c0_199 = arith.constant 0 : index
    %c0_200 = arith.constant 0 : index
    %475 = vector.load %arg23[%c0_197, %c0_198, %c0_199, %c0_200] : memref<1x4x3x256xf32, #tpu.memory_space<vmem>>, vector<1x1x3x256xf32>
    %476 = vector.shape_cast %475 : vector<1x1x3x256xf32> to vector<3x256xf32>
    %477 = vector.shape_cast %474 : vector<3x256xf32> to vector<1x1x3x256xf32>
    tpu.vector_store %arg23[%c0_197, %c0_198, %c0_199, %c0_200], %477 {strides = array<i32>} : memref<1x4x3x256xf32, #tpu.memory_space<vmem>>, vector<1x1x3x256xf32>,
    %c1_201 = arith.constant 1 : index
    %c0_202 = arith.constant 0 : index
    %c0_203 = arith.constant 0 : index
    %478 = vector.load %arg25[%c1_201, %c0_202, %c0_203] : memref<4x64x256xf32, #tpu.memory_space<vmem>>, vector<1x32x256xf32>
    %479 = vector.shape_cast %478 : vector<1x32x256xf32> to vector<32x256xf32>
    %c1_204 = arith.constant 1 : index
    %c32_205 = arith.constant 32 : index
    %c0_206 = arith.constant 0 : index
    %480 = vector.load %arg25[%c1_204, %c32_205, %c0_206] : memref<4x64x256xf32, #tpu.memory_space<vmem>>, vector<1x32x256xf32>
    %481 = vector.shape_cast %480 : vector<1x32x256xf32> to vector<32x256xf32>
    %cst_207 = arith.constant dense<0.000000e+00> : vector<4x256xf32>
    %482 = tpu.matmul %363, %479, %cst_207 {dimension_numbers = #tpu.dot_dimension_numbers<[1], [0], [0], [1], [0, 0, 1, 1], [], []>} : vector<4x32xf32>, vector<32x256xf32>, vector<4x256xf32> -> vector<4x256xf32>
    %cst_208 = arith.constant 0.176776692 : f32
    %483 = vector.broadcast %cst_208 : f32 to vector<4x256xf32>
    %484 = arith.mulf %482, %483 : vector<4x256xf32>
    %cst_209 = arith.constant dense<0xFF800000> : vector<256xf32>
    %485 = vector.multi_reduction <maximumf>, %484, %cst_209 [0] : vector<4x256xf32> to vector<256xf32>
    %486 = vector.shape_cast %485 : vector<256xf32> to vector<1x256xf32>
    %487 = vector.broadcast %486 : vector<1x256xf32> to vector<4x256xf32>
    %488 = arith.subf %484, %487 : vector<4x256xf32>
    %489 = math.exp %488 : vector<4x256xf32>
    %cst_210 = arith.constant dense<0.000000e+00> : vector<256xf32>
    %490 = vector.multi_reduction <add>, %489, %cst_210 [0] : vector<4x256xf32> to vector<256xf32>
    %491 = vector.shape_cast %490 : vector<256xf32> to vector<1x256xf32>
    %492 = vector.broadcast %491 : vector<1x256xf32> to vector<4x256xf32>
    %493 = arith.divf %489, %492 : vector<4x256xf32>
    %cst_211 = arith.constant dense<0.000000e+00> : vector<4xf32>
    %494 = vector.multi_reduction <add>, %493, %cst_211 [1] : vector<4x256xf32> to vector<4xf32>
    %495 = vector.shape_cast %494 : vector<4xf32> to vector<4x1xf32>
    %cst_212 = arith.constant dense<0.000000e+00> : vector<4x32xf32>
    %496 = tpu.matmul %493, %481, %cst_212 {dimension_numbers = #tpu.dot_dimension_numbers<[1], [1], [0], [0], [0, 0, 1, 0], [], []>} : vector<4x256xf32>, vector<32x256xf32>, vector<4x32xf32> -> vector<4x32xf32>
    %c0_213 = arith.constant 0 : index
    %c1_214 = arith.constant 1 : index
    %c0_215 = arith.constant 0 : index
    %c0_216 = arith.constant 0 : index
    %497 = vector.load %arg22[%c0_213, %c1_214, %c0_215, %c0_216] : memref<1x4x4x256xf32, #tpu.memory_space<vmem>>, vector<1x1x4x256xf32>
    %498 = vector.shape_cast %497 : vector<1x1x4x256xf32> to vector<4x256xf32>
    %499 = vector.shape_cast %493 : vector<4x256xf32> to vector<1x1x4x256xf32>
    tpu.vector_store %arg22[%c0_213, %c1_214, %c0_215, %c0_216], %499 {strides = array<i32>} : memref<1x4x4x256xf32, #tpu.memory_space<vmem>>, vector<1x1x4x256xf32>,
    %cst_217 = arith.constant 9.99999993E-9 : f32
    %500 = vector.broadcast %cst_217 : f32 to vector<4x1xf32>
    %501 = arith.addf %495, %500 : vector<4x1xf32>
    %502 = vector.broadcast %501 : vector<4x1xf32> to vector<4x32xf32>
    %503 = arith.divf %496, %502 : vector<4x32xf32>
    %c0_218 = arith.constant 0 : index
    %c1_219 = arith.constant 1 : index
    %c0_220 = arith.constant 0 : index
    %c0_221 = arith.constant 0 : index
    %504 = vector.load %arg21[%c0_218, %c1_219, %c0_220, %c0_221] : memref<1x4x4x32xf32, #tpu.memory_space<vmem>>, vector<1x1x4x32xf32>
    %505 = vector.shape_cast %504 : vector<1x1x4x32xf32> to vector<4x32xf32>
    %506 = vector.shape_cast %503 : vector<4x32xf32> to vector<1x1x4x32xf32>
    tpu.vector_store %arg21[%c0_218, %c1_219, %c0_220, %c0_221], %506 {strides = array<i32>} : memref<1x4x4x32xf32, #tpu.memory_space<vmem>>, vector<1x1x4x32xf32>,
    %cst_222 = arith.constant dense<0.000000e+00> : vector<64x4xf32>
    %507 = tpu.matmul %364, %503, %cst_222 {dimension_numbers = #tpu.dot_dimension_numbers<[1], [1], [0], [0], [0, 0, 1, 0], [], []>} : vector<64x32xf32>, vector<4x32xf32>, vector<64x4xf32> -> vector<64x4xf32>
    %508 = vector.extract_strided_slice %507 {offsets = [0, 0], sizes = [64, 1], strides = [1, 1]} : vector<64x4xf32> to vector<64x1xf32>
    %509 = vector.broadcast %508 : vector<64x1xf32> to vector<64x256xf32>
    %510 = arith.addf %369, %509 : vector<64x256xf32>
    %cst_223 = arith.constant 0.000000e+00 : f32
    %511 = vector.broadcast %cst_223 : f32 to vector<64x256xf32>
    %512 = arith.maximumf %510, %511 : vector<64x256xf32>
    %cst_224 = arith.constant dense<0.000000e+00> : vector<17x256xf32>
    %513 = tpu.matmul %370, %512, %cst_224 {dimension_numbers = #tpu.dot_dimension_numbers<[1], [0], [0], [1], [0, 0, 1, 1], [], []>} : vector<17x64xf32>, vector<64x256xf32>, vector<17x256xf32> -> vector<17x256xf32>
    %514 = vector.broadcast %371 : vector<17x1xf32> to vector<17x256xf32>
    %515 = arith.addf %513, %514 : vector<17x256xf32>
    %516 = vector.extract_strided_slice %515 {offsets = [0, 0], sizes = [16, 256], strides = [1, 1]} : vector<17x256xf32> to vector<16x256xf32>
    %517 = vector.extract_strided_slice %515 {offsets = [16, 0], sizes = [1, 256], strides = [1, 1]} : vector<17x256xf32> to vector<1x256xf32>
    %518 = vector.extract_strided_slice %507 {offsets = [0, 1], sizes = [64, 1], strides = [1, 1]} : vector<64x4xf32> to vector<64x1xf32>
    %519 = vector.broadcast %518 : vector<64x1xf32> to vector<64x256xf32>
    %520 = arith.addf %369, %519 : vector<64x256xf32>
    %cst_225 = arith.constant 0.000000e+00 : f32
    %521 = vector.broadcast %cst_225 : f32 to vector<64x256xf32>
    %522 = arith.maximumf %520, %521 : vector<64x256xf32>
    %cst_226 = arith.constant dense<0.000000e+00> : vector<17x256xf32>
    %523 = tpu.matmul %370, %522, %cst_226 {dimension_numbers = #tpu.dot_dimension_numbers<[1], [0], [0], [1], [0, 0, 1, 1], [], []>} : vector<17x64xf32>, vector<64x256xf32>, vector<17x256xf32> -> vector<17x256xf32>
    %524 = vector.broadcast %371 : vector<17x1xf32> to vector<17x256xf32>
    %525 = arith.addf %523, %524 : vector<17x256xf32>
    %526 = vector.extract_strided_slice %525 {offsets = [0, 0], sizes = [16, 256], strides = [1, 1]} : vector<17x256xf32> to vector<16x256xf32>
    %527 = vector.extract_strided_slice %525 {offsets = [16, 0], sizes = [1, 256], strides = [1, 1]} : vector<17x256xf32> to vector<1x256xf32>
    %528 = vector.extract_strided_slice %507 {offsets = [0, 2], sizes = [64, 1], strides = [1, 1]} : vector<64x4xf32> to vector<64x1xf32>
    %529 = vector.broadcast %528 : vector<64x1xf32> to vector<64x256xf32>
    %530 = arith.addf %369, %529 : vector<64x256xf32>
    %cst_227 = arith.constant 0.000000e+00 : f32
    %531 = vector.broadcast %cst_227 : f32 to vector<64x256xf32>
    %532 = arith.maximumf %530, %531 : vector<64x256xf32>
    %cst_228 = arith.constant dense<0.000000e+00> : vector<17x256xf32>
    %533 = tpu.matmul %370, %532, %cst_228 {dimension_numbers = #tpu.dot_dimension_numbers<[1], [0], [0], [1], [0, 0, 1, 1], [], []>} : vector<17x64xf32>, vector<64x256xf32>, vector<17x256xf32> -> vector<17x256xf32>
    %534 = vector.broadcast %371 : vector<17x1xf32> to vector<17x256xf32>
    %535 = arith.addf %533, %534 : vector<17x256xf32>
    %536 = vector.extract_strided_slice %535 {offsets = [0, 0], sizes = [16, 256], strides = [1, 1]} : vector<17x256xf32> to vector<16x256xf32>
    %537 = vector.extract_strided_slice %535 {offsets = [16, 0], sizes = [1, 256], strides = [1, 1]} : vector<17x256xf32> to vector<1x256xf32>
    %538 = vector.extract_strided_slice %507 {offsets = [0, 3], sizes = [64, 1], strides = [1, 1]} : vector<64x4xf32> to vector<64x1xf32>
    %539 = vector.broadcast %538 : vector<64x1xf32> to vector<64x256xf32>
    %540 = arith.addf %369, %539 : vector<64x256xf32>
    %cst_229 = arith.constant 0.000000e+00 : f32
    %541 = vector.broadcast %cst_229 : f32 to vector<64x256xf32>
    %542 = arith.maximumf %540, %541 : vector<64x256xf32>
    %cst_230 = arith.constant dense<0.000000e+00> : vector<17x256xf32>
    %543 = tpu.matmul %370, %542, %cst_230 {dimension_numbers = #tpu.dot_dimension_numbers<[1], [0], [0], [1], [0, 0, 1, 1], [], []>} : vector<17x64xf32>, vector<64x256xf32>, vector<17x256xf32> -> vector<17x256xf32>
    %544 = vector.broadcast %371 : vector<17x1xf32> to vector<17x256xf32>
    %545 = arith.addf %543, %544 : vector<17x256xf32>
    %546 = vector.extract_strided_slice %545 {offsets = [0, 0], sizes = [16, 256], strides = [1, 1]} : vector<17x256xf32> to vector<16x256xf32>
    %547 = vector.extract_strided_slice %545 {offsets = [16, 0], sizes = [1, 256], strides = [1, 1]} : vector<17x256xf32> to vector<1x256xf32>
    %548 = tpu.concatenate %517, %527, %537, %547 in 0 : vector<1x256xf32>, vector<1x256xf32>, vector<1x256xf32>, vector<1x256xf32> -> vector<4x256xf32>
    %c0_231 = arith.constant 0 : index
    %c1_232 = arith.constant 1 : index
    %c0_233 = arith.constant 0 : index
    %c0_234 = arith.constant 0 : index
    %549 = vector.load %arg24[%c0_231, %c1_232, %c0_233, %c0_234] : memref<1x4x4x256xf32, #tpu.memory_space<vmem>>, vector<1x1x4x256xf32>
    %550 = vector.shape_cast %549 : vector<1x1x4x256xf32> to vector<4x256xf32>
    %551 = vector.shape_cast %548 : vector<4x256xf32> to vector<1x1x4x256xf32>
    tpu.vector_store %arg24[%c0_231, %c1_232, %c0_233, %c0_234], %551 {strides = array<i32>} : memref<1x4x4x256xf32, #tpu.memory_space<vmem>>, vector<1x1x4x256xf32>,
    %cst_235 = arith.constant dense<0xFF800000> : vector<256xf32>
    %552 = vector.multi_reduction <maximumf>, %548, %cst_235 [0] : vector<4x256xf32> to vector<256xf32>
    %553 = vector.shape_cast %552 : vector<256xf32> to vector<1x256xf32>
    %554 = vector.broadcast %553 : vector<1x256xf32> to vector<4x256xf32>
    %555 = arith.subf %548, %554 : vector<4x256xf32>
    %556 = math.exp %555 : vector<4x256xf32>
    %cst_236 = arith.constant dense<0.000000e+00> : vector<256xf32>
    %557 = vector.multi_reduction <add>, %556, %cst_236 [0] : vector<4x256xf32> to vector<256xf32>
    %558 = vector.shape_cast %557 : vector<256xf32> to vector<1x256xf32>
    %559 = vector.broadcast %558 : vector<1x256xf32> to vector<4x256xf32>
    %560 = arith.divf %556, %559 : vector<4x256xf32>
    %561 = vector.extract_strided_slice %560 {offsets = [0, 0], sizes = [1, 256], strides = [1, 1]} : vector<4x256xf32> to vector<1x256xf32>
    %562 = vector.broadcast %561 : vector<1x256xf32> to vector<16x256xf32>
    %563 = arith.mulf %562, %516 : vector<16x256xf32>
    %564 = vector.extract_strided_slice %560 {offsets = [1, 0], sizes = [1, 256], strides = [1, 1]} : vector<4x256xf32> to vector<1x256xf32>
    %565 = vector.broadcast %564 : vector<1x256xf32> to vector<16x256xf32>
    %566 = arith.mulf %565, %526 : vector<16x256xf32>
    %567 = arith.addf %563, %566 : vector<16x256xf32>
    %568 = vector.extract_strided_slice %560 {offsets = [2, 0], sizes = [1, 256], strides = [1, 1]} : vector<4x256xf32> to vector<1x256xf32>
    %569 = vector.broadcast %568 : vector<1x256xf32> to vector<16x256xf32>
    %570 = arith.mulf %569, %536 : vector<16x256xf32>
    %571 = arith.addf %567, %570 : vector<16x256xf32>
    %572 = vector.extract_strided_slice %560 {offsets = [3, 0], sizes = [1, 256], strides = [1, 1]} : vector<4x256xf32> to vector<1x256xf32>
    %573 = vector.broadcast %572 : vector<1x256xf32> to vector<16x256xf32>
    %574 = arith.mulf %573, %546 : vector<16x256xf32>
    %575 = arith.addf %571, %574 : vector<16x256xf32>
    %cst_237 = arith.constant dense<0.000000e+00> : vector<3x256xf32>
    %576 = tpu.matmul %372, %575, %cst_237 {dimension_numbers = #tpu.dot_dimension_numbers<[1], [0], [0], [1], [0, 0, 1, 1], [], []>} : vector<3x16xf32>, vector<16x256xf32>, vector<3x256xf32> -> vector<3x256xf32>
    %577 = vector.broadcast %373 : vector<3x1xf32> to vector<3x256xf32>
    %578 = arith.addf %576, %577 : vector<3x256xf32>
    %c0_238 = arith.constant 0 : index
    %c1_239 = arith.constant 1 : index
    %c0_240 = arith.constant 0 : index
    %c0_241 = arith.constant 0 : index
    %579 = vector.load %arg23[%c0_238, %c1_239, %c0_240, %c0_241] : memref<1x4x3x256xf32, #tpu.memory_space<vmem>>, vector<1x1x3x256xf32>
    %580 = vector.shape_cast %579 : vector<1x1x3x256xf32> to vector<3x256xf32>
    %581 = vector.shape_cast %578 : vector<3x256xf32> to vector<1x1x3x256xf32>
    tpu.vector_store %arg23[%c0_238, %c1_239, %c0_240, %c0_241], %581 {strides = array<i32>} : memref<1x4x3x256xf32, #tpu.memory_space<vmem>>, vector<1x1x3x256xf32>,
    %c2_242 = arith.constant 2 : index
    %c0_243 = arith.constant 0 : index
    %c0_244 = arith.constant 0 : index
    %582 = vector.load %arg25[%c2_242, %c0_243, %c0_244] : memref<4x64x256xf32, #tpu.memory_space<vmem>>, vector<1x32x256xf32>
    %583 = vector.shape_cast %582 : vector<1x32x256xf32> to vector<32x256xf32>
    %c2_245 = arith.constant 2 : index
    %c32_246 = arith.constant 32 : index
    %c0_247 = arith.constant 0 : index
    %584 = vector.load %arg25[%c2_245, %c32_246, %c0_247] : memref<4x64x256xf32, #tpu.memory_space<vmem>>, vector<1x32x256xf32>
    %585 = vector.shape_cast %584 : vector<1x32x256xf32> to vector<32x256xf32>
    %cst_248 = arith.constant dense<0.000000e+00> : vector<4x256xf32>
    %586 = tpu.matmul %363, %583, %cst_248 {dimension_numbers = #tpu.dot_dimension_numbers<[1], [0], [0], [1], [0, 0, 1, 1], [], []>} : vector<4x32xf32>, vector<32x256xf32>, vector<4x256xf32> -> vector<4x256xf32>
    %cst_249 = arith.constant 0.176776692 : f32
    %587 = vector.broadcast %cst_249 : f32 to vector<4x256xf32>
    %588 = arith.mulf %586, %587 : vector<4x256xf32>
    %cst_250 = arith.constant dense<0xFF800000> : vector<256xf32>
    %589 = vector.multi_reduction <maximumf>, %588, %cst_250 [0] : vector<4x256xf32> to vector<256xf32>
    %590 = vector.shape_cast %589 : vector<256xf32> to vector<1x256xf32>
    %591 = vector.broadcast %590 : vector<1x256xf32> to vector<4x256xf32>
    %592 = arith.subf %588, %591 : vector<4x256xf32>
    %593 = math.exp %592 : vector<4x256xf32>
    %cst_251 = arith.constant dense<0.000000e+00> : vector<256xf32>
    %594 = vector.multi_reduction <add>, %593, %cst_251 [0] : vector<4x256xf32> to vector<256xf32>
    %595 = vector.shape_cast %594 : vector<256xf32> to vector<1x256xf32>
    %596 = vector.broadcast %595 : vector<1x256xf32> to vector<4x256xf32>
    %597 = arith.divf %593, %596 : vector<4x256xf32>
    %cst_252 = arith.constant dense<0.000000e+00> : vector<4xf32>
    %598 = vector.multi_reduction <add>, %597, %cst_252 [1] : vector<4x256xf32> to vector<4xf32>
    %599 = vector.shape_cast %598 : vector<4xf32> to vector<4x1xf32>
    %cst_253 = arith.constant dense<0.000000e+00> : vector<4x32xf32>
    %600 = tpu.matmul %597, %585, %cst_253 {dimension_numbers = #tpu.dot_dimension_numbers<[1], [1], [0], [0], [0, 0, 1, 0], [], []>} : vector<4x256xf32>, vector<32x256xf32>, vector<4x32xf32> -> vector<4x32xf32>
    %c0_254 = arith.constant 0 : index
    %c2_255 = arith.constant 2 : index
    %c0_256 = arith.constant 0 : index
    %c0_257 = arith.constant 0 : index
    %601 = vector.load %arg22[%c0_254, %c2_255, %c0_256, %c0_257] : memref<1x4x4x256xf32, #tpu.memory_space<vmem>>, vector<1x1x4x256xf32>
    %602 = vector.shape_cast %601 : vector<1x1x4x256xf32> to vector<4x256xf32>
    %603 = vector.shape_cast %597 : vector<4x256xf32> to vector<1x1x4x256xf32>
    tpu.vector_store %arg22[%c0_254, %c2_255, %c0_256, %c0_257], %603 {strides = array<i32>} : memref<1x4x4x256xf32, #tpu.memory_space<vmem>>, vector<1x1x4x256xf32>,
    %cst_258 = arith.constant 9.99999993E-9 : f32
    %604 = vector.broadcast %cst_258 : f32 to vector<4x1xf32>
    %605 = arith.addf %599, %604 : vector<4x1xf32>
    %606 = vector.broadcast %605 : vector<4x1xf32> to vector<4x32xf32>
    %607 = arith.divf %600, %606 : vector<4x32xf32>
    %c0_259 = arith.constant 0 : index
    %c2_260 = arith.constant 2 : index
    %c0_261 = arith.constant 0 : index
    %c0_262 = arith.constant 0 : index
    %608 = vector.load %arg21[%c0_259, %c2_260, %c0_261, %c0_262] : memref<1x4x4x32xf32, #tpu.memory_space<vmem>>, vector<1x1x4x32xf32>
    %609 = vector.shape_cast %608 : vector<1x1x4x32xf32> to vector<4x32xf32>
    %610 = vector.shape_cast %607 : vector<4x32xf32> to vector<1x1x4x32xf32>
    tpu.vector_store %arg21[%c0_259, %c2_260, %c0_261, %c0_262], %610 {strides = array<i32>} : memref<1x4x4x32xf32, #tpu.memory_space<vmem>>, vector<1x1x4x32xf32>,
    %cst_263 = arith.constant dense<0.000000e+00> : vector<64x4xf32>
    %611 = tpu.matmul %364, %607, %cst_263 {dimension_numbers = #tpu.dot_dimension_numbers<[1], [1], [0], [0], [0, 0, 1, 0], [], []>} : vector<64x32xf32>, vector<4x32xf32>, vector<64x4xf32> -> vector<64x4xf32>
    %612 = vector.extract_strided_slice %611 {offsets = [0, 0], sizes = [64, 1], strides = [1, 1]} : vector<64x4xf32> to vector<64x1xf32>
    %613 = vector.broadcast %612 : vector<64x1xf32> to vector<64x256xf32>
    %614 = arith.addf %369, %613 : vector<64x256xf32>
    %cst_264 = arith.constant 0.000000e+00 : f32
    %615 = vector.broadcast %cst_264 : f32 to vector<64x256xf32>
    %616 = arith.maximumf %614, %615 : vector<64x256xf32>
    %cst_265 = arith.constant dense<0.000000e+00> : vector<17x256xf32>
    %617 = tpu.matmul %370, %616, %cst_265 {dimension_numbers = #tpu.dot_dimension_numbers<[1], [0], [0], [1], [0, 0, 1, 1], [], []>} : vector<17x64xf32>, vector<64x256xf32>, vector<17x256xf32> -> vector<17x256xf32>
    %618 = vector.broadcast %371 : vector<17x1xf32> to vector<17x256xf32>
    %619 = arith.addf %617, %618 : vector<17x256xf32>
    %620 = vector.extract_strided_slice %619 {offsets = [0, 0], sizes = [16, 256], strides = [1, 1]} : vector<17x256xf32> to vector<16x256xf32>
    %621 = vector.extract_strided_slice %619 {offsets = [16, 0], sizes = [1, 256], strides = [1, 1]} : vector<17x256xf32> to vector<1x256xf32>
    %622 = vector.extract_strided_slice %611 {offsets = [0, 1], sizes = [64, 1], strides = [1, 1]} : vector<64x4xf32> to vector<64x1xf32>
    %623 = vector.broadcast %622 : vector<64x1xf32> to vector<64x256xf32>
    %624 = arith.addf %369, %623 : vector<64x256xf32>
    %cst_266 = arith.constant 0.000000e+00 : f32
    %625 = vector.broadcast %cst_266 : f32 to vector<64x256xf32>
    %626 = arith.maximumf %624, %625 : vector<64x256xf32>
    %cst_267 = arith.constant dense<0.000000e+00> : vector<17x256xf32>
    %627 = tpu.matmul %370, %626, %cst_267 {dimension_numbers = #tpu.dot_dimension_numbers<[1], [0], [0], [1], [0, 0, 1, 1], [], []>} : vector<17x64xf32>, vector<64x256xf32>, vector<17x256xf32> -> vector<17x256xf32>
    %628 = vector.broadcast %371 : vector<17x1xf32> to vector<17x256xf32>
    %629 = arith.addf %627, %628 : vector<17x256xf32>
    %630 = vector.extract_strided_slice %629 {offsets = [0, 0], sizes = [16, 256], strides = [1, 1]} : vector<17x256xf32> to vector<16x256xf32>
    %631 = vector.extract_strided_slice %629 {offsets = [16, 0], sizes = [1, 256], strides = [1, 1]} : vector<17x256xf32> to vector<1x256xf32>
    %632 = vector.extract_strided_slice %611 {offsets = [0, 2], sizes = [64, 1], strides = [1, 1]} : vector<64x4xf32> to vector<64x1xf32>
    %633 = vector.broadcast %632 : vector<64x1xf32> to vector<64x256xf32>
    %634 = arith.addf %369, %633 : vector<64x256xf32>
    %cst_268 = arith.constant 0.000000e+00 : f32
    %635 = vector.broadcast %cst_268 : f32 to vector<64x256xf32>
    %636 = arith.maximumf %634, %635 : vector<64x256xf32>
    %cst_269 = arith.constant dense<0.000000e+00> : vector<17x256xf32>
    %637 = tpu.matmul %370, %636, %cst_269 {dimension_numbers = #tpu.dot_dimension_numbers<[1], [0], [0], [1], [0, 0, 1, 1], [], []>} : vector<17x64xf32>, vector<64x256xf32>, vector<17x256xf32> -> vector<17x256xf32>
    %638 = vector.broadcast %371 : vector<17x1xf32> to vector<17x256xf32>
    %639 = arith.addf %637, %638 : vector<17x256xf32>
    %640 = vector.extract_strided_slice %639 {offsets = [0, 0], sizes = [16, 256], strides = [1, 1]} : vector<17x256xf32> to vector<16x256xf32>
    %641 = vector.extract_strided_slice %639 {offsets = [16, 0], sizes = [1, 256], strides = [1, 1]} : vector<17x256xf32> to vector<1x256xf32>
    %642 = vector.extract_strided_slice %611 {offsets = [0, 3], sizes = [64, 1], strides = [1, 1]} : vector<64x4xf32> to vector<64x1xf32>
    %643 = vector.broadcast %642 : vector<64x1xf32> to vector<64x256xf32>
    %644 = arith.addf %369, %643 : vector<64x256xf32>
    %cst_270 = arith.constant 0.000000e+00 : f32
    %645 = vector.broadcast %cst_270 : f32 to vector<64x256xf32>
    %646 = arith.maximumf %644, %645 : vector<64x256xf32>
    %cst_271 = arith.constant dense<0.000000e+00> : vector<17x256xf32>
    %647 = tpu.matmul %370, %646, %cst_271 {dimension_numbers = #tpu.dot_dimension_numbers<[1], [0], [0], [1], [0, 0, 1, 1], [], []>} : vector<17x64xf32>, vector<64x256xf32>, vector<17x256xf32> -> vector<17x256xf32>
    %648 = vector.broadcast %371 : vector<17x1xf32> to vector<17x256xf32>
    %649 = arith.addf %647, %648 : vector<17x256xf32>
    %650 = vector.extract_strided_slice %649 {offsets = [0, 0], sizes = [16, 256], strides = [1, 1]} : vector<17x256xf32> to vector<16x256xf32>
    %651 = vector.extract_strided_slice %649 {offsets = [16, 0], sizes = [1, 256], strides = [1, 1]} : vector<17x256xf32> to vector<1x256xf32>
    %652 = tpu.concatenate %621, %631, %641, %651 in 0 : vector<1x256xf32>, vector<1x256xf32>, vector<1x256xf32>, vector<1x256xf32> -> vector<4x256xf32>
    %c0_272 = arith.constant 0 : index
    %c2_273 = arith.constant 2 : index
    %c0_274 = arith.constant 0 : index
    %c0_275 = arith.constant 0 : index
    %653 = vector.load %arg24[%c0_272, %c2_273, %c0_274, %c0_275] : memref<1x4x4x256xf32, #tpu.memory_space<vmem>>, vector<1x1x4x256xf32>
    %654 = vector.shape_cast %653 : vector<1x1x4x256xf32> to vector<4x256xf32>
    %655 = vector.shape_cast %652 : vector<4x256xf32> to vector<1x1x4x256xf32>
    tpu.vector_store %arg24[%c0_272, %c2_273, %c0_274, %c0_275], %655 {strides = array<i32>} : memref<1x4x4x256xf32, #tpu.memory_space<vmem>>, vector<1x1x4x256xf32>,
    %cst_276 = arith.constant dense<0xFF800000> : vector<256xf32>
    %656 = vector.multi_reduction <maximumf>, %652, %cst_276 [0] : vector<4x256xf32> to vector<256xf32>
    %657 = vector.shape_cast %656 : vector<256xf32> to vector<1x256xf32>
    %658 = vector.broadcast %657 : vector<1x256xf32> to vector<4x256xf32>
    %659 = arith.subf %652, %658 : vector<4x256xf32>
    %660 = math.exp %659 : vector<4x256xf32>
    %cst_277 = arith.constant dense<0.000000e+00> : vector<256xf32>
    %661 = vector.multi_reduction <add>, %660, %cst_277 [0] : vector<4x256xf32> to vector<256xf32>
    %662 = vector.shape_cast %661 : vector<256xf32> to vector<1x256xf32>
    %663 = vector.broadcast %662 : vector<1x256xf32> to vector<4x256xf32>
    %664 = arith.divf %660, %663 : vector<4x256xf32>
    %665 = vector.extract_strided_slice %664 {offsets = [0, 0], sizes = [1, 256], strides = [1, 1]} : vector<4x256xf32> to vector<1x256xf32>
    %666 = vector.broadcast %665 : vector<1x256xf32> to vector<16x256xf32>
    %667 = arith.mulf %666, %620 : vector<16x256xf32>
    %668 = vector.extract_strided_slice %664 {offsets = [1, 0], sizes = [1, 256], strides = [1, 1]} : vector<4x256xf32> to vector<1x256xf32>
    %669 = vector.broadcast %668 : vector<1x256xf32> to vector<16x256xf32>
    %670 = arith.mulf %669, %630 : vector<16x256xf32>
    %671 = arith.addf %667, %670 : vector<16x256xf32>
    %672 = vector.extract_strided_slice %664 {offsets = [2, 0], sizes = [1, 256], strides = [1, 1]} : vector<4x256xf32> to vector<1x256xf32>
    %673 = vector.broadcast %672 : vector<1x256xf32> to vector<16x256xf32>
    %674 = arith.mulf %673, %640 : vector<16x256xf32>
    %675 = arith.addf %671, %674 : vector<16x256xf32>
    %676 = vector.extract_strided_slice %664 {offsets = [3, 0], sizes = [1, 256], strides = [1, 1]} : vector<4x256xf32> to vector<1x256xf32>
    %677 = vector.broadcast %676 : vector<1x256xf32> to vector<16x256xf32>
    %678 = arith.mulf %677, %650 : vector<16x256xf32>
    %679 = arith.addf %675, %678 : vector<16x256xf32>
    %cst_278 = arith.constant dense<0.000000e+00> : vector<3x256xf32>
    %680 = tpu.matmul %372, %679, %cst_278 {dimension_numbers = #tpu.dot_dimension_numbers<[1], [0], [0], [1], [0, 0, 1, 1], [], []>} : vector<3x16xf32>, vector<16x256xf32>, vector<3x256xf32> -> vector<3x256xf32>
    %681 = vector.broadcast %373 : vector<3x1xf32> to vector<3x256xf32>
    %682 = arith.addf %680, %681 : vector<3x256xf32>
    %c0_279 = arith.constant 0 : index
    %c2_280 = arith.constant 2 : index
    %c0_281 = arith.constant 0 : index
    %c0_282 = arith.constant 0 : index
    %683 = vector.load %arg23[%c0_279, %c2_280, %c0_281, %c0_282] : memref<1x4x3x256xf32, #tpu.memory_space<vmem>>, vector<1x1x3x256xf32>
    %684 = vector.shape_cast %683 : vector<1x1x3x256xf32> to vector<3x256xf32>
    %685 = vector.shape_cast %682 : vector<3x256xf32> to vector<1x1x3x256xf32>
    tpu.vector_store %arg23[%c0_279, %c2_280, %c0_281, %c0_282], %685 {strides = array<i32>} : memref<1x4x3x256xf32, #tpu.memory_space<vmem>>, vector<1x1x3x256xf32>,
    %c3_283 = arith.constant 3 : index
    %c0_284 = arith.constant 0 : index
    %c0_285 = arith.constant 0 : index
    %686 = vector.load %arg25[%c3_283, %c0_284, %c0_285] : memref<4x64x256xf32, #tpu.memory_space<vmem>>, vector<1x32x256xf32>
    %687 = vector.shape_cast %686 : vector<1x32x256xf32> to vector<32x256xf32>
    %c3_286 = arith.constant 3 : index
    %c32_287 = arith.constant 32 : index
    %c0_288 = arith.constant 0 : index
    %688 = vector.load %arg25[%c3_286, %c32_287, %c0_288] : memref<4x64x256xf32, #tpu.memory_space<vmem>>, vector<1x32x256xf32>
    %689 = vector.shape_cast %688 : vector<1x32x256xf32> to vector<32x256xf32>
    %cst_289 = arith.constant dense<0.000000e+00> : vector<4x256xf32>
    %690 = tpu.matmul %363, %687, %cst_289 {dimension_numbers = #tpu.dot_dimension_numbers<[1], [0], [0], [1], [0, 0, 1, 1], [], []>} : vector<4x32xf32>, vector<32x256xf32>, vector<4x256xf32> -> vector<4x256xf32>
    %cst_290 = arith.constant 0.176776692 : f32
    %691 = vector.broadcast %cst_290 : f32 to vector<4x256xf32>
    %692 = arith.mulf %690, %691 : vector<4x256xf32>
    %cst_291 = arith.constant dense<0xFF800000> : vector<256xf32>
    %693 = vector.multi_reduction <maximumf>, %692, %cst_291 [0] : vector<4x256xf32> to vector<256xf32>
    %694 = vector.shape_cast %693 : vector<256xf32> to vector<1x256xf32>
    %695 = vector.broadcast %694 : vector<1x256xf32> to vector<4x256xf32>
    %696 = arith.subf %692, %695 : vector<4x256xf32>
    %697 = math.exp %696 : vector<4x256xf32>
    %cst_292 = arith.constant dense<0.000000e+00> : vector<256xf32>
    %698 = vector.multi_reduction <add>, %697, %cst_292 [0] : vector<4x256xf32> to vector<256xf32>
    %699 = vector.shape_cast %698 : vector<256xf32> to vector<1x256xf32>
    %700 = vector.broadcast %699 : vector<1x256xf32> to vector<4x256xf32>
    %701 = arith.divf %697, %700 : vector<4x256xf32>
    %cst_293 = arith.constant dense<0.000000e+00> : vector<4xf32>
    %702 = vector.multi_reduction <add>, %701, %cst_293 [1] : vector<4x256xf32> to vector<4xf32>
    %703 = vector.shape_cast %702 : vector<4xf32> to vector<4x1xf32>
    %cst_294 = arith.constant dense<0.000000e+00> : vector<4x32xf32>
    %704 = tpu.matmul %701, %689, %cst_294 {dimension_numbers = #tpu.dot_dimension_numbers<[1], [1], [0], [0], [0, 0, 1, 0], [], []>} : vector<4x256xf32>, vector<32x256xf32>, vector<4x32xf32> -> vector<4x32xf32>
    %c0_295 = arith.constant 0 : index
    %c3_296 = arith.constant 3 : index
    %c0_297 = arith.constant 0 : index
    %c0_298 = arith.constant 0 : index
    %705 = vector.load %arg22[%c0_295, %c3_296, %c0_297, %c0_298] : memref<1x4x4x256xf32, #tpu.memory_space<vmem>>, vector<1x1x4x256xf32>
    %706 = vector.shape_cast %705 : vector<1x1x4x256xf32> to vector<4x256xf32>
    %707 = vector.shape_cast %701 : vector<4x256xf32> to vector<1x1x4x256xf32>
    tpu.vector_store %arg22[%c0_295, %c3_296, %c0_297, %c0_298], %707 {strides = array<i32>} : memref<1x4x4x256xf32, #tpu.memory_space<vmem>>, vector<1x1x4x256xf32>,
    %cst_299 = arith.constant 9.99999993E-9 : f32
    %708 = vector.broadcast %cst_299 : f32 to vector<4x1xf32>
    %709 = arith.addf %703, %708 : vector<4x1xf32>
    %710 = vector.broadcast %709 : vector<4x1xf32> to vector<4x32xf32>
    %711 = arith.divf %704, %710 : vector<4x32xf32>
    %c0_300 = arith.constant 0 : index
    %c3_301 = arith.constant 3 : index
    %c0_302 = arith.constant 0 : index
    %c0_303 = arith.constant 0 : index
    %712 = vector.load %arg21[%c0_300, %c3_301, %c0_302, %c0_303] : memref<1x4x4x32xf32, #tpu.memory_space<vmem>>, vector<1x1x4x32xf32>
    %713 = vector.shape_cast %712 : vector<1x1x4x32xf32> to vector<4x32xf32>
    %714 = vector.shape_cast %711 : vector<4x32xf32> to vector<1x1x4x32xf32>
    tpu.vector_store %arg21[%c0_300, %c3_301, %c0_302, %c0_303], %714 {strides = array<i32>} : memref<1x4x4x32xf32, #tpu.memory_space<vmem>>, vector<1x1x4x32xf32>,
    %cst_304 = arith.constant dense<0.000000e+00> : vector<64x4xf32>
    %715 = tpu.matmul %364, %711, %cst_304 {dimension_numbers = #tpu.dot_dimension_numbers<[1], [1], [0], [0], [0, 0, 1, 0], [], []>} : vector<64x32xf32>, vector<4x32xf32>, vector<64x4xf32> -> vector<64x4xf32>
    %716 = vector.extract_strided_slice %715 {offsets = [0, 0], sizes = [64, 1], strides = [1, 1]} : vector<64x4xf32> to vector<64x1xf32>
    %717 = vector.broadcast %716 : vector<64x1xf32> to vector<64x256xf32>
    %718 = arith.addf %369, %717 : vector<64x256xf32>
    %cst_305 = arith.constant 0.000000e+00 : f32
    %719 = vector.broadcast %cst_305 : f32 to vector<64x256xf32>
    %720 = arith.maximumf %718, %719 : vector<64x256xf32>
    %cst_306 = arith.constant dense<0.000000e+00> : vector<17x256xf32>
    %721 = tpu.matmul %370, %720, %cst_306 {dimension_numbers = #tpu.dot_dimension_numbers<[1], [0], [0], [1], [0, 0, 1, 1], [], []>} : vector<17x64xf32>, vector<64x256xf32>, vector<17x256xf32> -> vector<17x256xf32>
    %722 = vector.broadcast %371 : vector<17x1xf32> to vector<17x256xf32>
    %723 = arith.addf %721, %722 : vector<17x256xf32>
    %724 = vector.extract_strided_slice %723 {offsets = [0, 0], sizes = [16, 256], strides = [1, 1]} : vector<17x256xf32> to vector<16x256xf32>
    %725 = vector.extract_strided_slice %723 {offsets = [16, 0], sizes = [1, 256], strides = [1, 1]} : vector<17x256xf32> to vector<1x256xf32>
    %726 = vector.extract_strided_slice %715 {offsets = [0, 1], sizes = [64, 1], strides = [1, 1]} : vector<64x4xf32> to vector<64x1xf32>
    %727 = vector.broadcast %726 : vector<64x1xf32> to vector<64x256xf32>
    %728 = arith.addf %369, %727 : vector<64x256xf32>
    %cst_307 = arith.constant 0.000000e+00 : f32
    %729 = vector.broadcast %cst_307 : f32 to vector<64x256xf32>
    %730 = arith.maximumf %728, %729 : vector<64x256xf32>
    %cst_308 = arith.constant dense<0.000000e+00> : vector<17x256xf32>
    %731 = tpu.matmul %370, %730, %cst_308 {dimension_numbers = #tpu.dot_dimension_numbers<[1], [0], [0], [1], [0, 0, 1, 1], [], []>} : vector<17x64xf32>, vector<64x256xf32>, vector<17x256xf32> -> vector<17x256xf32>
    %732 = vector.broadcast %371 : vector<17x1xf32> to vector<17x256xf32>
    %733 = arith.addf %731, %732 : vector<17x256xf32>
    %734 = vector.extract_strided_slice %733 {offsets = [0, 0], sizes = [16, 256], strides = [1, 1]} : vector<17x256xf32> to vector<16x256xf32>
    %735 = vector.extract_strided_slice %733 {offsets = [16, 0], sizes = [1, 256], strides = [1, 1]} : vector<17x256xf32> to vector<1x256xf32>
    %736 = vector.extract_strided_slice %715 {offsets = [0, 2], sizes = [64, 1], strides = [1, 1]} : vector<64x4xf32> to vector<64x1xf32>
    %737 = vector.broadcast %736 : vector<64x1xf32> to vector<64x256xf32>
    %738 = arith.addf %369, %737 : vector<64x256xf32>
    %cst_309 = arith.constant 0.000000e+00 : f32
    %739 = vector.broadcast %cst_309 : f32 to vector<64x256xf32>
    %740 = arith.maximumf %738, %739 : vector<64x256xf32>
    %cst_310 = arith.constant dense<0.000000e+00> : vector<17x256xf32>
    %741 = tpu.matmul %370, %740, %cst_310 {dimension_numbers = #tpu.dot_dimension_numbers<[1], [0], [0], [1], [0, 0, 1, 1], [], []>} : vector<17x64xf32>, vector<64x256xf32>, vector<17x256xf32> -> vector<17x256xf32>
    %742 = vector.broadcast %371 : vector<17x1xf32> to vector<17x256xf32>
    %743 = arith.addf %741, %742 : vector<17x256xf32>
    %744 = vector.extract_strided_slice %743 {offsets = [0, 0], sizes = [16, 256], strides = [1, 1]} : vector<17x256xf32> to vector<16x256xf32>
    %745 = vector.extract_strided_slice %743 {offsets = [16, 0], sizes = [1, 256], strides = [1, 1]} : vector<17x256xf32> to vector<1x256xf32>
    %746 = vector.extract_strided_slice %715 {offsets = [0, 3], sizes = [64, 1], strides = [1, 1]} : vector<64x4xf32> to vector<64x1xf32>
    %747 = vector.broadcast %746 : vector<64x1xf32> to vector<64x256xf32>
    %748 = arith.addf %369, %747 : vector<64x256xf32>
    %cst_311 = arith.constant 0.000000e+00 : f32
    %749 = vector.broadcast %cst_311 : f32 to vector<64x256xf32>
    %750 = arith.maximumf %748, %749 : vector<64x256xf32>
    %cst_312 = arith.constant dense<0.000000e+00> : vector<17x256xf32>
    %751 = tpu.matmul %370, %750, %cst_312 {dimension_numbers = #tpu.dot_dimension_numbers<[1], [0], [0], [1], [0, 0, 1, 1], [], []>} : vector<17x64xf32>, vector<64x256xf32>, vector<17x256xf32> -> vector<17x256xf32>
    %752 = vector.broadcast %371 : vector<17x1xf32> to vector<17x256xf32>
    %753 = arith.addf %751, %752 : vector<17x256xf32>
    %754 = vector.extract_strided_slice %753 {offsets = [0, 0], sizes = [16, 256], strides = [1, 1]} : vector<17x256xf32> to vector<16x256xf32>
    %755 = vector.extract_strided_slice %753 {offsets = [16, 0], sizes = [1, 256], strides = [1, 1]} : vector<17x256xf32> to vector<1x256xf32>
    %756 = tpu.concatenate %725, %735, %745, %755 in 0 : vector<1x256xf32>, vector<1x256xf32>, vector<1x256xf32>, vector<1x256xf32> -> vector<4x256xf32>
    %c0_313 = arith.constant 0 : index
    %c3_314 = arith.constant 3 : index
    %c0_315 = arith.constant 0 : index
    %c0_316 = arith.constant 0 : index
    %757 = vector.load %arg24[%c0_313, %c3_314, %c0_315, %c0_316] : memref<1x4x4x256xf32, #tpu.memory_space<vmem>>, vector<1x1x4x256xf32>
    %758 = vector.shape_cast %757 : vector<1x1x4x256xf32> to vector<4x256xf32>
    %759 = vector.shape_cast %756 : vector<4x256xf32> to vector<1x1x4x256xf32>
    tpu.vector_store %arg24[%c0_313, %c3_314, %c0_315, %c0_316], %759 {strides = array<i32>} : memref<1x4x4x256xf32, #tpu.memory_space<vmem>>, vector<1x1x4x256xf32>,
    %cst_317 = arith.constant dense<0xFF800000> : vector<256xf32>
    %760 = vector.multi_reduction <maximumf>, %756, %cst_317 [0] : vector<4x256xf32> to vector<256xf32>
    %761 = vector.shape_cast %760 : vector<256xf32> to vector<1x256xf32>
    %762 = vector.broadcast %761 : vector<1x256xf32> to vector<4x256xf32>
    %763 = arith.subf %756, %762 : vector<4x256xf32>
    %764 = math.exp %763 : vector<4x256xf32>
    %cst_318 = arith.constant dense<0.000000e+00> : vector<256xf32>
    %765 = vector.multi_reduction <add>, %764, %cst_318 [0] : vector<4x256xf32> to vector<256xf32>
    %766 = vector.shape_cast %765 : vector<256xf32> to vector<1x256xf32>
    %767 = vector.broadcast %766 : vector<1x256xf32> to vector<4x256xf32>
    %768 = arith.divf %764, %767 : vector<4x256xf32>
    %769 = vector.extract_strided_slice %768 {offsets = [0, 0], sizes = [1, 256], strides = [1, 1]} : vector<4x256xf32> to vector<1x256xf32>
    %770 = vector.broadcast %769 : vector<1x256xf32> to vector<16x256xf32>
    %771 = arith.mulf %770, %724 : vector<16x256xf32>
    %772 = vector.extract_strided_slice %768 {offsets = [1, 0], sizes = [1, 256], strides = [1, 1]} : vector<4x256xf32> to vector<1x256xf32>
    %773 = vector.broadcast %772 : vector<1x256xf32> to vector<16x256xf32>
    %774 = arith.mulf %773, %734 : vector<16x256xf32>
    %775 = arith.addf %771, %774 : vector<16x256xf32>
    %776 = vector.extract_strided_slice %768 {offsets = [2, 0], sizes = [1, 256], strides = [1, 1]} : vector<4x256xf32> to vector<1x256xf32>
    %777 = vector.broadcast %776 : vector<1x256xf32> to vector<16x256xf32>
    %778 = arith.mulf %777, %744 : vector<16x256xf32>
    %779 = arith.addf %775, %778 : vector<16x256xf32>
    %780 = vector.extract_strided_slice %768 {offsets = [3, 0], sizes = [1, 256], strides = [1, 1]} : vector<4x256xf32> to vector<1x256xf32>
    %781 = vector.broadcast %780 : vector<1x256xf32> to vector<16x256xf32>
    %782 = arith.mulf %781, %754 : vector<16x256xf32>
    %783 = arith.addf %779, %782 : vector<16x256xf32>
    %cst_319 = arith.constant dense<0.000000e+00> : vector<3x256xf32>
    %784 = tpu.matmul %372, %783, %cst_319 {dimension_numbers = #tpu.dot_dimension_numbers<[1], [0], [0], [1], [0, 0, 1, 1], [], []>} : vector<3x16xf32>, vector<16x256xf32>, vector<3x256xf32> -> vector<3x256xf32>
    %785 = vector.broadcast %373 : vector<3x1xf32> to vector<3x256xf32>
    %786 = arith.addf %784, %785 : vector<3x256xf32>
    %c0_320 = arith.constant 0 : index
    %c3_321 = arith.constant 3 : index
    %c0_322 = arith.constant 0 : index
    %c0_323 = arith.constant 0 : index
    %787 = vector.load %arg23[%c0_320, %c3_321, %c0_322, %c0_323] : memref<1x4x3x256xf32, #tpu.memory_space<vmem>>, vector<1x1x3x256xf32>
    %788 = vector.shape_cast %787 : vector<1x1x3x256xf32> to vector<3x256xf32>
    %789 = vector.shape_cast %786 : vector<3x256xf32> to vector<1x1x3x256xf32>
    tpu.vector_store %arg23[%c0_320, %c3_321, %c0_322, %c0_323], %789 {strides = array<i32>} : memref<1x4x3x256xf32, #tpu.memory_space<vmem>>, vector<1x1x3x256xf32>,
    return
  }
  func.func @transform_0(%arg0: i32) -> (i32, i32, i32, i32) {
    %c0_i32 = arith.constant 0 : i32
    %c0_i32_0 = arith.constant 0 : i32
    %c0_i32_1 = arith.constant 0 : i32
    %c0_i32_2 = arith.constant 0 : i32
    return %arg0, %c0_i32, %c0_i32_0, %c0_i32_1 : i32, i32, i32, i32
  }
  func.func @transform_1(%arg0: i32) -> (i32, i32) {
    %c0_i32 = arith.constant 0 : i32
    %c0_i32_0 = arith.constant 0 : i32
    %c0_i32_1 = arith.constant 0 : i32
    return %c0_i32, %c0_i32_0 : i32, i32
  }
  func.func @transform_2(%arg0: i32) -> (i32, i32) {
    %c0_i32 = arith.constant 0 : i32
    %c0_i32_0 = arith.constant 0 : i32
    %c0_i32_1 = arith.constant 0 : i32
    return %c0_i32, %c0_i32_0 : i32, i32
  }
  func.func @transform_3(%arg0: i32) -> (i32, i32) {
    %c0_i32 = arith.constant 0 : i32
    %c0_i32_0 = arith.constant 0 : i32
    %c0_i32_1 = arith.constant 0 : i32
    return %c0_i32, %c0_i32_0 : i32, i32
  }
  func.func @transform_4(%arg0: i32) -> (i32, i32) {
    %c0_i32 = arith.constant 0 : i32
    %c0_i32_0 = arith.constant 0 : i32
    %c0_i32_1 = arith.constant 0 : i32
    return %c0_i32, %c0_i32_0 : i32, i32
  }
  func.func @transform_5(%arg0: i32) -> (i32, i32) {
    %c0_i32 = arith.constant 0 : i32
    %c0_i32_0 = arith.constant 0 : i32
    %c0_i32_1 = arith.constant 0 : i32
    return %c0_i32, %c0_i32_0 : i32, i32
  }
  func.func @transform_6(%arg0: i32) -> (i32, i32) {
    %c0_i32 = arith.constant 0 : i32
    %c0_i32_0 = arith.constant 0 : i32
    %c0_i32_1 = arith.constant 0 : i32
    return %c0_i32, %c0_i32_0 : i32, i32
  }
  func.func @transform_7(%arg0: i32) -> (i32, i32) {
    %c0_i32 = arith.constant 0 : i32
    %c0_i32_0 = arith.constant 0 : i32
    %c0_i32_1 = arith.constant 0 : i32
    return %c0_i32, %c0_i32_0 : i32, i32
  }
  func.func @transform_8(%arg0: i32) -> (i32, i32) {
    %c0_i32 = arith.constant 0 : i32
    %c0_i32_0 = arith.constant 0 : i32
    %c0_i32_1 = arith.constant 0 : i32
    return %c0_i32, %c0_i32_0 : i32, i32
  }
  func.func @transform_9(%arg0: i32) -> (i32, i32) {
    %c0_i32 = arith.constant 0 : i32
    %c0_i32_0 = arith.constant 0 : i32
    %c0_i32_1 = arith.constant 0 : i32
    return %c0_i32, %c0_i32_0 : i32, i32
  }
  func.func @transform_10(%arg0: i32) -> (i32, i32) {
    %c0_i32 = arith.constant 0 : i32
    %c0_i32_0 = arith.constant 0 : i32
    %c0_i32_1 = arith.constant 0 : i32
    return %c0_i32, %c0_i32_0 : i32, i32
  }
  func.func @transform_11(%arg0: i32) -> (i32, i32) {
    %c0_i32 = arith.constant 0 : i32
    %c0_i32_0 = arith.constant 0 : i32
    %c0_i32_1 = arith.constant 0 : i32
    return %c0_i32, %c0_i32_0 : i32, i32
  }
  func.func @transform_12(%arg0: i32) -> (i32, i32) {
    %c0_i32 = arith.constant 0 : i32
    %c0_i32_0 = arith.constant 0 : i32
    %c0_i32_1 = arith.constant 0 : i32
    return %c0_i32, %c0_i32_0 : i32, i32
  }
  func.func @transform_13(%arg0: i32) -> (i32, i32) {
    %c0_i32 = arith.constant 0 : i32
    %c0_i32_0 = arith.constant 0 : i32
    %c0_i32_1 = arith.constant 0 : i32
    return %c0_i32, %c0_i32_0 : i32, i32
  }
  func.func @transform_14(%arg0: i32) -> (i32, i32) {
    %c0_i32 = arith.constant 0 : i32
    %c0_i32_0 = arith.constant 0 : i32
    %c0_i32_1 = arith.constant 0 : i32
    return %c0_i32, %c0_i32_0 : i32, i32
  }
  func.func @transform_15(%arg0: i32) -> (i32, i32) {
    %c0_i32 = arith.constant 0 : i32
    %c0_i32_0 = arith.constant 0 : i32
    %c0_i32_1 = arith.constant 0 : i32
    return %c0_i32, %c0_i32_0 : i32, i32
  }
  func.func @transform_16(%arg0: i32) -> (i32, i32) {
    %c0_i32 = arith.constant 0 : i32
    %c0_i32_0 = arith.constant 0 : i32
    %c0_i32_1 = arith.constant 0 : i32
    return %c0_i32, %c0_i32_0 : i32, i32
  }
  func.func @transform_17(%arg0: i32) -> (i32, i32) {
    %c0_i32 = arith.constant 0 : i32
    %c0_i32_0 = arith.constant 0 : i32
    %c0_i32_1 = arith.constant 0 : i32
    return %c0_i32, %c0_i32_0 : i32, i32
  }
  func.func @transform_18(%arg0: i32) -> (i32, i32) {
    %c0_i32 = arith.constant 0 : i32
    %c0_i32_0 = arith.constant 0 : i32
    %c0_i32_1 = arith.constant 0 : i32
    return %c0_i32, %c0_i32_0 : i32, i32
  }
  func.func @transform_19(%arg0: i32) -> (i32, i32) {
    %c0_i32 = arith.constant 0 : i32
    %c0_i32_0 = arith.constant 0 : i32
    %c0_i32_1 = arith.constant 0 : i32
    return %c0_i32, %c0_i32_0 : i32, i32
  }
  func.func @transform_20(%arg0: i32) -> (i32, i32, i32, i32) {
    %c0_i32 = arith.constant 0 : i32
    %c0_i32_0 = arith.constant 0 : i32
    %c0_i32_1 = arith.constant 0 : i32
    %c0_i32_2 = arith.constant 0 : i32
    return %arg0, %c0_i32, %c0_i32_0, %c0_i32_1 : i32, i32, i32, i32
  }
  func.func @transform_21(%arg0: i32) -> (i32, i32, i32, i32) {
    %c0_i32 = arith.constant 0 : i32
    %c0_i32_0 = arith.constant 0 : i32
    %c0_i32_1 = arith.constant 0 : i32
    %c0_i32_2 = arith.constant 0 : i32
    return %arg0, %c0_i32, %c0_i32_0, %c0_i32_1 : i32, i32, i32, i32
  }
  func.func @transform_22(%arg0: i32) -> (i32, i32, i32, i32) {
    %c0_i32 = arith.constant 0 : i32
    %c0_i32_0 = arith.constant 0 : i32
    %c0_i32_1 = arith.constant 0 : i32
    %c0_i32_2 = arith.constant 0 : i32
    return %arg0, %c0_i32, %c0_i32_0, %c0_i32_1 : i32, i32, i32, i32
  }
  func.func @transform_23(%arg0: i32) -> (i32, i32, i32, i32) {
    %c0_i32 = arith.constant 0 : i32
    %c0_i32_0 = arith.constant 0 : i32
    %c0_i32_1 = arith.constant 0 : i32
    %c0_i32_2 = arith.constant 0 : i32
    return %arg0, %c0_i32, %c0_i32_0, %c0_i32_1 : i32, i32, i32, i32
  }
}

</mosaic_0001>

<bundles_post_ra>
// kernel: frame_prediction_forward.1
= control target key start
LH: loop header
LB: loop body
LE: loop exit
PB: predicated region body
PF: predicated region fallthrough
CT: control target
= control target key end

     0   :  { %s12701_s0 = inlined_call_operand.vmem [shape: f32[2,4,3,256], index: 0, kind: input, shape index: {}]   ;;  %s12702_s1 = inlined_call_operand.vmem [shape: f32[32,256], index: 1, kind: input, shape index: {}]   ;;  %s12703_s2 = inlined_call_operand.vmem [shape: f32[32,3], index: 2, kind: input, shape index: {}]   ;;  %s12704_s3 = inlined_call_operand.vmem [shape: f32[32,1], index: 3, kind: input, shape index: {}]   ;;  %s12705_s4 = inlined_call_operand.vmem [shape: f32[32,1], index: 4, kind: input, shape index: {}]   ;;  %s12706_s5 = inlined_call_operand.vmem [shape: f32[32,1], index: 5, kind: input, shape index: {}]   ;;  %s12707_s6 = inlined_call_operand.vmem [shape: f32[64,32], index: 6, kind: input, shape index: {}]   ;;  %s12708_s7 = inlined_call_operand.vmem [shape: f32[64,1], index: 7, kind: input, shape index: {}]   ;;  %s12709_s8 = inlined_call_operand.vmem [shape: f32[4,32], index: 8, kind: input, shape index: {}]   ;;  %s12710_s9 = inlined_call_operand.vmem [shape: f32[1,32], index: 9, kind: input, shape index: {}]   ;;  %s12711_s10 = inlined_call_operand.vmem [shape: f32[1,32], index: 10, kind: input, shape index: {}]   ;;  %s12712_s11 = inlined_call_operand.vmem [shape: f32[32,32], index: 11, kind: input, shape index: {}]   ;;  %s12713_s12 = inlined_call_operand.vmem [shape: f32[1,32], index: 12, kind: input, shape index: {}]   ;;  %s12714_s13 = inlined_call_operand.vmem [shape: f32[32,256], index: 13, kind: input, shape index: {}]   ;;  %s12715_s14 = inlined_call_operand.vmem [shape: f32[64,32], index: 14, kind: input, shape index: {}]   ;;  %s12716_s15 = inlined_call_operand.vmem [shape: f32[64,1], index: 15, kind: input, shape index: {}]   ;;  %s12717_s16 = inlined_call_operand.vmem [shape: f32[17,64], index: 16, kind: input, shape index: {}]   ;;  %s12718_s17 = inlined_call_operand.vmem [shape: f32[17,1], index: 17, kind: input, shape index: {}]   ;;  %s12719_s18 = inlined_call_operand.vmem [shape: f32[3,16], index: 18, kind: input, shape index: {}]   ;;  %s12720_s19 = inlined_call_operand.vmem [shape: f32[3,1], index: 19, kind: input, shape index: {}]   ;;  %s12721_s20 = inlined_call_operand.hbm [shape: f32[2,4,4,32], index: 20, kind: output, shape index: {0}]   ;;  %s12722_s21 = inlined_call_operand.hbm [shape: f32[2,4,4,256], index: 21, kind: output, shape index: {1}]   ;;  %s12723_s22 = inlined_call_operand.vmem [shape: f32[2,4,3,256], index: 22, kind: output, shape index: {2}]   ;;  %s12724_s23 = inlined_call_operand.vmem [shape: f32[2,4,4,256], index: 23, kind: output, shape index: {3}]  }
   0x1   :  { %12836 = sst [smem:[#allocation48_spill]] %s12701_s0 }
   0x2   :  { %12837 = sst [smem:[#allocation49_spill]] %s12702_s1 }
   0x3   :  { %12838 = sst [smem:[#allocation50_spill]] %s12703_s2 }
   0x4   :  { %12839 = sst [smem:[#allocation51_spill]] %s12704_s3 }
   0x5   :  { %12840 = sst [smem:[#allocation52_spill]] %s12705_s4 }
   0x6   :  { %12841 = sst [smem:[#allocation53_spill]] %s12706_s5 }
   0x7   :  { %12842 = sst [smem:[#allocation54_spill]] %s12707_s6 }
   0x8   :  { %12843 = sst [smem:[#allocation55_spill]] %s12708_s7 }
   0x9   :  { %12844 = sst [smem:[#allocation56_spill]] %s12709_s8 }
   0xa   :  { %12845 = sst [smem:[#allocation57_spill]] %s12710_s9 }
   0xb   :  { %12846 = sst [smem:[#allocation58_spill]] %s12711_s10 }
   0xc   :  { %12847 = sst [smem:[#allocation59_spill]] %s12712_s11 }
   0xd   :  { %12848 = sst [smem:[#allocation60_spill]] %s12713_s12 }
   0xe   :  { %12849 = sst [smem:[#allocation61_spill]] %s12714_s13 }
   0xf   :  { %12850 = sst [smem:[#allocation62_spill]] %s12715_s14 }
  0x10   :  { %12851 = sst [smem:[#allocation63_spill]] %s12722_s21 }
  0x11   :  { %29 = vsyncpa [#allocation4], 0 }
  0x12   :  { %31 = vsyncpa [#allocation4 + $0x1], 0 }
  0x13   :  { %32 = vsyncpa [#allocation6], 0 }
  0x14   :  { %34 = vsyncpa [#allocation6 + $0x1], 0  ;;  %s9563_s4 = smov 0   ;;  %s9565_s30 = smov 0  }
  0x15   :  { %s9567_s24 = smov 0   ;;  %s9569_s25 = smov 0  }
  0x16 LB: > { %12852 = sst [smem:[#allocation9_spill]] %s9416_s4  ;;  %s9584_s5 = sadd.s32 4294967295, %s9428_s25   ;;  %s9428_s25 = sphi %s9569_s25, %s13042_s25   ;;  %s9424_s24 = sphi %s9567_s24, %s13044_s24   ;;  %s9420_s30 = sphi %s9565_s30, %s13046_s30   ;;  %s9416_s4 = sphi %s9563_s4, %s13045_s4  }
  0x17   : > { %12853 = sst [smem:[#allocation10_spill]] %s9424_s24  ;;  %s8236_s1 = sadd.s32 4294967294, %s9428_s25  }
  0x18   : > { %12854 = sst [smem:[#allocation11_spill]] %s9428_s25  ;;  %s9588_s26 = sadd.s32 1, %s9428_s25  }
  0x19   : > { %12855 = sst [smem:[#allocation12_spill]] %s9588_s26  ;;  %s472_s2 = sadd.s32 1, %s9424_s24 }
  0x1a   : > { %s469_s6 = ssub.s32 %s9428_s25, %s9588_s26  ;;  %p482_p0 = scmp.ne.s32.totalorder %s9424_s24, %s9420_s30 }
  0x1b   : > { %p470_p1 = scmp.eq.s32.totalorder %s469_s6, 0  ;;  %p483_p2 = scmp.eq.s32.totalorder %s9584_s5, 1 }
  0x1c   : > { %p488_p3 = scmp.ne.s32.totalorder %s9420_s30, %s9416_s4  ;;  %p489_p4 = scmp.eq.s32.totalorder %s8236_s1, 1 }
  0x1d   : > { %s9599_s27 = scalar_select %p470_p1, %s9424_s24, %s472_s2  }
  0x1e   : > { %p9601_p5 = por %p483_p2, %p482_p0  ;;  %p9605_p6 = por %p489_p4, %p488_p3 }
  0x1f   : > { %12856 = sst [smem:[#allocation13_spill]] %s9599_s27  ;;  %p8239_p7 = scmp.ge.s32.totalorder %s9428_s25, 1 }
  0x20   : > { %s12858_s28 = scalar_select %p9605_p6, 1, 0 }
  0x21   : > { %p650_p8 = scmp.lt.s32.totalorder %s9428_s25, 3 }
  0x22   : > { %12859 = sst [smem:[#allocation14_spill]] %s12858_s28 }
  0x23   : > { %p651_p9 = pnand %p8239_p7, %p650_p8 }
  0x25   : > { %654 = sbr.rel (%p651_p9) target bundleno = 6104 (0x17d8), region = 100 }
  0x2c   : > { %s12860_s0 = sld [smem:[#allocation50_spill]]  ;;  %v12746_v1 = vmov 2   ;;  %v12744_v2 = vmov 1   ;;  %v12742_v6 = vmov 0   ;;  %s12861_s2 = sld [smem:[#allocation51_spill]]  ;;  %vm2301_vm0 = vcmask 257024  }
  0x2d   : > { %9055 = vset.pattern.permute.xlu0 %v12746_v1  ;;  %9054 = vset.pattern.permute.xlu1 %v12744_v2  ;;  %s12862_s24 = sld [smem:[#allocation52_spill]]  ;;  %s12866_s8 = sld [smem:[#allocation56_spill]]  ;;  %v806_v26 = vlaneseq  ;;  %vm1141_vm1 = vcmask 261120   ;;  %vm9435_vm2 = vmmov 0   ;;  %vm2507_vm3 = vcmask 1043456  }
  0x2e   : > { %s12868_s1 = sld [smem:[#allocation55_spill]]  ;;  %p729_p10 = scmp.lt.s32.totalorder %s9584_s5, 1  ;;  %vm3926_vm4 = vcmask 523264   ;;  %vm4478_vm5 = vcmask 1040384   ;;  %vm4481_vm6 = vcmask 1041408   ;;  %vm4484_vm7 = vcmask 1042432  }
  0x2f   : > { %v9696_v28 = vshrl.u32 %v806_v26, 7  ;;  %s12870_s21 = sld [smem:[#allocation48_spill]]  ;;  %s12895_s28 = sld [smem:[#allocation49_spill]]  ;;  %vm4595_vm8 = vcmask 130048  }
  0x30   : > { %s730_s27 = scalar_select %p729_p10, %s9584_s5, 1 }
  0x31   : > { %12869 = vst [vmem:[#allocation16_spill] sm:$0xff] %v9696_v28  ;;  %v9706_v30 = vsub.s32 1, %v9696_v28  ;;  %v854_v31 = vsub.s32 5, %v9696_v28  ;;  %v9714_v44 = vsub.s32 0, %v9696_v28  ;;  %v812_v45 = vsub.s32 4, %v9696_v28  ;;  %s12937_s11 = sld [smem:[#allocation59_spill]] }
  0x32   : > { %v744_v0 = vld [vmem:[%s12860_s0] sm:$0xff]  ;;  %v745_v3 = vld [vmem:[%s12860_s0 + $0x8] sm:$0xff]  ;;  %v747_v4 = vld [vmem:[%s12860_s0 + $0x18] sm:$0xff]  ;;  %s9694_s25 = sshll.u32 %s730_s27, 5  ;;  %v904_v46 = vsub.s32 6, %v9696_v28  ;;  %v9728_v50 = vsub.s32 2, %v9696_v28 }
  0x33   : > { %883 = vperm.xlu0 %9055, %v744_v0   ;;  %833 = vperm.xlu1 %9054, %v744_v0   ;;  %v746_v5 = vld [vmem:[%s12860_s0 + $0x10] sm:$0xff]  ;;  %v748_v7 = vld [vmem:[%s12861_s2] sm:$0xff]  ;;  %v751_v8 = vld [vmem:[%s12861_s2 + $0x18] sm:$0xff]  ;;  %s12863_s26 = smov %s12862_s24  ;;  %12871 = vst [vmem:[#allocation17_spill] sm:$0xff] %v9706_v30  ;;  %s12936_s27 = sld [smem:[#allocation54_spill]] }
  0x34   : > { %v760_v9 = vld [vmem:[%s12862_s24] sm:$0xff]  ;;  %v749_v10 = vld [vmem:[%s12861_s2 + $0x8] sm:$0xff]  ;;  %v750_v12 = vld [vmem:[%s12861_s2 + $0x10] sm:$0xff]  ;;  %s12864_s24 = sld [smem:[#allocation53_spill]]  ;;  %12872 = vst [vmem:[#allocation18_spill] sm:$0xff] %v9714_v44  ;;  %s12938_s9 = sld [smem:[#allocation57_spill]] }
  0x35   : > { %v761_v11 = vld [vmem:[%s12863_s26 + $0x8] sm:$0xff]  ;;  %v762_v15 = vld [vmem:[%s12863_s26 + $0x10] sm:$0xff]  ;;  %v763_v16 = vld [vmem:[%s12863_s26 + $0x18] sm:$0xff]  ;;  %s733_s2 = scalar_lea.vmem %s12870_s21, %s9694_s25  ;;  %12873 = vst [vmem:[#allocation19_spill] sm:$0xff] %v9728_v50  ;;  %s12939_s10 = sld [smem:[#allocation58_spill]] }
  0x36   : > { %v9670_v19 = vld [vmem:[%s12866_s8] sm:$0xf]  ;;  %v777_v22 = vld [vmem:[%s12868_s1 + $0x8] sm:$0xff]  ;;  %v778_v23 = vld [vmem:[%s12868_s1 + $0x10] sm:$0xff]  ;;  %s12957_s12 = sld [smem:[#allocation60_spill]]  ;;  %s12958_s13 = sld [smem:[#allocation61_spill]] }
  0x37   : > { %9058 = vset.pattern.permute.xlu0 %v12744_v2  ;;  %837 = vperm.xlu1 %9054, %v745_v3   ;;  %12867 = vst [vmem:[#allocation15_spill] sm:$0xff] %v9670_v19  ;;  %v2302_v20 = vsel %vm2301_vm0, %v9670_v19, 0.0  ;;  %v776_v21 = vld [vmem:[%s12868_s1] sm:$0xff]  ;;  %v779_v24 = vld [vmem:[%s12868_s1 + $0x18] sm:$0xff]  ;;  %v782_v27 = vld [vmem:[%s12868_s1 + $0x30] sm:$0xff]  ;;  %s12960_s14 = sld [smem:[#allocation62_spill]]  ;;  %s11549_s29 = scalar_lea.vmem %s12724_s23, %s9694_s25 }
  0x38   : > { %845 = vperm.xlu0 %9058, %v747_v4   ;;  %v780_v25 = vld [vmem:[%s12868_s1 + $0x20] sm:$0xff]  ;;  %v783_v29 = vld [vmem:[%s12868_s1 + $0x38] sm:$0xff]  ;;  %v8265_v32 = vld [vmem:[%s733_s2 + $0x10] sm:$0x77]  ;;  %s11192_s21 = sand.u32 1, %s9420_s30   ;;  %s12501_s0 = scalar_lea.vmem %s12723_s22, %s9694_s25 }
  0x39   : > { %v8274_v33 = vld [vmem:[%s733_s2 + $0x18] sm:$0x77]  ;;  %v784_v34 = vld [vmem:[%s733_s2] sm:$0x77]  ;;  %v8256_v35 = vld [vmem:[%s733_s2 + $0x8] sm:$0x77]  ;;  %v1662_v36 = vrot.slane %v8265_v32, %v9706_v30  ;;  %v1666_v42 = vrot.slane %v8265_v32, %v854_v31  ;;  %v1636_v56 = vrot.slane %v8265_v32, %v9714_v44  ;;  %v1640_v60 = vrot.slane %v8265_v32, %v812_v45 }
  0x3a   : > { %s12865_s3 = smov %s12864_s24  ;;  %v764_v13 = vld [vmem:[%s12864_s24] sm:$0xff]  ;;  %v1997_v37 = vrot.slane %v8274_v33, %v9706_v30  ;;  %v851_v38 = vrot.slane %v784_v34, %v9706_v30  ;;  %v855_v39 = vrot.slane %v784_v34, %v854_v31  ;;  %v1327_v40 = vrot.slane %v8256_v35, %v9706_v30  ;;  %s8241_s4 = sshll.u32 %s11192_s21, 5 }
  0x3b   : > { %841 = vperm.xlu1 %9054, %v746_v5   ;;  %v765_v14 = vld [vmem:[%s12865_s3 + $0x8] sm:$0xff]  ;;  %v766_v17 = vld [vmem:[%s12865_s3 + $0x10] sm:$0xff]  ;;  %v767_v18 = vld [vmem:[%s12865_s3 + $0x18] sm:$0xff]  ;;  %v1331_v41 = vrot.slane %v8256_v35, %v854_v31  ;;  %v2001_v43 = vrot.slane %v8274_v33, %v854_v31  ;;  %v9719_v47 = vrot.slane %v1662_v36, %v9706_v30  ;;  %v9740_v54 = vrot.slane %v1666_v42, %v9706_v30  ;;  %s11197_s2 = scalar_lea.vmem [#allocation5], %s8241_s4  ;;  %s8240_s3 = sshll.u32 %s11192_s21, 4 }
  0x3c   : > { %9059 = vset.pattern.permute.xlu0 %v12742_v6  ;;  %v9722_v48 = vrot.slane %v1997_v37, %v9706_v30  ;;  %v9725_v49 = vrot.slane %v851_v38, %v9706_v30  ;;  %v9731_v51 = vrot.slane %v855_v39, %v9706_v30  ;;  %v9734_v52 = vrot.slane %v1327_v40, %v9706_v30  ;;  %s11215_s6 = scalar_lea.vmem [#allocation3], %s8240_s3 }
  0x3d   : > { %787 = vperm.xlu0 %9059, %v744_v0   ;;  %v9737_v53 = vrot.slane %v1331_v41, %v9706_v30  ;;  %v9743_v55 = vrot.slane %v2001_v43, %v9706_v30  ;;  %v1971_v57 = vrot.slane %v8274_v33, %v9714_v44  ;;  %v809_v58 = vrot.slane %v784_v34, %v9714_v44  ;;  %s8070_s25 = sshll.u32 %s11215_s6, 4  ;;  %s12616_s25 = int_to_ptr.vmem [resolvable:$true] %s8070_s25 }
  0x3e   : > { %v1301_v59 = vrot.slane %v8256_v35, %v9714_v44  ;;  %v905_v61 = vrot.slane %v784_v34, %v904_v46  ;;  %v1365_v62 = vrot.slane %v8256_v35, %v904_v46  ;;  %v1975_v63 = vrot.slane %v8274_v33, %v812_v45 }
  0x3f   : > { %9056 = vset.pattern.permute.xlu1 %v12746_v1  ;;  %v813_v0 = vrot.slane %v784_v34, %v812_v45 }
  0x40   : > { %887 = vperm.xlu1 %9056, %v745_v3  }
  0x41   : > { %792 = vperm.xlu0 %9059, %v745_v3   ;;  %v901_v3 = vrot.slane %v784_v34, %v9728_v50 }
  0x44   : > { %9057 = vset.pattern.permute.xlu1 %v12742_v6 }
  0x45   : > { %797 = vperm.xlu0 %9059, %v746_v5   ;;  %802 = vperm.xlu1 %9057, %v747_v4  }
  0x49   : > { %934 = vperm.xlu0 %9059, %v748_v7   ;;  %9060 = vset.pattern.permute.xlu1 %v12746_v1  ;;  %v1696_v7 = vrot.slane %v8265_v32, %v9728_v50 }
  0x4a   : > { %891 = vperm.xlu1 %9060, %v746_v5   ;;  %v1305_v5 = vrot.slane %v8256_v35, %v812_v45 }
  0x4b   : > { %v9790_v26 = vrot.slane %v1696_v7, %v9728_v50 }
  0x4d   : > { %949 = vperm.xlu0 %9059, %v751_v8   ;;  %v1700_v8 = vrot.slane %v8265_v32, %v904_v46 }
  0x4e   : > { %895 = vperm.xlu1 %9060, %v747_v4   ;;  %v1361_v4 = vrot.slane %v8256_v35, %v9728_v50 }
  0x51   : > { %1047 = vperm.xlu0 %9059, %v760_v9   ;;  %v2035_v9 = vrot.slane %v8274_v33, %v904_v46 }
  0x52   : > { %9061 = vset.pattern.permute.xlu1 %v12742_v6 }
  0x53   : > { %939 = vperm.xlu1 %9061, %v749_v10   ;;  %v9753_v10 = vrot.slane %v1636_v56, %v9714_v44 }
  0x55   : > { %1052 = vperm.xlu0 %9059, %v761_v11   ;;  %v9756_v11 = vrot.slane %v1971_v57, %v9714_v44 }
  0x57   : > { %944 = vperm.xlu1 %9061, %v750_v12   ;;  %v9759_v12 = vrot.slane %v809_v58, %v9714_v44 }
  0x59   : > { %1075 = vperm.xlu0 %9059, %v764_v13   ;;  %v2031_v13 = vrot.slane %v8274_v33, %v9728_v50 }
  0x5b   : > { %v9801_v33 = vrot.slane %v2031_v13, %v9728_v50 }
  0x5d   : > { %1080 = vperm.xlu0 %9059, %v765_v14   ;;  %v9763_v14 = vrot.slane %v1301_v59, %v9714_v44  ;;  %12874 = vst [vmem:[#allocation20_spill] sm:$0xff] %v9801_v33 }
  0x61   : > { %1057 = vperm.xlu0 %9059, %v762_v15   ;;  %v9766_v15 = vrot.slane %v1640_v60, %v9714_v44 }
  0x65   : > { %1062 = vperm.xlu0 %9059, %v763_v16   ;;  %v9769_v16 = vrot.slane %v905_v61, %v9728_v50 }
  0x69   : > { %1085 = vperm.xlu0 %9059, %v766_v17   ;;  %v9772_v17 = vrot.slane %v1365_v62, %v9728_v50 }
  0x6d   : > { %1090 = vperm.xlu0 %9059, %v767_v18  }
  0x7b   : > { %2303 = vadd.xlane.f32.xlu1 %v2302_v20 }
  0x8c   : > { %1103 = vperm.xlu1 %9061, %v776_v21   ;;  %v9775_v21 = vrot.slane %v1975_v63, %v9714_v44 }
  0x90   : > { %1108 = vperm.xlu1 %9061, %v777_v22   ;;  %v9778_v22 = vrot.slane %v813_v0, %v9714_v44 }
  0x94   : > { %1113 = vperm.xlu1 %9061, %v778_v23   ;;  %v9781_v23 = vrot.slane %v901_v3, %v9728_v50 }
  0x98   : > { %1118 = vperm.xlu1 %9061, %v779_v24   ;;  %v9784_v24 = vrot.slane %v1361_v4, %v9728_v50 }
  0x9c   : > { %1123 = vperm.xlu1 %9061, %v780_v25   ;;  %v9787_v25 = vrot.slane %v1305_v5, %v9714_v44 }
  0xa0   : > { %1133 = vperm.xlu1 %9061, %v782_v27   ;;  %v9793_v27 = vrot.slane %v1700_v8, %v9728_v50 }
  0xa4   : > { %1138 = vperm.xlu1 %9061, %v783_v29   ;;  %v9796_v29 = vrot.slane %v2035_v9, %v9728_v50 }
  0xb2   : > { %v834_v18 = vpop.permute.xlu1 %833  ;;  %v884_v20 = vpop.permute.xlu0 %883 }
  0xb3   : > { %v1677_v31 = vmul.f32 %v9719_v47, %v834_v18  ;;  %v2012_v32 = vmul.f32 %v9722_v48, %v834_v18  ;;  %v867_v34 = vmul.f32 %v9731_v51, %v834_v18  ;;  %v9805_v35 = vmul.f32 %v9769_v16, %v884_v20 }
  0xb4   : > { %v1343_v36 = vmul.f32 %v9737_v53, %v834_v18  ;;  %v9809_v37 = vmul.f32 %v9772_v17, %v884_v20  ;;  %v866_v38 = vmul.f32 %v9725_v49, %v834_v18  ;;  %v9813_v40 = vmul.f32 %v9781_v23, %v884_v20 }
  0xb5   : > { %v9816_v41 = vmul.f32 %v9734_v52, %v834_v18  ;;  %v9819_v42 = vmul.f32 %v9784_v24, %v884_v20  ;;  %v9822_v43 = vmul.f32 %v9740_v54, %v834_v18  ;;  %v9825_v46 = vmul.f32 %v9793_v27, %v884_v20 }
  0xb6   : > { %v838_v39 = vpop.permute.xlu1 %837  ;;  %v9828_v56 = vmul.f32 %v9743_v55, %v834_v18  ;;  %v9831_v57 = vmul.f32 %v9796_v29, %v884_v20  ;;  %v9834_v58 = vmul.f32 %v9790_v26, %v884_v20  ;;  %v9844_v62 = vmul.f32 %v9801_v33, %v884_v20 }
  0xb7   : > { %v846_v45 = vpop.permute.xlu0 %845  ;;  %12875 = vst [vmem:[#allocation21_spill] sm:$0xff] %v9825_v46  ;;  %v9837_v59 = vmul.f32 %v9719_v47, %v838_v39  ;;  %v9840_v60 = vmul.f32 %v9722_v48, %v838_v39  ;;  %v869_v61 = vmul.f32 %v9731_v51, %v838_v39  ;;  %v1345_v4 = vmul.f32 %v9737_v53, %v838_v39 }
  0xb8   : > { %12876 = vst [vmem:[#allocation22_spill] sm:$0xff] %v9828_v56  ;;  %12877 = vst [vmem:[#allocation23_spill] sm:$0xff] %v9831_v57  ;;  %v9847_v63 = vmul.f32 %v9725_v49, %v846_v45  ;;  %v9850_v0 = vmul.f32 %v9731_v51, %v846_v45  ;;  %v9853_v3 = vmul.f32 %v9734_v52, %v846_v45 }
  0xb9   : > { %12878 = vst [vmem:[#allocation24_spill] sm:$0xff] %v9834_v58  ;;  %12879 = vst [vmem:[#allocation25_spill] sm:$0xff] %v9837_v59  ;;  %v9857_v5 = vmul.f32 %v9737_v53, %v846_v45  ;;  %v9860_v7 = vmul.f32 %v9719_v47, %v846_v45  ;;  %v9863_v8 = vmul.f32 %v9740_v54, %v846_v45 }
  0xba   : > { %12880 = vst [vmem:[#allocation26_spill] sm:$0xff] %v9840_v60  ;;  %12881 = vst [vmem:[#allocation27_spill] sm:$0xff] %v9844_v62  ;;  %v9866_v9 = vmul.f32 %v9722_v48, %v846_v45  ;;  %v842_v13 = vpop.permute.xlu1 %841  ;;  %v9869_v18 = vmul.f32 %v9743_v55, %v846_v45  ;;  %v868_v20 = vmul.f32 %v9725_v49, %v838_v39 }
  0xbb   : > { %v9873_v6 = vmul.f32 %v9734_v52, %v838_v39  ;;  %v9876_v2 = vmul.f32 %v9740_v54, %v838_v39  ;;  %v9879_v1 = vmul.f32 %v9725_v49, %v842_v13  ;;  %v9882_v50 = vmul.f32 %v9734_v52, %v842_v13 }
  0xbc   : > { %v1681_v30 = vmul.f32 %v9719_v47, %v842_v13  ;;  %v788_v44 = vpop.permute.xlu0 %787  ;;  %v9886_v45 = vmul.f32 %v9743_v55, %v838_v39  ;;  %v9893_v49 = vmul.f32 %v9740_v54, %v842_v13  ;;  %v2016_v52 = vmul.f32 %v9722_v48, %v842_v13 }
  0xbd   : > { %12882 = vst [vmem:[#allocation28_spill] sm:$0xff] %v9876_v2  ;;  %v1651_v28 = vmul.f32 %v9753_v10, %v788_v44  ;;  %v1986_v62 = vmul.f32 %v9756_v11, %v788_v44  ;;  %v825_v60 = vmul.f32 %v9778_v22, %v788_v44  ;;  %v1317_v58 = vmul.f32 %v9787_v25, %v788_v44 }
  0xbe   : > { %12883 = vst [vmem:[#allocation29_spill] sm:$0xff] %v9886_v45  ;;  %12884 = vst [vmem:[#allocation30_spill] sm:$0xff] %v9893_v49  ;;  %v9897_v59 = vmul.f32 %v9743_v55, %v842_v13  ;;  %v824_v47 = vmul.f32 %v9759_v12, %v788_v44  ;;  %v9903_v19 = vmul.f32 %v9731_v51, %v842_v13 }
  0xbf   : > { %v9900_v39 = vpop.permute.xlu1 %887  ;;  %v875_v57 = vadd.f32 %v867_v34, %v825_v60  ;;  %v9906_v45 = vmul.f32 %v9737_v53, %v842_v13  ;;  %v1351_v56 = vadd.f32 %v1343_v36, %v1317_v58  ;;  %v1316_v48 = vmul.f32 %v9763_v14, %v788_v44 }
  0xc0   : > { %12885 = vst [vmem:[#allocation31_spill] sm:$0xff] %v9897_v59  ;;  %12886 = vst [vmem:[#allocation32_spill] sm:$0xff] %v9900_v39  ;;  %v9908_v46 = vpop.permute.xlu0 %792  ;;  %v874_v54 = vadd.f32 %v866_v38, %v824_v47  ;;  %v1652_v55 = vmul.f32 %v9766_v15, %v788_v44  ;;  %v9913_v59 = vmul.f32 %v9775_v21, %v788_v44 }
  0xc1   : > { %12887 = vst [vmem:[#allocation33_spill] sm:$0xff] %v9908_v46  ;;  %v827_v49 = vmul.f32 %v9778_v22, %v9908_v46  ;;  %v919_v51 = vmul.f32 %v9769_v16, %v9900_v39  ;;  %v9919_v34 = vadd.f32 %v1677_v31, %v1651_v28  ;;  %v9921_v53 = vadd.f32 %v2012_v32, %v1986_v62 }
  0xc2   : > { %12888 = vst [vmem:[#allocation34_spill] sm:$0xff] %v9913_v59  ;;  %v1319_v36 = vmul.f32 %v9787_v25, %v9908_v46  ;;  %v1379_v38 = vmul.f32 %v9772_v17, %v9900_v39  ;;  %v826_v44 = vmul.f32 %v9759_v12, %v9908_v46  ;;  %v9931_v58 = vmul.f32 %v9781_v23, %v9900_v39 }
  0xc3   : > { %12889 = vst [vmem:[#allocation35_spill] sm:$0xff] %v9919_v34  ;;  %12890 = vst [vmem:[#allocation36_spill] sm:$0xff] %v9921_v53  ;;  %v9935_v60 = vmul.f32 %v9753_v10, %v9908_v46  ;;  %v9939_v28 = vmul.f32 %v9756_v11, %v9908_v46  ;;  %v925_v31 = vadd.f32 %v9805_v35, %v875_v57 }
  0xc4   : > { %v1385_v32 = vadd.f32 %v9809_v37, %v1351_v56  ;;  %v798_v62 = vpop.permute.xlu0 %797  ;;  %v803_v13 = vpop.permute.xlu1 %802  ;;  %v877_v47 = vadd.f32 %v869_v61, %v827_v49  ;;  %v9944_v53 = vadd.f32 %v9813_v40, %v874_v54  ;;  %v9948_v34 = vmul.f32 %v9763_v14, %v9908_v46 }
  0xc5   : > { %12891 = vst [vmem:[#allocation37_spill] sm:$0xff] %v9935_v60  ;;  %12892 = vst [vmem:[#allocation38_spill] sm:$0xff] %v9939_v28  ;;  %v9951_v60 = vadd.f32 %v9816_v41, %v1316_v48  ;;  %v1655_v59 = vmul.f32 %v9753_v10, %v798_v62  ;;  %v1353_v28 = vadd.f32 %v1345_v4, %v1319_v36 }
  0xc6   : > { %v9954_v2 = vadd.f32 %v868_v20, %v826_v44  ;;  %v9958_v35 = vmul.f32 %v9784_v24, %v9900_v39  ;;  %v9961_v37 = vmul.f32 %v9759_v12, %v798_v62  ;;  %v1990_v40 = vmul.f32 %v9756_v11, %v798_v62 }
  0xc7   : > { %v9966_v56 = vmul.f32 %v9766_v15, %v9908_v46  ;;  %v9969_v41 = vadd.f32 %v9822_v43, %v1652_v55  ;;  %v9972_v57 = vmul.f32 %v9763_v14, %v798_v62  ;;  %v9975_v61 = vmul.f32 %v9766_v15, %v798_v62 }
  0xc8   : > { %v831_v4 = vmul.f32 %v9778_v22, %v803_v13  ;;  %v1657_v20 = vmul.f32 %v9753_v10, %v803_v13  ;;  %v9980_v49 = vmul.f32 %v9775_v21, %v798_v62  ;;  %v1658_v54 = vmul.f32 %v9766_v15, %v803_v13  ;;  %v9996_v39 = vpop.permute.xlu0 %934 }
  0xc9   : > { %12893 = vst [vmem:[#allocation39_spill] sm:$0xff] %v9969_v41  ;;  %v1992_v48 = vmul.f32 %v9756_v11, %v803_v13  ;;  %v1993_v43 = vmul.f32 %v9775_v21, %v803_v13  ;;  %v1689_v55 = vadd.f32 %v1681_v30, %v1655_v59  ;;  %v9986_v36 = vmul.f32 %v9759_v12, %v803_v13  ;;  %v9991_v46 = vpop.permute.xlu1 %891 }
  0xca   : > { %12894 = vst [vmem:[#allocation40_spill] sm:$0xff] %v9980_v49  ;;  %v9989_v44 = vmul.f32 %v9763_v14, %v803_v13  ;;  %v829_v10 = vmul.f32 %v9778_v22, %v798_v62  ;;  %v2024_v41 = vadd.f32 %v2016_v52, %v1990_v40  ;;  %v1323_v49 = vmul.f32 %v9787_v25, %v803_v13 }
  0xcb   : > { %v1691_v15 = vadd.f32 %v9860_v7, %v1657_v20  ;;  %v1715_v30 = vmul.f32 %v9790_v26, %v9991_v46  ;;  %v10001_v11 = vadd.f32 %v9863_v8, %v1658_v54  ;;  %v2050_v12 = vmul.f32 %v9801_v33, %v9991_v46 }
  0xcc   : > { %v881_v14 = vadd.f32 %v9850_v0, %v831_v4  ;;  %v927_v59 = vadd.f32 %v919_v51, %v877_v47  ;;  %v2026_v22 = vadd.f32 %v9866_v9, %v1992_v48  ;;  %v10008_v52 = vadd.f32 %v9869_v18, %v1993_v43 }
  0xcd   : > { %v10012_v7 = vmul.f32 %v9793_v27, %v9991_v46  ;;  %v10016_v13 = vmul.f32 %v9796_v29, %v9991_v46  ;;  %v896_v8 = vpop.permute.xlu1 %895  ;;  %v1723_v40 = vadd.f32 %v1715_v30, %v1689_v55  ;;  %v879_v20 = vadd.f32 %v9903_v19, %v829_v10  ;;  %v10035_v10 = vpop.permute.xlu0 %949 }
  0xce   : > { %v921_v0 = vmul.f32 %v9769_v16, %v9991_v46  ;;  %v953_v9 = vadd.f32 %v9996_v39, %v925_v31  ;;  %v1717_v18 = vmul.f32 %v9790_v26, %v896_v8  ;;  %v10023_v51 = vadd.f32 %v2050_v12, %v2024_v41  ;;  %v10050_v12 = vld [vmem:[%s12895_s28 + $0x8] sm:$0xff] }
  0xcf   : > { %v1321_v47 = vmul.f32 %v9787_v25, %v798_v62  ;;  %v1357_v4 = vadd.f32 %v9857_v5, %v1323_v49  ;;  %v2052_v54 = vmul.f32 %v9801_v33, %v896_v8  ;;  %v923_v48 = vmul.f32 %v9769_v16, %v896_v8 }
  0xd0   : > { %v1381_v19 = vmul.f32 %v9772_v17, %v9991_v46  ;;  %v1387_v43 = vadd.f32 %v1379_v38, %v1353_v28  ;;  %v922_v55 = vmul.f32 %v9781_v23, %v896_v8  ;;  %v10033_v31 = vmul.f32 %v9784_v24, %v896_v8 }
  0xd1   : > { %v1725_v41 = vadd.f32 %v1717_v18, %v1691_v15  ;;  %v1383_v25 = vmul.f32 %v9772_v17, %v896_v8  ;;  %v10039_v5 = vmul.f32 %v9793_v27, %v896_v8  ;;  %v931_v62 = vadd.f32 %v923_v48, %v881_v14 }
  0xd2   : > { %v961_v49 = vmax.f32 %v953_v9, 0.0  ;;  %v1393_v16 = vadd.f32 %v1385_v32, %v9996_v39  ;;  %v10043_v30 = vmul.f32 %v9796_v29, %v896_v8  ;;  %v2060_v38 = vadd.f32 %v2052_v54, %v2026_v22  ;;  %v10045_v28 = vpop.permute.xlu1 %939  ;;  %v10062_v22 = vld [vmem:[%s12895_s28 + $0x18] sm:$0xff] }
  0xd3   : > { %v929_v15 = vadd.f32 %v921_v0, %v879_v20  ;;  %v1391_v17 = vadd.f32 %v1383_v25, %v1357_v4  ;;  %v955_v18 = vadd.f32 %v10045_v28, %v927_v59  ;;  %v959_v14 = vadd.f32 %v10035_v10, %v931_v62 }
  0xd4   : > { %v1355_v9 = vadd.f32 %v9906_v45, %v1321_v47  ;;  %v1395_v32 = vadd.f32 %v1387_v43, %v10045_v28  ;;  %v10057_v8 = vadd.f32 %v1725_v41, %v10035_v10  ;;  %v1401_v20 = vmax.f32 %v1393_v16, 0.0  ;;  %v10078_v41 = vld [vmem:[%s12895_s28 + $0x38] sm:$0xff] }
  0xd5   : > { %v1399_v54 = vadd.f32 %v1391_v17, %v10035_v10  ;;  %v878_v59 = vadd.f32 %v9879_v1, %v9961_v37  ;;  %v963_v0 = vmax.f32 %v955_v18, 0.0  ;;  %v967_v4 = vmax.f32 %v959_v14, 0.0 }
  0xd6   : > { %v10068_v45 = vadd.f32 %v961_v49, %v10050_v12  ;;  %v1403_v47 = vmax.f32 %v1395_v32, 0.0  ;;  %v10071_v48 = vadd.f32 %v2060_v38, %v10035_v10  ;;  %v10073_v43 = vpop.permute.xlu1 %944  ;;  %v1389_v25 = vadd.f32 %v1381_v19, %v1355_v9  ;;  %v10097_v19 = vld [vmem:[%s12895_s28 + $0x28] sm:$0xff] }
  0xd7   : > { %v1407_v62 = vmax.f32 %v1399_v54, 0.0  ;;  %v920_v1 = vmul.f32 %v9781_v23, %v9991_v46  ;;  %v957_v37 = vadd.f32 %v10073_v43, %v929_v15  ;;  %v10084_v49 = vadd.f32 %v963_v0, %v10062_v22 }
  0xd8   : > { %12896 = vst [vmem:[#allocation41_spill] sm:$0xff] %v10071_v48  ;;  %v10087_v16 = vadd.f32 %v1401_v20, %v10050_v12  ;;  %v880_v38 = vadd.f32 %v9847_v63, %v9986_v36  ;;  %v10092_v17 = vadd.f32 %v1723_v40, %v10073_v43  ;;  %v1397_v23 = vadd.f32 %v1389_v25, %v10073_v43  ;;  %v10129_v25 = vld [vmem:[%s12895_s28] sm:$0xff] }
  0xd9   : > { %v10101_v15 = vadd.f32 %v1403_v47, %v10062_v22  ;;  %v926_v18 = vadd.f32 %v9931_v58, %v9954_v2  ;;  %v965_v14 = vmax.f32 %v957_v37, 0.0  ;;  %v10106_v9 = vadd.f32 %v967_v4, %v10078_v41  ;;  %12897 = vst [vmem:[#allocation42_spill] sm:$0xff] %v10129_v25 }
  0xda   : > { %v985_v63 = vadd.f32 %v10084_v49, %v10068_v45  ;;  %v10111_v36 = vadd.f32 %v1407_v62, %v10078_v41  ;;  %v1405_v40 = vmax.f32 %v1397_v23, 0.0  ;;  %v928_v54 = vadd.f32 %v920_v1, %v878_v59  ;;  %v10144_v62 = vld [vmem:[%s12895_s28 + $0x20] sm:$0xff]  ;;  %v10149_v1 = vld [vmem:[%s12895_s28 + $0x30] sm:$0xff] }
  0xdb   : > { %v1425_v32 = vadd.f32 %v10101_v15, %v10087_v16  ;;  %v930_v20 = vadd.f32 %v922_v55, %v880_v38  ;;  %v10116_v0 = vadd.f32 %v965_v14, %v10097_v19  ;;  %v952_v2 = vadd.f32 %v9996_v39, %v9944_v53  ;;  %v10134_v55 = vld [vmem:[%s12895_s28 + $0x10] sm:$0xff]  ;;  %12899 = vst [vmem:[#allocation44_spill] sm:$0xff] %v10149_v1 }
  0xdc   : > { %v954_v58 = vadd.f32 %v10045_v28, %v926_v18  ;;  %v1352_v4 = vadd.f32 %v9873_v6, %v9948_v34  ;;  %v10124_v47 = vadd.f32 %v1405_v40, %v10097_v19  ;;  %12898 = vst [vmem:[#allocation43_spill] sm:$0xff] %v10134_v55  ;;  %v956_v53 = vadd.f32 %v10073_v43, %v928_v54 }
  0xdd   : > { %v958_v59 = vadd.f32 %v10035_v10, %v930_v20  ;;  %v1354_v6 = vadd.f32 %v9882_v50, %v9972_v57  ;;  %v986_v34 = vadd.f32 %v985_v63, %v10116_v0  ;;  %v960_v37 = vmax.f32 %v952_v2, 0.0 }
  0xde   : > { %v962_v38 = vmax.f32 %v954_v58, 0.0  ;;  %v1356_v23 = vadd.f32 %v9853_v3, %v9989_v44  ;;  %v1426_v18 = vadd.f32 %v1425_v32, %v10124_v47  ;;  %v964_v50 = vmax.f32 %v956_v53, 0.0 }
  0xdf   : > { %v966_v57 = vmax.f32 %v958_v59, 0.0  ;;  %v1380_v14 = vmul.f32 %v9784_v24, %v9991_v46  ;;  %v987_v63 = vadd.f32 %v986_v34, %v10106_v9  ;;  %v10158_v40 = vadd.f32 %v960_v37, %v10129_v25  ;;  %v12900_v34 = vld [vmem:[#allocation28_spill] sm:$0xff] }
  0xe0   : > { %v10161_v54 = vadd.f32 %v962_v38, %v10134_v55  ;;  %v1384_v20 = vadd.f32 %v9819_v42, %v9951_v60  ;;  %v1427_v3 = vadd.f32 %v1426_v18, %v10111_v36  ;;  %v10167_v44 = vadd.f32 %v964_v50, %v10144_v62 }
  0xe1   : > { %v10170_v32 = vadd.f32 %v966_v57, %v10149_v1  ;;  %v1386_v24 = vadd.f32 %v9958_v35, %v1352_v4  ;;  %v988_v46 = vrot.slane %v987_v63, 4  ;;  %v1388_v58 = vadd.f32 %v1380_v14, %v1354_v6 }
  0xe2   : > { %v976_v2 = vadd.f32 %v10161_v54, %v10158_v40  ;;  %v1390_v53 = vadd.f32 %v10033_v31, %v1356_v23  ;;  %v1428_v59 = vrot.slane %v1427_v3, 4  ;;  %v1392_v42 = vadd.f32 %v1384_v20, %v9996_v39  ;;  %v12901_v31 = vld [vmem:[#allocation30_spill] sm:$0xff] }
  0xe3   : > { %v1394_v60 = vadd.f32 %v1386_v24, %v10045_v28  ;;  %v1688_v37 = vadd.f32 %v12900_v34, %v9966_v56  ;;  %v989_v38 = vadd.f32 %v988_v46, %v987_v63  ;;  %v1396_v35 = vadd.f32 %v1388_v58, %v10073_v43  ;;  %v12902_v46 = vld [vmem:[#allocation32_spill] sm:$0xff]  ;;  %v12904_v34 = vld [vmem:[#allocation21_spill] sm:$0xff] }
  0xe4   : > { %v977_v18 = vadd.f32 %v976_v2, %v10167_v44  ;;  %v1398_v4 = vadd.f32 %v1390_v53, %v10035_v10  ;;  %v1429_v50 = vadd.f32 %v1428_v59, %v1427_v3  ;;  %v1400_v57 = vmax.f32 %v1392_v42, 0.0 }
  0xe5   : > { %v1402_v6 = vmax.f32 %v1394_v60, 0.0  ;;  %v1690_v23 = vadd.f32 %v12901_v31, %v9975_v61  ;;  %v990_v14 = vrot.slane %v989_v38, 2  ;;  %v1404_v24 = vmax.f32 %v1396_v35, 0.0  ;;  %v12903_v60 = vld [vmem:[#allocation39_spill] sm:$0xff] }
  0xe6   : > { %v978_v20 = vadd.f32 %v977_v18, %v10170_v32  ;;  %v1406_v33 = vmax.f32 %v1398_v4, 0.0  ;;  %v1430_v48 = vrot.slane %v1429_v50, 2  ;;  %v10187_v56 = vadd.f32 %v1400_v57, %v10129_v25 }
  0xe7   : > { %v10190_v63 = vadd.f32 %v1402_v6, %v10134_v55  ;;  %v1714_v3 = vmul.f32 %v9793_v27, %v12902_v46  ;;  %v991_v2 = vadd.f32 %v990_v14, %v989_v38  ;;  %v10195_v53 = vadd.f32 %v1404_v24, %v10144_v62 }
  0xe8   : > { %v979_v58 = vrot.slane %v978_v20, 4  ;;  %v10198_v61 = vadd.f32 %v1406_v33, %v10149_v1  ;;  %v1431_v59 = vadd.f32 %v1430_v48, %v1429_v50  ;;  %v1720_v18 = vadd.f32 %v12904_v34, %v12903_v60  ;;  %v12911_v1 = vld [vmem:[#allocation34_spill] sm:$0xff] }
  0xe9   : > { %v1416_v42 = vadd.f32 %v10190_v63, %v10187_v56  ;;  %v1722_v35 = vadd.f32 %v1714_v3, %v1688_v37  ;;  %v992_v4 = vrot.slane %v991_v2, 1  ;;  %v1724_v27 = vadd.f32 %v10012_v7, %v1690_v23  ;;  %v10216_v7 = vpop.permute.xlu0 %1047 }
  0xea   : > { %v980_v57 = vadd.f32 %v979_v58, %v978_v20  ;;  %v1726_v38 = vadd.f32 %v10039_v5, %v10001_v11  ;;  %v1432_v6 = vrot.slane %v1431_v59, 1  ;;  %v1728_v33 = vadd.f32 %v1720_v18, %v9996_v39  ;;  %12905 = vst [vmem:[#allocation28_spill] sm:$0xff] %v10216_v7  ;;  %v12914_v7 = vld [vmem:[#allocation40_spill] sm:$0xff] }
  0xeb   : > { %v1417_v31 = vadd.f32 %v1416_v42, %v10195_v53  ;;  %v1730_v48 = vadd.f32 %v1722_v35, %v10045_v28  ;;  %v993_v50 = vadd.f32 %v992_v4, %v991_v2  ;;  %v1732_v24 = vadd.f32 %v1724_v27, %v10073_v43 }
  0xec   : > { %v981_v14 = vrot.slane %v980_v57, 2  ;;  %v1734_v37 = vadd.f32 %v1726_v38, %v10035_v10  ;;  %v10214_v20 = vadd.f32 %v10023_v51, %v10073_v43  ;;  %v1433_v11 = vadd.f32 %v1432_v6, %v1431_v59 }
  0xed   : > { %v1418_v5 = vadd.f32 %v1417_v31, %v10198_v61  ;;  %v1738_v23 = vmax.f32 %v1730_v48, 0.0  ;;  %v996_v3 = vmul.f32 0.03125, %v993_v50  ;;  %v1736_v42 = vmax.f32 %v1728_v33, 0.0 }
  0xee   : > { %v982_v58 = vadd.f32 %v981_v14, %v980_v57  ;;  %v1740_v60 = vmax.f32 %v1732_v24, 0.0  ;;  %v1435_v2 = vmul.f32 0.03125, %v1433_v11  ;;  %v1742_v18 = vmax.f32 %v1734_v37, 0.0 }
  0xef   : > { %v1419_v34 = vrot.slane %v1418_v5, 4  ;;  %v10220_v35 = vadd.f32 %v1738_v23, %v10062_v22  ;;  %v10223_v4 = vsub.f32 %v10068_v45, %v996_v3  ;;  %v10226_v51 = vsub.f32 %v10084_v49, %v996_v3 }
  0xf0   : > { %v10229_v59 = vsub.f32 %v10116_v0, %v996_v3  ;;  %v10232_v27 = vsub.f32 %v10106_v9, %v996_v3  ;;  %v10235_v57 = vsub.f32 %v10087_v16, %v1435_v2  ;;  %v10238_v38 = vsub.f32 %v10101_v15, %v1435_v2  ;;  %v10255_v15 = vpop.permute.xlu0 %1052  ;;  %v12910_v3 = vld [vmem:[#allocation33_spill] sm:$0xff] }
  0xf1   : > { %v10241_v6 = vsub.f32 %v10124_v47, %v1435_v2  ;;  %v10244_v45 = vsub.f32 %v10111_v36, %v1435_v2  ;;  %v1006_v49 = vmul.f32 %v10223_v4, %v10223_v4  ;;  %v1008_v0 = vmul.f32 %v10226_v51, %v10226_v51  ;;  %12909 = vst [vmem:[#allocation21_spill] sm:$0xff] %v10255_v15 }
  0xf2   : > { %12906 = vst [vmem:[#allocation30_spill] sm:$0xff] %v10232_v27  ;;  %v1010_v9 = vmul.f32 %v10229_v59, %v10229_v59  ;;  %v10253_v16 = vadd.f32 %v1736_v42, %v10050_v12  ;;  %v1012_v47 = vmul.f32 %v10232_v27, %v10232_v27  ;;  %v1445_v36 = vmul.f32 %v10235_v57, %v10235_v57  ;;  %v12915_v27 = vld [vmem:[#allocation31_spill] sm:$0xff] }
  0xf3   : > { %12907 = vst [vmem:[#allocation32_spill] sm:$0xff] %v10241_v6  ;;  %12908 = vst [vmem:[#allocation39_spill] sm:$0xff] %v10244_v45  ;;  %v1447_v31 = vmul.f32 %v10238_v38, %v10238_v38  ;;  %v1449_v33 = vmul.f32 %v10241_v6, %v10241_v6  ;;  %v1022_v48 = vadd.f32 %v1008_v0, %v1006_v49  ;;  %v983_v50 = vrot.slane %v982_v58, 1  ;;  %v12912_v49 = vld [vmem:[#allocation22_spill] sm:$0xff] }
  0xf4   : > { %v1420_v14 = vadd.f32 %v1419_v34, %v1418_v5  ;;  %v10266_v24 = vadd.f32 %v1740_v60, %v10097_v19  ;;  %v1451_v37 = vmul.f32 %v10244_v45, %v10244_v45  ;;  %v1760_v23 = vadd.f32 %v10220_v35, %v10253_v16  ;;  %v12913_v45 = vld [vmem:[#allocation29_spill] sm:$0xff] }
  0xf5   : > { %v1461_v11 = vadd.f32 %v1447_v31, %v1445_v36  ;;  %v1989_v42 = vmul.f32 %v9775_v21, %v12910_v3  ;;  %v1023_v2 = vadd.f32 %v1022_v48, %v1010_v9  ;;  %v984_v55 = vadd.f32 %v983_v50, %v982_v58  ;;  %v10283_v9 = vpop.permute.xlu0 %1075 }
  0xf6   : > { %v1421_v25 = vrot.slane %v1420_v14, 2  ;;  %v2021_v0 = vadd.f32 %v12912_v49, %v12911_v1  ;;  %v10277_v60 = vadd.f32 %v1742_v18, %v10078_v41  ;;  %v1761_v34 = vadd.f32 %v1760_v23, %v10266_v24  ;;  %v12916_v18 = vld [vmem:[#allocation23_spill] sm:$0xff] }
  0xf7   : > { %v1462_v5 = vadd.f32 %v1461_v11, %v1449_v33  ;;  %v2023_v36 = vadd.f32 %v12913_v45, %v1989_v42  ;;  %v1024_v31 = vadd.f32 %v1023_v2, %v1012_v47  ;;  %v995_v6 = vmul.f32 0.03125, %v984_v55 }
  0xf8   : > { %v1422_v15 = vadd.f32 %v1421_v25, %v1420_v14  ;;  %v2025_v21 = vadd.f32 %v12915_v27, %v12914_v7  ;;  %v1762_v48 = vadd.f32 %v1761_v34, %v10277_v60  ;;  %v2049_v1 = vmul.f32 %v9796_v29, %v12902_v46 }
  0xf9   : > { %v1463_v58 = vadd.f32 %v1462_v5, %v1451_v37  ;;  %v2055_v33 = vadd.f32 %v12916_v18, %v2021_v0  ;;  %v1025_v50 = vrot.slane %v1024_v31, 4  ;;  %v10290_v11 = vsub.f32 %v10158_v40, %v995_v6  ;;  %v10310_v49 = vpop.permute.xlu0 %1080 }
  0xfa   : > { %v10293_v55 = vsub.f32 %v10161_v54, %v995_v6  ;;  %v10296_v25 = vsub.f32 %v10167_v44, %v995_v6  ;;  %v10299_v27 = vsub.f32 %v10170_v32, %v995_v6  ;;  %v1423_v45 = vrot.slane %v1422_v15, 1 }
  0xfb   : > { %v1464_v7 = vrot.slane %v1463_v58, 4  ;;  %v1763_v47 = vrot.slane %v1762_v48, 4  ;;  %v1026_v14 = vadd.f32 %v1025_v50, %v1024_v31  ;;  %v1005_v29 = vmul.f32 %v10290_v11, %v10290_v11 }
  0xfc   : > { %v1007_v40 = vmul.f32 %v10293_v55, %v10293_v55  ;;  %v2059_v37 = vadd.f32 %v10016_v13, %v2025_v21  ;;  %v1009_v44 = vmul.f32 %v10296_v25, %v10296_v25  ;;  %v1424_v23 = vadd.f32 %v1423_v45, %v1422_v15 }
  0xfd   : > { %v1465_v54 = vadd.f32 %v1464_v7, %v1463_v58  ;;  %v1764_v3 = vadd.f32 %v1763_v47, %v1762_v48  ;;  %v1027_v42 = vrot.slane %v1026_v14, 2  ;;  %v1011_v32 = vmul.f32 %v10299_v27, %v10299_v27 }
  0xfe   : > { %v1013_v6 = vadd.f32 %v1007_v40, %v1005_v29  ;;  %v2057_v2 = vadd.f32 %v2049_v1, %v2023_v36  ;;  %v1434_v5 = vmul.f32 0.03125, %v1424_v23  ;;  %v2061_v13 = vadd.f32 %v10043_v30, %v10008_v52  ;;  %v10335_v40 = vpop.permute.xlu0 %1057 }
  0xff   : > { %v1466_v0 = vrot.slane %v1465_v54, 2  ;;  %v1765_v34 = vrot.slane %v1764_v3, 2  ;;  %v1028_v31 = vadd.f32 %v1027_v42, %v1026_v14  ;;  %v2063_v58 = vadd.f32 %v2055_v33, %v9996_v39 }
 0x100   : > { %v1014_v21 = vadd.f32 %v1013_v6, %v1009_v44  ;;  %v2065_v15 = vadd.f32 %v2057_v2, %v10045_v28  ;;  %v10317_v18 = vsub.f32 %v10187_v56, %v1434_v5  ;;  %v10320_v36 = vsub.f32 %v10190_v63, %v1434_v5 }
 0x101   : > { %v1467_v48 = vadd.f32 %v1466_v0, %v1465_v54  ;;  %v10323_v1 = vsub.f32 %v10195_v53, %v1434_v5  ;;  %v1029_v50 = vrot.slane %v1028_v31, 1  ;;  %v1766_v45 = vadd.f32 %v1765_v34, %v1764_v3 }
 0x102   : > { %v1015_v7 = vadd.f32 %v1014_v21, %v1011_v32  ;;  %v2067_v52 = vadd.f32 %v2059_v37, %v10073_v43  ;;  %v10327_v33 = vsub.f32 %v10198_v61, %v1434_v5  ;;  %v1444_v47 = vmul.f32 %v10317_v18, %v10317_v18 }
 0x103   : > { %v1468_v30 = vrot.slane %v1467_v48, 1  ;;  %v1446_v56 = vmul.f32 %v10320_v36, %v10320_v36  ;;  %v1030_v63 = vadd.f32 %v1029_v50, %v1028_v31  ;;  %v1448_v53 = vmul.f32 %v10323_v1, %v10323_v1 }
 0x104   : > { %v1016_v14 = vrot.slane %v1015_v7, 4  ;;  %v1767_v29 = vrot.slane %v1766_v45, 1  ;;  %v2069_v37 = vadd.f32 %v2061_v13, %v10035_v10  ;;  %v2071_v61 = vmax.f32 %v2063_v58, 0.0 }
 0x105   : > { %v1469_v54 = vadd.f32 %v1468_v30, %v1467_v48  ;;  %v1452_v43 = vadd.f32 %v1446_v56, %v1444_v47  ;;  %v1032_v44 = vmul.f32 0.03125, %v1030_v63  ;;  %v2073_v42 = vmax.f32 %v2065_v15, 0.0 }
 0x106   : > { %v1017_v23 = vadd.f32 %v1016_v14, %v1015_v7  ;;  %v1768_v3 = vadd.f32 %v1767_v29, %v1766_v45  ;;  %v1450_v6 = vmul.f32 %v10327_v33, %v10327_v33  ;;  %v2075_v0 = vmax.f32 %v2067_v52, 0.0  ;;  %v10349_v45 = vpop.permute.xlu0 %1062 }
 0x107   : > { %v1471_v32 = vmul.f32 0.03125, %v1469_v54  ;;  %v1453_v2 = vadd.f32 %v1452_v43, %v1448_v53  ;;  %v1034_v5 = vadd.f32 1e-06, %v1032_v44  ;;  %v2077_v21 = vmax.f32 %v2069_v37, 0.0 }
 0x108   : > { %v1018_v34 = vrot.slane %v1017_v23, 2  ;;  %v1770_v31 = vmul.f32 0.03125, %v1768_v3  ;;  %v2304_v50 = vpop.xlane.xlu1 %2303  ;;  %v10341_v10 = vadd.f32 %v2071_v61, %v10050_v12  ;;  %v10344_v13 = vadd.f32 %v2073_v42, %v10062_v22  ;;  %v12917_v12 = vld [vmem:[#allocation15_spill] sm:$0xff] }
 0x109   : > { %v1473_v48 = vadd.f32 1e-06, %v1471_v32  ;;  %v1454_v30 = vadd.f32 %v1453_v2, %v1450_v6  ;;  %v2305_v58 = vmul.f32 0.03125, %v2304_v50  ;;  %9174 = vrsqrt.f32 %v1034_v5  ;;  %v12918_v32 = vld [vmem:[#allocation37_spill] sm:$0xff] }
 0x10a   : > { %v1019_v15 = vadd.f32 %v1018_v34, %v1017_v23  ;;  %v10347_v7 = vsub.f32 %v10253_v16, %v1770_v31  ;;  %v10352_v47 = vsub.f32 %v10220_v35, %v1770_v31  ;;  %v10355_v56 = vsub.f32 %v10266_v24, %v1770_v31  ;;  %v12919_v6 = vld [vmem:[#allocation25_spill] sm:$0xff]  ;;  %v10387_v5 = vpop.permute.xlu0 %1085 }
 0x10b   : > { %9176 = vrsqrt.f32 %v1473_v48  ;;  %v1455_v52 = vrot.slane %v1454_v30, 4  ;;  %v10358_v63 = vsub.f32 %v12917_v12, %v2305_v58  ;;  %v10363_v16 = vadd.f32 %v2075_v0, %v10097_v19  ;;  %v12921_v58 = vld [vmem:[#allocation24_spill] sm:$0xff] }
 0x10c   : > { %v1020_v22 = vrot.slane %v1019_v15, 1  ;;  %v1780_v14 = vmul.f32 %v10347_v7, %v10347_v7  ;;  %v1739_v53 = vmax.f32 %v10092_v17, 0.0  ;;  %v10367_v54 = vsub.f32 %v10277_v60, %v1770_v31 }
 0x10d   : > { %v1456_v29 = vadd.f32 %v1455_v52, %v1454_v30  ;;  %v1782_v35 = vmul.f32 %v10352_v47, %v10352_v47  ;;  %v2307_v24 = vmul.f32 %v10358_v63, %v10358_v63  ;;  %v1784_v37 = vmul.f32 %v10355_v56, %v10355_v56  ;;  %v12920_v30 = vld [vmem:[#allocation35_spill] sm:$0xff]  ;;  %v12922_v52 = vld [vmem:[#allocation41_spill] sm:$0xff] }
 0x10e   : > { %v1021_v43 = vadd.f32 %v1020_v22, %v1019_v15  ;;  %v2095_v19 = vadd.f32 %v10344_v13, %v10341_v10  ;;  %v10378_v17 = vadd.f32 %v2077_v21, %v10078_v41  ;;  %v12772_v42 = vmov 0.0  }
 0x10f   : > { %v1457_v61 = vrot.slane %v1456_v29, 2  ;;  %v1796_v44 = vadd.f32 %v1782_v35, %v1780_v14  ;;  %v2308_v60 = vsel %vm2301_vm0, %v2307_v24, 0.0  ;;  %1230 = vmatprep.mubr.f32.mxu0 %v12772_v42  ;;  %1564 = vmatprep.mubr.f32.mxu1 %v12772_v42  ;;  %v1687_v2 = vadd.f32 %v12919_v6, %v12918_v32  ;;  %v10408_v6 = vpop.permute.xlu0 %1090 }
 0x110   : > { %v1031_v23 = vmul.f32 0.03125, %v1021_v43  ;;  %v2096_v3 = vadd.f32 %v2095_v19, %v10363_v16  ;;  %v1741_v0 = vmax.f32 %v10057_v8, 0.0  ;;  %2309 = vadd.xlane.f32.xlu0 %v2308_v60  ;;  %v1786_v34 = vmul.f32 %v10367_v54, %v10367_v54 }
 0x111   : > { %v1458_v41 = vadd.f32 %v1457_v61, %v1456_v29  ;;  %v1797_v31 = vadd.f32 %v1796_v44, %v1784_v37  ;;  %v1713_v48 = vmul.f32 %v9790_v26, %v12902_v46  ;;  %v1719_v15 = vadd.f32 %v12921_v58, %v12920_v30 }
 0x112   : > { %v1033_v21 = vadd.f32 1e-06, %v1031_v23  ;;  %v2097_v50 = vadd.f32 %v2096_v3, %v10378_v17  ;;  %v2076_v12 = vmax.f32 %v12922_v52, 0.0  ;;  %v2074_v8 = vmax.f32 %v10214_v20, 0.0 }
 0x113   : > { %v1459_v22 = vrot.slane %v1458_v41, 1  ;;  %v10399_v14 = vadd.f32 %v1739_v53, %v10144_v62  ;;  %v9175_v29 = vpop.eup %9174  ;;  %v1798_v35 = vadd.f32 %v1797_v31, %v1786_v34  ;;  %v1721_v24 = vadd.f32 %v1713_v48, %v1687_v2  ;;  %v12923_v53 = vld [vmem:[#allocation30_spill] sm:$0xff]  ;;  %v12924_v2 = vld [vmem:[#allocation28_spill] sm:$0xff]  ;;  %v12925_v31 = vld [vmem:[#allocation21_spill] sm:$0xff] }
 0x114   : > { %9178 = vrsqrt.f32 %v1033_v21  ;;  %v1727_v43 = vadd.f32 %v1719_v15, %v9996_v39  ;;  %v1038_v26 = vmul.f32 %v9175_v29, %v10223_v4  ;;  %v1040_v19 = vmul.f32 %v9175_v29, %v10226_v51 }
 0x115   : > { %v9177_v37 = vpop.eup %9176  ;;  %v1460_v61 = vadd.f32 %v1459_v22, %v1458_v41  ;;  %v1042_v44 = vmul.f32 %v9175_v29, %v10229_v59  ;;  %v1044_v3 = vmul.f32 %v9175_v29, %v12923_v53  ;;  %v2098_v32 = vrot.slane %v2097_v50, 4  ;;  %v12926_v41 = vld [vmem:[#allocation32_spill] sm:$0xff]  ;;  %v12927_v22 = vld [vmem:[#allocation39_spill] sm:$0xff]  ;;  %v12928_v53 = vld [vmem:[#allocation38_spill] sm:$0xff] }
 0x116   : > { %v1477_v60 = vmul.f32 %v9177_v37, %v10235_v57  ;;  %v1479_v23 = vmul.f32 %v9177_v37, %v10238_v38  ;;  %v1066_v34 = vmul.f32 %v12924_v2, %v1038_v26  ;;  %v1068_v21 = vmul.f32 %v12925_v31, %v1040_v19 }
 0x117   : > { %v1470_v48 = vmul.f32 0.03125, %v1460_v61  ;;  %v1070_v4 = vmul.f32 %v10335_v40, %v1042_v44  ;;  %v1072_v57 = vmul.f32 %v10349_v45, %v1044_v3  ;;  %v1481_v38 = vmul.f32 %v9177_v37, %v12926_v41  ;;  %v12929_v3 = vld [vmem:[#allocation26_spill] sm:$0xff]  ;;  %v12930_v41 = vld [vmem:[#allocation44_spill] sm:$0xff] }
 0x118   : > { %v1485_v51 = vmul.f32 %v1477_v60, %v12924_v2  ;;  %v1487_v59 = vmul.f32 %v1479_v23, %v12925_v31  ;;  %v1094_v30 = vadd.f32 %v10283_v9, %v1066_v34  ;;  %v1096_v58 = vadd.f32 %v10310_v49, %v1068_v21 }
 0x119   : > { %v1472_v15 = vadd.f32 1e-06, %v1470_v48  ;;  %v1483_v29 = vmul.f32 %v9177_v37, %v12927_v22  ;;  %v10423_v61 = vadd.f32 %v10387_v5, %v1070_v4  ;;  %v10426_v44 = vadd.f32 %v10408_v6, %v1072_v57 }
 0x11a   : > { %v1493_v26 = vadd.f32 %v1485_v51, %v10283_v9  ;;  %v1495_v19 = vadd.f32 %v1487_v59, %v10310_v49  ;;  %v8541_v60 = vpack.c.bf16 %v1096_v58, %v1094_v30  ;;  %v1799_v23 = vrot.slane %v1798_v35, 4  ;;  %v12931_v51 = vld [vmem:[#allocation20_spill] sm:$0xff] }
 0x11b   : > { %9180 = vrsqrt.f32 %v1472_v15  ;;  %v2022_v34 = vadd.f32 %v12929_v3, %v12928_v53  ;;  %v2099_v48 = vadd.f32 %v2098_v32, %v2097_v50  ;;  %v10431_v37 = vadd.f32 %v1741_v0, %v12930_v41  ;;  %v12932_v0 = vld [vmem:[#allocation36_spill] sm:$0xff]  ;;  %v12934_v3 = vld [vmem:[#allocation42_spill] sm:$0xff] }
 0x11c   : > { %v8549_v21 = vpack.c.bf16 %v1495_v19, %v1493_v26  ;;  %v2048_v59 = vmul.f32 %v12931_v51, %v12902_v46  ;;  %8542 = vmatprep.subr.bf16.mxu0 %v8541_v60  ;;  %v1489_v4 = vmul.f32 %v1481_v38, %v10335_v40  ;;  %v1800_v22 = vadd.f32 %v1799_v23, %v1798_v35  ;;  %v12933_v26 = vld [vmem:[#allocation27_spill] sm:$0xff] }
 0x11d   : > { %v1729_v57 = vadd.f32 %v1721_v24, %v10045_v28  ;;  %v1735_v30 = vmax.f32 %v1727_v43, 0.0  ;;  %v8545_v15 = vpack.c.bf16 %v10426_v44, %v10423_v61  ;;  %v1491_v50 = vmul.f32 %v1483_v29, %v10349_v45 }
 0x11e   : > { %v9179_v58 = vpop.eup %9178  ;;  %8550 = vmatprep.subr.bf16.mxu1 %v8549_v21  ;;  %v2100_v32 = vrot.slane %v2099_v48, 2  ;;  %v2054_v19 = vadd.f32 %v12933_v26, %v12932_v0  ;;  %v2056_v38 = vadd.f32 %v2048_v59, %v2022_v34  ;;  %v1801_v43 = vrot.slane %v1800_v22, 2 }
 0x11f   : > { %v1037_v46 = vmul.f32 %v9179_v58, %v10290_v11  ;;  %v1039_v60 = vmul.f32 %v9179_v58, %v10293_v55  ;;  %v1041_v35 = vmul.f32 %v9179_v58, %v10296_v25  ;;  %v1043_v24 = vmul.f32 %v9179_v58, %v10299_v27  ;;  %v12935_v25 = vld [vmem:[#allocation43_spill] sm:$0xff] }
 0x120   : > { %v2101_v23 = vadd.f32 %v2100_v32, %v2099_v48  ;;  %v1737_v53 = vmax.f32 %v1729_v57, 0.0  ;;  %v10450_v21 = vadd.f32 %v1735_v30, %v12934_v3  ;;  %v1802_v55 = vadd.f32 %v1801_v43, %v1800_v22  ;;  %v781_v22 = vld [vmem:[%s12868_s1 + $0x28] sm:$0xff]  ;;  %s9334_s1 = scalar_lea.vmem %s12616_s25, 256 }
 0x121   : > { %v1065_v61 = vmul.f32 %v12924_v2, %v1037_v46  ;;  %v1067_v29 = vmul.f32 %v12925_v31, %v1039_v60  ;;  %v1069_v44 = vmul.f32 %v10335_v40, %v1041_v35  ;;  %v1071_v11 = vmul.f32 %v10349_v45, %v1043_v24  ;;  %p9335_p11 = scmp.ne.s32.totalorder %s12616_s25, %s9334_s1 }
 0x122   : > { %v2102_v51 = vrot.slane %v2101_v23, 1  ;;  %v10454_v34 = vadd.f32 %v1737_v53, %v12935_v25  ;;  %v2062_v57 = vadd.f32 %v2054_v19, %v9996_v39  ;;  %v1497_v58 = vadd.f32 %v1489_v4, %v10387_v5 }
 0x123   : > { %v1093_v27 = vadd.f32 %v10283_v9, %v1065_v61  ;;  %v1095_v48 = vadd.f32 %v10310_v49, %v1067_v29  ;;  %v1097_v59 = vadd.f32 %v10387_v5, %v1069_v44  ;;  %v1099_v30 = vadd.f32 %v10408_v6, %v1071_v11  ;;  %p9336_p12 = pnand %p9335_p11, %p9601_p5 }
 0x124   : > { %v1803_v32 = vrot.slane %v1802_v55, 1  ;;  %v2103_v0 = vadd.f32 %v2102_v51, %v2101_v23  ;;  %v1499_v60 = vadd.f32 %v1491_v50, %v10408_v6  ;;  %v1751_v35 = vadd.f32 %v10454_v34, %v10450_v21 }
 0x125   : > { %v9181_v26 = vpop.eup %9180  ;;  %v8543_v46 = vpack.c.bf16 %v1095_v48, %v1093_v27  ;;  %v2064_v24 = vadd.f32 %v2056_v38, %v10045_v28  ;;  %v2070_v43 = vmax.f32 %v2062_v57, 0.0  ;;  %v8547_v23 = vpack.c.bf16 %v1099_v30, %v1097_v59  ;;  %p9337_p13 = pneg %p9336_p12 }
 0x126   : > { %v1476_v39 = vmul.f32 %v9181_v26, %v10317_v18  ;;  %v1478_v4 = vmul.f32 %v9181_v26, %v10320_v36  ;;  %v1480_v19 = vmul.f32 %v9181_v26, %v10323_v1  ;;  %v1482_v53 = vmul.f32 %v9181_v26, %v10327_v33  ;;  %1128 = vperm.xlu0 %9059, %v781_v22  }
 0x127   : > { %8544 = vmatpush1.bf16.msra.mxu0 %v8543_v46  ;;  %v1804_v61 = vadd.f32 %v1803_v32, %v1802_v55  ;;  %v2105_v29 = vmul.f32 0.03125, %v2103_v0  ;;  %v1752_v18 = vadd.f32 %v1751_v35, %v10399_v14  ;;  %v8553_v0 = vpack.c.bf16 %v1499_v60, %v1497_v58 }
 0x128   : > { %v1484_v50 = vmul.f32 %v1476_v39, %v12924_v2  ;;  %v1486_v44 = vmul.f32 %v1478_v4, %v12925_v31  ;;  %8546 = vmatprep.subr.bf16.mxu0 %v8545_v15  ;;  %v1488_v28 = vmul.f32 %v1480_v19, %v10335_v40  ;;  %v1490_v36 = vmul.f32 %v1482_v53, %v10349_v45 }
 0x129   : > { %v1806_v1 = vmul.f32 0.03125, %v1804_v61  ;;  %v10479_v38 = vsub.f32 %v10341_v10, %v2105_v29  ;;  %v10482_v33 = vsub.f32 %v10344_v13, %v2105_v29  ;;  %v10487_v51 = vsub.f32 %v10363_v16, %v2105_v29  ;;  %v10496_v13 = vld [vmem:[%s12936_s27] sm:$0xff] }
 0x12a   : > { %v1492_v11 = vadd.f32 %v1484_v50, %v10283_v9  ;;  %v1494_v55 = vadd.f32 %v1486_v44, %v10310_v49  ;;  %v2072_v15 = vmax.f32 %v2064_v24, 0.0  ;;  %v1496_v27 = vadd.f32 %v1488_v28, %v10387_v5  ;;  %v10553_v50 = vld [vmem:[%s12936_s27 + $0x18] sm:$0xff] }
 0x12b   : > { %8548 = vmatpush1.bf16.msra.mxu0 %v8547_v23  ;;  %v1498_v48 = vadd.f32 %v1490_v36, %v10408_v6  ;;  %v1808_v59 = vadd.f32 1e-06, %v1806_v1  ;;  %v2115_v10 = vmul.f32 %v10479_v38, %v10479_v38  ;;  %v10499_v30 = vsub.f32 %v10378_v17, %v2105_v29 }
 0x12c   : > { %v8551_v57 = vpack.c.bf16 %v1494_v55, %v1492_v11  ;;  %v2117_v16 = vmul.f32 %v10482_v33, %v10482_v33  ;;  %v1753_v32 = vadd.f32 %v1752_v18, %v10431_v37  ;;  %v2119_v22 = vmul.f32 %v10487_v51, %v10487_v51 }
 0x12d   : > { %9182 = vrsqrt.f32 %v1808_v59  ;;  %v10509_v26 = vadd.f32 %v2074_v8, %v10144_v62  ;;  %v10514_v35 = vadd.f32 %v2070_v43, %v12934_v3  ;;  %v10517_v58 = vadd.f32 %v2072_v15, %v12935_v25  ;;  %v10523_v62 = vld [vmem:[%s12936_s27 + $0x8] sm:$0xff]  ;;  %v10541_v43 = vld [vmem:[%s12936_s27 + $0x10] sm:$0xff] }
 0x12e   : > { %8552 = vmatpush1.bf16.msra.mxu1 %v8551_v57  ;;  %v2131_v46 = vadd.f32 %v2117_v16, %v2115_v10  ;;  %8248 = vmatmul.mubr.msk.f32.vlgmr.msra.gmra.mrb[0].mxu0 %vm1141_vm1, %v10496_v13  ;;  %v1754_v17 = vrot.slane %v1753_v32, 4  ;;  %v8555_v60 = vpack.c.bf16 %v1498_v48, %v1496_v27  ;;  %v2121_v20 = vmul.f32 %v10499_v30, %v10499_v30 }
 0x12f   : > { %8554 = vmatprep.subr.bf16.mxu1 %v8553_v0  ;;  %1236 = vmatprep.mubr.f32.mxu0 %v12772_v42  ;;  %v2086_v3 = vadd.f32 %v10517_v58, %v10514_v35  ;;  %v10532_v4 = vadd.f32 %v2076_v12, %v12930_v41 }
 0x130   : > { %v2132_v8 = vadd.f32 %v2131_v46, %v2119_v22  ;;  %v1755_v24 = vadd.f32 %v1754_v17, %v1753_v32  ;;  %v10577_v32 = vld [vmem:[%s12936_s27 + $0x20] sm:$0xff] }
 0x131   : > { %v2087_v19 = vadd.f32 %v2086_v3, %v10509_v26 }
 0x132   : > { %8556 = vmatpush1.bf16.msra.mxu1 %v8555_v60  ;;  %v2133_v25 = vadd.f32 %v2132_v8, %v2121_v20  ;;  %v1756_v39 = vrot.slane %v1755_v24, 2  ;;  %8249 = vmatmul.mubr.msk.f32.gmra.mrb[2].mxu0 %vm1141_vm1, %v10523_v62 }
 0x133   : > { %1242 = vmatprep.mubr.f32.mxu0 %v12772_v42  ;;  %v2088_v61 = vadd.f32 %v2087_v19, %v10532_v4 }
 0x134   : > { %v2134_v23 = vrot.slane %v2133_v25, 4  ;;  %v1757_v53 = vadd.f32 %v1756_v39, %v1755_v24 }
 0x135   : > { %8257 = vmatmul.mubr.msk.f32.vlgmr.msra.gmra.mrb[0].mxu1 %vm1141_vm1, %v10496_v13  ;;  %v2089_v41 = vrot.slane %v2088_v61, 4 }
 0x136   : > { %v2135_v52 = vadd.f32 %v2134_v23, %v2133_v25  ;;  %v1758_v12 = vrot.slane %v1757_v53, 1  ;;  %1570 = vmatprep.mubr.f32.mxu1 %v12772_v42  ;;  %8250 = vmatmul.mubr.msk.f32.gmra.mrb[4].mxu0 %vm1141_vm1, %v10541_v43  ;;  %v10607_v25 = vld [vmem:[%s12936_s27 + $0x28] sm:$0xff] }
 0x137   : > { %v9183_v29 = vpop.eup %9182  ;;  %1248 = vmatprep.mubr.f32.mxu0 %v12772_v42  ;;  %v2090_v1 = vadd.f32 %v2089_v41, %v2088_v61  ;;  %v10624_v41 = vld [vmem:[%s12936_s27 + $0x30] sm:$0xff] }
 0x138   : > { %v1812_v44 = vmul.f32 %v9183_v29, %v10347_v7  ;;  %v1814_v28 = vmul.f32 %v9183_v29, %v10352_v47  ;;  %v2136_v18 = vrot.slane %v2135_v52, 2  ;;  %v1759_v36 = vadd.f32 %v1758_v12, %v1757_v53 }
 0x139   : > { %v1816_v11 = vmul.f32 %v9183_v29, %v10355_v56  ;;  %v1818_v55 = vmul.f32 %v9183_v29, %v10367_v54  ;;  %8258 = vmatmul.mubr.msk.f32.gmra.mrb[2].mxu1 %vm1141_vm1, %v10523_v62  ;;  %v2091_v7 = vrot.slane %v2090_v1, 2 }
 0x13a   : > { %v1820_v15 = vmul.f32 %v1812_v44, %v12924_v2  ;;  %v1822_v27 = vmul.f32 %v1814_v28, %v12925_v31  ;;  %v2137_v48 = vadd.f32 %v2136_v18, %v2135_v52  ;;  %v1769_v59 = vmul.f32 0.03125, %v1759_v36  ;;  %1576 = vmatprep.mubr.f32.mxu1 %v12772_v42  ;;  %8251 = vmatmul.mubr.msk.f32.gmra.mrb[6].mxu0 %vm1141_vm1, %v10553_v50 }
 0x13b   : > { %v1824_v47 = vmul.f32 %v1816_v11, %v10335_v40  ;;  %v1826_v56 = vmul.f32 %v1818_v55, %v10349_v45  ;;  %1254 = vmatprep.mubr.f32.mxu0 %v12772_v42  ;;  %v2092_v46 = vadd.f32 %v2091_v7, %v2090_v1 }
 0x13c   : > { %v1828_v54 = vadd.f32 %v1820_v15, %v10283_v9  ;;  %v1830_v10 = vadd.f32 %v1822_v27, %v10310_v49  ;;  %v2138_v57 = vrot.slane %v2137_v48, 1  ;;  %v10572_v16 = vsub.f32 %v10450_v21, %v1769_v59 }
 0x13d   : > { %v10580_v0 = vsub.f32 %v10454_v34, %v1769_v59  ;;  %v10583_v22 = vsub.f32 %v10399_v14, %v1769_v59  ;;  %8259 = vmatmul.mubr.msk.f32.gmra.mrb[4].mxu1 %vm1141_vm1, %v10541_v43  ;;  %v10590_v20 = vadd.f32 %v1824_v47, %v10387_v5  ;;  %v10594_v34 = vsub.f32 %v10431_v37, %v1769_v59 }
 0x13e   : > { %v8557_v17 = vpack.c.bf16 %v1830_v10, %v1828_v54  ;;  %v2139_v60 = vadd.f32 %v2138_v57, %v2137_v48  ;;  %v1779_v21 = vmul.f32 %v10572_v16, %v10572_v16  ;;  %1582 = vmatprep.mubr.f32.mxu1 %v12772_v42  ;;  %v2093_v8 = vrot.slane %v2092_v46, 1  ;;  %8252 = vmatmul.mubr.msk.f32.gmra.mrb[8].mxu0 %vm1141_vm1, %v10577_v32 }
 0x13f   : > { %v1781_v14 = vmul.f32 %v10580_v0, %v10580_v0  ;;  %v10601_v3 = vadd.f32 %v1826_v56, %v10408_v6  ;;  %1260 = vmatprep.mubr.f32.mxu0 %v12772_v42  ;;  %v1783_v37 = vmul.f32 %v10583_v22, %v10583_v22  ;;  %v1785_v61 = vmul.f32 %v10594_v34, %v10594_v34 }
 0x140   : > { %8558 = vmatprep.subr.bf16.mxu0 %v8557_v17  ;;  %v2141_v24 = vmul.f32 0.03125, %v2139_v60  ;;  %v2094_v19 = vadd.f32 %v2093_v8, %v2092_v46 }
 0x141   : > { %v1787_v39 = vadd.f32 %v1781_v14, %v1779_v21  ;;  %8260 = vmatmul.mubr.msk.f32.gmra.mrb[6].mxu1 %vm1141_vm1, %v10553_v50  ;;  %v8561_v53 = vpack.c.bf16 %v10601_v3, %v10590_v20 }
 0x142   : > { %v2143_v23 = vadd.f32 1e-06, %v2141_v24  ;;  %1588 = vmatprep.mubr.f32.mxu1 %v12772_v42  ;;  %v2104_v12 = vmul.f32 0.03125, %v2094_v19  ;;  %8253 = vmatmul.mubr.msk.f32.gmra.mrb[10].mxu0 %vm1141_vm1, %v10607_v25 }
 0x143   : > { %v1788_v52 = vadd.f32 %v1787_v39, %v1783_v37  ;;  %1266 = vmatprep.mubr.f32.mxu0 %v12772_v42 }
 0x144   : > { %9184 = vrsqrt.f32 %v2143_v23  ;;  %v10627_v44 = vsub.f32 %v10514_v35, %v2104_v12  ;;  %v10630_v28 = vsub.f32 %v10517_v58, %v2104_v12  ;;  %v10633_v18 = vsub.f32 %v10509_v26, %v2104_v12  ;;  %v10651_v26 = vld [vmem:[%s12936_s27 + $0x38] sm:$0xff] }
 0x145   : > { %v1789_v29 = vadd.f32 %v1788_v52, %v1785_v61  ;;  %8261 = vmatmul.mubr.msk.f32.gmra.mrb[8].mxu1 %vm1141_vm1, %v10577_v32  ;;  %v10639_v1 = vsub.f32 %v10532_v4, %v2104_v12 }
 0x146   : > { %1594 = vmatprep.mubr.f32.mxu1 %v12772_v42  ;;  %v2114_v11 = vmul.f32 %v10627_v44, %v10627_v44  ;;  %v2116_v35 = vmul.f32 %v10630_v28, %v10630_v28  ;;  %8254 = vmatmul.mubr.msk.f32.gmra.mrb[12].mxu0 %vm1141_vm1, %v10624_v41  ;;  %v2118_v4 = vmul.f32 %v10633_v18, %v10633_v18 }
 0x147   : > { %v1790_v36 = vrot.slane %v1789_v29, 4  ;;  %1272 = vmatprep.mubr.f32.mxu0 %v12772_v42  ;;  %v2120_v27 = vmul.f32 %v10639_v1, %v10639_v1 }
 0x148   : > { %v2122_v55 = vadd.f32 %v2116_v35, %v2114_v11 }
 0x149   : > { %v1791_v58 = vadd.f32 %v1790_v36, %v1789_v29  ;;  %8262 = vmatmul.mubr.msk.f32.gmra.mrb[10].mxu1 %vm1141_vm1, %v10607_v25 }
 0x14a   : > { %1600 = vmatprep.mubr.f32.mxu1 %v12772_v42  ;;  %v2123_v48 = vadd.f32 %v2122_v55, %v2118_v4  ;;  %8255 = vmatmul.mubr.msk.f32.gmra.mrb[14].mxu0 %vm1141_vm1, %v10651_v26 }
 0x14b   : > { %v1792_v15 = vrot.slane %v1791_v58, 2  ;;  %1899 = vmatprep.mubr.f32.mxu0 %v12772_v42 }
 0x14c   : > { %v2124_v7 = vadd.f32 %v2123_v48, %v2120_v27 }
 0x14d   : > { %v1793_v59 = vadd.f32 %v1792_v15, %v1791_v58  ;;  %8263 = vmatmul.mubr.msk.f32.gmra.mrb[12].mxu1 %vm1141_vm1, %v10624_v41 }
 0x14e   : > { %v9185_v47 = vpop.eup %9184  ;;  %1606 = vmatprep.mubr.f32.mxu1 %v12772_v42  ;;  %v2125_v57 = vrot.slane %v2124_v7, 4 }
 0x14f   : > { %v2147_v56 = vmul.f32 %v9185_v47, %v10479_v38  ;;  %v2149_v54 = vmul.f32 %v9185_v47, %v10482_v33  ;;  %v1794_v10 = vrot.slane %v1793_v59, 1  ;;  %v2151_v27 = vmul.f32 %v9185_v47, %v10487_v51 }
 0x150   : > { %v2126_v21 = vadd.f32 %v2125_v57, %v2124_v7  ;;  %v2153_v48 = vmul.f32 %v9185_v47, %v10499_v30 }
 0x151   : > { %v2155_v46 = vmul.f32 %v2147_v56, %v12924_v2  ;;  %v2157_v17 = vmul.f32 %v2149_v54, %v12925_v31  ;;  %v1795_v60 = vadd.f32 %v1794_v10, %v1793_v59  ;;  %8264 = vmatmul.mubr.msk.f32.gmra.mrb[14].mxu1 %vm1141_vm1, %v10651_v26  ;;  %v2159_v56 = vmul.f32 %v2151_v27, %v10335_v40 }
 0x152   : > { %2234 = vmatprep.mubr.f32.mxu1 %v12772_v42  ;;  %v2127_v24 = vrot.slane %v2126_v21, 2  ;;  %v2161_v54 = vmul.f32 %v2153_v48, %v10349_v45 }
 0x153   : > { %v2163_v14 = vadd.f32 %v2155_v46, %v10283_v9  ;;  %v2165_v8 = vadd.f32 %v2157_v17, %v10310_v49  ;;  %v1805_v38 = vmul.f32 0.03125, %v1795_v60  ;;  %v2167_v20 = vadd.f32 %v2159_v56, %v10387_v5 }
 0x154   : > { %v2128_v39 = vadd.f32 %v2127_v24, %v2126_v21  ;;  %v2169_v3 = vadd.f32 %v2161_v54, %v10408_v6 }
 0x155   : > { %v8565_v33 = vpack.c.bf16 %v2165_v8, %v2163_v14  ;;  %v1807_v37 = vadd.f32 1e-06, %v1805_v38  ;;  %v2333_v14 = vld [vmem:[%s12937_s11 + $0x10] sm:$0xff]  ;;  %v10792_v38 = vpop.permute.xlu1 %1103 }
 0x156   : > { %v2129_v19 = vrot.slane %v2128_v39, 1 }
 0x157   : > { %8566 = vmatprep.subr.bf16.mxu1 %v8565_v33  ;;  %9186 = vrsqrt.f32 %v1807_v37 }
 0x158   : > { %v2130_v23 = vadd.f32 %v2129_v19, %v2128_v39 }
 0x159   : > { %v10794_v24 = vpop.permute.xlu1 %1108 }
 0x15a   : > { %v2140_v61 = vmul.f32 0.03125, %v2130_v23 }
 0x15c   : > { %v2142_v52 = vadd.f32 1e-06, %v2140_v61 }
 0x15d   : > { %v10796_v39 = vpop.permute.xlu1 %1113 }
 0x15e   : > { %9188 = vrsqrt.f32 %v2142_v52 }
 0x161   : > { %v9187_v12 = vpop.eup %9186 }
 0x162   : > { %v1811_v29 = vmul.f32 %v9187_v12, %v10572_v16  ;;  %v1813_v36 = vmul.f32 %v9187_v12, %v10580_v0  ;;  %v1815_v11 = vmul.f32 %v9187_v12, %v10583_v22  ;;  %v1817_v35 = vmul.f32 %v9187_v12, %v10594_v34 }
 0x164   : > { %v1819_v58 = vmul.f32 %v1811_v29, %v12924_v2  ;;  %v1821_v4 = vmul.f32 %v1813_v36, %v12925_v31  ;;  %v1823_v55 = vmul.f32 %v1815_v11, %v10335_v40  ;;  %v1825_v15 = vmul.f32 %v1817_v35, %v10349_v45 }
 0x166   : > { %v1827_v16 = vadd.f32 %v1819_v58, %v10283_v9  ;;  %v1829_v0 = vadd.f32 %v1821_v4, %v10310_v49  ;;  %v1831_v22 = vadd.f32 %v1823_v55, %v10387_v5  ;;  %v1833_v34 = vadd.f32 %v1825_v15, %v10408_v6  ;;  %v10807_v55 = vpop.permute.xlu1 %1118 }
 0x168   : > { %v8559_v59 = vpack.c.bf16 %v1829_v0, %v1827_v16  ;;  %v9189_v7 = vpop.eup %9188  ;;  %v8563_v57 = vpack.c.bf16 %v1833_v34, %v1831_v22 }
 0x169   : > { %v2146_v10 = vmul.f32 %v9189_v7, %v10627_v44  ;;  %v2148_v51 = vmul.f32 %v9189_v7, %v10630_v28  ;;  %v2150_v30 = vmul.f32 %v9189_v7, %v10633_v18  ;;  %v2152_v47 = vmul.f32 %v9189_v7, %v10639_v1  ;;  %v2331_v44 = vld [vmem:[%s12937_s11] sm:$0xff]  ;;  %v2332_v28 = vld [vmem:[%s12937_s11 + $0x8] sm:$0xff] }
 0x16a   : > { %8560 = vmatpush1.bf16.msra.mxu0 %v8559_v59 }
 0x16b   : > { %8562 = vmatprep.subr.bf16.mxu0 %v8561_v53  ;;  %v2154_v46 = vmul.f32 %v2146_v10, %v12924_v2  ;;  %v2156_v17 = vmul.f32 %v2148_v51, %v12925_v31  ;;  %v2158_v60 = vmul.f32 %v2150_v30, %v10335_v40  ;;  %v2160_v21 = vmul.f32 %v2152_v47, %v10349_v45 }
 0x16c   : > { %v9434_v40 = vmov 0.0|0.0   ;;  %v10713_v45 = vpack.c.bf16 %v2332_v28, %v2331_v44 }
 0x16d   : > { %v2162_v2 = vadd.f32 %v2154_v46, %v10283_v9  ;;  %v2164_v31 = vadd.f32 %v2156_v17, %v10310_v49  ;;  %v2166_v18 = vadd.f32 %v2158_v60, %v10387_v5  ;;  %v2168_v1 = vadd.f32 %v2160_v21, %v10408_v6  ;;  %v2334_v9 = vld [vmem:[%s12937_s11 + $0x18] sm:$0xff]  ;;  %v10826_v60 = vpop.permute.xlu1 %1123 }
 0x16e   : > { %8564 = vmatpush1.bf16.msra.mxu0 %v8563_v57  ;;  %v8569_v49 = vpack.c.bf16 %v2169_v3, %v2167_v20  ;;  %v10727_v5 = vpack.c.bf16 %v2334_v9, %v2333_v14 }
 0x16f   : > { %8573 = vmatprep.subr.bf16.mxu0 %v9434_v40  ;;  %v8567_v53 = vpack.c.bf16 %v2164_v31, %v2162_v2  ;;  %v8571_v6 = vpack.c.bf16 %v2168_v1, %v2166_v18 }
 0x171   : > { %8266 = vmatmul.mubr.msk.f32.vlgmr.msra.gmra.mrb[16].mxu0 %vm1141_vm1, %v10496_v13  ;;  %8568 = vmatpush1.bf16.msra.mxu1 %v8567_v53 }
 0x172   : > { %1905 = vmatprep.mubr.f32.mxu0 %v12772_v42  ;;  %8570 = vmatprep.subr.bf16.mxu1 %v8569_v49 }
 0x173   : > { %8575 = vmatpush3.bf16.msra.mxu0 %v10713_v45 }
 0x174   : > { %8576 = vmatprep.subr.bf16.mxu0 %v9434_v40 }
 0x175   : > { %8267 = vmatmul.mubr.msk.f32.gmra.mrb[18].mxu0 %vm1141_vm1, %v10523_v62  ;;  %8572 = vmatpush1.bf16.msra.mxu1 %v8571_v6 }
 0x176   : > { %1911 = vmatprep.mubr.f32.mxu0 %v12772_v42 }
 0x177   : > { %8578 = vmatpush3.bf16.msra.mxu0 %v10727_v5 }
 0x178   : > { %8275 = vmatmul.mubr.msk.f32.vlgmr.msra.gmra.mrb[16].mxu1 %vm1141_vm1, %v10496_v13 }
 0x179   : > { %8268 = vmatmul.mubr.msk.f32.gmra.mrb[20].mxu0 %vm1141_vm1, %v10541_v43  ;;  %2240 = vmatprep.mubr.f32.mxu1 %v12772_v42 }
 0x17a   : > { %1917 = vmatprep.mubr.f32.mxu0 %v12772_v42 }
 0x17c   : > { %8276 = vmatmul.mubr.msk.f32.gmra.mrb[18].mxu1 %vm1141_vm1, %v10523_v62 }
 0x17d   : > { %8269 = vmatmul.mubr.msk.f32.gmra.mrb[22].mxu0 %vm1141_vm1, %v10553_v50  ;;  %2246 = vmatprep.mubr.f32.mxu1 %v12772_v42 }
 0x17e   : > { %1923 = vmatprep.mubr.f32.mxu0 %v12772_v42 }
 0x180   : > { %8277 = vmatmul.mubr.msk.f32.gmra.mrb[20].mxu1 %vm1141_vm1, %v10541_v43 }
 0x181   : > { %8270 = vmatmul.mubr.msk.f32.gmra.mrb[24].mxu0 %vm1141_vm1, %v10577_v32  ;;  %2252 = vmatprep.mubr.f32.mxu1 %v12772_v42 }
 0x182   : > { %1929 = vmatprep.mubr.f32.mxu0 %v12772_v42 }
 0x184   : > { %8278 = vmatmul.mubr.msk.f32.gmra.mrb[22].mxu1 %vm1141_vm1, %v10553_v50 }
 0x185   : > { %8271 = vmatmul.mubr.msk.f32.gmra.mrb[26].mxu0 %vm1141_vm1, %v10607_v25  ;;  %2258 = vmatprep.mubr.f32.mxu1 %v12772_v42 }
 0x186   : > { %1935 = vmatprep.mubr.f32.mxu0 %v12772_v42 }
 0x188   : > { %8279 = vmatmul.mubr.msk.f32.gmra.mrb[24].mxu1 %vm1141_vm1, %v10577_v32  ;;  %v10780_v32 = vld [vmem:[%s12938_s9] ss:$0 sm:$0xff]  ;;  %s9437_s9 = smov [#allocation3]  }
 0x189   : > { %8272 = vmatmul.mubr.msk.f32.gmra.mrb[28].mxu0 %vm1141_vm1, %v10624_v41  ;;  %2264 = vmatprep.mubr.f32.mxu1 %v12772_v42 }
 0x18a   : > { %1941 = vmatprep.mubr.f32.mxu0 %v12772_v42 }
 0x18c   : > { %8280 = vmatmul.mubr.msk.f32.gmra.mrb[26].mxu1 %vm1141_vm1, %v10607_v25 }
 0x18d   : > { %8273 = vmatmul.mubr.msk.f32.gmra.mrb[30].mxu0 %vm1141_vm1, %v10651_v26  ;;  %2270 = vmatprep.mubr.f32.mxu1 %v12772_v42 }
 0x18e   : > { %8471 = vmatprep.mubr.msk.f32.mxu0 %vm9435_vm2, %v12772_v42 }
 0x190   : > { %8281 = vmatmul.mubr.msk.f32.gmra.mrb[28].mxu1 %vm1141_vm1, %v10624_v41  ;;  %v10786_v41 = vld [vmem:[%s12939_s10] ss:$0 sm:$0xff]  ;;  %s9338_s10 = sshll.u32 %s9437_s9, 4  ;;  %s9339_s10 = int_to_ptr.vmem [resolvable:$false] %s9338_s10 }
 0x191   : > { %2276 = vmatprep.mubr.f32.mxu1 %v12772_v42  ;;  %p9341_p0 = scmp.lt.s32.totalorder %s12616_s25, %s9339_s10 }
 0x194   : > { %8282 = vmatmul.mubr.msk.f32.gmra.mrb[30].mxu1 %vm1141_vm1, %v10651_v26 }
 0x195   : > { %2498 = vmatprep.mubr.f32.mxu1 %v12772_v42 }
 0x19d   : > { %v2310_v13 = vpop.xlane.xlu0 %2309 }
 0x19e   : > { %v2311_v62 = vmul.f32 0.03125, %v2310_v13  ;;  %v10842_v13 = vpop.permute.xlu1 %1133 }
 0x1a0   : > { %v2312_v43 = vadd.f32 1e-06, %v2311_v62 }
 0x1a2   : > { %9190 = vrsqrt.f32 %v2312_v43 }
 0x1a5   : > { %v10834_v31 = vpop.permute.xlu0 %1128 }
 0x1ac   : > { %v9191_v50 = vpop.eup %9190 }
 0x1ad   : > { %v2314_v25 = vmul.f32 %v9191_v50, %v10358_v63 }
 0x1af   : > { %v2322_v26 = vmul.f32 %v10780_v32, %v2314_v25 }
 0x1b1   : > { %v2330_v8 = vadd.f32 %v10786_v41, %v2322_v26 }
 0x1b3   : > { %8472 = vmatmul.mubr.msk.f32.vlgmr.msra.gmra.mrb[32].mxu0 %vm1141_vm1, %v2330_v8 }
 0x1b4   : > { %2632 = vmatprep.mubr.f32.mxu0 %v12772_v42 }
 0x201   : > { %v1232_v33 = vpop.f32.mrb[0].mxu0 }
 0x202   : > { %v1234_v37 = vpop.f32.mrb[1].mxu0  ;;  %v1233_v19 = vadd.f32 %v1232_v33, %v10792_v38 }
 0x203   : > { %v1235_v52 = vadd.f32 %v1234_v37, %v10792_v38 }
 0x205   : > { %v1238_v63 = vpop.f32.mrb[2].mxu0 }
 0x206   : > { %v1239_v23 = vadd.f32 %v1238_v63, %v10794_v24  ;;  %v1240_v61 = vpop.f32.mrb[3].mxu0 }
 0x207   : > { %v1241_v12 = vadd.f32 %v1240_v61, %v10794_v24 }
 0x208   : > { %v1566_v29 = vpop.f32.mrb[0].mxu1  ;;  %v10802_v36 = vpack.c.bf16 %v1239_v23, %v1233_v19 }
 0x209   : > { %v1568_v11 = vpop.f32.mrb[1].mxu1  ;;  %v10804_v35 = vpack.c.bf16 %v1241_v12, %v1235_v52  ;;  %v1244_v58 = vpop.f32.mrb[4].mxu0  ;;  %v1567_v27 = vadd.f32 %v1566_v29, %v10792_v38 }
 0x20a   : > { %v1246_v4 = vpop.f32.mrb[5].mxu0  ;;  %v1569_v22 = vadd.f32 %v1568_v11, %v10792_v38  ;;  %v1245_v59 = vadd.f32 %v1244_v58, %v10796_v39  ;;  %v10856_v12 = vpop.permute.xlu1 %1138 }
 0x20b   : > { %8580 = vmatprep.subr.bf16.mxu1 %v10804_v35  ;;  %v1247_v10 = vadd.f32 %v1246_v4, %v10796_v39 }
 0x20c   : > { %v1572_v15 = vpop.f32.mrb[2].mxu1  ;;  %8582 = vmatpush1.bf16.msra.mxu1 %v10802_v36 }
 0x20d   : > { %v1573_v48 = vadd.f32 %v1572_v15, %v10794_v24  ;;  %v1574_v16 = vpop.f32.mrb[3].mxu1  ;;  %v1250_v0 = vpop.f32.mrb[6].mxu0 }
 0x20e   : > { %v1575_v34 = vadd.f32 %v1574_v16, %v10794_v24  ;;  %v1251_v7 = vadd.f32 %v1250_v0, %v10807_v55  ;;  %v1252_v56 = vpop.f32.mrb[7].mxu0 }
 0x20f   : > { %v10816_v54 = vpack.c.bf16 %v1573_v48, %v1567_v27  ;;  %v1253_v51 = vadd.f32 %v1252_v56, %v10807_v55 }
 0x210   : > { %v10820_v30 = vpack.c.bf16 %v1575_v34, %v1569_v22  ;;  %v1578_v47 = vpop.f32.mrb[4].mxu1  ;;  %v10822_v57 = vpack.c.bf16 %v1251_v7, %v1245_v59 }
 0x211   : > { %v1580_v46 = vpop.f32.mrb[5].mxu1  ;;  %v10824_v17 = vpack.c.bf16 %v1253_v51, %v1247_v10  ;;  %v1256_v21 = vpop.f32.mrb[8].mxu0  ;;  %v1579_v20 = vadd.f32 %v1578_v47, %v10796_v39 }
 0x212   : > { %8588 = vmatprep.subr.bf16.mxu0 %v10820_v30  ;;  %v1258_v44 = vpop.f32.mrb[9].mxu0  ;;  %v1581_v53 = vadd.f32 %v1580_v46, %v10796_v39  ;;  %v1257_v9 = vadd.f32 %v1256_v21, %v10826_v60 }
 0x213   : > { %8590 = vmatpush1.bf16.msra.mxu0 %v10816_v54  ;;  %8584 = vmatprep.subr.bf16.mxu1 %v10824_v17  ;;  %v1259_v50 = vadd.f32 %v1258_v44, %v10826_v60 }
 0x214   : > { %v1584_v28 = vpop.f32.mrb[6].mxu1  ;;  %8586 = vmatpush1.bf16.msra.mxu1 %v10822_v57 }
 0x215   : > { %v1585_v3 = vadd.f32 %v1584_v28, %v10807_v55  ;;  %v1586_v2 = vpop.f32.mrb[7].mxu1  ;;  %v1262_v1 = vpop.f32.mrb[10].mxu0 }
 0x216   : > { %v1587_v18 = vadd.f32 %v1586_v2, %v10807_v55  ;;  %v1263_v49 = vadd.f32 %v1262_v1, %v10834_v31  ;;  %v1264_v6 = vpop.f32.mrb[11].mxu0 }
 0x217   : > { %v10838_v14 = vpack.c.bf16 %v1585_v3, %v1579_v20  ;;  %v1265_v25 = vadd.f32 %v1264_v6, %v10834_v31 }
 0x218   : > { %v10844_v62 = vpack.c.bf16 %v1587_v18, %v1581_v53  ;;  %v1590_v43 = vpop.f32.mrb[8].mxu1  ;;  %v10848_v8 = vpack.c.bf16 %v1263_v49, %v1257_v9 }
 0x219   : > { %v1592_v26 = vpop.f32.mrb[9].mxu1  ;;  %v10851_v33 = vpack.c.bf16 %v1265_v25, %v1259_v50  ;;  %v1268_v37 = vpop.f32.mrb[12].mxu0  ;;  %v1591_v23 = vadd.f32 %v1590_v43, %v10826_v60 }
 0x21a   : > { %8592 = vmatprep.subr.bf16.mxu0 %v10844_v62  ;;  %v1270_v63 = vpop.f32.mrb[13].mxu0  ;;  %v1593_v29 = vadd.f32 %v1592_v26, %v10826_v60  ;;  %v1269_v15 = vadd.f32 %v1268_v37, %v10842_v13 }
 0x21b   : > { %8594 = vmatpush1.bf16.msra.mxu0 %v10838_v14  ;;  %v1271_v22 = vadd.f32 %v1270_v63, %v10842_v13 }
 0x21c   : > { %v1596_v19 = vpop.f32.mrb[10].mxu1 }
 0x21d   : > { %v1597_v61 = vadd.f32 %v1596_v19, %v10834_v31  ;;  %v1598_v52 = vpop.f32.mrb[11].mxu1  ;;  %v1274_v58 = vpop.f32.mrb[14].mxu0 }
 0x21e   : > { %v1599_v11 = vadd.f32 %v1598_v52, %v10834_v31  ;;  %v1275_v27 = vadd.f32 %v1274_v58, %v10856_v12  ;;  %v1276_v48 = vpop.f32.mrb[15].mxu0 }
 0x21f   : > { %v10860_v4 = vpack.c.bf16 %v1597_v61, %v1591_v23  ;;  %v1277_v34 = vadd.f32 %v1276_v48, %v10856_v12 }
 0x220   : > { %v10864_v16 = vpack.c.bf16 %v1599_v11, %v1593_v29  ;;  %v1602_v0 = vpop.f32.mrb[12].mxu1  ;;  %v10868_v7 = vpack.c.bf16 %v1275_v27, %v1269_v15 }
 0x221   : > { %v1604_v59 = vpop.f32.mrb[13].mxu1  ;;  %v10871_v56 = vpack.c.bf16 %v1277_v34, %v1271_v22  ;;  %v1603_v51 = vadd.f32 %v1602_v0, %v10842_v13 }
 0x222   : > { %8596 = vmatprep.subr.bf16.mxu1 %v10864_v16  ;;  %v1605_v21 = vadd.f32 %v1604_v59, %v10842_v13 }
 0x224   : > { %v1608_v10 = vpop.f32.mrb[14].mxu1 }
 0x225   : > { %v1609_v47 = vadd.f32 %v1608_v10, %v10856_v12  ;;  %v1610_v46 = vpop.f32.mrb[15].mxu1 }
 0x226   : > { %v1611_v44 = vadd.f32 %v1610_v46, %v10856_v12 }
 0x227   : > { %v10877_v28 = vpack.c.bf16 %v1609_v47, %v1603_v51 }
 0x228   : > { %v10879_v20 = vpack.c.bf16 %v1611_v44, %v1605_v21 }
 0x229   : > { %12940 = vst [vmem:[#allocation33_spill] sm:$0xff] %v10877_v28 }
 0x244   : > { %v1901_v3 = vpop.f32.mrb[16].mxu0 }
 0x245   : > { %v1903_v2 = vpop.f32.mrb[17].mxu0  ;;  %v1902_v18 = vadd.f32 %v1901_v3, %v10792_v38 }
 0x246   : > { %v1904_v49 = vadd.f32 %v1903_v2, %v10792_v38 }
 0x248   : > { %v1907_v53 = vpop.f32.mrb[18].mxu0 }
 0x249   : > { %v1908_v1 = vadd.f32 %v1907_v53, %v10794_v24  ;;  %v1909_v9 = vpop.f32.mrb[19].mxu0 }
 0x24a   : > { %v1910_v6 = vadd.f32 %v1909_v9, %v10794_v24 }
 0x24b   : > { %v10885_v43 = vpack.c.bf16 %v1908_v1, %v1902_v18  ;;  %v2236_v50 = vpop.f32.mrb[16].mxu1 }
 0x24c   : > { %v10887_v25 = vpack.c.bf16 %v1910_v6, %v1904_v49  ;;  %v1913_v26 = vpop.f32.mrb[20].mxu0  ;;  %v2238_v37 = vpop.f32.mrb[17].mxu1  ;;  %v2237_v61 = vadd.f32 %v2236_v50, %v10792_v38 }
 0x24d   : > { %12941 = vst [vmem:[#allocation34_spill] sm:$0xff] %v10885_v43  ;;  %v1915_v63 = vpop.f32.mrb[21].mxu0  ;;  %v1914_v11 = vadd.f32 %v1913_v26, %v10796_v39  ;;  %v2239_v27 = vadd.f32 %v2238_v37, %v10792_v38 }
 0x24e   : > { %12942 = vst [vmem:[#allocation22_spill] sm:$0xff] %v10887_v25  ;;  %8612 = vmatprep.subr.bf16.mxu0 %v10887_v25  ;;  %v1916_v0 = vadd.f32 %v1915_v63, %v10796_v39 }
 0x24f   : > { %v2242_v19 = vpop.f32.mrb[18].mxu1 }
 0x250   : > { %v1919_v23 = vpop.f32.mrb[22].mxu0  ;;  %v2243_v52 = vadd.f32 %v2242_v19, %v10794_v24  ;;  %v2244_v29 = vpop.f32.mrb[19].mxu1 }
 0x251   : > { %v1920_v58 = vadd.f32 %v1919_v23, %v10807_v55  ;;  %v1921_v15 = vpop.f32.mrb[23].mxu0  ;;  %v2245_v48 = vadd.f32 %v2244_v29, %v10794_v24 }
 0x252   : > { %v1922_v22 = vadd.f32 %v1921_v15, %v10807_v55  ;;  %v10898_v34 = vpack.c.bf16 %v2243_v52, %v2237_v61 }
 0x253   : > { %v10900_v59 = vpack.c.bf16 %v1920_v58, %v1914_v11  ;;  %v10902_v10 = vpack.c.bf16 %v2245_v48, %v2239_v27  ;;  %v2248_v51 = vpop.f32.mrb[20].mxu1 }
 0x254   : > { %12943 = vst [vmem:[#allocation29_spill] sm:$0xff] %v10898_v34  ;;  %v10904_v47 = vpack.c.bf16 %v1922_v22, %v1916_v0  ;;  %v1925_v46 = vpop.f32.mrb[24].mxu0  ;;  %v2250_v21 = vpop.f32.mrb[21].mxu1  ;;  %v2249_v24 = vadd.f32 %v2248_v51, %v10796_v39 }
 0x255   : > { %12944 = vst [vmem:[#allocation40_spill] sm:$0xff] %v10900_v59  ;;  %12945 = vst [vmem:[#allocation31_spill] sm:$0xff] %v10902_v10  ;;  %v1927_v44 = vpop.f32.mrb[25].mxu0  ;;  %v1926_v18 = vadd.f32 %v1925_v46, %v10826_v60  ;;  %v2251_v49 = vadd.f32 %v2250_v21, %v10796_v39 }
 0x256   : > { %12946 = vst [vmem:[#allocation23_spill] sm:$0xff] %v10904_v47  ;;  %v1928_v50 = vadd.f32 %v1927_v44, %v10826_v60 }
 0x257   : > { %v2254_v3 = vpop.f32.mrb[22].mxu1 }
 0x258   : > { %v1931_v38 = vpop.f32.mrb[26].mxu0  ;;  %v2255_v2 = vadd.f32 %v2254_v3, %v10807_v55  ;;  %v2256_v53 = vpop.f32.mrb[23].mxu1 }
 0x259   : > { %v1932_v1 = vadd.f32 %v1931_v38, %v10834_v31  ;;  %v1933_v9 = vpop.f32.mrb[27].mxu0  ;;  %v2257_v6 = vadd.f32 %v2256_v53, %v10807_v55 }
 0x25a   : > { %v1934_v26 = vadd.f32 %v1933_v9, %v10834_v31  ;;  %v10914_v37 = vpack.c.bf16 %v2255_v2, %v2249_v24 }
 0x25b   : > { %v10916_v63 = vpack.c.bf16 %v1932_v1, %v1926_v18  ;;  %v10918_v19 = vpack.c.bf16 %v2257_v6, %v2251_v49  ;;  %v2260_v23 = vpop.f32.mrb[24].mxu1 }
 0x25c   : > { %12947 = vst [vmem:[#allocation15_spill] sm:$0xff] %v10914_v37  ;;  %v10920_v61 = vpack.c.bf16 %v1934_v26, %v1928_v50  ;;  %v1937_v52 = vpop.f32.mrb[28].mxu0  ;;  %v2262_v29 = vpop.f32.mrb[25].mxu1  ;;  %v2261_v55 = vadd.f32 %v2260_v23, %v10826_v60  ;;  %v10949_v23 = vld [vmem:[%s12957_s12] ss:$0 sm:$0xff] }
 0x25d   : > { %12948 = vst [vmem:[#allocation37_spill] sm:$0xff] %v10916_v63  ;;  %12949 = vst [vmem:[#allocation25_spill] sm:$0xff] %v10918_v19  ;;  %v1939_v11 = vpop.f32.mrb[29].mxu0  ;;  %v1938_v48 = vadd.f32 %v1937_v52, %v10842_v13  ;;  %v2263_v51 = vadd.f32 %v2262_v29, %v10826_v60 }
 0x25e   : > { %12950 = vst [vmem:[#allocation35_spill] sm:$0xff] %v10920_v61  ;;  %v1940_v21 = vadd.f32 %v1939_v11, %v10842_v13 }
 0x25f   : > { %v2266_v58 = vpop.f32.mrb[26].mxu1 }
 0x260   : > { %v1943_v39 = vpop.f32.mrb[30].mxu0  ;;  %v2267_v15 = vadd.f32 %v2266_v58, %v10834_v31  ;;  %v2268_v27 = vpop.f32.mrb[27].mxu1 }
 0x261   : > { %v1944_v0 = vadd.f32 %v1943_v39, %v10856_v12  ;;  %v1945_v22 = vpop.f32.mrb[31].mxu0  ;;  %v2269_v46 = vadd.f32 %v2268_v27, %v10834_v31 }
 0x262   : > { %v1946_v44 = vadd.f32 %v1945_v22, %v10856_v12  ;;  %v10930_v3 = vpack.c.bf16 %v2267_v15, %v2261_v55 }
 0x263   : > { %v10932_v38 = vpack.c.bf16 %v1944_v0, %v1938_v48  ;;  %v10934_v24 = vpack.c.bf16 %v2269_v46, %v2263_v51  ;;  %v2272_v2 = vpop.f32.mrb[28].mxu1 }
 0x264   : > { %12951 = vst [vmem:[#allocation24_spill] sm:$0xff] %v10930_v3  ;;  %v10936_v53 = vpack.c.bf16 %v1946_v44, %v1940_v21  ;;  %v2274_v18 = vpop.f32.mrb[29].mxu1  ;;  %v2273_v9 = vadd.f32 %v2272_v2, %v10842_v13 }
 0x265   : > { %12952 = vst [vmem:[#allocation41_spill] sm:$0xff] %v10932_v38  ;;  %12953 = vst [vmem:[#allocation30_spill] sm:$0xff] %v10934_v24  ;;  %v2275_v49 = vadd.f32 %v2274_v18, %v10842_v13 }
 0x266   : > { %12954 = vst [vmem:[#allocation28_spill] sm:$0xff] %v10936_v53 }
 0x267   : > { %v2278_v1 = vpop.f32.mrb[30].mxu1 }
 0x268   : > { %v2279_v60 = vadd.f32 %v2278_v1, %v10856_v12  ;;  %v2280_v31 = vpop.f32.mrb[31].mxu1 }
 0x269   : > { %v2281_v6 = vadd.f32 %v2280_v31, %v10856_v12 }
 0x26a   : > { %v10942_v50 = vpack.c.bf16 %v2279_v60, %v2273_v9 }
 0x26b   : > { %v10944_v26 = vpack.c.bf16 %v2281_v6, %v2275_v49 }
 0x26c   : > { %12955 = vst [vmem:[#allocation21_spill] sm:$0xff] %v10942_v50 }
 0x26d   : > { %12956 = vst [vmem:[#allocation32_spill] sm:$0xff] %v10944_v26 }
 0x286   : > { %v2411_v52 = vpop.f32.mrb[32].mxu0 }
 0x287   : > { %v2412_v29 = vadd.f32 %v10949_v23, %v2411_v52  ;;  %v8473_v11 = vpop.f32.mrb[33].mxu0 }
 0x289   : > { %8287 = vmatmul.mubr.msk.f32.vlgmr.msra.gmra.mrb[32].mxu1 %vm1141_vm1, %v2412_v29  ;;  %8288 = vmatmul.mubr.msk.f32.vlgmr.msra.gmra.mrb[34].mxu0 %vm1141_vm1, %v2412_v29 }
 0x28a   : > { %8598 = vmatpush1.bf16.xpose.msra.mxu1 %v10860_v4  ;;  %8614 = vmatpush1.bf16.msra.mxu0 %v10885_v43 }
 0x28b   : > { %8600 = vmatprep.subr.bf16.mxu1 %v10879_v20  ;;  %8616 = vmatprep.subr.bf16.mxu0 %v10904_v47 }
 0x28c   : > { %2905 = vmatprep.mubr.f32.mxu0 %v12772_v42 }
 0x28e   : > { %8618 = vmatpush1.bf16.msra.mxu0 %v10900_v59 }
 0x28f   : > { %8628 = vmatprep.subr.bf16.mxu0 %v10902_v10 }
 0x291   : > { %8289 = vmatmul.mubr.msk.f32.vlgmr.msra.gmra.mrb[36].mxu0 %vm1141_vm1, %v2412_v29 }
 0x292   : > { %8602 = vmatpush1.bf16.xpose.msra.mxu1 %v10877_v28  ;;  %8630 = vmatpush1.bf16.msra.mxu0 %v10898_v34 }
 0x293   : > { %8604 = vmatprep.subr.bf16.mxu1 %v10851_v33  ;;  %8632 = vmatprep.subr.bf16.mxu0 %v10918_v19 }
 0x294   : > { %3109 = vmatprep.mubr.f32.mxu0 %v12772_v42 }
 0x296   : > { %8634 = vmatpush1.bf16.msra.mxu0 %v10914_v37 }
 0x297   : > { %8643 = vmatprep.subr.bf16.mxu0 %v9434_v40 }
 0x299   : > { %8290 = vmatmul.mubr.msk.f32.vlgmr.msra.gmra.mrb[38].mxu0 %vm1141_vm1, %v2412_v29 }
 0x29a   : > { %8645 = vmatpush3.bf16.msra.mxu0 %v10713_v45  ;;  %8482 = vmatprep.mubr.msk.f32.mxu0 %vm9435_vm2, %v12772_v42 }
 0x29b   : > { %8646 = vmatprep.subr.bf16.mxu0 %v9434_v40 }
 0x29e   : > { %8648 = vmatpush3.bf16.msra.mxu0 %v10727_v5 }
 0x35c   : > { %v2500_v13 = vpop.f32.mrb[32].mxu1  ;;  %v2634_v12 = vpop.f32.mrb[34].mxu0 }
 0x35d   : > { %v2505_v58 = vmul.f32 0.17677669, %v2500_v13  ;;  %v2639_v39 = vmul.f32 0.17677669, %v2634_v12  ;;  %v2502_v55 = vpop.f32.mrb[33].mxu1  ;;  %v2636_v15 = vpop.f32.mrb[35].mxu0 }
 0x35e   : > { %v2506_v27 = vmul.f32 0.17677669, %v2502_v55  ;;  %v2640_v48 = vmul.f32 0.17677669, %v2636_v15 }
 0x35f   : > { %v2508_v0 = vsel %vm2507_vm3, %v2505_v58, -inf  ;;  %v2641_v45 = vsel %vm2507_vm3, %v2639_v39, -inf }
 0x360   : > { %v2509_v22 = vrot.slane %v2508_v0, 4  ;;  %v2642_v51 = vrot.slane %v2641_v45, 4  ;;  %v2515_v46 = vsel %vm2507_vm3, %v2506_v27, -inf  ;;  %v2648_v40 = vsel %vm2507_vm3, %v2640_v48, -inf }
 0x361   : > { %v2516_v5 = vrot.slane %v2515_v46, 4  ;;  %v2649_v21 = vrot.slane %v2648_v40, 4 }
 0x362   : > { %v2510_v44 = vmax.f32 %v2508_v0, %v2509_v22  ;;  %v2643_v2 = vmax.f32 %v2641_v45, %v2642_v51 }
 0x363   : > { %v2517_v18 = vmax.f32 %v2515_v46, %v2516_v5  ;;  %v2650_v1 = vmax.f32 %v2648_v40, %v2649_v21 }
 0x364   : > { %v2511_v9 = vrot.slane %v2510_v44, 2  ;;  %v2644_v60 = vrot.slane %v2643_v2, 2  ;;  %v2907_v31 = vpop.f32.mrb[36].mxu0 }
 0x365   : > { %v2518_v49 = vrot.slane %v2517_v18, 2  ;;  %v2651_v6 = vrot.slane %v2650_v1, 2  ;;  %v2912_v52 = vmul.f32 0.17677669, %v2907_v31  ;;  %v2909_v29 = vpop.f32.mrb[37].mxu0 }
 0x366   : > { %v2512_v11 = vmax.f32 %v2510_v44, %v2511_v9  ;;  %v2645_v13 = vmax.f32 %v2643_v2, %v2644_v60  ;;  %v2913_v12 = vmul.f32 0.17677669, %v2909_v29 }
 0x367   : > { %v2519_v55 = vmax.f32 %v2517_v18, %v2518_v49  ;;  %v2652_v15 = vmax.f32 %v2650_v1, %v2651_v6  ;;  %v2914_v42 = vsel %vm2507_vm3, %v2912_v52, -inf }
 0x368   : > { %v2513_v37 = vrot.slane %v2512_v11, 1  ;;  %v2646_v19 = vrot.slane %v2645_v13, 1  ;;  %v2915_v0 = vrot.slane %v2914_v42, 4  ;;  %v2921_v45 = vsel %vm2507_vm3, %v2913_v12, -inf }
 0x369   : > { %v2520_v22 = vrot.slane %v2519_v55, 1  ;;  %v2653_v51 = vrot.slane %v2652_v15, 1  ;;  %v2922_v46 = vrot.slane %v2921_v45, 4 }
 0x36a   : > { %v2514_v40 = vmax.f32 %v2512_v11, %v2513_v37  ;;  %v2647_v5 = vmax.f32 %v2645_v13, %v2646_v19  ;;  %v2916_v21 = vmax.f32 %v2914_v42, %v2915_v0 }
 0x36b   : > { %v2521_v31 = vmax.f32 %v2519_v55, %v2520_v22  ;;  %v2654_v34 = vmax.f32 %v2652_v15, %v2653_v51  ;;  %v2923_v44 = vmax.f32 %v2921_v45, %v2922_v46 }
 0x36c   : > { %v2522_v2 = vsub.f32 %v2505_v58, %v2514_v40  ;;  %v2655_v9 = vsub.f32 %v2639_v39, %v2647_v5  ;;  %v2917_v18 = vrot.slane %v2916_v21, 2  ;;  %v3111_v1 = vpop.f32.mrb[38].mxu0 }
 0x36d   : > { %v2523_v60 = vsub.f32 %v2506_v27, %v2521_v31  ;;  %v2656_v49 = vsub.f32 %v2640_v48, %v2654_v34  ;;  %v2924_v6 = vrot.slane %v2923_v44, 2  ;;  %v3116_v29 = vmul.f32 0.17677669, %v3111_v1  ;;  %v3113_v10 = vpop.f32.mrb[39].mxu0 }
 0x36e   : > { %v2524_v59 = vmul.f32 1.442695, %v2522_v2  ;;  %v2657_v47 = vmul.f32 1.442695, %v2655_v9  ;;  %v2918_v43 = vmax.f32 %v2916_v21, %v2917_v18  ;;  %v3117_v25 = vmul.f32 0.17677669, %v3113_v10 }
 0x36f   : > { %v2526_v28 = vmul.f32 1.442695, %v2523_v60  ;;  %v2659_v37 = vmul.f32 1.442695, %v2656_v49  ;;  %v2925_v19 = vmax.f32 %v2923_v44, %v2924_v6  ;;  %v3118_v42 = vsel %vm2507_vm3, %v3116_v29, -inf }
 0x370   : > { %9192 = vpow2.f32 %v2524_v59  ;;  %v2919_v11 = vrot.slane %v2918_v43, 1  ;;  %v3119_v58 = vrot.slane %v3118_v42, 4  ;;  %v3125_v39 = vsel %vm2507_vm3, %v3117_v25, -inf }
 0x371   : > { %9194 = vpow2.f32 %v2657_v47  ;;  %v2926_v27 = vrot.slane %v2925_v19, 1  ;;  %v3126_v34 = vrot.slane %v3125_v39, 4 }
 0x372   : > { %9196 = vpow2.f32 %v2526_v28  ;;  %v2920_v48 = vmax.f32 %v2918_v43, %v2919_v11  ;;  %v3120_v13 = vmax.f32 %v3118_v42, %v3119_v58 }
 0x373   : > { %9198 = vpow2.f32 %v2659_v37  ;;  %v2927_v55 = vmax.f32 %v2925_v19, %v2926_v27  ;;  %v3127_v15 = vmax.f32 %v3125_v39, %v3126_v34 }
 0x374   : > { %v2928_v10 = vsub.f32 %v2912_v52, %v2920_v48  ;;  %v3121_v0 = vrot.slane %v3120_v13, 2 }
 0x375   : > { %v2929_v45 = vsub.f32 %v2913_v12, %v2927_v55  ;;  %v3128_v22 = vrot.slane %v3127_v15, 2 }
 0x376   : > { %v2930_v51 = vmul.f32 1.442695, %v2928_v10  ;;  %v3122_v46 = vmax.f32 %v3120_v13, %v3121_v0 }
 0x377   : > { %v2932_v59 = vmul.f32 1.442695, %v2929_v45  ;;  %v3129_v40 = vmax.f32 %v3127_v15, %v3128_v22 }
 0x378   : > { %9200 = vpow2.f32 %v2930_v51  ;;  %v3123_v5 = vrot.slane %v3122_v46, 1 }
 0x379   : > { %9202 = vpow2.f32 %v2932_v59  ;;  %v3130_v47 = vrot.slane %v3129_v40, 1 }
 0x37a   : > { %v10983_v21 = vpop.eup %9192  ;;  %v3124_v28 = vmax.f32 %v3122_v46, %v3123_v5 }
 0x37b   : > { %v10985_v43 = vpop.eup %9194  ;;  %v2528_v31 = vsel %vm2507_vm3, %v10983_v21, 0.0  ;;  %v3131_v52 = vmax.f32 %v3129_v40, %v3130_v47 }
 0x37c   : > { %v10989_v44 = vpop.eup %9196  ;;  %v2529_v12 = vrot.slane %v2528_v31, 4  ;;  %v2661_v2 = vsel %vm2507_vm3, %v10985_v43, 0.0  ;;  %v3132_v9 = vsub.f32 %v3116_v29, %v3124_v28 }
 0x37d   : > { %v10993_v18 = vpop.eup %9198  ;;  %v2662_v1 = vrot.slane %v2661_v2, 4  ;;  %v2535_v60 = vsel %vm2507_vm3, %v10989_v44, 0.0  ;;  %v3133_v49 = vsub.f32 %v3117_v25, %v3131_v52 }
 0x37e   : > { %v2530_v6 = vadd.f32 %v2529_v12, %v2528_v31  ;;  %v2536_v37 = vrot.slane %v2535_v60, 4  ;;  %v2668_v19 = vsel %vm2507_vm3, %v10993_v18, 0.0  ;;  %v3134_v42 = vmul.f32 1.442695, %v3132_v9 }
 0x37f   : > { %v2663_v11 = vadd.f32 %v2662_v1, %v2661_v2  ;;  %v2669_v58 = vrot.slane %v2668_v19, 4  ;;  %v3136_v39 = vmul.f32 1.442695, %v3133_v49 }
 0x380   : > { %v2531_v27 = vrot.slane %v2530_v6, 2  ;;  %v2537_v34 = vadd.f32 %v2536_v37, %v2535_v60  ;;  %9204 = vpow2.f32 %v3134_v42 }
 0x381   : > { %v2664_v29 = vrot.slane %v2663_v11, 2  ;;  %v2670_v48 = vadd.f32 %v2669_v58, %v2668_v19  ;;  %9206 = vpow2.f32 %v3136_v39 }
 0x382   : > { %v10999_v13 = vpop.eup %9200  ;;  %v2532_v55 = vadd.f32 %v2531_v27, %v2530_v6  ;;  %v2538_v15 = vrot.slane %v2537_v34, 2 }
 0x383   : > { %v11001_v25 = vpop.eup %9202  ;;  %v2665_v10 = vadd.f32 %v2664_v29, %v2663_v11  ;;  %v2671_v0 = vrot.slane %v2670_v48, 2  ;;  %v2934_v45 = vsel %vm2507_vm3, %v10999_v13, 0.0 }
 0x384   : > { %v2935_v22 = vrot.slane %v2934_v45, 4  ;;  %v2941_v51 = vsel %vm2507_vm3, %v11001_v25, 0.0  ;;  %v2539_v46 = vadd.f32 %v2538_v15, %v2537_v34  ;;  %v2533_v59 = vrot.slane %v2532_v55, 1 }
 0x385   : > { %v2666_v40 = vrot.slane %v2665_v10, 1  ;;  %v2942_v5 = vrot.slane %v2941_v51, 4  ;;  %v2672_v47 = vadd.f32 %v2671_v0, %v2670_v48 }
 0x386   : > { %v2936_v28 = vadd.f32 %v2935_v22, %v2934_v45  ;;  %v2540_v31 = vrot.slane %v2539_v46, 1  ;;  %v2534_v52 = vadd.f32 %v2533_v59, %v2532_v55 }
 0x387   : > { %v2943_v12 = vadd.f32 %v2942_v5, %v2941_v51  ;;  %v2673_v2 = vrot.slane %v2672_v47, 1  ;;  %v2667_v9 = vadd.f32 %v2666_v40, %v2665_v10 }
 0x388   : > { %v2937_v1 = vrot.slane %v2936_v28, 2  ;;  %v2541_v60 = vadd.f32 %v2540_v31, %v2539_v46  ;;  %9208 = vrcp.f32 %v2534_v52 }
 0x389   : > { %v2944_v49 = vrot.slane %v2943_v12, 2  ;;  %v2674_v6 = vadd.f32 %v2673_v2, %v2672_v47  ;;  %9210 = vrcp.f32 %v2667_v9 }
 0x38a   : > { %v9205_v37 = vpop.eup %9204  ;;  %v2938_v19 = vadd.f32 %v2937_v1, %v2936_v28  ;;  %9212 = vrcp.f32 %v2541_v60 }
 0x38b   : > { %v9207_v42 = vpop.eup %9206  ;;  %v2945_v11 = vadd.f32 %v2944_v49, %v2943_v12  ;;  %v3138_v58 = vsel %vm2507_vm3, %v9205_v37, 0.0  ;;  %9214 = vrcp.f32 %v2674_v6 }
 0x38c   : > { %v3139_v39 = vrot.slane %v3138_v58, 4  ;;  %v3145_v27 = vsel %vm2507_vm3, %v9207_v42, 0.0  ;;  %v2939_v34 = vrot.slane %v2938_v19, 1 }
 0x38d   : > { %v3146_v29 = vrot.slane %v3145_v27, 4  ;;  %v2946_v48 = vrot.slane %v2945_v11, 1 }
 0x38e   : > { %v3140_v55 = vadd.f32 %v3139_v39, %v3138_v58  ;;  %v2940_v15 = vadd.f32 %v2939_v34, %v2938_v19 }
 0x38f   : > { %v3147_v10 = vadd.f32 %v3146_v29, %v3145_v27  ;;  %v2947_v0 = vadd.f32 %v2946_v48, %v2945_v11 }
 0x390   : > { %v3141_v45 = vrot.slane %v3140_v55, 2  ;;  %9216 = vrcp.f32 %v2940_v15 }
 0x391   : > { %v3148_v22 = vrot.slane %v3147_v10, 2  ;;  %9218 = vrcp.f32 %v2947_v0 }
 0x392   : > { %v9209_v51 = vpop.eup %9208  ;;  %v3142_v46 = vadd.f32 %v3141_v45, %v3140_v55 }
 0x393   : > { %v9211_v59 = vpop.eup %9210  ;;  %v3149_v40 = vadd.f32 %v3148_v22, %v3147_v10  ;;  %v2543_v5 = vmul.f32 %v9209_v51, %v10983_v21 }
 0x394   : > { %v9213_v47 = vpop.eup %9212  ;;  %v2676_v28 = vmul.f32 %v9211_v59, %v10985_v43  ;;  %v3143_v31 = vrot.slane %v3142_v46, 1 }
 0x395   : > { %v9215_v52 = vpop.eup %9214  ;;  %v2545_v12 = vmul.f32 %v9213_v47, %v10989_v44  ;;  %v2546_v2 = vsel %vm2507_vm3, %v2543_v5, 0.0  ;;  %v3150_v9 = vrot.slane %v3149_v40, 1 }
 0x396   : > { %v2678_v1 = vmul.f32 %v9215_v52, %v10993_v18  ;;  %v2679_v60 = vsel %vm2507_vm3, %v2676_v28, 0.0  ;;  %v3144_v49 = vadd.f32 %v3143_v31, %v3142_v46 }
 0x397   : > { %v2547_v6 = vsel %vm2507_vm3, %v2545_v12, 0.0  ;;  %v3151_v19 = vadd.f32 %v3150_v9, %v3149_v40  ;;  %v3342_v9 = vld [vmem:[%s12716_s15 + $0x10] sm:$0xff] }
 0x398   : > { %2748 = vmatprep.mubr.f32.mxu1 %v2678_v1  ;;  %v2680_v21 = vsel %vm2507_vm3, %v2678_v1, 0.0  ;;  %v2548_v11 = vadd.f32 %v2547_v6, %v2546_v2  ;;  %9220 = vrcp.f32 %v3144_v49  ;;  %v3340_v2 = vld [vmem:[%s12716_s15] sm:$0xff]  ;;  %v3333_v49 = vld [vmem:[%s12958_s13 + $0x8] sm:$0xff]  ;;  %v3335_v6 = vld [vmem:[%s12958_s13 + $0x18] sm:$0xff] }
 0x399   : > { %2749 = vmatmul.mubr.f32.vlgmr.msra.gmra.mrb[34].mxu1 %v2676_v28  ;;  %v2681_v43 = vadd.f32 %v2680_v21, %v2679_v60  ;;  %9222 = vrcp.f32 %v3151_v19  ;;  %v3344_v1 = vld [vmem:[%s12716_s15 + $0x20] sm:$0xff]  ;;  %v3346_v60 = vld [vmem:[%s12716_s15 + $0x30] sm:$0xff]  ;;  %v8649_v19 = vpack.c.bf16 %v3335_v6, %v3333_v49 }
 0x39a   : > { %v9217_v44 = vpop.eup %9216  ;;  %8606 = vmatpush1.bf16.xpose.msra.mxu1 %v10848_v8  ;;  %2818 = vmatprep.mubr.f32.mxu1 %v2545_v12 }
 0x39b   : > { %v9219_v58 = vpop.eup %9218  ;;  %8608 = vmatprep.subr.bf16.mxu1 %v10871_v56  ;;  %2682 = vadd.xlane.f32.xlu0 %v2681_v43  ;;  %v2949_v18 = vmul.f32 %v9217_v44, %v10999_v13 }
 0x39c   : > { %2549 = vadd.xlane.f32.xlu1 %v2548_v11  ;;  %v2951_v39 = vmul.f32 %v9219_v58, %v11001_v25  ;;  %8650 = vmatprep.subr.bf16.mxu0 %v8649_v19 }
 0x39d   : > { %v2952_v27 = vsel %vm2507_vm3, %v2949_v18, 0.0 }
 0x39e   : > { %v2953_v34 = vsel %vm2507_vm3, %v2951_v39, 0.0 }
 0x39f   : > { %v2954_v29 = vadd.f32 %v2953_v34, %v2952_v27  ;;  %v3337_v27 = vld [vmem:[%s12958_s13 + $0x28] sm:$0xff]  ;;  %v3339_v34 = vld [vmem:[%s12958_s13 + $0x38] sm:$0xff] }
 0x3a1   : > { %2955 = vadd.xlane.f32.xlu1 %v2954_v29 }
 0x3a2   : > { %v9221_v48 = vpop.eup %9220  ;;  %8610 = vmatpush1.bf16.xpose.msra.mxu1 %v10868_v7 }
 0x3a3   : > { %v9223_v55 = vpop.eup %9222  ;;  %8620 = vmatprep.subr.bf16.mxu1 %v10920_v61  ;;  %v3153_v15 = vmul.f32 %v9221_v48, %v9205_v37 }
 0x3a4   : > { %v3155_v10 = vmul.f32 %v9223_v55, %v9207_v42 }
 0x3a5   : > { %v3156_v0 = vsel %vm2507_vm3, %v3153_v15, 0.0 }
 0x3a6   : > { %v3157_v13 = vsel %vm2507_vm3, %v3155_v10, 0.0 }
 0x3a7   : > { %v3158_v45 = vadd.f32 %v3157_v13, %v3156_v0  ;;  %v3338_v0 = vld [vmem:[%s12958_s13 + $0x30] sm:$0xff] }
 0x3a9   : > { %2819 = vmatmul.mubr.f32.vlgmr.msra.gmra.mrb[34].mxu1 %v2543_v5  ;;  %3159 = vadd.xlane.f32.xlu1 %v3158_v45  ;;  %v12959_v45 = vmov 0.0  }
 0x3aa   : > { %8622 = vmatpush1.bf16.xpose.msra.mxu1 %v10916_v63  ;;  %3021 = vmatprep.mubr.f32.mxu1 %v2951_v39  ;;  %v3334_v39 = vld [vmem:[%s12958_s13 + $0x10] sm:$0xff] }
 0x3ab   : > { %8624 = vmatprep.subr.bf16.mxu1 %v10936_v53 }
 0x3b2   : > { %8626 = vmatpush1.bf16.xpose.msra.mxu1 %v10932_v38 }
 0x3b3   : > { %8636 = vmatprep.subr.bf16.mxu1 %v10934_v24 }
 0x3b9   : > { %3022 = vmatmul.mubr.f32.vlgmr.msra.gmra.mrb[34].mxu1 %v2949_v18  ;;  %v3332_v18 = vld [vmem:[%s12958_s13] sm:$0xff] }
 0x3ba   : > { %8638 = vmatpush1.bf16.xpose.msra.mxu1 %v10930_v3  ;;  %3225 = vmatprep.mubr.f32.mxu1 %v3155_v10  ;;  %v8651_v48 = vpack.c.bf16 %v3334_v39, %v3332_v18  ;;  %v3336_v10 = vld [vmem:[%s12958_s13 + $0x20] sm:$0xff] }
 0x3bb   : > { %8640 = vmatprep.subr.bf16.mxu1 %v10944_v26  ;;  %v8655_v13 = vpack.c.bf16 %v3338_v0, %v3336_v10 }
 0x3c2   : > { %8642 = vmatpush1.bf16.xpose.msra.mxu1 %v10942_v50 }
 0x3c3   : > { %8666 = vmatprep.subr.bf16.mxu1 %v10851_v33 }
 0x3c9   : > { %3226 = vmatmul.mubr.f32.vlgmr.msra.gmra.mrb[34].mxu1 %v3153_v15  ;;  %v8653_v15 = vpack.c.bf16 %v3339_v34, %v3337_v27 }
 0x3ca   : > { %8668 = vmatpush1.bf16.xpose.msra.mxu1 %v10848_v8 }
 0x3cb   : > { %8670 = vmatprep.subr.bf16.mxu1 %v10871_v56 }
 0x3d2   : > { %8672 = vmatpush1.bf16.xpose.msra.mxu1 %v10868_v7 }
 0x428   : > { %v2683_v37 = vpop.xlane.xlu0 %2682 }
 0x429   : > { %v2550_v25 = vpop.xlane.xlu1 %2549 }
 0x42a   : > { %v2824_v22 = vadd.f32 %v2683_v37, %v2550_v25  ;;  %v11135_v25 = vld [vmem:[%s12960_s14 + $0x30] sm:$0xff]  ;;  %v11143_v37 = vld [vmem:[%s12960_s14 + $0x38] sm:$0xff] }
 0x42e   : > { %v2956_v42 = vpop.xlane.xlu1 %2955 }
 0x42f   : > { %v3028_v46 = vadd.f32 %v2956_v42, %v2824_v22 }
 0x436   : > { %v3160_v51 = vpop.xlane.xlu1 %3159 }
 0x437   : > { %v3232_v59 = vadd.f32 %v3160_v51, %v3028_v46 }
 0x439   : > { %v3233_v40 = vadd.f32 1e-08, %v3232_v59 }
 0x43b   : > { %9224 = vrcp.f32 %v3233_v40 }
 0x445   : > { %v9225_v5 = vpop.eup %9224 }
 0x49c   : > { %v3227_v47 = vpop.f32.mrb[34].mxu1 }
 0x49d   : > { %v3235_v28 = vmul.f32 %v9225_v5, %v3227_v47  ;;  %v3229_v33 = vpop.f32.mrb[35].mxu1 }
 0x49f   : > { %v3236_v31 = vsel %vm2301_vm0, %v3235_v28, 0.0 }
 0x4a0   : > { %3237 = vadd.xlane.f32.xlu0 %v3236_v31 }
 0x52d   : > { %v3238_v8 = vpop.xlane.xlu0 %3237 }
 0x52e   : > { %v3239_v56 = vmul.f32 0.03125, %v3238_v8 }
 0x530   : > { %v3240_v52 = vsub.f32 %v3235_v28, %v3239_v56 }
 0x532   : > { %v3241_v7 = vmul.f32 %v3240_v52, %v3240_v52 }
 0x534   : > { %v3242_v12 = vsel %vm2301_vm0, %v3241_v7, 0.0 }
 0x535   : > { %3243 = vadd.xlane.f32.xlu1 %v3242_v12 }
 0x546   : > { %3350 = vperm.xlu1 %9061, %v3340_v2  }
 0x54a   : > { %3360 = vperm.xlu1 %9061, %v3342_v9  }
 0x54e   : > { %3370 = vperm.xlu1 %9061, %v3344_v1  }
 0x552   : > { %3380 = vperm.xlu1 %9061, %v3346_v60  }
 0x5c2   : > { %v3244_v21 = vpop.xlane.xlu1 %3243 }
 0x5c3   : > { %v3245_v11 = vmul.f32 0.03125, %v3244_v21 }
 0x5c5   : > { %v3246_v43 = vadd.f32 1e-06, %v3245_v11 }
 0x5c7   : > { %9226 = vrsqrt.f32 %v3246_v43 }
 0x5d1   : > { %v9227_v44 = vpop.eup %9226 }
 0x5d2   : > { %v3248_v58 = vmul.f32 %v9227_v44, %v3240_v52 }
 0x5d4   : > { %v3249_v29 = vmul.f32 %v10780_v32, %v3248_v58  ;;  %v11083_v32 = vld [vmem:[%s12960_s14] sm:$0xff] }
 0x5d6   : > { %v3250_v55 = vadd.f32 %v10786_v41, %v3249_v29  ;;  %v11093_v41 = vld [vmem:[%s12960_s14 + $0x8] sm:$0xff] }
 0x5d8   : > { %8483 = vmatmul.mubr.msk.f32.vlgmr.msra.gmra.mrb[40].mxu0 %vm1141_vm1, %v3250_v55 }
 0x5d9   : > { %8652 = vmatpush1.bf16.msra.mxu0 %v8651_v48  ;;  %3476 = vmatprep.mubr.f32.mxu0 %v12959_v45 }
 0x5da   : > { %8654 = vmatprep.subr.bf16.mxu0 %v8653_v15 }
 0x5dd   : > { %8656 = vmatpush1.bf16.msra.mxu0 %v8655_v13 }
 0x5de   : > { %8658 = vmatprep.subr.bf16.mxu0 %v10804_v35  ;;  %v11111_v35 = vld [vmem:[%s12960_s14 + $0x18] sm:$0xff] }
 0x5e0   : > { %8292 = vmatmul.mubr.msk.f32.vlgmr.msra.gmra.mrb[42].mxu0 %vm1141_vm1, %v11083_v32 }
 0x5e1   : > { %8660 = vmatpush1.bf16.msra.mxu0 %v10802_v36  ;;  %3482 = vmatprep.mubr.f32.mxu0 %v12959_v45  ;;  %v11103_v36 = vld [vmem:[%s12960_s14 + $0x10] sm:$0xff] }
 0x5e2   : > { %8662 = vmatprep.subr.bf16.mxu0 %v10824_v17  ;;  %v11127_v17 = vld [vmem:[%s12960_s14 + $0x28] sm:$0xff] }
 0x5e4   : > { %8293 = vmatmul.mubr.msk.f32.gmra.mrb[44].mxu0 %vm1141_vm1, %v11093_v41 }
 0x5e5   : > { %8664 = vmatpush1.bf16.msra.mxu0 %v10822_v57  ;;  %3488 = vmatprep.mubr.f32.mxu0 %v12959_v45  ;;  %v11119_v57 = vld [vmem:[%s12960_s14 + $0x20] sm:$0xff] }
 0x5e8   : > { %8294 = vmatmul.mubr.msk.f32.gmra.mrb[46].mxu0 %vm1141_vm1, %v11103_v36 }
 0x5e9   : > { %3494 = vmatprep.mubr.f32.mxu0 %v12959_v45 }
 0x5ec   : > { %8295 = vmatmul.mubr.msk.f32.gmra.mrb[48].mxu0 %vm1141_vm1, %v11111_v35 }
 0x5ed   : > { %3500 = vmatprep.mubr.f32.mxu0 %v12959_v45 }
 0x5f0   : > { %8296 = vmatmul.mubr.msk.f32.gmra.mrb[50].mxu0 %vm1141_vm1, %v11119_v57 }
 0x5f1   : > { %3506 = vmatprep.mubr.f32.mxu0 %v12959_v45 }
 0x5f4   : > { %8297 = vmatmul.mubr.msk.f32.gmra.mrb[52].mxu0 %vm1141_vm1, %v11127_v17 }
 0x5f5   : > { %3512 = vmatprep.mubr.f32.mxu0 %v12959_v45 }
 0x5f8   : > { %8298 = vmatmul.mubr.msk.f32.gmra.mrb[54].mxu0 %vm1141_vm1, %v11135_v25 }
 0x5f9   : > { %3518 = vmatprep.mubr.f32.mxu0 %v12959_v45 }
 0x5fc   : > { %8299 = vmatmul.mubr.msk.f32.gmra.mrb[56].mxu0 %vm1141_vm1, %v11143_v37 }
 0x5fd   : > { %3600 = vmatprep.mubr.f32.mxu0 %v12959_v45 }
 0x6ab   : > { %v3320_v42 = vpop.f32.mrb[40].mxu0 }
 0x6ac   : > { %v11149_v22 = vadd.f32 %v10949_v23, %v3320_v42  ;;  %v8484_v51 = vpop.f32.mrb[41].mxu0 }
 0x6ae   : > { %12961 = vst [vmem:[#allocation39_spill] sm:$0xff] %v11149_v22  ;;  %8300 = vmatmul.mubr.msk.f32.vlgmr.msra.gmra.mrb[58].mxu0 %vm1141_vm1, %v11149_v22 }
 0x6af   : > { %8487 = vmatprep.mubr.msk.f32.mxu0 %vm1141_vm1, %v11083_v32 }
 0x6b3   : > { %v11155_v46 = vpop.f32.mrb[42].mxu0 }
 0x6b4   : > { %v11157_v59 = vpop.f32.mrb[43].mxu0 }
 0x6b7   : > { %v11159_v40 = vpop.f32.mrb[44].mxu0 }
 0x6b8   : > { %v11161_v5 = vpop.f32.mrb[45].mxu0 }
 0x6bb   : > { %v11163_v47 = vpop.f32.mrb[46].mxu0 }
 0x6bc   : > { %v11165_v28 = vpop.f32.mrb[47].mxu0 }
 0x6bf   : > { %v11167_v23 = vpop.f32.mrb[48].mxu0 }
 0x6c0   : > { %v11169_v33 = vpop.f32.mrb[49].mxu0 }
 0x6c3   : > { %v11171_v31 = vpop.f32.mrb[50].mxu0 }
 0x6c4   : > { %v11173_v8 = vpop.f32.mrb[51].mxu0 }
 0x6c7   : > { %v11175_v56 = vpop.f32.mrb[52].mxu0 }
 0x6c8   : > { %v11177_v52 = vpop.f32.mrb[53].mxu0 }
 0x6cb   : > { %v11179_v7 = vpop.f32.mrb[54].mxu0 }
 0x6cc   : > { %v11181_v12 = vpop.f32.mrb[55].mxu0 }
 0x6cf   : > { %v11183_v2 = vpop.f32.mrb[56].mxu0 }
 0x6d0   : > { %v11185_v9 = vpop.f32.mrb[57].mxu0 }
 0x781   : > { %v3602_v1 = vpop.f32.mrb[58].mxu0 }
 0x782   : > { %v3607_v60 = vmul.f32 0.17677669, %v3602_v1  ;;  %v3604_v49 = vpop.f32.mrb[59].mxu0 }
 0x783   : > { %v3608_v6 = vmul.f32 0.17677669, %v3604_v49 }
 0x784   : > { %v3609_v19 = vsel %vm2507_vm3, %v3607_v60, -inf }
 0x785   : > { %v3610_v21 = vrot.slane %v3609_v19, 4  ;;  %v3616_v11 = vsel %vm2507_vm3, %v3608_v6, -inf }
 0x786   : > { %v3617_v43 = vrot.slane %v3616_v11, 4 }
 0x787   : > { %v3611_v44 = vmax.f32 %v3609_v19, %v3610_v21 }
 0x788   : > { %v3618_v58 = vmax.f32 %v3616_v11, %v3617_v43 }
 0x789   : > { %v3612_v18 = vrot.slane %v3611_v44, 2 }
 0x78a   : > { %v3619_v39 = vrot.slane %v3618_v58, 2 }
 0x78b   : > { %v3613_v27 = vmax.f32 %v3611_v44, %v3612_v18 }
 0x78c   : > { %v3620_v34 = vmax.f32 %v3618_v58, %v3619_v39 }
 0x78d   : > { %v3614_v29 = vrot.slane %v3613_v27, 1 }
 0x78e   : > { %v3621_v48 = vrot.slane %v3620_v34, 1 }
 0x78f   : > { %v3615_v55 = vmax.f32 %v3613_v27, %v3614_v29 }
 0x790   : > { %v3622_v15 = vmax.f32 %v3620_v34, %v3621_v48 }
 0x791   : > { %v3623_v10 = vsub.f32 %v3607_v60, %v3615_v55 }
 0x792   : > { %v3624_v0 = vsub.f32 %v3608_v6, %v3622_v15 }
 0x793   : > { %v3625_v13 = vmul.f32 1.442695, %v3623_v10 }
 0x794   : > { %v3627_v42 = vmul.f32 1.442695, %v3624_v0 }
 0x795   : > { %9228 = vpow2.f32 %v3625_v13 }
 0x796   : > { %9230 = vpow2.f32 %v3627_v42 }
 0x79f   : > { %v9229_v51 = vpop.eup %9228 }
 0x7a0   : > { %v9231_v1 = vpop.eup %9230  ;;  %v3629_v49 = vsel %vm2507_vm3, %v9229_v51, 0.0 }
 0x7a1   : > { %v3630_v19 = vrot.slane %v3629_v49, 4  ;;  %v3636_v21 = vsel %vm2507_vm3, %v9231_v1, 0.0 }
 0x7a2   : > { %v3637_v11 = vrot.slane %v3636_v21, 4 }
 0x7a3   : > { %v3631_v43 = vadd.f32 %v3630_v19, %v3629_v49  ;;  %v3345_v19 = vld [vmem:[%s12716_s15 + $0x28] sm:$0xff] }
 0x7a4   : > { %v3638_v44 = vadd.f32 %v3637_v11, %v3636_v21  ;;  %v3347_v21 = vld [vmem:[%s12716_s15 + $0x38] sm:$0xff]  ;;  %v12962_v11 = vmov 2  }
 0x7a5   : > { %v3632_v58 = vrot.slane %v3631_v43, 2 }
 0x7a6   : > { %v3639_v18 = vrot.slane %v3638_v44, 2 }
 0x7a7   : > { %v3633_v39 = vadd.f32 %v3632_v58, %v3631_v43 }
 0x7a8   : > { %v3640_v60 = vadd.f32 %v3639_v18, %v3638_v44 }
 0x7a9   : > { %v3634_v6 = vrot.slane %v3633_v39, 1 }
 0x7aa   : > { %v3641_v27 = vrot.slane %v3640_v60, 1 }
 0x7ab   : > { %v3635_v34 = vadd.f32 %v3634_v6, %v3633_v39 }
 0x7ac   : > { %v3642_v29 = vadd.f32 %v3641_v27, %v3640_v60 }
 0x7ad   : > { %9232 = vrcp.f32 %v3635_v34  ;;  %v12784_v34 = vmov 3  }
 0x7ae   : > { %9234 = vrcp.f32 %v3642_v29  ;;  %v12964_v29 = vmov 0  }
 0x7b7   : > { %v9233_v48 = vpop.eup %9232 }
 0x7b8   : > { %v9235_v55 = vpop.eup %9234  ;;  %v3644_v15 = vmul.f32 %v9233_v48, %v9229_v51  ;;  %v3341_v51 = vld [vmem:[%s12716_s15 + $0x8] sm:$0xff]  ;;  %v3351_v48 = vpop.permute.xlu1 %3350 }
 0x7b9   : > { %v3646_v10 = vmul.f32 %v9235_v55, %v9231_v1  ;;  %v3343_v1 = vld [vmem:[%s12716_s15 + $0x18] sm:$0xff] }
 0x7ba   : > { %v3647_v0 = vsel %vm2507_vm3, %v3644_v15, 0.0 }
 0x7bb   : > { %3716 = vmatprep.mubr.f32.mxu1 %v3646_v10  ;;  %v3724_v13 = vcombine.low %v3644_v15, %v3646_v10  ;;  %v3648_v42 = vsel %vm2507_vm3, %v3646_v10, 0.0 }
 0x7bc   : > { %3717 = vmatmul.mubr.f32.vlgmr.msra.gmra.mrb[36].mxu1 %v3644_v15  ;;  %v3649_v49 = vadd.f32 %v3648_v42, %v3647_v0  ;;  %v3361_v15 = vpop.permute.xlu1 %3360 }
 0x7bd   : > { %3726 = vst [vmem:[%s11197_s2] sm:$0xff] %v3724_v13  ;;  %4147 = vmatprep.mubr.f32.mxu1 %v12959_v45 }
 0x7be   : > { %3650 = vadd.xlane.f32.xlu0 %v3649_v49 }
 0x7c0   : > { %v11261_v0 = vpop.permute.xlu1 %3370 }
 0x7c4   : > { %v11265_v42 = vpop.permute.xlu1 %3380 }
 0x7d4   : > { %3355 = vperm.xlu0 %9059, %v3341_v51   ;;  %v3528_v51 = vld [vmem:[%s12718_s17] sm:$0xff] }
 0x7d8   : > { %3365 = vperm.xlu0 %9059, %v3343_v1   ;;  %v3530_v1 = vld [vmem:[%s12718_s17 + $0x10] sm:$0x1] }
 0x7dc   : > { %3375 = vperm.xlu0 %9059, %v3345_v19   ;;  %v3529_v19 = vld [vmem:[%s12718_s17 + $0x8] sm:$0xff] }
 0x7e0   : > { %3385 = vperm.xlu0 %9059, %v3347_v21  }
 0x7e4   : > { %9063 = vset.pattern.permute.xlu0 %v12962_v11 }
 0x84b   : > { %v3651_v43 = vpop.xlane.xlu0 %3650 }
 0x84c   : > { %v3727_v44 = vadd.f32 1e-08, %v3651_v43 }
 0x84e   : > { %9236 = vrcp.f32 %v3727_v44 }
 0x853   : > { %v3356_v55 = vpop.permute.xlu0 %3355 }
 0x857   : > { %v3366_v10 = vpop.permute.xlu0 %3365 }
 0x858   : > { %v9237_v58 = vpop.eup %9236 }
 0x85b   : > { %v11263_v13 = vpop.permute.xlu0 %3375 }
 0x85f   : > { %v11267_v49 = vpop.permute.xlu0 %3385 }
 0x88f   : > { %v3718_v18 = vpop.f32.mrb[36].mxu1 }
 0x890   : > { %v3729_v39 = vmul.f32 %v9237_v58, %v3718_v18  ;;  %v3720_v60 = vpop.f32.mrb[37].mxu1 }
 0x891   : > { %v11288_v60 = vadd.f32 %v11159_v40, %v3356_v55 }
 0x892   : > { %3730 = vst.msk [vmem:[%s11215_s6] sm:$0xf] %vm2301_vm0, %v3729_v39  ;;  %8485 = vmatprep.subr.msk.mxu0 %vm1141_vm1, %v3729_v39 }
 0x893   : > { %8486 = vmatpush3.xpose.msk.msra.mxu0 %vm1141_vm1, %v3729_v39 }
 0x896   : > { %8488 = vmatmul.mubr.msk.f32.vlgmr.msra.gmra.mrb[60].mxu0 %vm1141_vm1, %v11093_v41 }
 0x897   : > { %8490 = vmatprep.mubr.msk.f32.mxu0 %vm1141_vm1, %v11103_v36 }
 0x89a   : > { %8491 = vmatmul.mubr.msk.f32.gmra.mrb[62].mxu0 %vm1141_vm1, %v11111_v35  ;;  %v12963_v35 = vmov 1  }
 0x89b   : > { %8493 = vmatprep.mubr.msk.f32.mxu0 %vm1141_vm1, %v11119_v57 }
 0x89e   : > { %8494 = vmatmul.mubr.msk.f32.gmra.mrb[64].mxu0 %vm1141_vm1, %v11127_v17 }
 0x89f   : > { %8496 = vmatprep.mubr.msk.f32.mxu0 %vm1141_vm1, %v11135_v25 }
 0x8a2   : > { %8497 = vmatmul.mubr.msk.f32.gmra.mrb[66].mxu0 %vm1141_vm1, %v11143_v37 }
 0x8a3   : > { %4000 = vmatprep.mubr.f32.mxu0 %v12959_v45 }
 0x969   : > { %v8489_v41 = vpop.f32.mrb[60].mxu0 }
 0x96a   : > { %4171 = vperm.xlu0 %9063, %v8489_v41   ;;  %3846 = vperm.xlu1 %9061, %v8489_v41   ;;  %v3800_v36 = vpop.f32.mrb[61].mxu0 }
 0x96d   : > { %v8492_v6 = vpop.f32.mrb[62].mxu0 }
 0x96e   : > { %9062 = vset.pattern.permute.xlu1 %v12963_v35  ;;  %v3810_v27 = vpop.f32.mrb[63].mxu0 }
 0x96f   : > { %4024 = vperm.xlu1 %9062, %v8489_v41   ;;  %4175 = vperm.xlu0 %9063, %v3810_v27  }
 0x971   : > { %v8495_v57 = vpop.f32.mrb[64].mxu0 }
 0x972   : > { %v3820_v17 = vpop.f32.mrb[65].mxu0 }
 0x973   : > { %9064 = vset.pattern.permute.xlu1 %v12784_v34  ;;  %9073 = vset.pattern.permute.xlu0 %v12784_v34 }
 0x974   : > { %4318 = vperm.xlu1 %9064, %v8489_v41   ;;  %4322 = vperm.xlu0 %9073, %v3810_v27   ;;  %v11291_v41 = vadd.f32 %v11161_v5, %v3356_v55 }
 0x975   : > { %v8498_v25 = vpop.f32.mrb[66].mxu0 }
 0x976   : > { %v3830_v37 = vpop.f32.mrb[67].mxu0 }
 0x978   : > { %9065 = vset.pattern.permute.xlu1 %v12964_v29  ;;  %9079 = vset.pattern.permute.xlu0 %v12962_v11 }
 0x979   : > { %3841 = vperm.xlu1 %9065, %v3800_v36   ;;  %4187 = vperm.xlu0 %9079, %v8495_v57  }
 0x97d   : > { %9066 = vset.pattern.permute.xlu1 %v12962_v11  ;;  %9080 = vset.pattern.permute.xlu0 %v12963_v35 }
 0x97e   : > { %4167 = vperm.xlu1 %9066, %v3800_v36   ;;  %4020 = vperm.xlu0 %9080, %v3800_v36  }
 0x982   : > { %9067 = vset.pattern.permute.xlu1 %v12784_v34  ;;  %4028 = vperm.xlu0 %9080, %v3810_v27  }
 0x983   : > { %4314 = vperm.xlu1 %9067, %v3800_v36   ;;  %v11294_v36 = vadd.f32 %v11155_v46, %v3351_v48 }
 0x986   : > { %4036 = vperm.xlu0 %9080, %v3820_v17  }
 0x987   : > { %9068 = vset.pattern.permute.xlu1 %v12964_v29 }
 0x988   : > { %3856 = vperm.xlu1 %9068, %v8492_v6  }
 0x98a   : > { %4044 = vperm.xlu0 %9080, %v3830_v37  }
 0x98c   : > { %9069 = vset.pattern.permute.xlu1 %v12963_v35 }
 0x98d   : > { %4032 = vperm.xlu1 %9069, %v8492_v6  }
 0x98e   : > { %9083 = vset.pattern.permute.xlu0 %v12962_v11 }
 0x98f   : > { %4191 = vperm.xlu0 %9083, %v3830_v37  }
 0x991   : > { %9070 = vset.pattern.permute.xlu1 %v12962_v11 }
 0x992   : > { %4179 = vperm.xlu1 %9070, %v8492_v6  }
 0x993   : > { %9084 = vset.pattern.permute.xlu0 %v12784_v34 }
 0x994   : > { %4338 = vperm.xlu0 %9084, %v3830_v37  }
 0x996   : > { %9071 = vset.pattern.permute.xlu1 %v12784_v34 }
 0x997   : > { %4326 = vperm.xlu1 %9071, %v8492_v6   ;;  %v11297_v6 = vadd.f32 %v11157_v59, %v3351_v48 }
 0x998   : > { %9087 = vset.pattern.permute.xlu0 %v12964_v29 }
 0x999   : > { %3913 = vperm.xlu0 %9087, %v3528_v51  }
 0x99b   : > { %9072 = vset.pattern.permute.xlu1 %v12964_v29 }
 0x99c   : > { %3851 = vperm.xlu1 %9072, %v3810_v27  }
 0x9a0   : > { %3866 = vperm.xlu1 %9072, %v8495_v57  }
 0x9a4   : > { %9074 = vset.pattern.permute.xlu1 %v12963_v35 }
 0x9a5   : > { %4040 = vperm.xlu1 %9074, %v8495_v57  }
 0x9a9   : > { %9075 = vset.pattern.permute.xlu1 %v12964_v29 }
 0x9aa   : > { %3861 = vperm.xlu1 %9075, %v3820_v17  }
 0x9ae   : > { %3876 = vperm.xlu1 %9075, %v8498_v25  }
 0x9b2   : > { %9076 = vset.pattern.permute.xlu1 %v12963_v35 }
 0x9b3   : > { %4048 = vperm.xlu1 %9076, %v8498_v25  }
 0x9b7   : > { %9077 = vset.pattern.permute.xlu1 %v12964_v29 }
 0x9b8   : > { %3871 = vperm.xlu1 %9077, %v3830_v37  }
 0x9bc   : > { %9078 = vset.pattern.permute.xlu1 %v12962_v11 }
 0x9bd   : > { %4183 = vperm.xlu1 %9078, %v3820_v17  }
 0x9c1   : > { %9081 = vset.pattern.permute.xlu1 %v12784_v34 }
 0x9c2   : > { %4330 = vperm.xlu1 %9081, %v3820_v17  }
 0x9c6   : > { %4334 = vperm.xlu1 %9081, %v8495_v57  }
 0x9ca   : > { %9082 = vset.pattern.permute.xlu1 %v12962_v11 }
 0x9cb   : > { %4195 = vperm.xlu1 %9082, %v8498_v25  }
 0x9cf   : > { %9085 = vset.pattern.permute.xlu1 %v12784_v34 }
 0x9d0   : > { %4342 = vperm.xlu1 %9085, %v8498_v25  }
 0x9d4   : > { %9086 = vset.pattern.permute.xlu1 %v12964_v29 }
 0x9d5   : > { %3923 = vperm.xlu1 %9086, %v3530_v1  }
 0x9d9   : > { %3918 = vperm.xlu1 %9086, %v3529_v19  }
 0x9dd   : > { %9089 = vset.pattern.permute.xlu1 %v12962_v11 }
 0x9e9   : > { %v11278_v21 = vpop.permute.xlu0 %4171  ;;  %v3847_v43 = vpop.permute.xlu1 %3846 }
 0x9ea   : > { %v3881_v27 = vadd.f32 %v3847_v43, %v11288_v60  ;;  %v3882_v57 = vadd.f32 %v3847_v43, %v11291_v41 }
 0x9ec   : > { %v3897_v51 = vmax.f32 %v3881_v27, 0.0  ;;  %v3898_v5 = vmax.f32 %v3882_v57, 0.0 }
 0x9ee   : > { %v11280_v44 = vpop.permute.xlu0 %4175  ;;  %v4025_v58 = vpop.permute.xlu1 %4024 }
 0x9ef   : > { %v4053_v46 = vadd.f32 %v4025_v58, %v11288_v60  ;;  %v4054_v59 = vadd.f32 %v4025_v58, %v11291_v41 }
 0x9f1   : > { %v4069_v3 = vmax.f32 %v4053_v46, 0.0  ;;  %v4070_v57 = vmax.f32 %v4054_v59, 0.0 }
 0x9f3   : > { %v11283_v18 = vpop.permute.xlu0 %4322  ;;  %v11285_v39 = vpop.permute.xlu1 %4318 }
 0x9f8   : > { %v11301_v17 = vpop.permute.xlu0 %4187  ;;  %v3842_v25 = vpop.permute.xlu1 %3841 }
 0x9f9   : > { %v3879_v37 = vadd.f32 %v3842_v25, %v11294_v36  ;;  %v3880_v40 = vadd.f32 %v3842_v25, %v11297_v6 }
 0x9fb   : > { %v3895_v55 = vmax.f32 %v3879_v37, 0.0  ;;  %v3896_v1 = vmax.f32 %v3880_v40, 0.0 }
 0x9fd   : > { %v8675_v48 = vpack.c.bf16 %v3897_v51, %v3895_v55  ;;  %v4021_v19 = vpop.permute.xlu0 %4020  ;;  %v11307_v34 = vpop.permute.xlu1 %4167  ;;  %v8673_v43 = vpack.c.bf16 %v3898_v5, %v3896_v1  ;;  %v11314_v5 = vadd.f32 %v11163_v47, %v3361_v15  ;;  %v11317_v55 = vadd.f32 %v11165_v28, %v3361_v15 }
 0x9fe   : > { %v4051_v50 = vadd.f32 %v4021_v19, %v11294_v36  ;;  %v4052_v26 = vadd.f32 %v4021_v19, %v11297_v6  ;;  %v11320_v1 = vadd.f32 %v11167_v23, %v3366_v10 }
 0x9ff   : > { %8674 = vmatprep.subr.bf16.mxu0 %v8673_v43  ;;  %12965 = vst [vmem:[#allocation38_spill] sm:$0xff] %v11314_v5  ;;  %12966 = vst [vmem:[#allocation26_spill] sm:$0xff] %v11317_v55 }
 0xa00   : > { %v4067_v25 = vmax.f32 %v4051_v50, 0.0  ;;  %v4068_v27 = vmax.f32 %v4052_v26, 0.0  ;;  %8676 = vmatpush1.bf16.msra.mxu0 %v8675_v48  ;;  %v11323_v50 = vadd.f32 %v11169_v33, %v3366_v10 }
 0xa01   : > { %v4029_v51 = vpop.permute.xlu0 %4028 }
 0xa02   : > { %v8691_v37 = vpack.c.bf16 %v4069_v3, %v4067_v25  ;;  %v11311_v40 = vpop.permute.xlu1 %4314  ;;  %v8689_v24 = vpack.c.bf16 %v4070_v57, %v4068_v27  ;;  %v4055_v3 = vadd.f32 %v4029_v51, %v11314_v5  ;;  %v4056_v26 = vadd.f32 %v4029_v51, %v11317_v55 }
 0xa04   : > { %8690 = vmatprep.subr.bf16.mxu1 %v8689_v24  ;;  %v4071_v47 = vmax.f32 %v4055_v3, 0.0  ;;  %v4072_v48 = vmax.f32 %v4056_v26, 0.0 }
 0xa05   : > { %8692 = vmatpush1.bf16.msra.mxu1 %v8691_v37 }
 0xa07   : > { %v3857_v58 = vpop.permute.xlu1 %3856 }
 0xa08   : > { %v3885_v10 = vadd.f32 %v3857_v58, %v11320_v1  ;;  %v3886_v25 = vadd.f32 %v3857_v58, %v11323_v50  ;;  %v11343_v58 = vadd.f32 %v11173_v8, %v11261_v0 }
 0xa0a   : > { %v3901_v51 = vmax.f32 %v3885_v10, 0.0  ;;  %v3902_v3 = vmax.f32 %v3886_v25, 0.0  ;;  %12968 = vst [vmem:[#allocation20_spill] sm:$0xff] %v11343_v58 }
 0xa0c   : > { %v4033_v24 = vpop.permute.xlu1 %4032 }
 0xa0d   : > { %v4057_v46 = vadd.f32 %v4033_v24, %v11320_v1  ;;  %v4058_v59 = vadd.f32 %v4033_v24, %v11323_v50 }
 0xa0f   : > { %v4073_v19 = vmax.f32 %v4057_v46, 0.0  ;;  %v4074_v28 = vmax.f32 %v4058_v59, 0.0  ;;  %v4037_v59 = vpop.permute.xlu0 %4036 }
 0xa10   : > { %v4060_v10 = vadd.f32 %v4037_v59, %v11343_v58 }
 0xa11   : > { %v8695_v15 = vpack.c.bf16 %v4073_v19, %v4071_v47  ;;  %v11329_v43 = vpop.permute.xlu1 %4179  ;;  %v8693_v23 = vpack.c.bf16 %v4074_v28, %v4072_v48  ;;  %v11339_v19 = vadd.f32 %v11171_v31, %v11261_v0  ;;  %v11347_v28 = vadd.f32 %v11175_v56, %v11263_v13 }
 0xa12   : > { %v4205_v53 = vadd.f32 %v11329_v43, %v11323_v50 }
 0xa13   : > { %8694 = vmatprep.subr.bf16.mxu1 %v8693_v23  ;;  %12967 = vst [vmem:[#allocation44_spill] sm:$0xff] %v11339_v19  ;;  %12969 = vst [vmem:[#allocation36_spill] sm:$0xff] %v11347_v28  ;;  %v4059_v23 = vadd.f32 %v4037_v59, %v11339_v19 }
 0xa14   : > { %8696 = vmatpush1.bf16.msra.mxu1 %v8695_v15  ;;  %v11351_v15 = vadd.f32 %v11177_v52, %v11263_v13 }
 0xa15   : > { %v4075_v0 = vmax.f32 %v4059_v23, 0.0  ;;  %v4045_v23 = vpop.permute.xlu0 %4044 }
 0xa16   : > { %v11331_v33 = vpop.permute.xlu1 %4326  ;;  %12970 = vst [vmem:[#allocation27_spill] sm:$0xff] %v11351_v15 }
 0xa1b   : > { %v3852_v27 = vpop.permute.xlu1 %3851 }
 0xa1c   : > { %v3883_v57 = vadd.f32 %v3852_v27, %v11314_v5  ;;  %v3884_v37 = vadd.f32 %v3852_v27, %v11317_v55  ;;  %v4076_v27 = vmax.f32 %v4060_v10, 0.0 }
 0xa1e   : > { %v3899_v26 = vmax.f32 %v3883_v57, 0.0  ;;  %v3900_v24 = vmax.f32 %v3884_v37, 0.0 }
 0xa1f   : > { %v3867_v46 = vpop.permute.xlu1 %3866 }
 0xa20   : > { %v8679_v47 = vpack.c.bf16 %v3901_v51, %v3899_v26  ;;  %v8677_v48 = vpack.c.bf16 %v3902_v3, %v3900_v24  ;;  %v3889_v56 = vadd.f32 %v3867_v46, %v11347_v28  ;;  %v3890_v51 = vadd.f32 %v3867_v46, %v11351_v15 }
 0xa22   : > { %8678 = vmatprep.subr.bf16.mxu0 %v8677_v48  ;;  %v3905_v59 = vmax.f32 %v3889_v56, 0.0 }
 0xa23   : > { %8680 = vmatpush1.bf16.msra.mxu0 %v8679_v47  ;;  %v3906_v47 = vmax.f32 %v3890_v51, 0.0 }
 0xa24   : > { %v4041_v31 = vpop.permute.xlu1 %4040 }
 0xa25   : > { %v4061_v25 = vadd.f32 %v4041_v31, %v11347_v28  ;;  %v4062_v8 = vadd.f32 %v4041_v31, %v11351_v15 }
 0xa27   : > { %v4077_v57 = vmax.f32 %v4061_v25, 0.0  ;;  %v4078_v37 = vmax.f32 %v4062_v8, 0.0  ;;  %v11363_v25 = vadd.f32 %v11179_v7, %v11265_v42  ;;  %v11378_v7 = vadd.f32 %v11185_v9, %v11267_v49 }
 0xa29   : > { %v8699_v52 = vpack.c.bf16 %v4077_v57, %v4075_v0  ;;  %v3862_v13 = vpop.permute.xlu1 %3861  ;;  %v8697_v3 = vpack.c.bf16 %v4078_v37, %v4076_v27  ;;  %12971 = vst [vmem:[#allocation42_spill] sm:$0xff] %v11363_v25  ;;  %v11367_v0 = vadd.f32 %v11181_v12, %v11265_v42  ;;  %v4346_v27 = vadd.f32 %v11311_v40, %v11297_v6 }
 0xa2a   : > { %v3887_v26 = vadd.f32 %v3862_v13, %v11339_v19  ;;  %v3888_v24 = vadd.f32 %v3862_v13, %v11343_v58  ;;  %v4063_v57 = vadd.f32 %v4045_v23, %v11363_v25  ;;  %v11374_v37 = vadd.f32 %v11183_v2, %v11267_v49  ;;  %12974 = vst [vmem:[#allocation46_spill] sm:$0xff] %v11378_v7 }
 0xa2b   : > { %8698 = vmatprep.subr.bf16.mxu1 %v8697_v3  ;;  %12972 = vst [vmem:[#allocation43_spill] sm:$0xff] %v11367_v0  ;;  %v4064_v56 = vadd.f32 %v4045_v23, %v11367_v0  ;;  %v4201_v12 = vadd.f32 %v11278_v21, %v11291_v41  ;;  %v4347_v42 = vadd.f32 %v11285_v39, %v11288_v60 }
 0xa2c   : > { %v3903_v48 = vmax.f32 %v3887_v26, 0.0  ;;  %v3904_v31 = vmax.f32 %v3888_v24, 0.0  ;;  %8700 = vmatpush1.bf16.msra.mxu1 %v8699_v52  ;;  %12973 = vst [vmem:[#allocation45_spill] sm:$0xff] %v11374_v37  ;;  %v11387_v52 = vadd.f32 %v11283_v18, %v11314_v5  ;;  %v4348_v2 = vadd.f32 %v11285_v39, %v11291_v41 }
 0xa2d   : > { %v3877_v10 = vpop.permute.xlu1 %3876  ;;  %v4199_v13 = vadd.f32 %v11307_v34, %v11297_v6  ;;  %v4345_v3 = vadd.f32 %v11311_v40, %v11294_v36  ;;  %v4362_v26 = vmax.f32 %v4346_v27, 0.0  ;;  %v4079_v24 = vmax.f32 %v4063_v57, 0.0 }
 0xa2e   : > { %v8683_v46 = vpack.c.bf16 %v3905_v59, %v3903_v48  ;;  %v8681_v8 = vpack.c.bf16 %v3906_v47, %v3904_v31  ;;  %v4080_v59 = vmax.f32 %v4064_v56, 0.0  ;;  %v4352_v47 = vadd.f32 %v11331_v33, %v11323_v50 }
 0xa2f   : > { %v4350_v39 = vadd.f32 %v11283_v18, %v11317_v55  ;;  %v4363_v23 = vmax.f32 %v4347_v42, 0.0  ;;  %v4198_v40 = vadd.f32 %v11307_v34, %v11294_v36  ;;  %v4361_v38 = vmax.f32 %v4345_v3, 0.0 }
 0xa30   : > { %8682 = vmatprep.subr.bf16.mxu0 %v8681_v8  ;;  %v3894_v8 = vadd.f32 %v3877_v10, %v11378_v7  ;;  %v4215_v42 = vmax.f32 %v4199_v13, 0.0  ;;  %v4200_v3 = vadd.f32 %v11278_v21, %v11288_v60  ;;  %v4217_v13 = vmax.f32 %v4201_v12, 0.0 }
 0xa31   : > { %8684 = vmatpush1.bf16.msra.mxu0 %v8683_v46  ;;  %v3893_v46 = vadd.f32 %v3877_v10, %v11374_v37  ;;  %v4368_v10 = vmax.f32 %v4352_v47, 0.0  ;;  %v4366_v47 = vmax.f32 %v4350_v39, 0.0  ;;  %v4365_v21 = vmax.f32 %v11387_v52, 0.0 }
 0xa32   : > { %v4049_v51 = vpop.permute.xlu1 %4048  ;;  %v3910_v34 = vmax.f32 %v3894_v8, 0.0  ;;  %v4221_v12 = vmax.f32 %v4205_v53, 0.0  ;;  %v4216_v39 = vmax.f32 %v4200_v3, 0.0  ;;  %v4209_v53 = vadd.f32 %v11301_v17, %v11351_v15 }
 0xa33   : > { %v4065_v9 = vadd.f32 %v4049_v51, %v11374_v37  ;;  %v4066_v49 = vadd.f32 %v4049_v51, %v11378_v7  ;;  %v4364_v51 = vmax.f32 %v4348_v2, 0.0  ;;  %v3909_v63 = vmax.f32 %v3893_v46, 0.0 }
 0xa35   : > { %v4081_v48 = vmax.f32 %v4065_v9, 0.0  ;;  %v4082_v31 = vmax.f32 %v4066_v49, 0.0  ;;  %v4351_v9 = vadd.f32 %v11331_v33, %v11320_v1  ;;  %v8721_v2 = vpack.c.bf16 %v4364_v51, %v4362_v26  ;;  %v11414_v33 = vld [vmem:[%s12717_s16] sm:$0xff] }
 0xa36   : > { %v8723_v26 = vpack.c.bf16 %v4363_v23, %v4361_v38  ;;  %v8705_v38 = vpack.c.bf16 %v4217_v13, %v4215_v42 }
 0xa37   : > { %v8703_v27 = vpack.c.bf16 %v4081_v48, %v4079_v24  ;;  %v3872_v57 = vpop.permute.xlu1 %3871  ;;  %v8701_v56 = vpack.c.bf16 %v4082_v31, %v4080_v59  ;;  %v4203_v59 = vadd.f32 %v11280_v44, %v11317_v55  ;;  %v4367_v31 = vmax.f32 %v4351_v9, 0.0 }
 0xa38   : > { %v3891_v49 = vadd.f32 %v3872_v57, %v11363_v25  ;;  %v3892_v18 = vadd.f32 %v3872_v57, %v11367_v0  ;;  %v4204_v57 = vadd.f32 %v11329_v43, %v11320_v1  ;;  %v4202_v43 = vadd.f32 %v11280_v44, %v11314_v5 }
 0xa39   : > { %8702 = vmatprep.subr.bf16.mxu1 %v8701_v56  ;;  %v8725_v56 = vpack.c.bf16 %v4368_v10, %v4366_v47  ;;  %v4219_v23 = vmax.f32 %v4203_v59, 0.0  ;;  %v8727_v52 = vpack.c.bf16 %v4367_v31, %v4365_v21  ;;  %v4192_v59 = vpop.permute.xlu0 %4191 }
 0xa3a   : > { %v3907_v24 = vmax.f32 %v3891_v49, 0.0  ;;  %v3908_v48 = vmax.f32 %v3892_v18, 0.0  ;;  %8704 = vmatpush1.bf16.msra.mxu1 %v8703_v27  ;;  %v4214_v27 = vmax.f32 %v4198_v40, 0.0  ;;  %v4220_v9 = vmax.f32 %v4204_v57, 0.0 }
 0xa3b   : > { %8722 = vmatprep.subr.bf16.mxu1 %v8721_v2  ;;  %v8709_v44 = vpack.c.bf16 %v4221_v12, %v4219_v23  ;;  %v11444_v2 = vld [vmem:[%s12717_s16 + $0x10] sm:$0x1]  ;;  %v4210_v12 = vadd.f32 %v4192_v59, %v11363_v25 }
 0xa3c   : > { %v8687_v46 = vpack.c.bf16 %v3909_v63, %v3907_v24  ;;  %v4184_v8 = vpop.permute.xlu1 %4183  ;;  %v8685_v51 = vpack.c.bf16 %v3910_v34, %v3908_v48  ;;  %v11429_v63 = vld [vmem:[%s12717_s16 + $0x8] sm:$0xff]  ;;  %v8707_v40 = vpack.c.bf16 %v4216_v39, %v4214_v27  ;;  %v4218_v34 = vmax.f32 %v4202_v43, 0.0 }
 0xa3d   : > { %8313 = vmatmul.mubr.msk.f32.vlgmr.msra.gmra.mrb[38].mxu1 %vm3926_vm4, %v11414_v33  ;;  %v4207_v49 = vadd.f32 %v4184_v8, %v11343_v58  ;;  %v4206_v18 = vadd.f32 %v4184_v8, %v11339_v19  ;;  %v4208_v24 = vadd.f32 %v11301_v17, %v11347_v28  ;;  %v4225_v48 = vmax.f32 %v4209_v53, 0.0  ;;  %v4339_v53 = vpop.permute.xlu0 %4338 }
 0xa3e   : > { %8686 = vmatprep.subr.bf16.mxu0 %v8685_v51  ;;  %8724 = vmatpush1.bf16.msra.mxu1 %v8723_v26  ;;  %v8711_v47 = vpack.c.bf16 %v4220_v9, %v4218_v34  ;;  %v4226_v9 = vmax.f32 %v4210_v12, 0.0  ;;  %v4358_v34 = vadd.f32 %v4339_v53, %v11367_v0 }
 0xa3f   : > { %8688 = vmatpush1.bf16.msra.mxu0 %v8687_v46  ;;  %8726 = vmatprep.subr.bf16.mxu1 %v8725_v56  ;;  %v4223_v10 = vmax.f32 %v4207_v49, 0.0  ;;  %v4222_v26 = vmax.f32 %v4206_v18, 0.0  ;;  %v4224_v51 = vmax.f32 %v4208_v24, 0.0  ;;  %v4211_v49 = vadd.f32 %v4192_v59, %v11367_v0 }
 0xa40   : > { %8706 = vmatprep.subr.bf16.mxu0 %v8705_v38  ;;  %4153 = vmatprep.mubr.f32.mxu1 %v12959_v45 }
 0xa41   : > { %v4331_v42 = vpop.permute.xlu1 %4330  ;;  %8314 = vmatmul.mubr.msk.f32.gmra.mrb[40].mxu1 %vm3926_vm4, %v11429_v63  ;;  %v8713_v8 = vpack.c.bf16 %v4225_v48, %v4223_v10  ;;  %v8715_v38 = vpack.c.bf16 %v4224_v51, %v4222_v26  ;;  %v4227_v18 = vmax.f32 %v4211_v49, 0.0  ;;  %v4374_v26 = vmax.f32 %v4358_v34, 0.0 }
 0xa42   : > { %8728 = vmatpush1.bf16.msra.mxu1 %v8727_v52  ;;  %8310 = vmatmul.mubr.msk.f32.vlgmr.msra.gmra.mrb[68].mxu0 %vm3926_vm4, %v11414_v33  ;;  %v4353_v3 = vadd.f32 %v4331_v42, %v11339_v19  ;;  %v4354_v13 = vadd.f32 %v4331_v42, %v11343_v58 }
 0xa43   : > { %8708 = vmatpush1.bf16.msra.mxu0 %v8707_v40  ;;  %4006 = vmatprep.mubr.f32.mxu0 %v12959_v45 }
 0xa44   : > { %8710 = vmatprep.subr.bf16.mxu0 %v8709_v44  ;;  %4159 = vmatprep.mubr.f32.mxu1 %v12959_v45  ;;  %v4369_v27 = vmax.f32 %v4353_v3, 0.0  ;;  %v4370_v57 = vmax.f32 %v4354_v13, 0.0  ;;  %v4357_v44 = vadd.f32 %v4339_v53, %v11363_v25 }
 0xa45   : > { %v4335_v31 = vpop.permute.xlu1 %4334  ;;  %8315 = vmatmul.mubr.msk.f32.gmra.mrb[42].mxu1 %vm3926_vm4, %v11444_v2 }
 0xa46   : > { %v4355_v17 = vadd.f32 %v4335_v31, %v11347_v28  ;;  %v4356_v46 = vadd.f32 %v4335_v31, %v11351_v15  ;;  %8311 = vmatmul.mubr.msk.f32.gmra.mrb[70].mxu0 %vm3926_vm4, %v11429_v63  ;;  %4441 = vmatprep.mubr.f32.mxu1 %v12959_v45 }
 0xa47   : > { %8712 = vmatpush1.bf16.msra.mxu0 %v8711_v47  ;;  %4012 = vmatprep.mubr.f32.mxu0 %v12959_v45  ;;  %v4373_v47 = vmax.f32 %v4357_v44, 0.0 }
 0xa48   : > { %v4371_v56 = vmax.f32 %v4355_v17, 0.0  ;;  %v4372_v21 = vmax.f32 %v4356_v46, 0.0  ;;  %8714 = vmatprep.subr.bf16.mxu0 %v8713_v8 }
 0xa4a   : > { %v8731_v39 = vpack.c.bf16 %v4371_v56, %v4369_v27  ;;  %v4196_v43 = vpop.permute.xlu1 %4195  ;;  %v8729_v23 = vpack.c.bf16 %v4372_v21, %v4370_v57  ;;  %8312 = vmatmul.mubr.msk.f32.gmra.mrb[72].mxu0 %vm3926_vm4, %v11444_v2 }
 0xa4b   : > { %v4212_v52 = vadd.f32 %v4196_v43, %v11374_v37  ;;  %v4213_v40 = vadd.f32 %v4196_v43, %v11378_v7  ;;  %8716 = vmatpush1.bf16.msra.mxu0 %v8715_v38  ;;  %4294 = vmatprep.mubr.f32.mxu0 %v12959_v45 }
 0xa4c   : > { %8730 = vmatprep.subr.bf16.mxu1 %v8729_v23 }
 0xa4d   : > { %v4228_v42 = vmax.f32 %v4212_v52, 0.0  ;;  %v4229_v10 = vmax.f32 %v4213_v40, 0.0  ;;  %8732 = vmatpush1.bf16.msra.mxu1 %v8731_v39 }
 0xa4f   : > { %v8719_v24 = vpack.c.bf16 %v4228_v42, %v4226_v9  ;;  %v4343_v48 = vpop.permute.xlu1 %4342  ;;  %v8717_v3 = vpack.c.bf16 %v4229_v10, %v4227_v18 }
 0xa50   : > { %v4359_v13 = vadd.f32 %v4343_v48, %v11374_v37  ;;  %v4360_v59 = vadd.f32 %v4343_v48, %v11378_v7 }
 0xa51   : > { %8718 = vmatprep.subr.bf16.mxu0 %v8717_v3 }
 0xa52   : > { %v4375_v31 = vmax.f32 %v4359_v13, 0.0  ;;  %v4376_v17 = vmax.f32 %v4360_v59, 0.0  ;;  %8720 = vmatpush1.bf16.msra.mxu0 %v8719_v24 }
 0xa54   : > { %v8735_v46 = vpack.c.bf16 %v4375_v31, %v4373_v47  ;;  %v8733_v8 = vpack.c.bf16 %v4376_v17, %v4374_v26 }
 0xa55   : > { %8316 = vmatmul.mubr.msk.f32.vlgmr.msra.gmra.mrb[74].mxu0 %vm3926_vm4, %v11414_v33 }
 0xa56   : > { %8734 = vmatprep.subr.bf16.mxu1 %v8733_v8  ;;  %4300 = vmatprep.mubr.f32.mxu0 %v12959_v45 }
 0xa57   : > { %8736 = vmatpush1.bf16.msra.mxu1 %v8735_v46 }
 0xa58   : > { %8742 = vmatprep.subr.bf16.mxu1 %v10820_v30 }
 0xa59   : > { %8317 = vmatmul.mubr.msk.f32.gmra.mrb[76].mxu0 %vm3926_vm4, %v11429_v63 }
 0xa5a   : > { %8319 = vmatmul.mubr.msk.f32.vlgmr.msra.gmra.mrb[44].mxu1 %vm3926_vm4, %v11414_v33  ;;  %4306 = vmatprep.mubr.f32.mxu0 %v12959_v45 }
 0xa5b   : > { %8744 = vmatpush1.bf16.msra.mxu1 %v10816_v54  ;;  %4447 = vmatprep.mubr.f32.mxu1 %v12959_v45 }
 0xa5c   : > { %8746 = vmatprep.subr.bf16.mxu1 %v10844_v62 }
 0xa5d   : > { %8318 = vmatmul.mubr.msk.f32.gmra.mrb[78].mxu0 %vm3926_vm4, %v11444_v2 }
 0xa5e   : > { %8320 = vmatmul.mubr.msk.f32.gmra.mrb[46].mxu1 %vm3926_vm4, %v11429_v63  ;;  %4663 = vmatprep.mubr.f32.mxu0 %v12959_v45 }
 0xa5f   : > { %8748 = vmatpush1.bf16.msra.mxu1 %v10838_v14  ;;  %4453 = vmatprep.mubr.f32.mxu1 %v12959_v45 }
 0xa62   : > { %8321 = vmatmul.mubr.msk.f32.gmra.mrb[48].mxu1 %vm3926_vm4, %v11444_v2  ;;  %v11509_v2 = vpop.permute.xlu1 %3923 }
 0xa63   : > { %4755 = vmatprep.mubr.f32.mxu1 %v12959_v45  ;;  %12975 = vst [vmem:[#allocation47_spill] sm:$0xff] %v11509_v2 }
 0xa66   : > { %8323 = vmatmul.mubr.msk.f32.vlgmr.msra.gmra.mrb[50].mxu1 %vm1141_vm1, %v11149_v22 }
 0xa67   : > { %8501 = vmatprep.mubr.msk.f32.mxu1 %vm1141_vm1, %v11083_v32 }
 0xb10   : > { %v11497_v54 = vpop.f32.mrb[38].mxu1 }
 0xb11   : > { %v11499_v30 = vpop.f32.mrb[39].mxu1 }
 0xb14   : > { %v11501_v62 = vpop.f32.mrb[40].mxu1 }
 0xb15   : > { %v11503_v14 = vpop.f32.mrb[68].mxu0  ;;  %v11505_v33 = vpop.f32.mrb[41].mxu1 }
 0xb16   : > { %v11507_v63 = vpop.f32.mrb[69].mxu0 }
 0xb18   : > { %v4161_v51 = vpop.f32.mrb[42].mxu1 }
 0xb19   : > { %v11511_v27 = vpop.f32.mrb[70].mxu0  ;;  %v4162_v57 = vadd.f32 %v4161_v51, %v11509_v2  ;;  %v4163_v32 = vpop.f32.mrb[43].mxu1 }
 0xb1a   : > { %v11514_v56 = vpop.f32.mrb[71].mxu0  ;;  %v4164_v21 = vadd.f32 %v4163_v32, %v11509_v2 }
 0xb1b   : > { %v4462_v12 = vrot.slane %v4162_v57, 7 }
 0xb1c   : > { %v4463_v49 = vrot.slane %v4164_v21, 7 }
 0xb1d   : > { %v4014_v38 = vpop.f32.mrb[72].mxu0 }
 0xb1e   : > { %v4015_v39 = vadd.f32 %v4014_v38, %v11509_v2  ;;  %v4016_v43 = vpop.f32.mrb[73].mxu0 }
 0xb1f   : > { %v4017_v23 = vadd.f32 %v4016_v43, %v11509_v2 }
 0xb20   : > { %v4479_v53 = vsel %vm4478_vm5, %v4015_v39, %v4462_v12 }
 0xb21   : > { %v4480_v52 = vsel %vm4478_vm5, %v4017_v23, %v4463_v49 }
 0xb28   : > { %v11521_v40 = vpop.f32.mrb[74].mxu0 }
 0xb29   : > { %v11523_v9 = vpop.f32.mrb[75].mxu0 }
 0xb2c   : > { %v11525_v18 = vpop.f32.mrb[76].mxu0 }
 0xb2d   : > { %v11527_v42 = vpop.f32.mrb[44].mxu1  ;;  %v11529_v10 = vpop.f32.mrb[77].mxu0 }
 0xb2e   : > { %v11531_v44 = vpop.f32.mrb[45].mxu1 }
 0xb30   : > { %v4308_v34 = vpop.f32.mrb[78].mxu0 }
 0xb31   : > { %v4309_v24 = vadd.f32 %v4308_v34, %v11509_v2  ;;  %v4310_v48 = vpop.f32.mrb[79].mxu0  ;;  %v11534_v3 = vpop.f32.mrb[46].mxu1 }
 0xb32   : > { %v4311_v13 = vadd.f32 %v4310_v48, %v11509_v2  ;;  %v11537_v59 = vpop.f32.mrb[47].mxu1 }
 0xb33   : > { %v4468_v47 = vrot.slane %v4309_v24, 6 }
 0xb34   : > { %v4469_v26 = vrot.slane %v4311_v13, 6 }
 0xb35   : > { %v4482_v31 = vsel %vm4481_vm6, %v4479_v53, %v4468_v47  ;;  %v4455_v17 = vpop.f32.mrb[48].mxu1 }
 0xb36   : > { %v4483_v46 = vsel %vm4481_vm6, %v4480_v52, %v4469_v26  ;;  %v4456_v8 = vadd.f32 %v4455_v17, %v11509_v2  ;;  %v4457_v51 = vpop.f32.mrb[49].mxu1 }
 0xb37   : > { %v4458_v57 = vadd.f32 %v4457_v51, %v11509_v2 }
 0xb38   : > { %v4474_v32 = vrot.slane %v4456_v8, 5 }
 0xb39   : > { %v4475_v21 = vrot.slane %v4458_v57, 5  ;;  %v4757_v12 = vpop.f32.mrb[50].mxu1 }
 0xb3a   : > { %v4485_v49 = vsel %vm4484_vm7, %v4482_v31, %v4474_v32  ;;  %v4762_v38 = vmul.f32 0.17677669, %v4757_v12  ;;  %v4759_v39 = vpop.f32.mrb[51].mxu1 }
 0xb3b   : > { %v4492_v43 = vsel %vm2507_vm3, %v4485_v49, -inf  ;;  %v4486_v23 = vsel %vm4484_vm7, %v4483_v46, %v4475_v21  ;;  %v4763_v53 = vmul.f32 0.17677669, %v4759_v39 }
 0xb3c   : > { %v4493_v52 = vrot.slane %v4492_v43, 4  ;;  %v4489_v34 = vcombine.low %v4485_v49, %v4486_v23  ;;  %v4499_v24 = vsel %vm2507_vm3, %v4486_v23, -inf  ;;  %v4764_v48 = vsel %vm2507_vm3, %v4762_v38, -inf }
 0xb3d   : > { %v4500_v13 = vrot.slane %v4499_v24, 4  ;;  %v4765_v47 = vrot.slane %v4764_v48, 4  ;;  %v4771_v26 = vsel %vm2507_vm3, %v4763_v53, -inf }
 0xb3e   : > { %v4494_v31 = vmax.f32 %v4492_v43, %v4493_v52  ;;  %4491 = vst [vmem:[%s11549_s29] sm:$0xff] %v4489_v34  ;;  %v4772_v17 = vrot.slane %v4771_v26, 4 }
 0xb3f   : > { %v4501_v8 = vmax.f32 %v4499_v24, %v4500_v13  ;;  %v4766_v51 = vmax.f32 %v4764_v48, %v4765_v47 }
 0xb40   : > { %v4495_v57 = vrot.slane %v4494_v31, 2  ;;  %v4773_v32 = vmax.f32 %v4771_v26, %v4772_v17 }
 0xb41   : > { %v4502_v12 = vrot.slane %v4501_v8, 2  ;;  %v4767_v46 = vrot.slane %v4766_v51, 2 }
 0xb42   : > { %v4496_v21 = vmax.f32 %v4494_v31, %v4495_v57  ;;  %v4774_v39 = vrot.slane %v4773_v32, 2 }
 0xb43   : > { %v4503_v61 = vmax.f32 %v4501_v8, %v4502_v12  ;;  %v4768_v2 = vmax.f32 %v4766_v51, %v4767_v46 }
 0xb44   : > { %v4497_v22 = vrot.slane %v4496_v21, 1  ;;  %v4775_v37 = vmax.f32 %v4773_v32, %v4774_v39 }
 0xb45   : > { %v4504_v25 = vrot.slane %v4503_v61, 1  ;;  %v4769_v7 = vrot.slane %v4768_v2, 1 }
 0xb46   : > { %v4498_v0 = vmax.f32 %v4496_v21, %v4497_v22  ;;  %v4776_v15 = vrot.slane %v4775_v37, 1 }
 0xb47   : > { %v4505_v28 = vmax.f32 %v4503_v61, %v4504_v25  ;;  %v4770_v43 = vmax.f32 %v4768_v2, %v4769_v7 }
 0xb48   : > { %v4506_v52 = vsub.f32 %v4485_v49, %v4498_v0  ;;  %v4777_v34 = vmax.f32 %v4775_v37, %v4776_v15 }
 0xb49   : > { %v4507_v24 = vsub.f32 %v4486_v23, %v4505_v28  ;;  %v4778_v48 = vsub.f32 %v4762_v38, %v4770_v43 }
 0xb4a   : > { %v4508_v13 = vmul.f32 1.442695, %v4506_v52  ;;  %v4779_v47 = vsub.f32 %v4763_v53, %v4777_v34 }
 0xb4b   : > { %v4510_v26 = vmul.f32 1.442695, %v4507_v24  ;;  %v4780_v17 = vmul.f32 1.442695, %v4778_v48 }
 0xb4c   : > { %9238 = vpow2.f32 %v4508_v13  ;;  %v4782_v31 = vmul.f32 1.442695, %v4779_v47 }
 0xb4d   : > { %9240 = vpow2.f32 %v4510_v26 }
 0xb4e   : > { %9242 = vpow2.f32 %v4780_v17 }
 0xb4f   : > { %9244 = vpow2.f32 %v4782_v31 }
 0xb56   : > { %v9239_v8 = vpop.eup %9238 }
 0xb57   : > { %v9241_v51 = vpop.eup %9240  ;;  %v4512_v22 = vsel %vm2507_vm3, %v9239_v8, 0.0 }
 0xb58   : > { %v9243_v57 = vpop.eup %9242  ;;  %v4513_v61 = vrot.slane %v4512_v22, 4  ;;  %v4519_v25 = vsel %vm2507_vm3, %v9241_v51, 0.0 }
 0xb59   : > { %v9245_v15 = vpop.eup %9244  ;;  %v4520_v28 = vrot.slane %v4519_v25, 4  ;;  %v4784_v0 = vsel %vm2507_vm3, %v9243_v57, 0.0 }
 0xb5a   : > { %v4514_v37 = vadd.f32 %v4513_v61, %v4512_v22  ;;  %v4785_v7 = vrot.slane %v4784_v0, 4  ;;  %v4791_v2 = vsel %vm2507_vm3, %v9245_v15, 0.0  ;;  %v11560_v61 = vpop.permute.xlu0 %3913 }
 0xb5b   : > { %v4521_v49 = vadd.f32 %v4520_v28, %v4519_v25  ;;  %v4792_v38 = vrot.slane %v4791_v2, 4  ;;  %v11562_v25 = vpop.permute.xlu1 %3918  ;;  %v4150_v28 = vadd.f32 %v11497_v54, %v11560_v61  ;;  %v4297_v54 = vadd.f32 %v11521_v40, %v11560_v61 }
 0xb5c   : > { %v4515_v23 = vrot.slane %v4514_v37, 2  ;;  %v4786_v53 = vadd.f32 %v4785_v7, %v4784_v0  ;;  %v12976_v0 = vld [vmem:[#allocation16_spill] sm:$0xff]  ;;  %v4152_v7 = vadd.f32 %v11499_v30, %v11560_v61  ;;  %v4009_v30 = vadd.f32 %v11511_v27, %v11562_v25 }
 0xb5d   : > { %v4522_v32 = vrot.slane %v4521_v49, 2  ;;  %v4793_v12 = vadd.f32 %v4792_v38, %v4791_v2  ;;  %v4158_v2 = vadd.f32 %v11505_v33, %v11562_v25  ;;  %v4156_v38 = vadd.f32 %v11501_v62, %v11562_v25 }
 0xb5e   : > { %v4516_v46 = vadd.f32 %v4515_v23, %v4514_v37  ;;  %v4787_v21 = vrot.slane %v4786_v53, 2  ;;  %v11567_v37 = vsub.s32 3, %v12976_v0  ;;  %v4444_v62 = vadd.f32 %v11527_v42, %v11560_v61  ;;  %v12978_v42 = vld [vmem:[#allocation17_spill] sm:$0xff] }
 0xb5f   : > { %v4523_v39 = vadd.f32 %v4522_v32, %v4521_v49  ;;  %v4794_v43 = vrot.slane %v4793_v12, 2  ;;  %v4003_v49 = vadd.f32 %v11503_v14, %v11560_v61  ;;  %v4011_v32 = vadd.f32 %v11514_v56, %v11562_v25 }
 0xb60   : > { %v4517_v52 = vrot.slane %v4516_v46, 1  ;;  %v4788_v34 = vadd.f32 %v4787_v21, %v4786_v53  ;;  %v4005_v53 = vadd.f32 %v11507_v63, %v11560_v61  ;;  %v4299_v14 = vadd.f32 %v11523_v9, %v11560_v61 }
 0xb61   : > { %v4524_v24 = vrot.slane %v4523_v39, 1  ;;  %v4795_v48 = vadd.f32 %v4794_v43, %v4793_v12  ;;  %v4303_v12 = vadd.f32 %v11525_v18, %v11562_v25  ;;  %v4446_v40 = vadd.f32 %v11531_v44, %v11560_v61  ;;  %v12977_v43 = vld [vmem:[#allocation18_spill] sm:$0xff] }
 0xb62   : > { %v4518_v13 = vadd.f32 %v4517_v52, %v4516_v46  ;;  %v4789_v47 = vrot.slane %v4788_v34, 1  ;;  %v4305_v56 = vadd.f32 %v11529_v10, %v11562_v25  ;;  %v4452_v27 = vadd.f32 %v11537_v59, %v11562_v25 }
 0xb63   : > { %v4525_v26 = vadd.f32 %v4524_v24, %v4523_v39  ;;  %v4796_v17 = vrot.slane %v4795_v48, 1  ;;  %v12979_v24 = vld [vmem:[#allocation19_spill] sm:$0xff] }
 0xb64   : > { %9246 = vrcp.f32 %v4518_v13  ;;  %v4790_v31 = vadd.f32 %v4789_v47, %v4788_v34 }
 0xb65   : > { %9248 = vrcp.f32 %v4525_v26  ;;  %v4797_v22 = vadd.f32 %v4796_v17, %v4795_v48 }
 0xb66   : > { %9250 = vrcp.f32 %v4790_v31 }
 0xb67   : > { %9252 = vrcp.f32 %v4797_v22 }
 0xb6e   : > { %v9247_v23 = vpop.eup %9246 }
 0xb6f   : > { %v9249_v33 = vpop.eup %9248  ;;  %v4527_v63 = vmul.f32 %v9247_v23, %v9239_v8 }
 0xb70   : > { %v9251_v46 = vpop.eup %9250  ;;  %v4529_v21 = vmul.f32 %v9249_v33, %v9241_v51 }
 0xb71   : > { %v9253_v39 = vpop.eup %9252  ;;  %v4799_v9 = vmul.f32 %v9251_v46, %v9243_v57  ;;  %v4533_v52 = vrot.slane %v4527_v63, %v12977_v43  ;;  %v4545_v34 = vrot.slane %v4527_v63, %v12978_v42  ;;  %v4561_v18 = vrot.slane %v4527_v63, %v12979_v24 }
 0xb72   : > { %v4801_v8 = vmul.f32 %v9253_v39, %v9245_v15  ;;  %v4537_v48 = vrot.slane %v4529_v21, %v12977_v43  ;;  %v4549_v44 = vrot.slane %v4529_v21, %v12978_v42  ;;  %v4565_v10 = vrot.slane %v4529_v21, %v12979_v24 }
 0xb73   : > { %v4802_v13 = vsel %vm2507_vm3, %v4799_v9, 0.0  ;;  %v4581_v59 = vrot.slane %v4529_v21, %v11567_v37  ;;  %v4538_v51 = vmul.f32 %v4533_v52, %v4003_v49  ;;  %v4540_v57 = vmul.f32 %v4533_v52, %v4009_v30 }
 0xb74   : > { %v4803_v47 = vsel %vm2507_vm3, %v4801_v8, 0.0  ;;  %v4879_v26 = vcombine.low %v4799_v9, %v4801_v8  ;;  %v4539_v17 = vmul.f32 %v4537_v48, %v4005_v53  ;;  %v4541_v31 = vmul.f32 %v4537_v48, %v4011_v32 }
 0xb75   : > { %v4804_v22 = vadd.f32 %v4803_v47, %v4802_v13  ;;  %v4551_v15 = vmul.f32 %v4549_v44, %v4152_v7  ;;  %v4553_v0 = vmul.f32 %v4549_v44, %v4158_v2  ;;  %v4567_v23 = vmul.f32 %v4565_v10, %v4299_v14 }
 0xb76   : > { %8324 = vst [vmem:[%s11197_s2 + $0x8] sm:$0xff] %v4879_v26  ;;  %v4569_v33 = vmul.f32 %v4565_v10, %v4305_v56  ;;  %v4583_v46 = vmul.f32 %v4581_v59, %v4446_v40  ;;  %v4585_v39 = vmul.f32 %v4581_v59, %v4452_v27  ;;  %v4550_v24 = vmul.f32 %v4545_v34, %v4150_v28  ;;  %v9304_v59 = vld [vmem:[%s12960_s14 + $0x28] sm:$0xff] }
 0xb77   : > { %4805 = vadd.xlane.f32.xlu1 %v4804_v22  ;;  %v4555_v42 = vadd.f32 %v4551_v15, %v4539_v17  ;;  %v4557_v43 = vadd.f32 %v4553_v0, %v4541_v31  ;;  %v4552_v21 = vmul.f32 %v4545_v34, %v4156_v38  ;;  %v4566_v49 = vmul.f32 %v4561_v18, %v4297_v54 }
 0xb78   : > { %v4450_v30 = vadd.f32 %v11534_v3, %v11562_v25  ;;  %v4554_v52 = vadd.f32 %v4550_v24, %v4538_v51  ;;  %v4568_v53 = vmul.f32 %v4561_v18, %v4303_v12  ;;  %v4577_v32 = vrot.slane %v4527_v63, %v11567_v37  ;;  %v3531_v3 = vld [vmem:[%s12719_s18] sm:$0x7]  ;;  %v9305_v51 = vld [vmem:[%s12960_s14 + $0x30] sm:$0xff] }
 0xb79   : > { %v4571_v7 = vadd.f32 %v4567_v23, %v4555_v42  ;;  %v4573_v2 = vadd.f32 %v4569_v33, %v4557_v43  ;;  %v4556_v14 = vadd.f32 %v4552_v21, %v4540_v57  ;;  %v9306_v57 = vld [vmem:[%s12960_s14 + $0x38] sm:$0xff]  ;;  %v12983_v31 = vmov 3  }
 0xb7a   : > { %v4570_v48 = vadd.f32 %v4566_v49, %v4554_v52  ;;  %v4582_v56 = vmul.f32 %v4577_v32, %v4444_v62  ;;  %v4584_v40 = vmul.f32 %v4577_v32, %v4450_v30  ;;  %v12980_v62 = vld [vmem:[#allocation33_spill] sm:$0xff] }
 0xb7b   : > { %v4587_v27 = vadd.f32 %v4583_v46, %v4571_v7  ;;  %v4589_v28 = vadd.f32 %v4585_v39, %v4573_v2  ;;  %v4572_v44 = vadd.f32 %v4568_v53, %v4556_v14 }
 0xb7c   : > { %v4586_v10 = vadd.f32 %v4582_v56, %v4570_v48 }
 0xb7d   : > { %v8737_v13 = vpack.c.bf16 %v4589_v28, %v4587_v27  ;;  %v4588_v38 = vadd.f32 %v4584_v40, %v4572_v44 }
 0xb7f   : > { %8738 = vmatprep.subr.bf16.mxu0 %v8737_v13  ;;  %v8739_v54 = vpack.c.bf16 %v4588_v38, %v4586_v10 }
 0xb81   : > { %8740 = vmatpush1.bf16.msra.mxu0 %v8739_v54 }
 0xb82   : > { %8750 = vmatprep.subr.bf16.mxu0 %v10864_v16 }
 0xb84   : > { %8322 = vmatmul.mubr.msk.f32.vlgmr.msra.gmra.mrb[80].mxu0 %vm4595_vm8, %v3531_v3 }
 0xb85   : > { %4871 = vmatprep.mubr.f32.mxu0 %v4801_v8  ;;  %v9303_v8 = vld [vmem:[%s12960_s14 + $0x20] sm:$0xff] }
 0xb8a   : > { %8752 = vmatpush1.bf16.xpose.msra.mxu0 %v10860_v4  ;;  %v9300_v4 = vld [vmem:[%s12960_s14 + $0x8] sm:$0xff] }
 0xb8b   : > { %8754 = vmatprep.subr.bf16.mxu0 %v10879_v20  ;;  %v9301_v20 = vld [vmem:[%s12960_s14 + $0x10] sm:$0xff] }
 0xb92   : > { %8756 = vmatpush1.bf16.xpose.msra.mxu0 %v12980_v62 }
 0xb99   : > { %4872 = vmatmul.mubr.f32.vlgmr.msra.gmra.mrb[82].mxu0 %v4799_v9  ;;  %v9302_v9 = vld [vmem:[%s12960_s14 + $0x18] sm:$0xff] }
 0xb9a   : > { %5279 = vmatprep.mubr.f32.mxu0 %v12959_v45 }
 0xc04   : > { %v4806_v43 = vpop.xlane.xlu1 %4805 }
 0xc05   : > { %v4883_v42 = vadd.f32 1e-08, %v4806_v43 }
 0xc07   : > { %9254 = vrcp.f32 %v4883_v42 }
 0xc11   : > { %v9255_v16 = vpop.eup %9254 }
 0xc57   : > { %v11619_v12 = vpop.f32.mrb[80].mxu0 }
 0xc58   : > { %12981 = vst [vmem:[#allocation16_spill] sm:$0xff] %v11619_v12  ;;  %v11621_v63 = vpop.f32.mrb[81].mxu0 }
 0xc59   : > { %12982 = vst [vmem:[#allocation33_spill] sm:$0xff] %v11621_v63 }
 0xc6c   : > { %v4873_v34 = vpop.f32.mrb[82].mxu0 }
 0xc6d   : > { %v4885_v24 = vmul.f32 %v9255_v16, %v4873_v34  ;;  %v4875_v18 = vpop.f32.mrb[83].mxu0 }
 0xc6f   : > { %8325 = vst.msk [vmem:[%s11215_s6 + $0x4] sm:$0xf] %vm2301_vm0, %v4885_v24  ;;  %8499 = vmatprep.subr.msk.mxu1 %vm1141_vm1, %v4885_v24 }
 0xc70   : > { %8500 = vmatpush3.xpose.msk.msra.mxu1 %vm1141_vm1, %v4885_v24 }
 0xc73   : > { %8502 = vmatmul.mubr.msk.f32.vlgmr.msra.gmra.mrb[52].mxu1 %vm1141_vm1, %v9300_v4 }
 0xc74   : > { %8504 = vmatprep.mubr.msk.f32.mxu1 %vm1141_vm1, %v9301_v20 }
 0xc77   : > { %8505 = vmatmul.mubr.msk.f32.gmra.mrb[54].mxu1 %vm1141_vm1, %v9302_v9 }
 0xc78   : > { %8507 = vmatprep.mubr.msk.f32.mxu1 %vm1141_vm1, %v9303_v8 }
 0xc7b   : > { %8508 = vmatmul.mubr.msk.f32.gmra.mrb[56].mxu1 %vm1141_vm1, %v9304_v59 }
 0xc7c   : > { %8510 = vmatprep.mubr.msk.f32.mxu1 %vm1141_vm1, %v9305_v51 }
 0xc7f   : > { %8511 = vmatmul.mubr.msk.f32.gmra.mrb[58].mxu1 %vm1141_vm1, %v9306_v57 }
 0xc80   : > { %5132 = vmatprep.mubr.f32.mxu1 %v12959_v45 }
 0xd46   : > { %v8503_v47 = vpop.f32.mrb[52].mxu1 }
 0xd47   : > { %5303 = vperm.xlu1 %9089, %v8503_v47   ;;  %5003 = vperm.xlu0 %9087, %v8503_v47   ;;  %v4957_v26 = vpop.f32.mrb[53].mxu1 }
 0xd4a   : > { %v8506_v17 = vpop.f32.mrb[54].mxu1 }
 0xd4b   : > { %9094 = vset.pattern.permute.xlu1 %v12983_v31  ;;  %9088 = vset.pattern.permute.xlu0 %v12963_v35  ;;  %v4967_v22 = vpop.f32.mrb[55].mxu1 }
 0xd4c   : > { %5156 = vperm.xlu0 %9088, %v8503_v47   ;;  %5446 = vperm.xlu1 %9094, %v4957_v26  }
 0xd4e   : > { %v8509_v15 = vpop.f32.mrb[56].mxu1 }
 0xd4f   : > { %v4977_v0 = vpop.f32.mrb[57].mxu1 }
 0xd50   : > { %9090 = vset.pattern.permute.xlu0 %v12983_v31  ;;  %9096 = vset.pattern.permute.xlu1 %v12963_v35 }
 0xd51   : > { %5450 = vperm.xlu0 %9090, %v8503_v47   ;;  %5164 = vperm.xlu1 %9096, %v8506_v17  }
 0xd52   : > { %v8512_v23 = vpop.f32.mrb[58].mxu1 }
 0xd53   : > { %v4987_v33 = vpop.f32.mrb[59].mxu1 }
 0xd55   : > { %9091 = vset.pattern.permute.xlu0 %v12964_v29  ;;  %9097 = vset.pattern.permute.xlu1 %v12962_v11 }
 0xd56   : > { %4998 = vperm.xlu0 %9091, %v4957_v26   ;;  %5311 = vperm.xlu1 %9097, %v8506_v17  }
 0xd5a   : > { %9092 = vset.pattern.permute.xlu0 %v12963_v35  ;;  %9098 = vset.pattern.permute.xlu1 %v12983_v31 }
 0xd5b   : > { %5152 = vperm.xlu0 %9092, %v4957_v26   ;;  %5458 = vperm.xlu1 %9098, %v8506_v17  }
 0xd5f   : > { %9093 = vset.pattern.permute.xlu0 %v12962_v11  ;;  %9100 = vset.pattern.permute.xlu1 %v12962_v11 }
 0xd60   : > { %5299 = vperm.xlu0 %9093, %v4957_v26   ;;  %5307 = vperm.xlu1 %9100, %v4967_v22  }
 0xd64   : > { %9095 = vset.pattern.permute.xlu0 %v12964_v29  ;;  %9104 = vset.pattern.permute.xlu1 %v12963_v35 }
 0xd65   : > { %5013 = vperm.xlu0 %9095, %v8506_v17   ;;  %5168 = vperm.xlu1 %9104, %v4977_v0  }
 0xd69   : > { %5008 = vperm.xlu0 %9095, %v4967_v22   ;;  %9106 = vset.pattern.permute.xlu1 %v12964_v29 }
 0xd6a   : > { %5033 = vperm.xlu1 %9106, %v8512_v23  }
 0xd6d   : > { %9099 = vset.pattern.permute.xlu0 %v12963_v35 }
 0xd6e   : > { %5160 = vperm.xlu0 %9099, %v4967_v22   ;;  %9107 = vset.pattern.permute.xlu1 %v12963_v35 }
 0xd6f   : > { %5180 = vperm.xlu1 %9107, %v8512_v23  }
 0xd72   : > { %9101 = vset.pattern.permute.xlu0 %v12964_v29 }
 0xd73   : > { %5023 = vperm.xlu0 %9101, %v8509_v15   ;;  %9108 = vset.pattern.permute.xlu1 %v12964_v29 }
 0xd74   : > { %5028 = vperm.xlu1 %9108, %v4987_v33  }
 0xd77   : > { %9102 = vset.pattern.permute.xlu0 %v12963_v35 }
 0xd78   : > { %5172 = vperm.xlu0 %9102, %v8509_v15   ;;  %9111 = vset.pattern.permute.xlu1 %v12962_v11 }
 0xd79   : > { %5319 = vperm.xlu1 %9111, %v8509_v15  }
 0xd7c   : > { %9103 = vset.pattern.permute.xlu0 %v12964_v29 }
 0xd7d   : > { %5018 = vperm.xlu0 %9103, %v4977_v0   ;;  %9112 = vset.pattern.permute.xlu1 %v12983_v31 }
 0xd7e   : > { %5462 = vperm.xlu1 %9112, %v4977_v0  }
 0xd81   : > { %9105 = vset.pattern.permute.xlu0 %v12962_v11 }
 0xd82   : > { %5315 = vperm.xlu0 %9105, %v4977_v0   ;;  %9113 = vset.pattern.permute.xlu1 %v12962_v11 }
 0xd83   : > { %5327 = vperm.xlu1 %9113, %v8512_v23  }
 0xd86   : > { %9109 = vset.pattern.permute.xlu0 %v12963_v35 }
 0xd87   : > { %5176 = vperm.xlu0 %9109, %v4987_v33   ;;  %5323 = vperm.xlu1 %9113, %v4987_v33  }
 0xd8b   : > { %9110 = vset.pattern.permute.xlu0 %v12983_v31  ;;  %9114 = vset.pattern.permute.xlu1 %v12983_v31 }
 0xd8c   : > { %5454 = vperm.xlu0 %9110, %v4967_v22   ;;  %5474 = vperm.xlu1 %9114, %v8512_v23  }
 0xd90   : > { %5466 = vperm.xlu0 %9110, %v8509_v15   ;;  %9115 = vset.pattern.permute.xlu1 %v12964_v29 }
 0xd94   : > { %5470 = vperm.xlu0 %9110, %v4987_v33  }
 0xdc6   : > { %v11683_v46 = vpop.permute.xlu1 %5303  ;;  %v5004_v39 = vpop.permute.xlu0 %5003 }
 0xdc7   : > { %v5038_v53 = vadd.f32 %v5004_v39, %v11288_v60  ;;  %v5039_v32 = vadd.f32 %v5004_v39, %v11291_v41 }
 0xdc9   : > { %v5054_v56 = vmax.f32 %v5038_v53, 0.0  ;;  %v5055_v40 = vmax.f32 %v5039_v32, 0.0 }
 0xdcb   : > { %v5157_v21 = vpop.permute.xlu0 %5156  ;;  %v11685_v49 = vpop.permute.xlu1 %5446 }
 0xdcc   : > { %v5185_v44 = vadd.f32 %v5157_v21, %v11288_v60  ;;  %v5186_v10 = vadd.f32 %v5157_v21, %v11291_v41 }
 0xdce   : > { %v5201_v42 = vmax.f32 %v5185_v44, 0.0  ;;  %v5202_v16 = vmax.f32 %v5186_v10, 0.0 }
 0xdd0   : > { %v11687_v30 = vpop.permute.xlu0 %5450  ;;  %v5165_v52 = vpop.permute.xlu1 %5164 }
 0xdd1   : > { %v5189_v39 = vadd.f32 %v5165_v52, %v11320_v1  ;;  %v5190_v21 = vadd.f32 %v5165_v52, %v11323_v50 }
 0xdd5   : > { %v4999_v7 = vpop.permute.xlu0 %4998  ;;  %v11691_v2 = vpop.permute.xlu1 %5311 }
 0xdd6   : > { %v5036_v14 = vadd.f32 %v4999_v7, %v11294_v36  ;;  %v5037_v48 = vadd.f32 %v4999_v7, %v11297_v6 }
 0xdd8   : > { %v5052_v27 = vmax.f32 %v5036_v14, 0.0  ;;  %v5053_v28 = vmax.f32 %v5037_v48, 0.0 }
 0xdda   : > { %v8759_v13 = vpack.c.bf16 %v5054_v56, %v5052_v27  ;;  %v5153_v38 = vpop.permute.xlu0 %5152  ;;  %v11697_v54 = vpop.permute.xlu1 %5458  ;;  %v8757_v3 = vpack.c.bf16 %v5055_v40, %v5053_v28  ;;  %v5205_v40 = vmax.f32 %v5189_v39, 0.0  ;;  %v5206_v27 = vmax.f32 %v5190_v21, 0.0 }
 0xddb   : > { %v5183_v62 = vadd.f32 %v5153_v38, %v11294_v36  ;;  %v5184_v43 = vadd.f32 %v5153_v38, %v11297_v6 }
 0xddc   : > { %8758 = vmatprep.subr.bf16.mxu1 %v8757_v3 }
 0xddd   : > { %v5199_v34 = vmax.f32 %v5183_v62, 0.0  ;;  %v5200_v24 = vmax.f32 %v5184_v43, 0.0  ;;  %8760 = vmatpush1.bf16.msra.mxu1 %v8759_v13 }
 0xddf   : > { %v8775_v18 = vpack.c.bf16 %v5201_v42, %v5199_v34  ;;  %v11701_v4 = vpop.permute.xlu0 %5299  ;;  %v11703_v20 = vpop.permute.xlu1 %5307  ;;  %v8773_v9 = vpack.c.bf16 %v5202_v16, %v5200_v24  ;;  %v12984_v42 = vld [vmem:[#allocation36_spill] sm:$0xff]  ;;  %v12985_v34 = vld [vmem:[#allocation27_spill] sm:$0xff] }
 0xde1   : > { %8774 = vmatprep.subr.bf16.mxu0 %v8773_v9 }
 0xde2   : > { %8776 = vmatpush1.bf16.msra.mxu0 %v8775_v18 }
 0xde4   : > { %v5014_v8 = vpop.permute.xlu0 %5013  ;;  %v5169_v59 = vpop.permute.xlu1 %5168 }
 0xde5   : > { %v5042_v51 = vadd.f32 %v5014_v8, %v11320_v1  ;;  %v5043_v57 = vadd.f32 %v5014_v8, %v11323_v50  ;;  %v5191_v52 = vadd.f32 %v5169_v59, %v11339_v19  ;;  %v5192_v62 = vadd.f32 %v5169_v59, %v11343_v58  ;;  %v12986_v59 = vld [vmem:[#allocation43_spill] sm:$0xff] }
 0xde7   : > { %v5058_v15 = vmax.f32 %v5042_v51, 0.0  ;;  %v5059_v0 = vmax.f32 %v5043_v57, 0.0  ;;  %v5207_v9 = vmax.f32 %v5191_v52, 0.0  ;;  %v5208_v8 = vmax.f32 %v5192_v62, 0.0 }
 0xde8   : > { %v5009_v47 = vpop.permute.xlu0 %5008 }
 0xde9   : > { %v5040_v26 = vadd.f32 %v5009_v47, %v11314_v5  ;;  %v5041_v17 = vadd.f32 %v5009_v47, %v11317_v55  ;;  %v5034_v22 = vpop.permute.xlu1 %5033 }
 0xdeb   : > { %v5056_v23 = vmax.f32 %v5040_v26, 0.0  ;;  %v5057_v33 = vmax.f32 %v5041_v17, 0.0  ;;  %v11724_v26 = vadd.f32 %v11683_v46, %v11288_v60 }
 0xded   : > { %v8763_v53 = vpack.c.bf16 %v5058_v15, %v5056_v23  ;;  %v5161_v32 = vpop.permute.xlu0 %5160  ;;  %v8761_v7 = vpack.c.bf16 %v5059_v0, %v5057_v33  ;;  %v5477_v0 = vadd.f32 %v11685_v49, %v11294_v36  ;;  %v5479_v23 = vadd.f32 %v11687_v30, %v11288_v60 }
 0xdee   : > { %v5187_v14 = vadd.f32 %v5161_v32, %v11314_v5  ;;  %v5188_v48 = vadd.f32 %v5161_v32, %v11317_v55  ;;  %v11713_v56 = vpop.permute.xlu1 %5180  ;;  %v12987_v32 = vld [vmem:[#allocation46_spill] sm:$0xff] }
 0xdef   : > { %8762 = vmatprep.subr.bf16.mxu1 %v8761_v7  ;;  %v5051_v7 = vadd.f32 %v5034_v22, %v12987_v32 }
 0xdf0   : > { %v5203_v28 = vmax.f32 %v5187_v14, 0.0  ;;  %v5204_v44 = vmax.f32 %v5188_v48, 0.0  ;;  %8764 = vmatpush1.bf16.msra.mxu1 %v8763_v53  ;;  %v5480_v53 = vadd.f32 %v11687_v30, %v11291_v41 }
 0xdf2   : > { %v8779_v10 = vpack.c.bf16 %v5205_v40, %v5203_v28  ;;  %v5024_v13 = vpop.permute.xlu0 %5023  ;;  %v8777_v38 = vpack.c.bf16 %v5206_v27, %v5204_v44  ;;  %v5478_v27 = vadd.f32 %v11685_v49, %v11297_v6  ;;  %v5331_v28 = vadd.f32 %v11701_v4, %v11297_v6 }
 0xdf3   : > { %v5029_v3 = vpop.permute.xlu1 %5028  ;;  %v5046_v51 = vadd.f32 %v5024_v13, %v12984_v42  ;;  %v5047_v17 = vadd.f32 %v5024_v13, %v12985_v34  ;;  %v5067_v49 = vmax.f32 %v5051_v7, 0.0 }
 0xdf4   : > { %8778 = vmatprep.subr.bf16.mxu0 %v8777_v38  ;;  %v5049_v15 = vadd.f32 %v5029_v3, %v12986_v59 }
 0xdf5   : > { %8780 = vmatpush1.bf16.msra.mxu0 %v8779_v10  ;;  %v5062_v44 = vmax.f32 %v5046_v51, 0.0  ;;  %v12988_v10 = vld [vmem:[#allocation42_spill] sm:$0xff]  ;;  %v5063_v38 = vmax.f32 %v5047_v17, 0.0  ;;  %v5348_v51 = vmax.f32 %v11724_v26, 0.0  ;;  %v5335_v17 = vadd.f32 %v11703_v20, %v11317_v55 }
 0xdf6   : > { %v5048_v13 = vadd.f32 %v5029_v3, %v12988_v10  ;;  %v5065_v30 = vmax.f32 %v5049_v15, 0.0  ;;  %v5330_v3 = vadd.f32 %v11701_v4, %v11294_v36  ;;  %v5337_v26 = vadd.f32 %v11691_v2, %v11323_v50 }
 0xdf7   : > { %v5173_v43 = vpop.permute.xlu0 %5172 }
 0xdf8   : > { %v5193_v16 = vadd.f32 %v5173_v43, %v12984_v42  ;;  %v5194_v24 = vadd.f32 %v5173_v43, %v12985_v34  ;;  %v11719_v18 = vpop.permute.xlu1 %5319  ;;  %v5333_v43 = vadd.f32 %v11683_v46, %v11291_v41  ;;  %v5064_v15 = vmax.f32 %v5048_v13, 0.0 }
 0xdf9   : > { %v5493_v46 = vmax.f32 %v5477_v0, 0.0  ;;  %v5198_v0 = vadd.f32 %v11713_v56, %v12987_v32  ;;  %v5351_v13 = vmax.f32 %v5335_v17, 0.0 }
 0xdfa   : > { %v5209_v57 = vmax.f32 %v5193_v16, 0.0  ;;  %v5210_v47 = vmax.f32 %v5194_v24, 0.0  ;;  %v5495_v16 = vmax.f32 %v5479_v23, 0.0  ;;  %v12989_v24 = vld [vmem:[#allocation45_spill] sm:$0xff]  ;;  %v5494_v23 = vmax.f32 %v5478_v27, 0.0 }
 0xdfb   : > { %v5197_v4 = vadd.f32 %v11713_v56, %v12989_v24  ;;  %v5484_v56 = vadd.f32 %v11697_v54, %v11323_v50 }
 0xdfc   : > { %v8783_v33 = vpack.c.bf16 %v5209_v57, %v5207_v9  ;;  %v5019_v39 = vpop.permute.xlu0 %5018  ;;  %v8781_v21 = vpack.c.bf16 %v5210_v47, %v5208_v8  ;;  %v5050_v9 = vadd.f32 %v5034_v22, %v12989_v24  ;;  %v5496_v8 = vmax.f32 %v5480_v53, 0.0 }
 0xdfd   : > { %v5044_v14 = vadd.f32 %v5019_v39, %v11339_v19  ;;  %v5045_v48 = vadd.f32 %v5019_v39, %v11343_v58  ;;  %v11737_v40 = vpop.permute.xlu1 %5462  ;;  %v8769_v22 = vpack.c.bf16 %v5067_v49, %v5065_v30  ;;  %v5336_v53 = vadd.f32 %v11691_v2, %v11320_v1 }
 0xdfe   : > { %8782 = vmatprep.subr.bf16.mxu0 %v8781_v21  ;;  %v5347_v21 = vmax.f32 %v5331_v28, 0.0  ;;  %v5066_v7 = vmax.f32 %v5050_v9, 0.0  ;;  %v8805_v27 = vpack.c.bf16 %v5496_v8, %v5494_v23  ;;  %v5346_v28 = vmax.f32 %v5330_v3, 0.0 }
 0xdff   : > { %v5060_v52 = vmax.f32 %v5044_v14, 0.0  ;;  %v5061_v62 = vmax.f32 %v5045_v48, 0.0  ;;  %8784 = vmatpush1.bf16.msra.mxu0 %v8783_v33  ;;  %v5349_v14 = vmax.f32 %v5333_v43, 0.0  ;;  %v11760_v48 = vpack.c.bf16 %v5495_v16, %v5493_v46 }
 0xe00   : > { %v5352_v16 = vmax.f32 %v5336_v53, 0.0  ;;  %v5353_v9 = vmax.f32 %v5337_v26, 0.0  ;;  %v5213_v8 = vmax.f32 %v5197_v4, 0.0  ;;  %v8791_v17 = vpack.c.bf16 %v5348_v51, %v5346_v28 }
 0xe01   : > { %v8767_v57 = vpack.c.bf16 %v5062_v44, %v5060_v52  ;;  %v5316_v47 = vpop.permute.xlu0 %5315  ;;  %v8765_v39 = vpack.c.bf16 %v5063_v38, %v5061_v62  ;;  %v5334_v44 = vadd.f32 %v11703_v20, %v11314_v5  ;;  %v8771_v38 = vpack.c.bf16 %v5066_v7, %v5064_v15  ;;  %v11778_v7 = vld [vmem:[%s12717_s16] sm:$0xff] }
 0xe02   : > { %v11752_v33 = vpop.permute.xlu1 %5327  ;;  %v5339_v30 = vadd.f32 %v5316_v47, %v11343_v58  ;;  %v8789_v43 = vpack.c.bf16 %v5349_v14, %v5347_v21  ;;  %v5341_v20 = vadd.f32 %v11719_v18, %v12985_v34  ;;  %v5338_v46 = vadd.f32 %v5316_v47, %v11339_v19 }
 0xe03   : > { %8766 = vmatprep.subr.bf16.mxu1 %v8765_v39  ;;  %v5350_v15 = vmax.f32 %v5334_v44, 0.0  ;;  %v8793_v23 = vpack.c.bf16 %v5353_v9, %v5351_v13  ;;  %v5483_v51 = vadd.f32 %v11697_v54, %v11320_v1  ;;  %v5340_v47 = vadd.f32 %v11719_v18, %v12984_v42 }
 0xe04   : > { %8768 = vmatpush1.bf16.msra.mxu1 %v8767_v57  ;;  %v5214_v57 = vmax.f32 %v5198_v0, 0.0  ;;  %v5355_v21 = vmax.f32 %v5339_v30, 0.0  ;;  %v5500_v28 = vmax.f32 %v5484_v56, 0.0  ;;  %v5357_v44 = vmax.f32 %v5341_v20, 0.0 }
 0xe05   : > { %8770 = vmatprep.subr.bf16.mxu1 %v8769_v22  ;;  %v5486_v13 = vadd.f32 %v11737_v40, %v11343_v58  ;;  %v5354_v54 = vmax.f32 %v5338_v46, 0.0 }
 0xe06   : > { %v5177_v2 = vpop.permute.xlu0 %5176  ;;  %v5324_v49 = vpop.permute.xlu1 %5323 }
 0xe07   : > { %v5195_v52 = vadd.f32 %v5177_v2, %v12988_v10  ;;  %v5196_v62 = vadd.f32 %v5177_v2, %v12986_v59  ;;  %v5343_v53 = vadd.f32 %v5324_v49, %v12986_v59  ;;  %v8795_v2 = vpack.c.bf16 %v5352_v16, %v5350_v15 }
 0xe08   : > { %8772 = vmatpush1.bf16.msra.mxu1 %v8771_v38  ;;  %v5345_v38 = vadd.f32 %v11752_v33, %v12987_v32  ;;  %v5342_v30 = vadd.f32 %v5324_v49, %v12988_v10  ;;  %v8797_v16 = vpack.c.bf16 %v5357_v44, %v5355_v21  ;;  %v5499_v49 = vmax.f32 %v5483_v51, 0.0 }
 0xe09   : > { %v5211_v39 = vmax.f32 %v5195_v52, 0.0  ;;  %v5212_v3 = vmax.f32 %v5196_v62, 0.0  ;;  %8790 = vmatprep.subr.bf16.mxu1 %v8789_v43  ;;  %v5344_v52 = vadd.f32 %v11752_v33, %v12989_v24  ;;  %v5359_v62 = vmax.f32 %v5343_v53, 0.0 }
 0xe0a   : > { %v5358_v46 = vmax.f32 %v5342_v30, 0.0 }
 0xe0b   : > { %v8787_v22 = vpack.c.bf16 %v5213_v8, %v5211_v39  ;;  %v5455_v26 = vpop.permute.xlu0 %5454  ;;  %8335 = vmatmul.mubr.msk.f32.vlgmr.msra.gmra.mrb[60].mxu1 %vm3926_vm4, %v11778_v7  ;;  %v8785_v4 = vpack.c.bf16 %v5214_v57, %v5212_v3  ;;  %v5475_v9 = vpop.permute.xlu1 %5474  ;;  %v11799_v8 = vld [vmem:[%s12717_s16 + $0x8] sm:$0xff]  ;;  %v5356_v57 = vmax.f32 %v5340_v47, 0.0  ;;  %v5502_v39 = vmax.f32 %v5486_v13, 0.0 }
 0xe0c   : > { %v5481_v14 = vadd.f32 %v5455_v26, %v11314_v5  ;;  %v5482_v0 = vadd.f32 %v5455_v26, %v11317_v55  ;;  %8792 = vmatpush1.bf16.msra.mxu1 %v8791_v17  ;;  %5138 = vmatprep.mubr.f32.mxu1 %v12959_v45  ;;  %v5361_v3 = vmax.f32 %v5345_v38, 0.0  ;;  %v9309_v26 = vld [vmem:[%s12717_s16 + $0x10] sm:$0x1]  ;;  %v5491_v44 = vadd.f32 %v5475_v9, %v12989_v24 }
 0xe0d   : > { %8786 = vmatprep.subr.bf16.mxu0 %v8785_v4  ;;  %8794 = vmatprep.subr.bf16.mxu1 %v8793_v23  ;;  %v8799_v15 = vpack.c.bf16 %v5356_v57, %v5354_v54  ;;  %v5492_v23 = vadd.f32 %v5475_v9, %v12987_v32  ;;  %v12992_v9 = vld [vmem:[#allocation23_spill] sm:$0xff] }
 0xe0e   : > { %v5498_v18 = vmax.f32 %v5482_v0, 0.0  ;;  %8788 = vmatpush1.bf16.msra.mxu0 %v8787_v22  ;;  %v5497_v43 = vmax.f32 %v5481_v14, 0.0  ;;  %v5360_v22 = vmax.f32 %v5344_v52, 0.0  ;;  %v8801_v4 = vpack.c.bf16 %v5361_v3, %v5359_v62  ;;  %v12990_v62 = vld [vmem:[#allocation22_spill] sm:$0xff] }
 0xe0f   : > { %8806 = vmatprep.subr.bf16.mxu0 %v8805_v27  ;;  %v5467_v56 = vpop.permute.xlu0 %5466  ;;  %8336 = vmatmul.mubr.msk.f32.gmra.mrb[62].mxu1 %vm3926_vm4, %v11799_v8  ;;  %v5485_v27 = vadd.f32 %v11737_v40, %v11339_v19  ;;  %v5508_v13 = vmax.f32 %v5492_v23, 0.0  ;;  %v12995_v23 = vld [vmem:[#allocation47_spill] sm:$0xff] }
 0xe10   : > { %v5487_v20 = vadd.f32 %v5467_v56, %v12984_v42  ;;  %v5488_v33 = vadd.f32 %v5467_v56, %v12985_v34  ;;  %8796 = vmatpush1.bf16.msra.mxu1 %v8795_v2  ;;  %5144 = vmatprep.mubr.f32.mxu1 %v12959_v45  ;;  %v8809_v17 = vpack.c.bf16 %v5500_v28, %v5498_v18  ;;  %v5507_v18 = vmax.f32 %v5491_v44, 0.0  ;;  %v12993_v56 = vld [vmem:[#allocation40_spill] sm:$0xff] }
 0xe11   : > { %8338 = vmatmul.mubr.msk.f32.vlgmr.msra.gmra.mrb[84].mxu0 %vm3926_vm4, %v11778_v7  ;;  %8798 = vmatprep.subr.bf16.mxu1 %v8797_v16  ;;  %v8811_v53 = vpack.c.bf16 %v5499_v49, %v5497_v43  ;;  %v5501_v0 = vmax.f32 %v5485_v27, 0.0  ;;  %v8803_v28 = vpack.c.bf16 %v5360_v22, %v5358_v46  ;;  %v12991_v43 = vld [vmem:[#allocation34_spill] sm:$0xff]  ;;  %v9310_v16 = vld [vmem:[%s12960_s14] sm:$0xff] }
 0xe12   : > { %v5504_v21 = vmax.f32 %v5488_v33, 0.0  ;;  %8808 = vmatpush1.bf16.msra.mxu0 %v11760_v48  ;;  %5285 = vmatprep.mubr.f32.mxu0 %v12959_v45  ;;  %v5503_v51 = vmax.f32 %v5487_v20, 0.0 }
 0xe13   : > { %8810 = vmatprep.subr.bf16.mxu0 %v8809_v17  ;;  %v5471_v40 = vpop.permute.xlu0 %5470  ;;  %8337 = vmatmul.mubr.msk.f32.gmra.mrb[64].mxu1 %vm3926_vm4, %v9309_v26 }
 0xe14   : > { %v5489_v47 = vadd.f32 %v5471_v40, %v12988_v10  ;;  %v5490_v14 = vadd.f32 %v5471_v40, %v12986_v59  ;;  %8800 = vmatpush1.bf16.msra.mxu1 %v8799_v15  ;;  %v8813_v48 = vpack.c.bf16 %v5504_v21, %v5502_v39  ;;  %5426 = vmatprep.mubr.f32.mxu1 %v12959_v45 }
 0xe15   : > { %8339 = vmatmul.mubr.msk.f32.gmra.mrb[86].mxu0 %vm3926_vm4, %v11799_v8  ;;  %8802 = vmatprep.subr.bf16.mxu1 %v8801_v4  ;;  %v8815_v2 = vpack.c.bf16 %v5503_v51, %v5501_v0 }
 0xe16   : > { %v5506_v38 = vmax.f32 %v5490_v14, 0.0  ;;  %8812 = vmatpush1.bf16.msra.mxu0 %v8811_v53  ;;  %5291 = vmatprep.mubr.f32.mxu0 %v12959_v45  ;;  %v5505_v54 = vmax.f32 %v5489_v47, 0.0 }
 0xe17   : > { %8814 = vmatprep.subr.bf16.mxu0 %v8813_v48 }
 0xe18   : > { %8804 = vmatpush1.bf16.msra.mxu1 %v8803_v28  ;;  %v8817_v30 = vpack.c.bf16 %v5508_v13, %v5506_v38  ;;  %v8819_v52 = vpack.c.bf16 %v5507_v18, %v5505_v54 }
 0xe19   : > { %8340 = vmatmul.mubr.msk.f32.gmra.mrb[88].mxu0 %vm3926_vm4, %v9309_v26 }
 0xe1a   : > { %8816 = vmatpush1.bf16.msra.mxu0 %v8815_v2  ;;  %5573 = vmatprep.mubr.f32.mxu0 %v12959_v45 }
 0xe1b   : > { %8341 = vmatmul.mubr.msk.f32.vlgmr.msra.gmra.mrb[66].mxu1 %vm3926_vm4, %v11778_v7  ;;  %8818 = vmatprep.subr.bf16.mxu0 %v8817_v30 }
 0xe1c   : > { %5432 = vmatprep.mubr.f32.mxu1 %v12959_v45 }
 0xe1e   : > { %8820 = vmatpush1.bf16.msra.mxu0 %v8819_v52 }
 0xe1f   : > { %8342 = vmatmul.mubr.msk.f32.gmra.mrb[68].mxu1 %vm3926_vm4, %v11799_v8  ;;  %8826 = vmatprep.subr.bf16.mxu0 %v12990_v62 }
 0xe20   : > { %5438 = vmatprep.mubr.f32.mxu1 %v12959_v45 }
 0xe21   : > { %8344 = vmatmul.mubr.msk.f32.vlgmr.msra.gmra.mrb[90].mxu0 %vm3926_vm4, %v11778_v7  ;;  %v12994_v7 = vld [vmem:[#allocation39_spill] sm:$0xff] }
 0xe22   : > { %8828 = vmatpush1.bf16.msra.mxu0 %v12991_v43  ;;  %5579 = vmatprep.mubr.f32.mxu0 %v12959_v45 }
 0xe23   : > { %8343 = vmatmul.mubr.msk.f32.gmra.mrb[70].mxu1 %vm3926_vm4, %v9309_v26  ;;  %8830 = vmatprep.subr.bf16.mxu0 %v12992_v9 }
 0xe24   : > { %5784 = vmatprep.mubr.f32.mxu1 %v12959_v45 }
 0xe25   : > { %8345 = vmatmul.mubr.msk.f32.gmra.mrb[92].mxu0 %vm3926_vm4, %v11799_v8 }
 0xe26   : > { %8832 = vmatpush1.bf16.msra.mxu0 %v12993_v56  ;;  %5585 = vmatprep.mubr.f32.mxu0 %v12959_v45 }
 0xe29   : > { %8346 = vmatmul.mubr.msk.f32.gmra.mrb[94].mxu0 %vm3926_vm4, %v9309_v26 }
 0xe2a   : > { %5877 = vmatprep.mubr.f32.mxu0 %v12959_v45 }
 0xe2d   : > { %8350 = vmatmul.mubr.msk.f32.vlgmr.msra.gmra.mrb[96].mxu0 %vm1141_vm1, %v12994_v7 }
 0xe2e   : > { %8515 = vmatprep.mubr.msk.f32.mxu0 %vm1141_vm1, %v9310_v16 }
 0xede   : > { %v11852_v49 = vpop.f32.mrb[60].mxu1 }
 0xedf   : > { %v11854_v8 = vpop.f32.mrb[61].mxu1 }
 0xee2   : > { %v11856_v57 = vpop.f32.mrb[62].mxu1 }
 0xee3   : > { %v11858_v20 = vpop.f32.mrb[63].mxu1 }
 0xee4   : > { %v11860_v33 = vpop.f32.mrb[84].mxu0 }
 0xee5   : > { %v11862_v27 = vpop.f32.mrb[85].mxu0 }
 0xee6   : > { %v5146_v39 = vpop.f32.mrb[64].mxu1 }
 0xee7   : > { %v5148_v3 = vpop.f32.mrb[65].mxu1  ;;  %v5147_v26 = vadd.f32 %v5146_v39, %v12995_v23 }
 0xee8   : > { %v11864_v17 = vpop.f32.mrb[86].mxu0  ;;  %v5149_v47 = vadd.f32 %v5148_v3, %v12995_v23 }
 0xee9   : > { %v11866_v15 = vpop.f32.mrb[87].mxu0 }
 0xeec   : > { %v5293_v46 = vpop.f32.mrb[88].mxu0 }
 0xeed   : > { %v5294_v21 = vadd.f32 %v5293_v46, %v12995_v23  ;;  %v5295_v22 = vpop.f32.mrb[89].mxu0 }
 0xeee   : > { %v5296_v53 = vadd.f32 %v5295_v22, %v12995_v23  ;;  %v11870_v40 = vpop.f32.mrb[66].mxu1 }
 0xeef   : > { %v5594_v4 = vrot.slane %v5294_v21, 7  ;;  %v11873_v51 = vpop.f32.mrb[67].mxu1 }
 0xef0   : > { %v5595_v14 = vrot.slane %v5296_v53, 7 }
 0xef1   : > { %v5610_v48 = vsel %vm4478_vm5, %v5147_v26, %v5594_v4 }
 0xef2   : > { %v5611_v0 = vsel %vm4478_vm5, %v5149_v47, %v5595_v14  ;;  %v11878_v28 = vpop.f32.mrb[68].mxu1 }
 0xef3   : > { %v11880_v44 = vpop.f32.mrb[69].mxu1 }
 0xef4   : > { %v11882_v13 = vpop.f32.mrb[90].mxu0 }
 0xef5   : > { %v11884_v38 = vpop.f32.mrb[91].mxu0 }
 0xef6   : > { %v5440_v2 = vpop.f32.mrb[70].mxu1 }
 0xef7   : > { %v5441_v54 = vadd.f32 %v5440_v2, %v12995_v23  ;;  %v5442_v30 = vpop.f32.mrb[71].mxu1 }
 0xef8   : > { %v5443_v18 = vadd.f32 %v5442_v30, %v12995_v23  ;;  %v11888_v52 = vpop.f32.mrb[92].mxu0 }
 0xef9   : > { %v5600_v62 = vrot.slane %v5441_v54, 6  ;;  %v11890_v43 = vpop.f32.mrb[93].mxu0 }
 0xefa   : > { %v5601_v9 = vrot.slane %v5443_v18, 6 }
 0xefb   : > { %v5612_v56 = vsel %vm4481_vm6, %v5610_v48, %v5600_v62 }
 0xefc   : > { %v5613_v16 = vsel %vm4481_vm6, %v5611_v0, %v5601_v9  ;;  %v5587_v39 = vpop.f32.mrb[94].mxu0 }
 0xefd   : > { %v5588_v3 = vadd.f32 %v5587_v39, %v12995_v23  ;;  %v5589_v46 = vpop.f32.mrb[95].mxu0 }
 0xefe   : > { %v5590_v21 = vadd.f32 %v5589_v46, %v12995_v23 }
 0xeff   : > { %v5606_v22 = vrot.slane %v5588_v3, 5 }
 0xf00   : > { %v5607_v53 = vrot.slane %v5590_v21, 5  ;;  %v5879_v26 = vpop.f32.mrb[96].mxu0 }
 0xf01   : > { %v5614_v4 = vsel %vm4484_vm7, %v5612_v56, %v5606_v22  ;;  %v5884_v47 = vmul.f32 0.17677669, %v5879_v26  ;;  %v5881_v14 = vpop.f32.mrb[97].mxu0 }
 0xf02   : > { %v5622_v2 = vsel %vm2507_vm3, %v5614_v4, -inf  ;;  %v5615_v48 = vsel %vm4484_vm7, %v5613_v16, %v5607_v53  ;;  %v5885_v54 = vmul.f32 0.17677669, %v5881_v14 }
 0xf03   : > { %v5623_v0 = vrot.slane %v5622_v2, 4  ;;  %v5618_v30 = vcombine.low %v5614_v4, %v5615_v48  ;;  %v5629_v18 = vsel %vm2507_vm3, %v5615_v48, -inf  ;;  %v5886_v62 = vsel %vm2507_vm3, %v5884_v47, -inf }
 0xf04   : > { %v5630_v9 = vrot.slane %v5629_v18, 4  ;;  %v5887_v39 = vrot.slane %v5886_v62, 4  ;;  %v5893_v3 = vsel %vm2507_vm3, %v5885_v54, -inf }
 0xf05   : > { %v5624_v46 = vmax.f32 %v5622_v2, %v5623_v0  ;;  %8347 = vst [vmem:[%s11549_s29 + $0x8] sm:$0xff] %v5618_v30  ;;  %v5894_v56 = vrot.slane %v5893_v3, 4 }
 0xf06   : > { %v5631_v21 = vmax.f32 %v5629_v18, %v5630_v9  ;;  %v5888_v22 = vmax.f32 %v5886_v62, %v5887_v39 }
 0xf07   : > { %v5625_v26 = vrot.slane %v5624_v46, 2  ;;  %v5895_v63 = vmax.f32 %v5893_v3, %v5894_v56 }
 0xf08   : > { %v5632_v12 = vrot.slane %v5631_v21, 2  ;;  %v5889_v16 = vrot.slane %v5888_v22, 2 }
 0xf09   : > { %v5626_v53 = vmax.f32 %v5624_v46, %v5625_v26  ;;  %v5896_v14 = vrot.slane %v5895_v63, 2 }
 0xf0a   : > { %v5633_v23 = vmax.f32 %v5631_v21, %v5632_v12  ;;  %v5890_v7 = vmax.f32 %v5888_v22, %v5889_v16 }
 0xf0b   : > { %v5627_v59 = vrot.slane %v5626_v53, 1  ;;  %v5897_v10 = vmax.f32 %v5895_v63, %v5896_v14 }
 0xf0c   : > { %v5634_v32 = vrot.slane %v5633_v23, 1  ;;  %v5891_v24 = vrot.slane %v5890_v7, 1 }
 0xf0d   : > { %v5628_v34 = vmax.f32 %v5626_v53, %v5627_v59  ;;  %v5898_v42 = vrot.slane %v5897_v10, 1 }
 0xf0e   : > { %v5635_v58 = vmax.f32 %v5633_v23, %v5634_v32  ;;  %v5892_v2 = vmax.f32 %v5890_v7, %v5891_v24 }
 0xf0f   : > { %v5636_v0 = vsub.f32 %v5614_v4, %v5628_v34  ;;  %v5899_v30 = vmax.f32 %v5897_v10, %v5898_v42 }
 0xf10   : > { %v5637_v18 = vsub.f32 %v5615_v48, %v5635_v58  ;;  %v5900_v62 = vsub.f32 %v5884_v47, %v5892_v2 }
 0xf11   : > { %v5638_v9 = vmul.f32 1.442695, %v5636_v0  ;;  %v5901_v39 = vsub.f32 %v5885_v54, %v5899_v30 }
 0xf12   : > { %v5640_v3 = vmul.f32 1.442695, %v5637_v18  ;;  %v5902_v56 = vmul.f32 1.442695, %v5900_v62 }
 0xf13   : > { %9256 = vpow2.f32 %v5638_v9  ;;  %v5904_v46 = vmul.f32 1.442695, %v5901_v39 }
 0xf14   : > { %9258 = vpow2.f32 %v5640_v3 }
 0xf15   : > { %9260 = vpow2.f32 %v5902_v56 }
 0xf16   : > { %9262 = vpow2.f32 %v5904_v46 }
 0xf1d   : > { %v9257_v12 = vpop.eup %9256 }
 0xf1e   : > { %v9259_v63 = vpop.eup %9258  ;;  %v5642_v59 = vsel %vm2507_vm3, %v9257_v12, 0.0 }
 0xf1f   : > { %v9261_v21 = vpop.eup %9260  ;;  %v5643_v32 = vrot.slane %v5642_v59, 4  ;;  %v5649_v34 = vsel %vm2507_vm3, %v9259_v63, 0.0 }
 0xf20   : > { %v9263_v42 = vpop.eup %9262  ;;  %v5650_v58 = vrot.slane %v5649_v34, 4  ;;  %v5906_v10 = vsel %vm2507_vm3, %v9261_v21, 0.0 }
 0xf21   : > { %v5644_v24 = vadd.f32 %v5643_v32, %v5642_v59  ;;  %v5907_v7 = vrot.slane %v5906_v10, 4  ;;  %v5913_v23 = vsel %vm2507_vm3, %v9263_v42, 0.0  ;;  %v5135_v32 = vadd.f32 %v11852_v49, %v11560_v61 }
 0xf22   : > { %v5651_v4 = vadd.f32 %v5650_v58, %v5649_v34  ;;  %v5914_v47 = vrot.slane %v5913_v23, 4  ;;  %v5137_v34 = vadd.f32 %v11854_v8, %v11560_v61  ;;  %v5141_v58 = vadd.f32 %v11856_v57, %v11562_v25 }
 0xf23   : > { %v5645_v48 = vrot.slane %v5644_v24, 2  ;;  %v5908_v54 = vadd.f32 %v5907_v7, %v5906_v10  ;;  %v5143_v10 = vadd.f32 %v11858_v20, %v11562_v25  ;;  %v5290_v49 = vadd.f32 %v11866_v15, %v11562_v25 }
 0xf24   : > { %v5652_v22 = vrot.slane %v5651_v4, 2  ;;  %v5915_v26 = vadd.f32 %v5914_v47, %v5913_v23  ;;  %v5284_v23 = vadd.f32 %v11862_v27, %v11560_v61  ;;  %v5429_v8 = vadd.f32 %v11870_v40, %v11560_v61 }
 0xf25   : > { %v5646_v16 = vadd.f32 %v5645_v48, %v5644_v24  ;;  %v5909_v53 = vrot.slane %v5908_v54, 2  ;;  %v5282_v24 = vadd.f32 %v11860_v33, %v11560_v61  ;;  %v5431_v20 = vadd.f32 %v11873_v51, %v11560_v61 }
 0xf26   : > { %v5653_v14 = vadd.f32 %v5652_v22, %v5651_v4  ;;  %v5916_v2 = vrot.slane %v5915_v26, 2  ;;  %v5288_v4 = vadd.f32 %v11864_v17, %v11562_v25  ;;  %v5435_v33 = vadd.f32 %v11878_v28, %v11562_v25  ;;  %v12997_v28 = vld [vmem:[#allocation17_spill] sm:$0xff] }
 0xf27   : > { %v5647_v0 = vrot.slane %v5646_v16, 1  ;;  %v5910_v30 = vadd.f32 %v5909_v53, %v5908_v54  ;;  %v5437_v47 = vadd.f32 %v11880_v44, %v11562_v25  ;;  %v5576_v17 = vadd.f32 %v11882_v13, %v11560_v61 }
 0xf28   : > { %v5654_v18 = vrot.slane %v5653_v14, 1  ;;  %v5917_v62 = vadd.f32 %v5916_v2, %v5915_v26  ;;  %v5578_v15 = vadd.f32 %v11884_v38, %v11560_v61  ;;  %v5584_v40 = vadd.f32 %v11890_v43, %v11562_v25  ;;  %v12996_v26 = vld [vmem:[#allocation18_spill] sm:$0xff] }
 0xf29   : > { %v5648_v9 = vadd.f32 %v5647_v0, %v5646_v16  ;;  %v5911_v39 = vrot.slane %v5910_v30, 1 }
 0xf2a   : > { %v5655_v3 = vadd.f32 %v5654_v18, %v5653_v14  ;;  %v5918_v56 = vrot.slane %v5917_v62, 1  ;;  %v12998_v14 = vld [vmem:[#allocation19_spill] sm:$0xff] }
 0xf2b   : > { %9264 = vrcp.f32 %v5648_v9  ;;  %v5912_v46 = vadd.f32 %v5911_v39, %v5910_v30 }
 0xf2c   : > { %9266 = vrcp.f32 %v5655_v3  ;;  %v5919_v59 = vadd.f32 %v5918_v56, %v5917_v62 }
 0xf2d   : > { %9268 = vrcp.f32 %v5912_v46 }
 0xf2e   : > { %9270 = vrcp.f32 %v5919_v59 }
 0xf35   : > { %v9265_v7 = vpop.eup %9264 }
 0xf36   : > { %v9267_v57 = vpop.eup %9266  ;;  %v5657_v27 = vmul.f32 %v9265_v7, %v9257_v12 }
 0xf37   : > { %v9269_v48 = vpop.eup %9268  ;;  %v5659_v54 = vmul.f32 %v9267_v57, %v9259_v63 }
 0xf38   : > { %v9271_v22 = vpop.eup %9270  ;;  %v5921_v51 = vmul.f32 %v9269_v48, %v9261_v21  ;;  %v5663_v16 = vrot.slane %v5657_v27, %v12996_v26  ;;  %v5675_v53 = vrot.slane %v5657_v27, %v12997_v28  ;;  %v5691_v44 = vrot.slane %v5657_v27, %v12998_v14 }
 0xf39   : > { %v5923_v12 = vmul.f32 %v9271_v22, %v9263_v42  ;;  %v5667_v2 = vrot.slane %v5659_v54, %v12996_v26  ;;  %v5679_v13 = vrot.slane %v5659_v54, %v12997_v28  ;;  %v5695_v38 = vrot.slane %v5659_v54, %v12998_v14 }
 0xf3a   : > { %v5924_v0 = vsel %vm2507_vm3, %v5921_v51, 0.0  ;;  %v5711_v43 = vrot.slane %v5659_v54, %v11567_v37  ;;  %v5668_v63 = vmul.f32 %v5663_v16, %v5135_v32  ;;  %v5670_v21 = vmul.f32 %v5663_v16, %v5141_v58 }
 0xf3b   : > { %v5925_v30 = vsel %vm2507_vm3, %v5923_v12, 0.0  ;;  %v6001_v18 = vcombine.low %v5921_v51, %v5923_v12  ;;  %v5669_v62 = vmul.f32 %v5667_v2, %v5137_v34  ;;  %v5671_v9 = vmul.f32 %v5667_v2, %v5143_v10 }
 0xf3c   : > { %v5926_v39 = vadd.f32 %v5925_v30, %v5924_v0  ;;  %v5681_v42 = vmul.f32 %v5679_v13, %v5284_v23  ;;  %v5683_v3 = vmul.f32 %v5679_v13, %v5290_v49  ;;  %v5697_v56 = vmul.f32 %v5695_v38, %v5431_v20 }
 0xf3d   : > { %8351 = vst [vmem:[%s11197_s2 + $0x10] sm:$0xff] %v6001_v18  ;;  %v5699_v46 = vmul.f32 %v5695_v38, %v5437_v47  ;;  %v5713_v59 = vmul.f32 %v5711_v43, %v5578_v15  ;;  %v5715_v7 = vmul.f32 %v5711_v43, %v5584_v40  ;;  %v5680_v57 = vmul.f32 %v5675_v53, %v5282_v24 }
 0xf3e   : > { %5927 = vadd.xlane.f32.xlu0 %v5926_v39  ;;  %v5685_v48 = vadd.f32 %v5681_v42, %v5669_v62  ;;  %v5687_v22 = vadd.f32 %v5683_v3, %v5671_v9  ;;  %v5682_v54 = vmul.f32 %v5675_v53, %v5288_v4  ;;  %v5696_v32 = vmul.f32 %v5691_v44, %v5429_v8  ;;  %v13002_v53 = vld [vmem:[#allocation41_spill] sm:$0xff]  ;;  %v9314_v39 = vld [vmem:[%s12960_s14 + $0x18] sm:$0xff]  ;;  %v9315_v42 = vld [vmem:[%s12960_s14 + $0x20] sm:$0xff] }
 0xf3f   : > { %v5582_v58 = vadd.f32 %v11888_v52, %v11562_v25  ;;  %v5684_v16 = vadd.f32 %v5680_v57, %v5668_v63  ;;  %v5698_v34 = vmul.f32 %v5691_v44, %v5435_v33  ;;  %v5707_v10 = vrot.slane %v5657_v27, %v11567_v37  ;;  %v12999_v52 = vld [vmem:[#allocation35_spill] sm:$0xff]  ;;  %v13000_v27 = vld [vmem:[#allocation37_spill] sm:$0xff]  ;;  %v9316_v3 = vld [vmem:[%s12960_s14 + $0x28] sm:$0xff] }
 0xf40   : > { %v5701_v23 = vadd.f32 %v5697_v56, %v5685_v48  ;;  %v5703_v49 = vadd.f32 %v5699_v46, %v5687_v22  ;;  %v5686_v20 = vadd.f32 %v5682_v54, %v5670_v21  ;;  %v9311_v33 = vld [vmem:[%s12719_s18] sm:$0x7]  ;;  %v9313_v9 = vld [vmem:[%s12960_s14 + $0x10] sm:$0xff]  ;;  %v9318_v46 = vld [vmem:[%s12960_s14 + $0x38] sm:$0xff] }
 0xf41   : > { %v5700_v2 = vadd.f32 %v5696_v32, %v5684_v16  ;;  %v5712_v47 = vmul.f32 %v5707_v10, %v5576_v17  ;;  %v5714_v15 = vmul.f32 %v5707_v10, %v5582_v58  ;;  %v13001_v17 = vld [vmem:[#allocation28_spill] sm:$0xff]  ;;  %v9317_v56 = vld [vmem:[%s12960_s14 + $0x30] sm:$0xff] }
 0xf42   : > { %v5717_v40 = vadd.f32 %v5713_v59, %v5701_v23  ;;  %v5719_v24 = vadd.f32 %v5715_v7, %v5703_v49  ;;  %v5702_v13 = vadd.f32 %v5698_v34, %v5686_v20 }
 0xf43   : > { %v5716_v38 = vadd.f32 %v5712_v47, %v5700_v2 }
 0xf44   : > { %v8821_v0 = vpack.c.bf16 %v5719_v24, %v5717_v40  ;;  %v5718_v4 = vadd.f32 %v5714_v15, %v5702_v13 }
 0xf46   : > { %8822 = vmatprep.subr.bf16.mxu1 %v8821_v0  ;;  %v8823_v8 = vpack.c.bf16 %v5718_v4, %v5716_v38 }
 0xf48   : > { %8824 = vmatpush1.bf16.msra.mxu1 %v8823_v8 }
 0xf49   : > { %8834 = vmatprep.subr.bf16.mxu1 %v12999_v52 }
 0xf4b   : > { %8348 = vmatmul.mubr.msk.f32.vlgmr.msra.gmra.mrb[72].mxu1 %vm4595_vm8, %v9311_v33 }
 0xf4c   : > { %5993 = vmatprep.mubr.f32.mxu1 %v5923_v12 }
 0xf51   : > { %8836 = vmatpush1.bf16.xpose.msra.mxu1 %v13000_v27 }
 0xf52   : > { %8838 = vmatprep.subr.bf16.mxu1 %v13001_v17 }
 0xf59   : > { %8840 = vmatpush1.bf16.xpose.msra.mxu1 %v13002_v53 }
 0xf60   : > { %5994 = vmatmul.mubr.f32.vlgmr.msra.gmra.mrb[74].mxu1 %v5921_v51  ;;  %v9312_v51 = vld [vmem:[%s12960_s14 + $0x8] sm:$0xff] }
 0xf61   : > { %6401 = vmatprep.mubr.f32.mxu1 %v12959_v45 }
 0xfcb   : > { %v5928_v63 = vpop.xlane.xlu0 %5927 }
 0xfcc   : > { %v6005_v21 = vadd.f32 1e-08, %v5928_v63 }
 0xfce   : > { %9272 = vrcp.f32 %v6005_v21 }
 0xfd8   : > { %v9273_v30 = vpop.eup %9272 }
0x101e   : > { %v11959_v44 = vpop.f32.mrb[72].mxu1 }
0x101f   : > { %13003 = vst [vmem:[#allocation22_spill] sm:$0xff] %v11959_v44  ;;  %v11961_v43 = vpop.f32.mrb[73].mxu1 }
0x1020   : > { %13004 = vst [vmem:[#allocation34_spill] sm:$0xff] %v11961_v43 }
0x1033   : > { %v5995_v18 = vpop.f32.mrb[74].mxu1 }
0x1034   : > { %v6007_v62 = vmul.f32 %v9273_v30, %v5995_v18  ;;  %v5997_v12 = vpop.f32.mrb[75].mxu1 }
0x1036   : > { %8352 = vst.msk [vmem:[%s11215_s6 + $0x8] sm:$0xf] %vm2301_vm0, %v6007_v62  ;;  %8513 = vmatprep.subr.msk.mxu0 %vm1141_vm1, %v6007_v62 }
0x1037   : > { %8514 = vmatpush3.xpose.msk.msra.mxu0 %vm1141_vm1, %v6007_v62 }
0x103a   : > { %8516 = vmatmul.mubr.msk.f32.vlgmr.msra.gmra.mrb[98].mxu0 %vm1141_vm1, %v9312_v51 }
0x103b   : > { %8518 = vmatprep.mubr.msk.f32.mxu0 %vm1141_vm1, %v9313_v9 }
0x103e   : > { %8519 = vmatmul.mubr.msk.f32.gmra.mrb[100].mxu0 %vm1141_vm1, %v9314_v39 }
0x103f   : > { %8521 = vmatprep.mubr.msk.f32.mxu0 %vm1141_vm1, %v9315_v42 }
0x1042   : > { %8522 = vmatmul.mubr.msk.f32.gmra.mrb[102].mxu0 %vm1141_vm1, %v9316_v3 }
0x1043   : > { %8524 = vmatprep.mubr.msk.f32.mxu0 %vm1141_vm1, %v9317_v56 }
0x1046   : > { %8525 = vmatmul.mubr.msk.f32.gmra.mrb[104].mxu0 %vm1141_vm1, %v9318_v46 }
0x1047   : > { %6254 = vmatprep.mubr.f32.mxu0 %v12959_v45 }
0x110d   : > { %v8517_v59 = vpop.f32.mrb[98].mxu0 }
0x110e   : > { %6125 = vperm.xlu1 %9115, %v8517_v59   ;;  %v6079_v7 = vpop.f32.mrb[99].mxu0 }
0x1111   : > { %v8520_v57 = vpop.f32.mrb[100].mxu0 }
0x1112   : > { %9116 = vset.pattern.permute.xlu1 %v12963_v35  ;;  %6580 = vperm.xlu0 %9110, %v8520_v57   ;;  %v6089_v48 = vpop.f32.mrb[101].mxu0 }
0x1113   : > { %6278 = vperm.xlu1 %9116, %v8517_v59  }
0x1115   : > { %v8523_v22 = vpop.f32.mrb[102].mxu0 }
0x1116   : > { %9131 = vset.pattern.permute.xlu0 %v12964_v29  ;;  %v6099_v54 = vpop.f32.mrb[103].mxu0 }
0x1117   : > { %9117 = vset.pattern.permute.xlu1 %v12962_v11  ;;  %6140 = vperm.xlu0 %9131, %v6099_v54  }
0x1118   : > { %6425 = vperm.xlu1 %9117, %v8517_v59  }
0x1119   : > { %v8526_v32 = vpop.f32.mrb[104].mxu0 }
0x111a   : > { %v6109_v58 = vpop.f32.mrb[105].mxu0 }
0x111b   : > { %9138 = vset.pattern.permute.xlu0 %v12983_v31 }
0x111c   : > { %9118 = vset.pattern.permute.xlu1 %v12983_v31  ;;  %6584 = vperm.xlu0 %9138, %v6099_v54  }
0x111d   : > { %6572 = vperm.xlu1 %9118, %v8517_v59  }
0x1120   : > { %9139 = vset.pattern.permute.xlu0 %v12962_v11 }
0x1121   : > { %9119 = vset.pattern.permute.xlu1 %v12964_v29  ;;  %6429 = vperm.xlu0 %9139, %v6089_v48  }
0x1122   : > { %6120 = vperm.xlu1 %9119, %v6079_v7  }
0x1125   : > { %6445 = vperm.xlu0 %9139, %v6109_v58  }
0x1126   : > { %9120 = vset.pattern.permute.xlu1 %v12963_v35 }
0x1127   : > { %6274 = vperm.xlu1 %9120, %v6079_v7  }
0x1129   : > { %9143 = vset.pattern.permute.xlu0 %v12983_v31 }
0x112a   : > { %6596 = vperm.xlu0 %9143, %v8526_v32  }
0x112b   : > { %9121 = vset.pattern.permute.xlu1 %v12962_v11 }
0x112c   : > { %6421 = vperm.xlu1 %9121, %v6079_v7  }
0x112e   : > { %9144 = vset.pattern.permute.xlu0 %v12964_v29 }
0x1130   : > { %9122 = vset.pattern.permute.xlu1 %v12983_v31 }
0x1131   : > { %6568 = vperm.xlu1 %9122, %v6079_v7  }
0x1135   : > { %9123 = vset.pattern.permute.xlu1 %v12964_v29 }
0x1136   : > { %6135 = vperm.xlu1 %9123, %v8520_v57  }
0x113a   : > { %9124 = vset.pattern.permute.xlu1 %v12963_v35 }
0x113b   : > { %6286 = vperm.xlu1 %9124, %v8520_v57  }
0x113f   : > { %9125 = vset.pattern.permute.xlu1 %v12962_v11 }
0x1140   : > { %6433 = vperm.xlu1 %9125, %v8520_v57  }
0x1144   : > { %9126 = vset.pattern.permute.xlu1 %v12964_v29 }
0x1145   : > { %6130 = vperm.xlu1 %9126, %v6089_v48  }
0x1149   : > { %9127 = vset.pattern.permute.xlu1 %v12963_v35 }
0x114a   : > { %6282 = vperm.xlu1 %9127, %v6089_v48  }
0x114e   : > { %9128 = vset.pattern.permute.xlu1 %v12983_v31 }
0x114f   : > { %6576 = vperm.xlu1 %9128, %v6089_v48  }
0x1153   : > { %9129 = vset.pattern.permute.xlu1 %v12964_v29 }
0x1154   : > { %6145 = vperm.xlu1 %9129, %v8523_v22  }
0x1158   : > { %9130 = vset.pattern.permute.xlu1 %v12963_v35 }
0x1159   : > { %6294 = vperm.xlu1 %9130, %v8523_v22  }
0x115d   : > { %6290 = vperm.xlu1 %9130, %v6099_v54  }
0x1161   : > { %9132 = vset.pattern.permute.xlu1 %v12962_v11 }
0x1162   : > { %6437 = vperm.xlu1 %9132, %v6099_v54  }
0x1166   : > { %9133 = vset.pattern.permute.xlu1 %v12964_v29 }
0x1167   : > { %6155 = vperm.xlu1 %9133, %v8526_v32  }
0x116b   : > { %9134 = vset.pattern.permute.xlu1 %v12963_v35 }
0x116c   : > { %6302 = vperm.xlu1 %9134, %v8526_v32  }
0x1170   : > { %9135 = vset.pattern.permute.xlu1 %v12964_v29 }
0x1171   : > { %6150 = vperm.xlu1 %9135, %v6109_v58  }
0x1175   : > { %9136 = vset.pattern.permute.xlu1 %v12963_v35 }
0x1176   : > { %6298 = vperm.xlu1 %9136, %v6109_v58  }
0x117a   : > { %9137 = vset.pattern.permute.xlu1 %v12962_v11 }
0x117b   : > { %6441 = vperm.xlu1 %9137, %v8523_v22  }
0x117f   : > { %9140 = vset.pattern.permute.xlu1 %v12983_v31 }
0x1180   : > { %6588 = vperm.xlu1 %9140, %v8523_v22  }
0x1184   : > { %9141 = vset.pattern.permute.xlu1 %v12962_v11 }
0x1185   : > { %6449 = vperm.xlu1 %9141, %v8526_v32  }
0x1189   : > { %9142 = vset.pattern.permute.xlu1 %v12983_v31 }
0x118a   : > { %6592 = vperm.xlu1 %9142, %v6109_v58  }
0x118d   : > { %v6126_v16 = vpop.permute.xlu1 %6125 }
0x118e   : > { %9146 = vset.pattern.permute.xlu1 %v12962_v11  ;;  %v6160_v49 = vadd.f32 %v6126_v16, %v11288_v60  ;;  %v6161_v20 = vadd.f32 %v6126_v16, %v11291_v41 }
0x1190   : > { %v6176_v40 = vmax.f32 %v6160_v49, 0.0  ;;  %v6177_v24 = vmax.f32 %v6161_v20, 0.0 }
0x1192   : > { %v6279_v34 = vpop.permute.xlu1 %6278 }
0x1193   : > { %v6307_v0 = vadd.f32 %v6279_v34, %v11288_v60  ;;  %v6308_v4 = vadd.f32 %v6279_v34, %v11291_v41 }
0x1195   : > { %v6323_v53 = vmax.f32 %v6307_v0, 0.0  ;;  %v6324_v63 = vmax.f32 %v6308_v4, 0.0 }
0x1197   : > { %v6426_v10 = vpop.permute.xlu1 %6425 }
0x1198   : > { %v6454_v18 = vadd.f32 %v6426_v10, %v11288_v60  ;;  %v6455_v62 = vadd.f32 %v6426_v10, %v11291_v41 }
0x119a   : > { %v6470_v3 = vmax.f32 %v6454_v18, 0.0  ;;  %v6471_v56 = vmax.f32 %v6455_v62, 0.0 }
0x119c   : > { %v6573_v23 = vpop.permute.xlu1 %6572 }
0x119d   : > { %v6601_v7 = vadd.f32 %v6573_v23, %v11288_v60  ;;  %v6602_v57 = vadd.f32 %v6573_v23, %v11291_v41 }
0x119f   : > { %v6617_v16 = vmax.f32 %v6601_v7, 0.0  ;;  %v6618_v34 = vmax.f32 %v6602_v57, 0.0  ;;  %v13005_v7 = vld [vmem:[#allocation20_spill] sm:$0xff] }
0x11a1   : > { %v6121_v2 = vpop.permute.xlu1 %6120 }
0x11a2   : > { %v6158_v47 = vadd.f32 %v6121_v2, %v11294_v36  ;;  %v6159_v15 = vadd.f32 %v6121_v2, %v11297_v6 }
0x11a4   : > { %v6174_v13 = vmax.f32 %v6158_v47, 0.0  ;;  %v6175_v38 = vmax.f32 %v6159_v15, 0.0 }
0x11a6   : > { %v8843_v8 = vpack.c.bf16 %v6176_v40, %v6174_v13  ;;  %v6275_v52 = vpop.permute.xlu1 %6274  ;;  %v8841_v33 = vpack.c.bf16 %v6177_v24, %v6175_v38 }
0x11a7   : > { %v6305_v27 = vadd.f32 %v6275_v52, %v11294_v36  ;;  %v6306_v17 = vadd.f32 %v6275_v52, %v11297_v6 }
0x11a8   : > { %8842 = vmatprep.subr.bf16.mxu0 %v8841_v33 }
0x11a9   : > { %v6321_v21 = vmax.f32 %v6305_v27, 0.0  ;;  %v6322_v30 = vmax.f32 %v6306_v17, 0.0  ;;  %8844 = vmatpush1.bf16.msra.mxu0 %v8843_v8 }
0x11ab   : > { %v8859_v12 = vpack.c.bf16 %v6323_v53, %v6321_v21  ;;  %v6422_v51 = vpop.permute.xlu1 %6421  ;;  %v8857_v9 = vpack.c.bf16 %v6324_v63, %v6322_v30  ;;  %v12058_v53 = vpop.permute.xlu0 %6580 }
0x11ac   : > { %v6452_v39 = vadd.f32 %v6422_v51, %v11294_v36  ;;  %v6453_v42 = vadd.f32 %v6422_v51, %v11297_v6 }
0x11ad   : > { %8858 = vmatprep.subr.bf16.mxu1 %v8857_v9 }
0x11ae   : > { %v6468_v46 = vmax.f32 %v6452_v39, 0.0  ;;  %v6469_v59 = vmax.f32 %v6453_v42, 0.0  ;;  %8860 = vmatpush1.bf16.msra.mxu1 %v8859_v12 }
0x11b0   : > { %v12040_v48 = vpack.c.bf16 %v6470_v3, %v6468_v46  ;;  %v6569_v22 = vpop.permute.xlu1 %6568  ;;  %v12042_v54 = vpack.c.bf16 %v6471_v56, %v6469_v59  ;;  %v6141_v46 = vpop.permute.xlu0 %6140 }
0x11b1   : > { %v6599_v32 = vadd.f32 %v6569_v22, %v11294_v36  ;;  %v6600_v58 = vadd.f32 %v6569_v22, %v11297_v6  ;;  %v6166_v59 = vadd.f32 %v6141_v46, %v11339_v19  ;;  %v6167_v57 = vadd.f32 %v6141_v46, %v13005_v7 }
0x11b3   : > { %v6615_v10 = vmax.f32 %v6599_v32, 0.0  ;;  %v6616_v49 = vmax.f32 %v6600_v58, 0.0  ;;  %v13006_v32 = vld [vmem:[#allocation36_spill] sm:$0xff] }
0x11b5   : > { %v12046_v20 = vpack.c.bf16 %v6617_v16, %v6615_v10  ;;  %v6136_v2 = vpop.permute.xlu1 %6135  ;;  %v12048_v47 = vpack.c.bf16 %v6618_v34, %v6616_v49  ;;  %v13007_v16 = vld [vmem:[#allocation27_spill] sm:$0xff]  ;;  %v6182_v10 = vmax.f32 %v6166_v59, 0.0  ;;  %v6183_v49 = vmax.f32 %v6167_v57, 0.0  ;;  %v13010_v59 = vld [vmem:[#allocation42_spill] sm:$0xff] }
0x11b6   : > { %v6164_v40 = vadd.f32 %v6136_v2, %v11320_v1  ;;  %v6165_v24 = vadd.f32 %v6136_v2, %v11323_v50 }
0x11b8   : > { %v6180_v4 = vmax.f32 %v6164_v40, 0.0  ;;  %v6181_v8 = vmax.f32 %v6165_v24, 0.0 }
0x11ba   : > { %v6287_v15 = vpop.permute.xlu1 %6286 }
0x11bb   : > { %v6311_v27 = vadd.f32 %v6287_v15, %v11320_v1  ;;  %v6312_v17 = vadd.f32 %v6287_v15, %v11323_v50 }
0x11bd   : > { %v6327_v12 = vmax.f32 %v6311_v27, 0.0  ;;  %v6328_v51 = vmax.f32 %v6312_v17, 0.0 }
0x11bf   : > { %v12050_v23 = vpop.permute.xlu1 %6433 }
0x11c4   : > { %v6131_v13 = vpop.permute.xlu1 %6130 }
0x11c5   : > { %v6162_v38 = vadd.f32 %v6131_v13, %v11314_v5  ;;  %v6163_v0 = vadd.f32 %v6131_v13, %v11317_v55 }
0x11c7   : > { %v6178_v52 = vmax.f32 %v6162_v38, 0.0  ;;  %v6179_v33 = vmax.f32 %v6163_v0, 0.0 }
0x11c9   : > { %v8847_v63 = vpack.c.bf16 %v6180_v4, %v6178_v52  ;;  %v6283_v21 = vpop.permute.xlu1 %6282  ;;  %v8845_v30 = vpack.c.bf16 %v6181_v8, %v6179_v33 }
0x11ca   : > { %v6309_v18 = vadd.f32 %v6283_v21, %v11314_v5  ;;  %v6310_v62 = vadd.f32 %v6283_v21, %v11317_v55 }
0x11cb   : > { %8846 = vmatprep.subr.bf16.mxu0 %v8845_v30 }
0x11cc   : > { %v6325_v9 = vmax.f32 %v6309_v18, 0.0  ;;  %v6326_v39 = vmax.f32 %v6310_v62, 0.0  ;;  %8848 = vmatpush1.bf16.msra.mxu0 %v8847_v63 }
0x11ce   : > { %v8863_v42 = vpack.c.bf16 %v6327_v12, %v6325_v9  ;;  %v12062_v3 = vpop.permute.xlu1 %6576  ;;  %v8861_v56 = vpack.c.bf16 %v6328_v51, %v6326_v39  ;;  %v12072_v51 = vpop.permute.xlu0 %6584  ;;  %v13008_v9 = vld [vmem:[#allocation45_spill] sm:$0xff] }
0x11d0   : > { %8862 = vmatprep.subr.bf16.mxu1 %v8861_v56 }
0x11d1   : > { %8864 = vmatpush1.bf16.msra.mxu1 %v8863_v42  ;;  %v13009_v42 = vld [vmem:[#allocation46_spill] sm:$0xff] }
0x11d3   : > { %v6146_v22 = vpop.permute.xlu1 %6145 }
0x11d4   : > { %v6168_v58 = vadd.f32 %v6146_v22, %v13006_v32  ;;  %v6169_v34 = vadd.f32 %v6146_v22, %v13007_v16  ;;  %v13011_v22 = vld [vmem:[#allocation43_spill] sm:$0xff] }
0x11d6   : > { %v6184_v2 = vmax.f32 %v6168_v58, 0.0  ;;  %v6185_v15 = vmax.f32 %v6169_v34, 0.0  ;;  %v6430_v34 = vpop.permute.xlu0 %6429 }
0x11d8   : > { %v8851_v40 = vpack.c.bf16 %v6184_v2, %v6182_v10  ;;  %v6295_v24 = vpop.permute.xlu1 %6294  ;;  %v8849_v13 = vpack.c.bf16 %v6185_v15, %v6183_v49  ;;  %v6459_v10 = vadd.f32 %v12050_v23, %v11323_v50 }
0x11d9   : > { %v6315_v38 = vadd.f32 %v6295_v24, %v13006_v32  ;;  %v6316_v0 = vadd.f32 %v6295_v24, %v13007_v16 }
0x11da   : > { %8850 = vmatprep.subr.bf16.mxu0 %v8849_v13 }
0x11db   : > { %8852 = vmatpush1.bf16.msra.mxu0 %v8851_v40  ;;  %v6331_v33 = vmax.f32 %v6315_v38, 0.0  ;;  %v6332_v27 = vmax.f32 %v6316_v0, 0.0  ;;  %v6457_v38 = vadd.f32 %v6430_v34, %v11317_v55 }
0x11dc   : > { %v6291_v4 = vpop.permute.xlu1 %6290 }
0x11dd   : > { %v6313_v8 = vadd.f32 %v6291_v4, %v11339_v19  ;;  %v6314_v52 = vadd.f32 %v6291_v4, %v13005_v7 }
0x11df   : > { %v6329_v17 = vmax.f32 %v6313_v8, 0.0  ;;  %v6330_v63 = vmax.f32 %v6314_v52, 0.0  ;;  %v6458_v52 = vadd.f32 %v12050_v23, %v11320_v1  ;;  %v6606_v23 = vadd.f32 %v12058_v53, %v11323_v50 }
0x11e1   : > { %v8867_v21 = vpack.c.bf16 %v6331_v33, %v6329_v17  ;;  %v6438_v30 = vpop.permute.xlu1 %6437  ;;  %v8865_v18 = vpack.c.bf16 %v6332_v27, %v6330_v63  ;;  %v6456_v17 = vadd.f32 %v6430_v34, %v11314_v5  ;;  %v6475_v63 = vmax.f32 %v6459_v10, 0.0 }
0x11e3   : > { %8866 = vmatprep.subr.bf16.mxu1 %v8865_v18 }
0x11e4   : > { %8868 = vmatpush1.bf16.msra.mxu1 %v8867_v21  ;;  %v6604_v21 = vadd.f32 %v12062_v3, %v11317_v55 }
0x11e6   : > { %v6156_v62 = vpop.permute.xlu1 %6155 }
0x11e7   : > { %v6172_v39 = vadd.f32 %v6156_v62, %v13008_v9  ;;  %v6173_v56 = vadd.f32 %v6156_v62, %v13009_v42 }
0x11e9   : > { %v6188_v49 = vmax.f32 %v6172_v39, 0.0  ;;  %v6189_v2 = vmax.f32 %v6173_v56, 0.0  ;;  %v6473_v56 = vmax.f32 %v6457_v38, 0.0  ;;  %v6460_v38 = vadd.f32 %v6438_v30, %v11339_v19 }
0x11eb   : > { %v6303_v12 = vpop.permute.xlu1 %6302 }
0x11ec   : > { %v6319_v24 = vadd.f32 %v6303_v12, %v13008_v9  ;;  %v6320_v13 = vadd.f32 %v6303_v12, %v13009_v42 }
0x11ee   : > { %v6335_v18 = vmax.f32 %v6319_v24, 0.0  ;;  %v6336_v62 = vmax.f32 %v6320_v13, 0.0  ;;  %v6472_v24 = vmax.f32 %v6456_v17, 0.0  ;;  %v6620_v13 = vmax.f32 %v6604_v21, 0.0 }
0x11ef   : > { %v6476_v21 = vmax.f32 %v6460_v38, 0.0 }
0x11f0   : > { %v6151_v46 = vpop.permute.xlu1 %6150 }
0x11f1   : > { %v6170_v57 = vadd.f32 %v6151_v46, %v13010_v59  ;;  %v6171_v58 = vadd.f32 %v6151_v46, %v13011_v22  ;;  %v6461_v46 = vadd.f32 %v6438_v30, %v13005_v7  ;;  %v6446_v30 = vpop.permute.xlu0 %6445 }
0x11f3   : > { %v6186_v15 = vmax.f32 %v6170_v57, 0.0  ;;  %v6187_v40 = vmax.f32 %v6171_v58, 0.0  ;;  %v6474_v57 = vmax.f32 %v6458_v52, 0.0  ;;  %v6608_v52 = vadd.f32 %v12072_v51, %v13005_v7 }
0x11f5   : > { %v8855_v0 = vpack.c.bf16 %v6188_v49, %v6186_v15  ;;  %v6299_v4 = vpop.permute.xlu1 %6298  ;;  %v8853_v8 = vpack.c.bf16 %v6189_v2, %v6187_v40  ;;  %v6603_v49 = vadd.f32 %v12062_v3, %v11314_v5  ;;  %v12101_v40 = vld [vmem:[%s12717_s16] sm:$0xff]  ;;  %v6605_v3 = vadd.f32 %v12058_v53, %v11320_v1 }
0x11f6   : > { %v6317_v33 = vadd.f32 %v6299_v4, %v13010_v59  ;;  %v6318_v27 = vadd.f32 %v6299_v4, %v13011_v22 }
0x11f7   : > { %8854 = vmatprep.subr.bf16.mxu0 %v8853_v8  ;;  %v6622_v8 = vmax.f32 %v6606_v23, 0.0  ;;  %v6619_v17 = vmax.f32 %v6603_v49, 0.0  ;;  %v9321_v49 = vld [vmem:[%s12717_s16 + $0x10] sm:$0x1] }
0x11f8   : > { %v6333_v12 = vmax.f32 %v6317_v33, 0.0  ;;  %v6334_v39 = vmax.f32 %v6318_v27, 0.0  ;;  %8856 = vmatpush1.bf16.msra.mxu0 %v8855_v0  ;;  %v6477_v0 = vmax.f32 %v6461_v46, 0.0  ;;  %v8879_v33 = vpack.c.bf16 %v6474_v57, %v6472_v24 }
0x11f9   : > { %8874 = vmatprep.subr.bf16.mxu0 %v12042_v54  ;;  %v8877_v54 = vpack.c.bf16 %v6475_v63, %v6473_v56  ;;  %v6624_v56 = vmax.f32 %v6608_v52, 0.0  ;;  %v6464_v46 = vadd.f32 %v6446_v30, %v13010_v59 }
0x11fa   : > { %v8871_v58 = vpack.c.bf16 %v6335_v18, %v6333_v12  ;;  %v6442_v34 = vpop.permute.xlu1 %6441  ;;  %v8869_v10 = vpack.c.bf16 %v6336_v62, %v6334_v39  ;;  %v6621_v12 = vmax.f32 %v6605_v3, 0.0  ;;  %v6607_v39 = vadd.f32 %v12072_v51, %v11339_v19 }
0x11fb   : > { %v6462_v2 = vadd.f32 %v6442_v34, %v13006_v32  ;;  %v6463_v15 = vadd.f32 %v6442_v34, %v13007_v16  ;;  %8362 = vmatmul.mubr.msk.f32.vlgmr.msra.gmra.mrb[106].mxu0 %vm3926_vm4, %v12101_v40 }
0x11fc   : > { %8870 = vmatprep.subr.bf16.mxu1 %v8869_v10  ;;  %8876 = vmatpush1.bf16.msra.mxu0 %v12040_v48  ;;  %v12116_v48 = vld [vmem:[%s12717_s16 + $0x8] sm:$0xff]  ;;  %v8895_v34 = vpack.c.bf16 %v6621_v12, %v6619_v17 }
0x11fd   : > { %v6479_v4 = vmax.f32 %v6463_v15, 0.0  ;;  %8872 = vmatpush1.bf16.msra.mxu1 %v8871_v58  ;;  %8878 = vmatprep.subr.bf16.mxu0 %v8877_v54  ;;  %v6478_v27 = vmax.f32 %v6462_v2, 0.0  ;;  %v6465_v58 = vadd.f32 %v6446_v30, %v13011_v22  ;;  %v6623_v2 = vmax.f32 %v6607_v39, 0.0  ;;  %v6597_v15 = vpop.permute.xlu0 %6596  ;;  %v13012_v39 = vld [vmem:[#allocation31_spill] sm:$0xff] }
0x11fe   : > { %6260 = vmatprep.mubr.f32.mxu0 %v12959_v45  ;;  %8890 = vmatprep.subr.bf16.mxu1 %v12048_v47  ;;  %v8893_v47 = vpack.c.bf16 %v6622_v8, %v6620_v13  ;;  %v6480_v13 = vmax.f32 %v6464_v46, 0.0  ;;  %v6613_v8 = vadd.f32 %v6597_v15, %v13008_v9  ;;  %v6614_v52 = vadd.f32 %v6597_v15, %v13009_v42  ;;  %v13014_v46 = vld [vmem:[#allocation25_spill] sm:$0xff] }
0x11ff   : > { %8363 = vmatmul.mubr.msk.f32.gmra.mrb[108].mxu0 %vm3926_vm4, %v12116_v48  ;;  %v6589_v53 = vpop.permute.xlu1 %6588  ;;  %v8881_v63 = vpack.c.bf16 %v6479_v4, %v6477_v0  ;;  %v8883_v23 = vpack.c.bf16 %v6478_v27, %v6476_v21  ;;  %v6481_v38 = vmax.f32 %v6465_v58, 0.0 }
0x1200   : > { %v6609_v18 = vadd.f32 %v6589_v53, %v13006_v32  ;;  %v6610_v62 = vadd.f32 %v6589_v53, %v13007_v16  ;;  %8365 = vmatmul.mubr.msk.f32.vlgmr.msra.gmra.mrb[76].mxu1 %vm3926_vm4, %v12101_v40  ;;  %8880 = vmatpush1.bf16.msra.mxu0 %v8879_v33  ;;  %v6630_v21 = vmax.f32 %v6614_v52, 0.0 }
0x1201   : > { %8882 = vmatprep.subr.bf16.mxu0 %v8881_v63  ;;  %8892 = vmatpush1.bf16.msra.mxu1 %v12046_v20  ;;  %v6629_v63 = vmax.f32 %v6613_v8, 0.0 }
0x1202   : > { %v6626_v57 = vmax.f32 %v6610_v62, 0.0  ;;  %6266 = vmatprep.mubr.f32.mxu0 %v12959_v45  ;;  %8894 = vmatprep.subr.bf16.mxu1 %v8893_v47  ;;  %v6625_v10 = vmax.f32 %v6609_v18, 0.0 }
0x1203   : > { %8364 = vmatmul.mubr.msk.f32.gmra.mrb[110].mxu0 %vm3926_vm4, %v9321_v49  ;;  %6407 = vmatprep.mubr.f32.mxu1 %v12959_v45 }
0x1204   : > { %8366 = vmatmul.mubr.msk.f32.gmra.mrb[78].mxu1 %vm3926_vm4, %v12116_v48  ;;  %8884 = vmatpush1.bf16.msra.mxu0 %v8883_v23  ;;  %v6450_v20 = vpop.permute.xlu1 %6449  ;;  %v8897_v51 = vpack.c.bf16 %v6626_v57, %v6624_v56  ;;  %v8899_v3 = vpack.c.bf16 %v6625_v10, %v6623_v2  ;;  %v13013_v56 = vld [vmem:[#allocation29_spill] sm:$0xff]  ;;  %v13015_v23 = vld [vmem:[#allocation15_spill] sm:$0xff] }
0x1205   : > { %v6466_v54 = vadd.f32 %v6450_v20, %v13008_v9  ;;  %v6467_v24 = vadd.f32 %v6450_v20, %v13009_v42  ;;  %8896 = vmatpush1.bf16.msra.mxu1 %v8895_v34  ;;  %6413 = vmatprep.mubr.f32.mxu1 %v12959_v45  ;;  %v9322_v57 = vld [vmem:[%s12960_s14] sm:$0xff] }
0x1206   : > { %8898 = vmatprep.subr.bf16.mxu1 %v8897_v51  ;;  %6548 = vmatprep.mubr.f32.mxu0 %v12959_v45 }
0x1207   : > { %v6482_v0 = vmax.f32 %v6466_v54, 0.0  ;;  %v6483_v4 = vmax.f32 %v6467_v24, 0.0 }
0x1208   : > { %8367 = vmatmul.mubr.msk.f32.gmra.mrb[80].mxu1 %vm3926_vm4, %v9321_v49 }
0x1209   : > { %v8887_v33 = vpack.c.bf16 %v6482_v0, %v6480_v13  ;;  %8900 = vmatpush1.bf16.msra.mxu1 %v8899_v3  ;;  %v6593_v27 = vpop.permute.xlu1 %6592  ;;  %v8885_v30 = vpack.c.bf16 %v6483_v4, %v6481_v38  ;;  %6695 = vmatprep.mubr.f32.mxu1 %v12959_v45  ;;  %v13017_v13 = vld [vmem:[#allocation47_spill] sm:$0xff] }
0x120a   : > { %v6611_v17 = vadd.f32 %v6593_v27, %v13010_v59  ;;  %v6612_v53 = vadd.f32 %v6593_v27, %v13011_v22 }
0x120b   : > { %8886 = vmatprep.subr.bf16.mxu0 %v8885_v30 }
0x120c   : > { %v6627_v18 = vmax.f32 %v6611_v17, 0.0  ;;  %v6628_v62 = vmax.f32 %v6612_v53, 0.0  ;;  %8888 = vmatpush1.bf16.msra.mxu0 %v8887_v33 }
0x120e   : > { %v8903_v47 = vpack.c.bf16 %v6629_v63, %v6627_v18  ;;  %v8901_v12 = vpack.c.bf16 %v6630_v21, %v6628_v62 }
0x120f   : > { %8368 = vmatmul.mubr.msk.f32.vlgmr.msra.gmra.mrb[112].mxu0 %vm3926_vm4, %v12101_v40 }
0x1210   : > { %8902 = vmatprep.subr.bf16.mxu1 %v8901_v12  ;;  %6554 = vmatprep.mubr.f32.mxu0 %v12959_v45 }
0x1211   : > { %8904 = vmatpush1.bf16.msra.mxu1 %v8903_v47 }
0x1212   : > { %8910 = vmatprep.subr.bf16.mxu1 %v13012_v39 }
0x1213   : > { %8369 = vmatmul.mubr.msk.f32.gmra.mrb[114].mxu0 %vm3926_vm4, %v12116_v48 }
0x1214   : > { %8371 = vmatmul.mubr.msk.f32.vlgmr.msra.gmra.mrb[82].mxu1 %vm3926_vm4, %v12101_v40  ;;  %6560 = vmatprep.mubr.f32.mxu0 %v12959_v45  ;;  %v13016_v40 = vld [vmem:[#allocation39_spill] sm:$0xff] }
0x1215   : > { %8912 = vmatpush1.bf16.msra.mxu1 %v13013_v56  ;;  %6701 = vmatprep.mubr.f32.mxu1 %v12959_v45 }
0x1216   : > { %8914 = vmatprep.subr.bf16.mxu1 %v13014_v46 }
0x1217   : > { %8370 = vmatmul.mubr.msk.f32.gmra.mrb[116].mxu0 %vm3926_vm4, %v9321_v49 }
0x1218   : > { %8372 = vmatmul.mubr.msk.f32.gmra.mrb[84].mxu1 %vm3926_vm4, %v12116_v48  ;;  %6906 = vmatprep.mubr.f32.mxu0 %v12959_v45 }
0x1219   : > { %8916 = vmatpush1.bf16.msra.mxu1 %v13015_v23  ;;  %6707 = vmatprep.mubr.f32.mxu1 %v12959_v45 }
0x121c   : > { %8373 = vmatmul.mubr.msk.f32.gmra.mrb[86].mxu1 %vm3926_vm4, %v9321_v49 }
0x121d   : > { %6999 = vmatprep.mubr.f32.mxu1 %v12959_v45 }
0x1220   : > { %8377 = vmatmul.mubr.msk.f32.vlgmr.msra.gmra.mrb[88].mxu1 %vm1141_vm1, %v13016_v40 }
0x1221   : > { %8529 = vmatprep.mubr.msk.f32.mxu1 %vm1141_vm1, %v9322_v57 }
0x12ce   : > { %v12173_v48 = vpop.f32.mrb[106].mxu0 }
0x12cf   : > { %v12175_v58 = vpop.f32.mrb[107].mxu0 }
0x12d2   : > { %v12177_v34 = vpop.f32.mrb[108].mxu0 }
0x12d3   : > { %v12179_v10 = vpop.f32.mrb[109].mxu0  ;;  %v12181_v49 = vpop.f32.mrb[76].mxu1 }
0x12d4   : > { %v12183_v20 = vpop.f32.mrb[77].mxu1 }
0x12d6   : > { %v6268_v51 = vpop.f32.mrb[110].mxu0 }
0x12d7   : > { %v6270_v2 = vpop.f32.mrb[111].mxu0  ;;  %v12185_v15 = vpop.f32.mrb[78].mxu1  ;;  %v6269_v4 = vadd.f32 %v6268_v51, %v13017_v13 }
0x12d8   : > { %v12187_v54 = vpop.f32.mrb[79].mxu1  ;;  %v6271_v52 = vadd.f32 %v6270_v2, %v13017_v13 }
0x12db   : > { %v6415_v24 = vpop.f32.mrb[80].mxu1 }
0x12dc   : > { %v6416_v38 = vadd.f32 %v6415_v24, %v13017_v13  ;;  %v6417_v3 = vpop.f32.mrb[81].mxu1 }
0x12dd   : > { %v6418_v0 = vadd.f32 %v6417_v3, %v13017_v13 }
0x12de   : > { %v6716_v8 = vrot.slane %v6416_v38, 7 }
0x12df   : > { %v6717_v33 = vrot.slane %v6418_v0, 7 }
0x12e0   : > { %v6732_v27 = vsel %vm4478_vm5, %v6269_v4, %v6716_v8 }
0x12e1   : > { %v6733_v30 = vsel %vm4478_vm5, %v6271_v52, %v6717_v33 }
0x12e2   : > { %v12195_v17 = vpop.f32.mrb[112].mxu0 }
0x12e3   : > { %v12197_v53 = vpop.f32.mrb[113].mxu0 }
0x12e6   : > { %v12199_v63 = vpop.f32.mrb[114].mxu0 }
0x12e7   : > { %v12201_v21 = vpop.f32.mrb[115].mxu0  ;;  %v12203_v18 = vpop.f32.mrb[82].mxu1 }
0x12e8   : > { %v12205_v62 = vpop.f32.mrb[83].mxu1 }
0x12ea   : > { %v6562_v47 = vpop.f32.mrb[116].mxu0 }
0x12eb   : > { %v6563_v12 = vadd.f32 %v6562_v47, %v13017_v13  ;;  %v6564_v39 = vpop.f32.mrb[117].mxu0  ;;  %v12208_v56 = vpop.f32.mrb[84].mxu1 }
0x12ec   : > { %v6565_v46 = vadd.f32 %v6564_v39, %v13017_v13  ;;  %v12211_v23 = vpop.f32.mrb[85].mxu1 }
0x12ed   : > { %v6722_v40 = vrot.slane %v6563_v12, 6 }
0x12ee   : > { %v6723_v57 = vrot.slane %v6565_v46, 6 }
0x12ef   : > { %v6734_v51 = vsel %vm4481_vm6, %v6732_v27, %v6722_v40  ;;  %v6709_v2 = vpop.f32.mrb[86].mxu1 }
0x12f0   : > { %v6735_v24 = vsel %vm4481_vm6, %v6733_v30, %v6723_v57  ;;  %v6710_v38 = vadd.f32 %v6709_v2, %v13017_v13  ;;  %v6711_v3 = vpop.f32.mrb[87].mxu1 }
0x12f1   : > { %v6712_v0 = vadd.f32 %v6711_v3, %v13017_v13 }
0x12f2   : > { %v6728_v4 = vrot.slane %v6710_v38, 5 }
0x12f3   : > { %v6729_v8 = vrot.slane %v6712_v0, 5  ;;  %v7001_v52 = vpop.f32.mrb[88].mxu1 }
0x12f4   : > { %v6736_v33 = vsel %vm4484_vm7, %v6734_v51, %v6728_v4  ;;  %v7006_v47 = vmul.f32 0.17677669, %v7001_v52  ;;  %v7003_v39 = vpop.f32.mrb[89].mxu1 }
0x12f5   : > { %v6744_v12 = vsel %vm2507_vm3, %v6736_v33, -inf  ;;  %v6737_v27 = vsel %vm4484_vm7, %v6735_v24, %v6729_v8  ;;  %v7007_v46 = vmul.f32 0.17677669, %v7003_v39 }
0x12f6   : > { %v6745_v40 = vrot.slane %v6744_v12, 4  ;;  %v6740_v30 = vcombine.low %v6736_v33, %v6737_v27  ;;  %v6751_v57 = vsel %vm2507_vm3, %v6737_v27, -inf  ;;  %v7008_v2 = vsel %vm2507_vm3, %v7006_v47, -inf }
0x12f7   : > { %v6752_v3 = vrot.slane %v6751_v57, 4  ;;  %v7009_v38 = vrot.slane %v7008_v2, 4  ;;  %v7015_v0 = vsel %vm2507_vm3, %v7007_v46, -inf }
0x12f8   : > { %v6746_v13 = vmax.f32 %v6744_v12, %v6745_v40  ;;  %8374 = vst [vmem:[%s11549_s29 + $0x10] sm:$0xff] %v6740_v30  ;;  %v7016_v51 = vrot.slane %v7015_v0, 4 }
0x12f9   : > { %v6753_v4 = vmax.f32 %v6751_v57, %v6752_v3  ;;  %v7010_v52 = vmax.f32 %v7008_v2, %v7009_v38 }
0x12fa   : > { %v6747_v43 = vrot.slane %v6746_v13, 2  ;;  %v7017_v44 = vmax.f32 %v7015_v0, %v7016_v51 }
0x12fb   : > { %v6754_v9 = vrot.slane %v6753_v4, 2  ;;  %v7011_v24 = vrot.slane %v7010_v52, 2 }
0x12fc   : > { %v6748_v8 = vmax.f32 %v6746_v13, %v6747_v43  ;;  %v7018_v39 = vrot.slane %v7017_v44, 2 }
0x12fd   : > { %v6755_v22 = vmax.f32 %v6753_v4, %v6754_v9  ;;  %v7012_v59 = vmax.f32 %v7010_v52, %v7011_v24 }
0x12fe   : > { %v6749_v42 = vrot.slane %v6748_v8, 1  ;;  %v7019_v16 = vmax.f32 %v7017_v44, %v7018_v39 }
0x12ff   : > { %v6756_v32 = vrot.slane %v6755_v22, 1  ;;  %v7013_v7 = vrot.slane %v7012_v59, 1 }
0x1300   : > { %v6750_v19 = vmax.f32 %v6748_v8, %v6749_v42  ;;  %v7020_v55 = vrot.slane %v7019_v16, 1 }
0x1301   : > { %v6757_v5 = vmax.f32 %v6755_v22, %v6756_v32  ;;  %v7014_v12 = vmax.f32 %v7012_v59, %v7013_v7 }
0x1302   : > { %v6758_v40 = vsub.f32 %v6736_v33, %v6750_v19  ;;  %v7021_v30 = vmax.f32 %v7019_v16, %v7020_v55 }
0x1303   : > { %v6759_v57 = vsub.f32 %v6737_v27, %v6757_v5  ;;  %v7022_v2 = vsub.f32 %v7006_v47, %v7014_v12 }
0x1304   : > { %v6760_v3 = vmul.f32 1.442695, %v6758_v40  ;;  %v7023_v38 = vsub.f32 %v7007_v46, %v7021_v30 }
0x1305   : > { %v6762_v0 = vmul.f32 1.442695, %v6759_v57  ;;  %v7024_v51 = vmul.f32 1.442695, %v7022_v2 }
0x1306   : > { %9274 = vpow2.f32 %v6760_v3  ;;  %v7026_v43 = vmul.f32 1.442695, %v7023_v38 }
0x1307   : > { %9276 = vpow2.f32 %v6762_v0 }
0x1308   : > { %9278 = vpow2.f32 %v7024_v51 }
0x1309   : > { %9280 = vpow2.f32 %v7026_v43 }
0x1310   : > { %v9275_v44 = vpop.eup %9274 }
0x1311   : > { %v9277_v9 = vpop.eup %9276  ;;  %v6764_v42 = vsel %vm2507_vm3, %v9275_v44, 0.0 }
0x1312   : > { %v9279_v13 = vpop.eup %9278  ;;  %v6765_v32 = vrot.slane %v6764_v42, 4  ;;  %v6771_v19 = vsel %vm2507_vm3, %v9277_v9, 0.0 }
0x1313   : > { %v9281_v55 = vpop.eup %9280  ;;  %v6772_v5 = vrot.slane %v6771_v19, 4  ;;  %v7028_v7 = vsel %vm2507_vm3, %v9279_v13, 0.0 }
0x1314   : > { %v6766_v16 = vadd.f32 %v6765_v32, %v6764_v42  ;;  %v7029_v59 = vrot.slane %v7028_v7, 4  ;;  %v7035_v22 = vsel %vm2507_vm3, %v9281_v55, 0.0  ;;  %v6257_v32 = vadd.f32 %v12173_v48, %v11560_v61 }
0x1315   : > { %v6773_v33 = vadd.f32 %v6772_v5, %v6771_v19  ;;  %v7036_v47 = vrot.slane %v7035_v22, 4  ;;  %v6259_v19 = vadd.f32 %v12175_v58, %v11560_v61  ;;  %v6263_v5 = vadd.f32 %v12177_v34, %v11562_v25 }
0x1316   : > { %v6767_v27 = vrot.slane %v6766_v16, 2  ;;  %v7030_v46 = vadd.f32 %v7029_v59, %v7028_v7  ;;  %v6265_v7 = vadd.f32 %v12179_v10, %v11562_v25  ;;  %v6412_v48 = vadd.f32 %v12187_v54, %v11562_v25 }
0x1317   : > { %v6774_v4 = vrot.slane %v6773_v33, 2  ;;  %v7037_v52 = vadd.f32 %v7036_v47, %v7035_v22  ;;  %v6406_v22 = vadd.f32 %v12183_v20, %v11560_v61  ;;  %v6551_v58 = vadd.f32 %v12195_v17, %v11560_v61 }
0x1318   : > { %v6768_v24 = vadd.f32 %v6767_v27, %v6766_v16  ;;  %v7031_v8 = vrot.slane %v7030_v46, 2  ;;  %v6404_v16 = vadd.f32 %v12181_v49, %v11560_v61  ;;  %v6553_v10 = vadd.f32 %v12197_v53, %v11560_v61 }
0x1319   : > { %v6775_v39 = vadd.f32 %v6774_v4, %v6773_v33  ;;  %v7038_v12 = vrot.slane %v7037_v52, 2  ;;  %v6410_v33 = vadd.f32 %v12185_v15, %v11562_v25  ;;  %v6557_v49 = vadd.f32 %v12199_v63, %v11562_v25 }
0x131a   : > { %v6769_v40 = vrot.slane %v6768_v24, 1  ;;  %v7032_v30 = vadd.f32 %v7031_v8, %v7030_v46  ;;  %v6559_v47 = vadd.f32 %v12201_v21, %v11562_v25  ;;  %v6698_v15 = vadd.f32 %v12203_v18, %v11560_v61 }
0x131b   : > { %v6776_v57 = vrot.slane %v6775_v39, 1  ;;  %v7039_v2 = vadd.f32 %v7038_v12, %v7037_v52  ;;  %v6700_v54 = vadd.f32 %v12205_v62, %v11560_v61  ;;  %v6706_v17 = vadd.f32 %v12211_v23, %v11562_v25 }
0x131c   : > { %v6770_v3 = vadd.f32 %v6769_v40, %v6768_v24  ;;  %v7033_v38 = vrot.slane %v7032_v30, 1 }
0x131d   : > { %v6777_v0 = vadd.f32 %v6776_v57, %v6775_v39  ;;  %v7040_v51 = vrot.slane %v7039_v2, 1 }
0x131e   : > { %9282 = vrcp.f32 %v6770_v3  ;;  %v7034_v43 = vadd.f32 %v7033_v38, %v7032_v30 }
0x131f   : > { %9284 = vrcp.f32 %v6777_v0  ;;  %v7041_v42 = vadd.f32 %v7040_v51, %v7039_v2 }
0x1320   : > { %9286 = vrcp.f32 %v7034_v43 }
0x1321   : > { %9288 = vrcp.f32 %v7041_v42 }
0x1328   : > { %v9283_v59 = vpop.eup %9282 }
0x1329   : > { %v9285_v34 = vpop.eup %9284  ;;  %v6779_v20 = vmul.f32 %v9283_v59, %v9275_v44 }
0x132a   : > { %v9287_v27 = vpop.eup %9286  ;;  %v6781_v46 = vmul.f32 %v9285_v34, %v9277_v9 }
0x132b   : > { %v9289_v4 = vpop.eup %9288  ;;  %v7043_v53 = vmul.f32 %v9287_v27, %v9279_v13  ;;  %v6785_v52 = vrot.slane %v6779_v20, %v12996_v26  ;;  %v6797_v63 = vrot.slane %v6779_v20, %v12997_v28  ;;  %v6813_v21 = vrot.slane %v6779_v20, %v12998_v14 }
0x132c   : > { %v7045_v44 = vmul.f32 %v9289_v4, %v9281_v55  ;;  %v6789_v24 = vrot.slane %v6781_v46, %v12996_v26  ;;  %v6801_v18 = vrot.slane %v6781_v46, %v12997_v28  ;;  %v6817_v62 = vrot.slane %v6781_v46, %v12998_v14 }
0x132d   : > { %v7046_v8 = vsel %vm2507_vm3, %v7043_v53, 0.0  ;;  %v6833_v23 = vrot.slane %v6781_v46, %v11567_v37  ;;  %v6790_v9 = vmul.f32 %v6785_v52, %v6257_v32  ;;  %v6792_v13 = vmul.f32 %v6785_v52, %v6263_v5 }
0x132e   : > { %v7047_v39 = vsel %vm2507_vm3, %v7045_v44, 0.0  ;;  %v7123_v12 = vcombine.low %v7043_v53, %v7045_v44  ;;  %v6791_v40 = vmul.f32 %v6789_v24, %v6259_v19  ;;  %v6793_v30 = vmul.f32 %v6789_v24, %v6265_v7 }
0x132f   : > { %v7048_v57 = vadd.f32 %v7047_v39, %v7046_v8  ;;  %v6803_v55 = vmul.f32 %v6801_v18, %v6406_v22  ;;  %v6805_v2 = vmul.f32 %v6801_v18, %v6412_v48  ;;  %v6819_v3 = vmul.f32 %v6817_v62, %v6553_v10  ;;  %v9325_v39 = vld [vmem:[%s12960_s14 + $0x10] sm:$0xff] }
0x1330   : > { %8378 = vst [vmem:[%s11197_s2 + $0x18] sm:$0xff] %v7123_v12  ;;  %v6821_v38 = vmul.f32 %v6817_v62, %v6559_v47  ;;  %v6835_v0 = vmul.f32 %v6833_v23, %v6700_v54  ;;  %v6837_v51 = vmul.f32 %v6833_v23, %v6706_v17  ;;  %v6802_v43 = vmul.f32 %v6797_v63, %v6404_v16  ;;  %v9326_v12 = vld [vmem:[%s12960_s14 + $0x18] sm:$0xff] }
0x1331   : > { %7049 = vadd.xlane.f32.xlu1 %v7048_v57  ;;  %v6807_v42 = vadd.f32 %v6803_v55, %v6791_v40  ;;  %v6809_v59 = vadd.f32 %v6805_v2, %v6793_v30  ;;  %v6804_v34 = vmul.f32 %v6797_v63, %v6410_v33  ;;  %v6818_v32 = vmul.f32 %v6813_v21, %v6551_v58  ;;  %v13021_v63 = vld [vmem:[#allocation21_spill] sm:$0xff]  ;;  %v9327_v40 = vld [vmem:[%s12960_s14 + $0x20] sm:$0xff]  ;;  %v9328_v30 = vld [vmem:[%s12960_s14 + $0x28] sm:$0xff] }
0x1332   : > { %v6704_v5 = vadd.f32 %v12208_v56, %v11562_v25  ;;  %v6806_v27 = vadd.f32 %v6802_v43, %v6790_v9  ;;  %v6820_v19 = vmul.f32 %v6813_v21, %v6557_v49  ;;  %v6829_v7 = vrot.slane %v6779_v20, %v11567_v37  ;;  %v13018_v56 = vld [vmem:[#allocation30_spill] sm:$0xff]  ;;  %v12275_v49 = vld [vmem:[%s12719_s18] sm:$0x7]  ;;  %v13019_v20 = vld [vmem:[#allocation24_spill] sm:$0xff] }
0x1333   : > { %v6823_v22 = vadd.f32 %v6819_v3, %v6807_v42  ;;  %v6825_v48 = vadd.f32 %v6821_v38, %v6809_v59  ;;  %v6808_v10 = vadd.f32 %v6804_v34, %v6792_v13  ;;  %v9329_v57 = vld [vmem:[%s12960_s14 + $0x30] sm:$0xff]  ;;  %v9330_v55 = vld [vmem:[%s12960_s14 + $0x38] sm:$0xff] }
0x1334   : > { %v6822_v46 = vadd.f32 %v6818_v32, %v6806_v27  ;;  %v6834_v47 = vmul.f32 %v6829_v7, %v6698_v15  ;;  %v6836_v54 = vmul.f32 %v6829_v7, %v6704_v5  ;;  %v13020_v15 = vld [vmem:[#allocation32_spill] sm:$0xff] }
0x1335   : > { %v6839_v17 = vadd.f32 %v6835_v0, %v6823_v22  ;;  %v6841_v16 = vadd.f32 %v6837_v51, %v6825_v48  ;;  %v6824_v4 = vadd.f32 %v6820_v19, %v6808_v10 }
0x1336   : > { %v6838_v52 = vadd.f32 %v6834_v47, %v6822_v46 }
0x1337   : > { %v8905_v24 = vpack.c.bf16 %v6841_v16, %v6839_v17  ;;  %v6840_v33 = vadd.f32 %v6836_v54, %v6824_v4 }
0x1339   : > { %8906 = vmatprep.subr.bf16.mxu0 %v8905_v24  ;;  %v8907_v58 = vpack.c.bf16 %v6840_v33, %v6838_v52 }
0x133b   : > { %8908 = vmatpush1.bf16.msra.mxu0 %v8907_v58 }
0x133c   : > { %8918 = vmatprep.subr.bf16.mxu0 %v13018_v56 }
0x133e   : > { %8375 = vmatmul.mubr.msk.f32.vlgmr.msra.gmra.mrb[118].mxu0 %vm4595_vm8, %v12275_v49 }
0x133f   : > { %7115 = vmatprep.mubr.f32.mxu0 %v7045_v44 }
0x1344   : > { %8920 = vmatpush1.bf16.xpose.msra.mxu0 %v13019_v20 }
0x1345   : > { %8922 = vmatprep.subr.bf16.mxu0 %v13020_v15 }
0x134c   : > { %8924 = vmatpush1.bf16.xpose.msra.mxu0 %v13021_v63 }
0x1353   : > { %7116 = vmatmul.mubr.f32.vlgmr.msra.gmra.mrb[120].mxu0 %v7043_v53  ;;  %v9324_v53 = vld [vmem:[%s12960_s14 + $0x8] sm:$0xff] }
0x1354   : > { %7523 = vmatprep.mubr.f32.mxu0 %v12959_v45 }
0x13be   : > { %v7050_v62 = vpop.xlane.xlu1 %7049 }
0x13bf   : > { %v7127_v8 = vadd.f32 1e-08, %v7050_v62 }
0x13c1   : > { %9290 = vrcp.f32 %v7127_v8 }
0x13cb   : > { %v9291_v23 = vpop.eup %9290 }
0x1411   : > { %v12283_v21 = vpop.f32.mrb[118].mxu0 }
0x1412   : > { %v12285_v18 = vpop.f32.mrb[119].mxu0 }
0x1426   : > { %v7117_v9 = vpop.f32.mrb[120].mxu0 }
0x1427   : > { %v7129_v13 = vmul.f32 %v9291_v23, %v7117_v9  ;;  %v7119_v44 = vpop.f32.mrb[121].mxu0 }
0x1429   : > { %8379 = vst.msk [vmem:[%s11215_s6 + $0xc] sm:$0xf] %vm2301_vm0, %v7129_v13  ;;  %8527 = vmatprep.subr.msk.mxu1 %vm1141_vm1, %v7129_v13  ;;  %s9340_s6 = scalar_lea.vmem %s9339_s10, 512 }
0x142a   : > { %8528 = vmatpush3.xpose.msk.msra.mxu1 %vm1141_vm1, %v7129_v13  ;;  %p9342_p1 = scmp.lt.s32.totalorder %s9340_s6, %s9334_s1 }
0x142c   : > { %p9343_p2 = por %p9342_p1, %p9341_p0 }
0x142d   : > { %8530 = vmatmul.mubr.msk.f32.vlgmr.msra.gmra.mrb[90].mxu1 %vm1141_vm1, %v9324_v53 }
0x142e   : > { %8532 = vmatprep.mubr.msk.f32.mxu1 %vm1141_vm1, %v9325_v39  ;;  %p9344_p3 = pnand %p9343_p2, %p9337_p13 }
0x1431   : > { %8533 = vmatmul.mubr.msk.f32.gmra.mrb[92].mxu1 %vm1141_vm1, %v9326_v12 }
0x1432   : > { %8535 = vmatprep.mubr.msk.f32.mxu1 %vm1141_vm1, %v9327_v40 }
0x1435   : > { %8536 = vmatmul.mubr.msk.f32.gmra.mrb[94].mxu1 %vm1141_vm1, %v9328_v30 }
0x1436   : > { %8538 = vmatprep.mubr.msk.f32.mxu1 %vm1141_vm1, %v9329_v57 }
0x1439   : > { %8539 = vmatmul.mubr.msk.f32.gmra.mrb[96].mxu1 %vm1141_vm1, %v9330_v55  ;;  %v13022_v55 = vld [vmem:[#allocation38_spill] sm:$0xff] }
0x143a   : > { %7376 = vmatprep.mubr.f32.mxu1 %v12959_v45 }
0x1500   : > { %v8531_v2 = vpop.f32.mrb[90].mxu1 }
0x1501   : > { %7547 = vperm.xlu1 %9146, %v8531_v2   ;;  %7247 = vperm.xlu0 %9144, %v8531_v2   ;;  %v7201_v3 = vpop.f32.mrb[91].mxu1 }
0x1504   : > { %v8534_v38 = vpop.f32.mrb[92].mxu1 }
0x1505   : > { %9151 = vset.pattern.permute.xlu1 %v12983_v31  ;;  %9145 = vset.pattern.permute.xlu0 %v12963_v35  ;;  %v7211_v0 = vpop.f32.mrb[93].mxu1 }
0x1506   : > { %7400 = vperm.xlu0 %9145, %v8531_v2   ;;  %7690 = vperm.xlu1 %9151, %v7201_v3  }
0x1508   : > { %v8537_v51 = vpop.f32.mrb[94].mxu1 }
0x1509   : > { %v7221_v43 = vpop.f32.mrb[95].mxu1 }
0x150a   : > { %9147 = vset.pattern.permute.xlu0 %v12983_v31  ;;  %9152 = vset.pattern.permute.xlu1 %v12964_v29 }
0x150b   : > { %7694 = vperm.xlu0 %9147, %v8531_v2   ;;  %7257 = vperm.xlu1 %9152, %v8534_v38  }
0x150c   : > { %v8540_v42 = vpop.f32.mrb[96].mxu1 }
0x150d   : > { %v7231_v59 = vpop.f32.mrb[97].mxu1 }
0x150f   : > { %9148 = vset.pattern.permute.xlu0 %v12964_v29  ;;  %9154 = vset.pattern.permute.xlu1 %v12962_v11 }
0x1510   : > { %7242 = vperm.xlu0 %9148, %v7201_v3   ;;  %7555 = vperm.xlu1 %9154, %v8534_v38  }
0x1514   : > { %9149 = vset.pattern.permute.xlu0 %v12963_v35  ;;  %9155 = vset.pattern.permute.xlu1 %v12983_v31 }
0x1515   : > { %7396 = vperm.xlu0 %9149, %v7201_v3   ;;  %7702 = vperm.xlu1 %9155, %v8534_v38  }
0x1519   : > { %9150 = vset.pattern.permute.xlu0 %v12962_v11  ;;  %9158 = vset.pattern.permute.xlu1 %v12962_v11 }
0x151a   : > { %7543 = vperm.xlu0 %9150, %v7201_v3   ;;  %7551 = vperm.xlu1 %9158, %v7211_v0   ;;  %v13023_v3 = vld [vmem:[#allocation26_spill] sm:$0xff] }
0x151e   : > { %9153 = vset.pattern.permute.xlu0 %v12963_v35  ;;  %9159 = vset.pattern.permute.xlu1 %v12964_v29 }
0x151f   : > { %7408 = vperm.xlu0 %9153, %v8534_v38   ;;  %7267 = vperm.xlu1 %9159, %v8537_v51  }
0x1523   : > { %9156 = vset.pattern.permute.xlu0 %v12964_v29  ;;  %9161 = vset.pattern.permute.xlu1 %v12963_v35 }
0x1524   : > { %7252 = vperm.xlu0 %9156, %v7211_v0   ;;  %7412 = vperm.xlu1 %9161, %v7221_v43  }
0x1528   : > { %9157 = vset.pattern.permute.xlu0 %v12963_v35  ;;  %9163 = vset.pattern.permute.xlu1 %v12964_v29 }
0x1529   : > { %7404 = vperm.xlu0 %9157, %v7211_v0   ;;  %7277 = vperm.xlu1 %9163, %v8540_v42  }
0x152d   : > { %7416 = vperm.xlu0 %9157, %v8537_v51   ;;  %9164 = vset.pattern.permute.xlu1 %v12963_v35 }
0x152e   : > { %7424 = vperm.xlu1 %9164, %v8540_v42  }
0x1531   : > { %9160 = vset.pattern.permute.xlu0 %v12964_v29 }
0x1532   : > { %7262 = vperm.xlu0 %9160, %v7221_v43   ;;  %9165 = vset.pattern.permute.xlu1 %v12964_v29 }
0x1533   : > { %7272 = vperm.xlu1 %9165, %v7231_v59  }
0x1536   : > { %9162 = vset.pattern.permute.xlu0 %v12962_v11 }
0x1537   : > { %7559 = vperm.xlu0 %9162, %v7221_v43   ;;  %9168 = vset.pattern.permute.xlu1 %v12962_v11 }
0x1538   : > { %7563 = vperm.xlu1 %9168, %v8537_v51  }
0x153b   : > { %9166 = vset.pattern.permute.xlu0 %v12963_v35  ;;  %v3532_v35 = vld [vmem:[%s12720_s19] sm:$0x7] }
0x153c   : > { %7420 = vperm.xlu0 %9166, %v7231_v59   ;;  %9169 = vset.pattern.permute.xlu1 %v12983_v31 }
0x153d   : > { %7706 = vperm.xlu1 %9169, %v7221_v43  }
0x1540   : > { %9167 = vset.pattern.permute.xlu0 %v12983_v31 }
0x1541   : > { %7698 = vperm.xlu0 %9167, %v7211_v0   ;;  %9170 = vset.pattern.permute.xlu1 %v12962_v11 }
0x1542   : > { %7571 = vperm.xlu1 %9170, %v8540_v42  }
0x1545   : > { %7710 = vperm.xlu0 %9167, %v8537_v51  }
0x1546   : > { %7567 = vperm.xlu1 %9170, %v7231_v59  }
0x1549   : > { %7714 = vperm.xlu0 %9167, %v7231_v59  }
0x154a   : > { %9171 = vset.pattern.permute.xlu1 %v12983_v31 }
0x154b   : > { %7718 = vperm.xlu1 %9171, %v8540_v42  }
0x154d   : > { %9172 = vset.pattern.permute.xlu0 %v12964_v29 }
0x154e   : > { %4592 = vperm.xlu0 %9172, %v3532_v35  }
0x1552   : > { %9173 = vset.pattern.permute.xlu0 %v12983_v31 }
0x1580   : > { %v12351_v34 = vpop.permute.xlu1 %7547  ;;  %v7248_v32 = vpop.permute.xlu0 %7247 }
0x1581   : > { %v7282_v7 = vadd.f32 %v7248_v32, %v11288_v60  ;;  %v7283_v22 = vadd.f32 %v7248_v32, %v11291_v41 }
0x1583   : > { %v7298_v46 = vmax.f32 %v7282_v7, 0.0  ;;  %v7299_v47 = vmax.f32 %v7283_v22, 0.0 }
0x1585   : > { %v7401_v11 = vpop.permute.xlu0 %7400  ;;  %v12353_v5 = vpop.permute.xlu1 %7690 }
0x1586   : > { %v7429_v16 = vadd.f32 %v7401_v11, %v11288_v60  ;;  %v7430_v4 = vadd.f32 %v7401_v11, %v11291_v41 }
0x1588   : > { %v7445_v15 = vmax.f32 %v7429_v16, 0.0  ;;  %v7446_v63 = vmax.f32 %v7430_v4, 0.0 }
0x158a   : > { %v12355_v27 = vpop.permute.xlu0 %7694  ;;  %v7258_v19 = vpop.permute.xlu1 %7257 }
0x158b   : > { %v7286_v12 = vadd.f32 %v7258_v19, %v11320_v1  ;;  %v7287_v40 = vadd.f32 %v7258_v19, %v11323_v50 }
0x158d   : > { %v7302_v0 = vmax.f32 %v7286_v12, 0.0  ;;  %v7303_v51 = vmax.f32 %v7287_v40, 0.0 }
0x158f   : > { %v7243_v48 = vpop.permute.xlu0 %7242  ;;  %v12359_v10 = vpop.permute.xlu1 %7555 }
0x1590   : > { %v7280_v29 = vadd.f32 %v7243_v48, %v11294_v36  ;;  %v7281_v31 = vadd.f32 %v7243_v48, %v11297_v6 }
0x1592   : > { %v7296_v54 = vmax.f32 %v7280_v29, 0.0  ;;  %v7297_v17 = vmax.f32 %v7281_v31, 0.0 }
0x1594   : > { %v8927_v52 = vpack.c.bf16 %v7298_v46, %v7296_v54  ;;  %v7397_v24 = vpop.permute.xlu0 %7396  ;;  %v12365_v33 = vpop.permute.xlu1 %7702  ;;  %v8925_v58 = vpack.c.bf16 %v7299_v47, %v7297_v17  ;;  %v13024_v46 = vld [vmem:[#allocation44_spill] sm:$0xff] }
0x1595   : > { %v7427_v56 = vadd.f32 %v7397_v24, %v11294_v36  ;;  %v7428_v20 = vadd.f32 %v7397_v24, %v11297_v6  ;;  %v13025_v54 = vld [vmem:[#allocation20_spill] sm:$0xff] }
0x1596   : > { %8926 = vmatprep.subr.bf16.mxu1 %v8925_v58  ;;  %v13026_v58 = vld [vmem:[#allocation36_spill] sm:$0xff] }
0x1597   : > { %v7443_v62 = vmax.f32 %v7427_v56, 0.0  ;;  %v7444_v8 = vmax.f32 %v7428_v20, 0.0  ;;  %8928 = vmatpush1.bf16.msra.mxu1 %v8927_v52  ;;  %v13027_v20 = vld [vmem:[#allocation27_spill] sm:$0xff] }
0x1599   : > { %v8943_v23 = vpack.c.bf16 %v7445_v15, %v7443_v62  ;;  %v12369_v9 = vpop.permute.xlu0 %7543  ;;  %v12371_v13 = vpop.permute.xlu1 %7551  ;;  %v8941_v44 = vpack.c.bf16 %v7446_v63, %v7444_v8 }
0x159b   : > { %8942 = vmatprep.subr.bf16.mxu0 %v8941_v44 }
0x159c   : > { %8944 = vmatpush1.bf16.msra.mxu0 %v8943_v23 }
0x159e   : > { %v7409_v53 = vpop.permute.xlu0 %7408  ;;  %v7268_v39 = vpop.permute.xlu1 %7267 }
0x159f   : > { %v7433_v43 = vadd.f32 %v7409_v53, %v11320_v1  ;;  %v7434_v42 = vadd.f32 %v7409_v53, %v11323_v50  ;;  %v7290_v12 = vadd.f32 %v7268_v39, %v13026_v58  ;;  %v7291_v40 = vadd.f32 %v7268_v39, %v13027_v20 }
0x15a0   : > { %v12398_v39 = vadd.f32 %v12353_v5, %v11297_v6 }
0x15a1   : > { %v7449_v29 = vmax.f32 %v7433_v43, 0.0  ;;  %v7450_v31 = vmax.f32 %v7434_v42, 0.0  ;;  %v7577_v43 = vadd.f32 %v12351_v34, %v11291_v41 }
0x15a3   : > { %v7253_v30 = vpop.permute.xlu0 %7252  ;;  %v7413_v57 = vpop.permute.xlu1 %7412 }
0x15a4   : > { %v7284_v2 = vadd.f32 %v7253_v30, %v13022_v55  ;;  %v7285_v38 = vadd.f32 %v7253_v30, %v13023_v3  ;;  %v7435_v47 = vadd.f32 %v7413_v57, %v13024_v46  ;;  %v7436_v17 = vadd.f32 %v7413_v57, %v13025_v54  ;;  %v13028_v30 = vld [vmem:[#allocation46_spill] sm:$0xff] }
0x15a6   : > { %v7300_v59 = vmax.f32 %v7284_v2, 0.0  ;;  %v7301_v35 = vmax.f32 %v7285_v38, 0.0  ;;  %v7451_v8 = vmax.f32 %v7435_v47, 0.0  ;;  %v7452_v23 = vmax.f32 %v7436_v17, 0.0  ;;  %v13031_v17 = vld [vmem:[#allocation45_spill] sm:$0xff] }
0x15a8   : > { %v8931_v32 = vpack.c.bf16 %v7302_v0, %v7300_v59  ;;  %v7405_v11 = vpop.permute.xlu0 %7404  ;;  %v7278_v7 = vpop.permute.xlu1 %7277  ;;  %v8929_v22 = vpack.c.bf16 %v7303_v51, %v7301_v35  ;;  %v12390_v51 = vadd.f32 %v12351_v34, %v11288_v60 }
0x15a9   : > { %v7431_v19 = vadd.f32 %v7405_v11, %v13022_v55  ;;  %v7432_v48 = vadd.f32 %v7405_v11, %v13023_v3  ;;  %v7295_v57 = vadd.f32 %v7278_v7, %v13028_v30  ;;  %v13029_v11 = vld [vmem:[#allocation42_spill] sm:$0xff] }
0x15aa   : > { %8930 = vmatprep.subr.bf16.mxu1 %v8929_v22 }
0x15ab   : > { %v7447_v16 = vmax.f32 %v7431_v19, 0.0  ;;  %v7448_v4 = vmax.f32 %v7432_v48, 0.0  ;;  %8932 = vmatpush1.bf16.msra.mxu1 %v8931_v32  ;;  %v7575_v32 = vadd.f32 %v12369_v9, %v11297_v6  ;;  %v13030_v19 = vld [vmem:[#allocation43_spill] sm:$0xff]  ;;  %v7574_v6 = vadd.f32 %v12369_v9, %v11294_v36 }
0x15ac   : > { %v7417_v52 = vpop.permute.xlu0 %7416  ;;  %v7580_v9 = vadd.f32 %v12359_v10, %v11320_v1 }
0x15ad   : > { %v8947_v24 = vpack.c.bf16 %v7449_v29, %v7447_v16  ;;  %v7437_v56 = vadd.f32 %v7417_v52, %v13026_v58  ;;  %v7438_v15 = vadd.f32 %v7417_v52, %v13027_v20  ;;  %v7425_v63 = vpop.permute.xlu1 %7424  ;;  %v8945_v62 = vpack.c.bf16 %v7450_v31, %v7448_v4 }
0x15ae   : > { %v7306_v29 = vmax.f32 %v7290_v12, 0.0  ;;  %v7307_v31 = vmax.f32 %v7291_v40, 0.0  ;;  %v7294_v16 = vadd.f32 %v7278_v7, %v13031_v17  ;;  %v7311_v4 = vmax.f32 %v7295_v57, 0.0 }
0x15af   : > { %v7453_v44 = vmax.f32 %v7437_v56, 0.0  ;;  %v7454_v53 = vmax.f32 %v7438_v15, 0.0  ;;  %8946 = vmatprep.subr.bf16.mxu0 %v8945_v62  ;;  %v7592_v7 = vmax.f32 %v12390_v51, 0.0  ;;  %v7593_v40 = vmax.f32 %v7577_v43, 0.0 }
0x15b0   : > { %8948 = vmatpush1.bf16.msra.mxu0 %v8947_v24  ;;  %v12407_v24 = vadd.f32 %v12355_v27, %v11291_v41  ;;  %v12416_v41 = vadd.f32 %v12353_v5, %v11294_v36  ;;  %v7738_v57 = vmax.f32 %v12398_v39, 0.0  ;;  %v7723_v51 = vadd.f32 %v12355_v27, %v11288_v60 }
0x15b1   : > { %v8951_v2 = vpack.c.bf16 %v7453_v44, %v7451_v8  ;;  %v7263_v38 = vpop.permute.xlu0 %7262  ;;  %v8949_v0 = vpack.c.bf16 %v7454_v53, %v7452_v23  ;;  %v7591_v8 = vmax.f32 %v7575_v32, 0.0  ;;  %v7579_v23 = vadd.f32 %v12371_v13, %v13023_v3 }
0x15b2   : > { %v7288_v42 = vadd.f32 %v7263_v38, %v13024_v46  ;;  %v7289_v59 = vadd.f32 %v7263_v38, %v13025_v54  ;;  %v7273_v35 = vpop.permute.xlu1 %7272  ;;  %v7578_v38 = vadd.f32 %v12371_v13, %v13022_v55  ;;  %v7740_v36 = vmax.f32 %v12407_v24, 0.0 }
0x15b3   : > { %v7292_v22 = vadd.f32 %v7273_v35, %v13029_v11  ;;  %v7293_v48 = vadd.f32 %v7273_v35, %v13030_v19  ;;  %8950 = vmatprep.subr.bf16.mxu0 %v8949_v0  ;;  %v7310_v0 = vmax.f32 %v7294_v16, 0.0  ;;  %v7441_v5 = vadd.f32 %v7425_v63, %v13031_v17 }
0x15b4   : > { %v7304_v34 = vmax.f32 %v7288_v42, 0.0  ;;  %v7305_v47 = vmax.f32 %v7289_v59, 0.0  ;;  %8952 = vmatpush1.bf16.msra.mxu0 %v8951_v2  ;;  %v7581_v2 = vadd.f32 %v12359_v10, %v11323_v50  ;;  %v7442_v43 = vadd.f32 %v7425_v63, %v13028_v30 }
0x15b5   : > { %v7309_v52 = vmax.f32 %v7293_v48, 0.0  ;;  %v7308_v44 = vmax.f32 %v7292_v22, 0.0  ;;  %v7590_v42 = vmax.f32 %v7574_v6, 0.0  ;;  %v7595_v59 = vmax.f32 %v7579_v23, 0.0 }
0x15b6   : > { %v8935_v56 = vpack.c.bf16 %v7306_v29, %v7304_v34  ;;  %v7560_v15 = vpop.permute.xlu0 %7559  ;;  %v8933_v62 = vpack.c.bf16 %v7307_v31, %v7305_v47  ;;  %v8957_v10 = vpack.c.bf16 %v7593_v40, %v7591_v8  ;;  %v7596_v48 = vmax.f32 %v7580_v9, 0.0 }
0x15b7   : > { %v7564_v53 = vpop.permute.xlu1 %7563  ;;  %v8937_v12 = vpack.c.bf16 %v7311_v4, %v7309_v52  ;;  %v8939_v35 = vpack.c.bf16 %v7310_v0, %v7308_v44  ;;  %v7583_v32 = vadd.f32 %v7560_v15, %v13025_v54  ;;  %v7597_v29 = vmax.f32 %v7581_v2, 0.0 }
0x15b8   : > { %8934 = vmatprep.subr.bf16.mxu1 %v8933_v62  ;;  %v7585_v13 = vadd.f32 %v7564_v53, %v13027_v20  ;;  %v7728_v63 = vadd.f32 %v12365_v33, %v11323_v50  ;;  %v7594_v31 = vmax.f32 %v7578_v38, 0.0  ;;  %v7457_v34 = vmax.f32 %v7441_v5, 0.0  ;;  %v12441_v50 = vld [vmem:[%s12717_s16] sm:$0xff] }
0x15b9   : > { %8936 = vmatpush1.bf16.msra.mxu1 %v8935_v56  ;;  %v7458_v47 = vmax.f32 %v7442_v43, 0.0  ;;  %v8959_v52 = vpack.c.bf16 %v7592_v7, %v7590_v42  ;;  %v7582_v24 = vadd.f32 %v7560_v15, %v13024_v46  ;;  %v7584_v6 = vadd.f32 %v7564_v53, %v13026_v58 }
0x15ba   : > { %8938 = vmatprep.subr.bf16.mxu1 %v8937_v12  ;;  %v8961_v56 = vpack.c.bf16 %v7597_v29, %v7595_v59  ;;  %v7599_v62 = vmax.f32 %v7583_v32, 0.0  ;;  %v7601_v8 = vmax.f32 %v7585_v13, 0.0  ;;  %v7739_v40 = vmax.f32 %v7723_v51, 0.0 }
0x15bb   : > { %v7421_v39 = vpop.permute.xlu0 %7420  ;;  %v7737_v9 = vmax.f32 %v12416_v41, 0.0  ;;  %v7727_v2 = vadd.f32 %v12365_v33, %v11320_v1  ;;  %v8963_v38 = vpack.c.bf16 %v7596_v48, %v7594_v31  ;;  %v8973_v0 = vpack.c.bf16 %v7740_v36, %v7738_v57  ;;  %v12457_v1 = vld [vmem:[%s12717_s16 + $0x8] sm:$0xff] }
0x15bc   : > { %v7439_v22 = vadd.f32 %v7421_v39, %v13029_v11  ;;  %v7440_v60 = vadd.f32 %v7421_v39, %v13030_v19  ;;  %v7707_v27 = vpop.permute.xlu1 %7706  ;;  %v7598_v5 = vmax.f32 %v7582_v24, 0.0  ;;  %v7600_v43 = vmax.f32 %v7584_v6, 0.0 }
0x15bd   : > { %8940 = vmatpush1.bf16.msra.mxu1 %v8939_v35  ;;  %v7730_v51 = vadd.f32 %v7707_v27, %v13025_v54  ;;  %v8965_v33 = vpack.c.bf16 %v7601_v8, %v7599_v62  ;;  %v8975_v57 = vpack.c.bf16 %v7739_v40, %v7737_v9  ;;  %v7729_v48 = vadd.f32 %v7707_v27, %v13024_v46 }
0x15be   : > { %v7455_v16 = vmax.f32 %v7439_v22, 0.0  ;;  %v7456_v4 = vmax.f32 %v7440_v60, 0.0  ;;  %8958 = vmatprep.subr.bf16.mxu1 %v8957_v10  ;;  %v7743_v10 = vmax.f32 %v7727_v2, 0.0  ;;  %v8967_v60 = vpack.c.bf16 %v7600_v43, %v7598_v5 }
0x15bf   : > { %v7745_v62 = vmax.f32 %v7729_v48, 0.0 }
0x15c0   : > { %v8955_v23 = vpack.c.bf16 %v7457_v34, %v7455_v16  ;;  %v7699_v44 = vpop.permute.xlu0 %7698  ;;  %8389 = vmatmul.mubr.msk.f32.vlgmr.msra.gmra.mrb[98].mxu1 %vm3926_vm4, %v12441_v50  ;;  %v8953_v12 = vpack.c.bf16 %v7458_v47, %v7456_v4  ;;  %v9333_v16 = vld [vmem:[%s12717_s16 + $0x10] sm:$0x1] }
0x15c1   : > { %v7725_v7 = vadd.f32 %v7699_v44, %v13022_v55  ;;  %v7726_v15 = vadd.f32 %v7699_v44, %v13023_v3  ;;  %8960 = vmatpush1.bf16.msra.mxu1 %v8959_v52  ;;  %v7572_v53 = vpop.permute.xlu1 %7571  ;;  %7382 = vmatprep.mubr.f32.mxu1 %v12959_v45  ;;  %v7744_v3 = vmax.f32 %v7728_v63, 0.0 }
0x15c2   : > { %8954 = vmatprep.subr.bf16.mxu0 %v8953_v12  ;;  %8962 = vmatprep.subr.bf16.mxu1 %v8961_v56  ;;  %v7588_v42 = vadd.f32 %v7572_v53, %v13031_v17  ;;  %v7589_v59 = vadd.f32 %v7572_v53, %v13028_v30  ;;  %v13032_v53 = vld [vmem:[#allocation16_spill] sm:$0xff] }
0x15c3   : > { %v7742_v55 = vmax.f32 %v7726_v15, 0.0  ;;  %8956 = vmatpush1.bf16.msra.mxu0 %v8955_v23  ;;  %v7741_v54 = vmax.f32 %v7725_v7, 0.0 }
0x15c4   : > { %8974 = vmatprep.subr.bf16.mxu0 %v8973_v0  ;;  %v7711_v41 = vpop.permute.xlu0 %7710  ;;  %8390 = vmatmul.mubr.msk.f32.gmra.mrb[100].mxu1 %vm3926_vm4, %v12457_v1  ;;  %v7605_v63 = vmax.f32 %v7589_v59, 0.0 }
0x15c5   : > { %v7731_v36 = vadd.f32 %v7711_v41, %v13026_v58  ;;  %v7732_v35 = vadd.f32 %v7711_v41, %v13027_v20  ;;  %8964 = vmatpush1.bf16.msra.mxu1 %v8963_v38  ;;  %v7568_v39 = vpop.permute.xlu1 %7567  ;;  %7388 = vmatprep.mubr.f32.mxu1 %v12959_v45  ;;  %v8977_v22 = vpack.c.bf16 %v7744_v3, %v7742_v55  ;;  %v7746_v58 = vmax.f32 %v7730_v51, 0.0  ;;  %v13035_v38 = vld [vmem:[#allocation34_spill] sm:$0xff] }
0x15c6   : > { %v7586_v32 = vadd.f32 %v7568_v39, %v13029_v11  ;;  %v7587_v13 = vadd.f32 %v7568_v39, %v13030_v19  ;;  %8392 = vmatmul.mubr.msk.f32.vlgmr.msra.gmra.mrb[122].mxu0 %vm3926_vm4, %v12441_v50  ;;  %8966 = vmatprep.subr.bf16.mxu1 %v8965_v33  ;;  %v7604_v20 = vmax.f32 %v7588_v42, 0.0  ;;  %v8979_v4 = vpack.c.bf16 %v7743_v10, %v7741_v54  ;;  %v13036_v10 = vld [vmem:[#allocation47_spill] sm:$0xff] }
0x15c7   : > { %v7748_v29 = vmax.f32 %v7732_v35, 0.0  ;;  %8976 = vmatpush1.bf16.msra.mxu0 %v8975_v57  ;;  %7529 = vmatprep.mubr.f32.mxu0 %v12959_v45  ;;  %v7747_v52 = vmax.f32 %v7731_v36, 0.0 }
0x15c8   : > { %v7602_v31 = vmax.f32 %v7586_v32, 0.0  ;;  %v7603_v34 = vmax.f32 %v7587_v13, 0.0  ;;  %8978 = vmatprep.subr.bf16.mxu0 %v8977_v22  ;;  %v7715_v47 = vpop.permute.xlu0 %7714  ;;  %8391 = vmatmul.mubr.msk.f32.gmra.mrb[102].mxu1 %vm3926_vm4, %v9333_v16 }
0x15c9   : > { %v7734_v46 = vadd.f32 %v7715_v47, %v13030_v19  ;;  %8968 = vmatpush1.bf16.msra.mxu1 %v8967_v60  ;;  %v8981_v27 = vpack.c.bf16 %v7748_v29, %v7746_v58  ;;  %7670 = vmatprep.mubr.f32.mxu1 %v12959_v45  ;;  %v7733_v8 = vadd.f32 %v7715_v47, %v13029_v11 }
0x15ca   : > { %v8971_v24 = vpack.c.bf16 %v7604_v20, %v7602_v31  ;;  %8393 = vmatmul.mubr.msk.f32.gmra.mrb[124].mxu0 %vm3926_vm4, %v12457_v1  ;;  %v7719_v6 = vpop.permute.xlu1 %7718  ;;  %v8969_v56 = vpack.c.bf16 %v7605_v63, %v7603_v34  ;;  %v8983_v19 = vpack.c.bf16 %v7747_v52, %v7745_v62 }
0x15cb   : > { %v7735_v23 = vadd.f32 %v7719_v6, %v13031_v17  ;;  %v7736_v44 = vadd.f32 %v7719_v6, %v13028_v30  ;;  %8980 = vmatpush1.bf16.msra.mxu0 %v8979_v4  ;;  %7535 = vmatprep.mubr.f32.mxu0 %v12959_v45  ;;  %v7750_v12 = vmax.f32 %v7734_v46, 0.0  ;;  %v13033_v17 = vld [vmem:[#allocation33_spill] sm:$0xff]  ;;  %v13034_v30 = vld [vmem:[#allocation22_spill] sm:$0xff]  ;;  %v7749_v5 = vmax.f32 %v7733_v8, 0.0 }
0x15cc   : > { %8970 = vmatprep.subr.bf16.mxu1 %v8969_v56  ;;  %8982 = vmatprep.subr.bf16.mxu0 %v8981_v27 }
0x15cd   : > { %v7751_v40 = vmax.f32 %v7735_v23, 0.0  ;;  %v7752_v7 = vmax.f32 %v7736_v44, 0.0  ;;  %v12482_v15 = vpop.permute.xlu0 %4592  ;;  %8972 = vmatpush1.bf16.msra.mxu1 %v8971_v24 }
0x15ce   : > { %v4666_v11 = vadd.f32 %v13032_v53, %v12482_v15  ;;  %v4668_v9 = vadd.f32 %v13033_v17, %v12482_v15  ;;  %v5787_v2 = vadd.f32 %v13034_v30, %v12482_v15  ;;  %v5789_v0 = vadd.f32 %v13035_v38, %v12482_v15  ;;  %8394 = vmatmul.mubr.msk.f32.gmra.mrb[126].mxu0 %vm3926_vm4, %v9333_v16 }
0x15cf   : > { %v8985_v43 = vpack.c.bf16 %v7752_v7, %v7750_v12  ;;  %v6909_v51 = vadd.f32 %v12283_v21, %v12482_v15  ;;  %v6911_v55 = vadd.f32 %v12285_v18, %v12482_v15  ;;  %8984 = vmatpush1.bf16.msra.mxu0 %v8983_v19  ;;  %7817 = vmatprep.mubr.f32.mxu0 %v12959_v45 }
0x15d0   : > { %8395 = vmatmul.mubr.msk.f32.vlgmr.msra.gmra.mrb[104].mxu1 %vm3926_vm4, %v12441_v50  ;;  %v4672_v3 = vcombine.low %v4666_v11, %v4668_v9  ;;  %v5793_v42 = vcombine.low %v5787_v2, %v5789_v0  ;;  %v8987_v21 = vpack.c.bf16 %v7751_v40, %v7749_v5 }
0x15d1   : > { %8986 = vmatprep.subr.bf16.mxu0 %v8985_v43  ;;  %7676 = vmatprep.mubr.f32.mxu1 %v12959_v45  ;;  %v6915_v18 = vcombine.low %v6909_v51, %v6911_v55 }
0x15d2   : > { %4674 = vst [vmem:[%s12501_s0] sm:$0x77] %v4672_v3  ;;  %8349 = vst [vmem:[%s12501_s0 + $0x8] sm:$0x77] %v5793_v42 }
0x15d3   : > { %8988 = vmatpush1.bf16.msra.mxu0 %v8987_v21  ;;  %8376 = vst [vmem:[%s12501_s0 + $0x10] sm:$0x77] %v6915_v18 }
0x15d4   : > { %8396 = vmatmul.mubr.msk.f32.gmra.mrb[106].mxu1 %vm3926_vm4, %v12457_v1 }
0x15d5   : > { %7682 = vmatprep.mubr.f32.mxu1 %v12959_v45 }
0x15d6   : > { %8398 = vmatmul.mubr.msk.f32.vlgmr.msra.gmra.mrb[128].mxu0 %vm3926_vm4, %v12441_v50 }
0x15d7   : > { %7823 = vmatprep.mubr.f32.mxu0 %v12959_v45 }
0x15d8   : > { %8397 = vmatmul.mubr.msk.f32.gmra.mrb[108].mxu1 %vm3926_vm4, %v9333_v16 }
0x15d9   : > { %8028 = vmatprep.mubr.f32.mxu1 %v12959_v45 }
0x15da   : > { %8399 = vmatmul.mubr.msk.f32.gmra.mrb[130].mxu0 %vm3926_vm4, %v12457_v1 }
0x15db   : > { %7829 = vmatprep.mubr.f32.mxu0 %v12959_v45 }
0x15de   : > { %8400 = vmatmul.mubr.msk.f32.gmra.mrb[132].mxu0 %vm3926_vm4, %v9333_v16 }
0x1693   : > { %v12522_v59 = vpop.f32.mrb[98].mxu1 }
0x1694   : > { %v12524_v41 = vpop.f32.mrb[99].mxu1 }
0x1697   : > { %v12526_v33 = vpop.f32.mrb[100].mxu1 }
0x1698   : > { %v12528_v50 = vpop.f32.mrb[101].mxu1 }
0x1699   : > { %v12530_v57 = vpop.f32.mrb[122].mxu0 }
0x169a   : > { %v12532_v54 = vpop.f32.mrb[123].mxu0 }
0x169b   : > { %v7390_v36 = vpop.f32.mrb[102].mxu1 }
0x169c   : > { %v7392_v35 = vpop.f32.mrb[103].mxu1  ;;  %v7391_v48 = vadd.f32 %v7390_v36, %v13036_v10 }
0x169d   : > { %v12534_v39 = vpop.f32.mrb[124].mxu0  ;;  %v7393_v20 = vadd.f32 %v7392_v35, %v13036_v10 }
0x169e   : > { %v12536_v1 = vpop.f32.mrb[125].mxu0 }
0x16a1   : > { %v7537_v45 = vpop.f32.mrb[126].mxu0 }
0x16a2   : > { %v7538_v32 = vadd.f32 %v7537_v45, %v13036_v10  ;;  %v7539_v13 = vpop.f32.mrb[127].mxu0 }
0x16a3   : > { %v7540_v22 = vadd.f32 %v7539_v13, %v13036_v10  ;;  %v12540_v60 = vpop.f32.mrb[104].mxu1 }
0x16a4   : > { %v7838_v58 = vrot.slane %v7538_v32, 7  ;;  %v12543_v29 = vpop.f32.mrb[105].mxu1 }
0x16a5   : > { %v7839_v63 = vrot.slane %v7540_v22, 7 }
0x16a6   : > { %v7854_v31 = vsel %vm4478_vm5, %v7391_v48, %v7838_v58 }
0x16a7   : > { %v7855_v34 = vsel %vm4478_vm5, %v7393_v20, %v7839_v63  ;;  %v12548_v47 = vpop.f32.mrb[106].mxu1 }
0x16a8   : > { %v12550_v16 = vpop.f32.mrb[107].mxu1 }
0x16a9   : > { %v12552_v4 = vpop.f32.mrb[128].mxu0 }
0x16aa   : > { %v12554_v52 = vpop.f32.mrb[129].mxu0 }
0x16ab   : > { %v7684_v46 = vpop.f32.mrb[108].mxu1 }
0x16ac   : > { %v7685_v27 = vadd.f32 %v7684_v46, %v13036_v10  ;;  %v7686_v24 = vpop.f32.mrb[109].mxu1 }
0x16ad   : > { %v7687_v6 = vadd.f32 %v7686_v24, %v13036_v10  ;;  %v12558_v56 = vpop.f32.mrb[130].mxu0 }
0x16ae   : > { %v7844_v62 = vrot.slane %v7685_v27, 6  ;;  %v12560_v8 = vpop.f32.mrb[131].mxu0 }
0x16af   : > { %v7845_v23 = vrot.slane %v7687_v6, 6 }
0x16b0   : > { %v7856_v44 = vsel %vm4481_vm6, %v7854_v31, %v7844_v62 }
0x16b1   : > { %v7857_v19 = vsel %vm4481_vm6, %v7855_v34, %v7845_v23  ;;  %v7831_v12 = vpop.f32.mrb[132].mxu0 }
0x16b2   : > { %v7832_v40 = vadd.f32 %v7831_v12, %v13036_v10  ;;  %v7833_v7 = vpop.f32.mrb[133].mxu0 }
0x16b3   : > { %v7834_v53 = vadd.f32 %v7833_v7, %v13036_v10 }
0x16b4   : > { %v7850_v11 = vrot.slane %v7832_v40, 5 }
0x16b5   : > { %v7851_v17 = vrot.slane %v7834_v53, 5  ;;  %v7379_v53 = vadd.f32 %v12522_v59, %v11560_v61  ;;  %v7534_v59 = vadd.f32 %v12536_v1, %v11562_v25  ;;  %v7822_v1 = vadd.f32 %v12554_v52, %v11560_v61 }
0x16b6   : > { %v7858_v9 = vsel %vm4484_vm7, %v7856_v44, %v7850_v11  ;;  %v7381_v11 = vadd.f32 %v12524_v41, %v11560_v61  ;;  %v7673_v41 = vadd.f32 %v12540_v60, %v11560_v61  ;;  %v7826_v60 = vadd.f32 %v12558_v56, %v11562_v25 }
0x16b7   : > { %v7866_v30 = vsel %vm2507_vm3, %v7858_v9, -inf  ;;  %v7859_v2 = vsel %vm4484_vm7, %v7857_v19, %v7851_v17  ;;  %v7385_v17 = vadd.f32 %v12526_v33, %v11562_v25  ;;  %v7675_v33 = vadd.f32 %v12543_v29, %v11560_v61 }
0x16b8   : > { %v7867_v38 = vrot.slane %v7866_v30, 4  ;;  %v7862_v0 = vcombine.low %v7858_v9, %v7859_v2  ;;  %v7873_v5 = vsel %vm2507_vm3, %v7859_v2, -inf  ;;  %v7828_v29 = vadd.f32 %v12560_v8, %v11562_v25 }
0x16b9   : > { %v7874_v43 = vrot.slane %v7873_v5, 4 }
0x16ba   : > { %v7868_v51 = vmax.f32 %v7866_v30, %v7867_v38  ;;  %8401 = vst [vmem:[%s11549_s29 + $0x18] sm:$0xff] %v7862_v0  ;;  %v7526_v30 = vadd.f32 %v12530_v57, %v11560_v61  ;;  %v7532_v0 = vadd.f32 %v12534_v39, %v11562_v25  ;;  %v7679_v57 = vadd.f32 %v12548_v47, %v11562_v25  ;;  %s8415_s29 = sshll.u32 %s9584_s5, 8 }
0x16bb   : > { %v7875_v55 = vmax.f32 %v7873_v5, %v7874_v43  ;;  %v7820_v5 = vadd.f32 %v12552_v4, %v11560_v61  ;;  %s12622_s3 = scalar_lea.hbm %s12721_s20, %s8415_s29 }
0x16bc   : > { %v7869_v3 = vrot.slane %v7868_v51, 2 }
0x16bd   : > { %v7876_v42 = vrot.slane %v7875_v55, 2 }
0x16be   : > { %v7870_v21 = vmax.f32 %v7868_v51, %v7869_v3 }
0x16bf   : > { %v7877_v18 = vmax.f32 %v7875_v55, %v7876_v42 }
0x16c0   : > { %v7871_v36 = vrot.slane %v7870_v21, 1 }
0x16c1   : > { %v7878_v35 = vrot.slane %v7877_v18, 1 }
0x16c2   : > { %v7872_v45 = vmax.f32 %v7870_v21, %v7871_v36 }
0x16c3   : > { %v7879_v10 = vmax.f32 %v7877_v18, %v7878_v35 }
0x16c4   : > { %v7880_v32 = vsub.f32 %v7858_v9, %v7872_v45  ;;  %v7387_v9 = vadd.f32 %v12528_v50, %v11562_v25 }
0x16c5   : > { %v7881_v13 = vsub.f32 %v7859_v2, %v7879_v10  ;;  %v7528_v2 = vadd.f32 %v12532_v54, %v11560_v61  ;;  %v7681_v54 = vadd.f32 %v12550_v16, %v11562_v25 }
0x16c6   : > { %v7882_v22 = vmul.f32 1.442695, %v7880_v32 }
0x16c7   : > { %v7884_v48 = vmul.f32 1.442695, %v7881_v13 }
0x16c8   : > { %9292 = vpow2.f32 %v7882_v22 }
0x16c9   : > { %9294 = vpow2.f32 %v7884_v48 }
0x16d2   : > { %v9293_v58 = vpop.eup %9292 }
0x16d3   : > { %v9295_v20 = vpop.eup %9294  ;;  %v7886_v63 = vsel %vm2507_vm3, %v9293_v58, 0.0 }
0x16d4   : > { %v7887_v31 = vrot.slane %v7886_v63, 4  ;;  %v7893_v34 = vsel %vm2507_vm3, %v9295_v20, 0.0 }
0x16d5   : > { %v7894_v46 = vrot.slane %v7893_v34, 4 }
0x16d6   : > { %v7888_v27 = vadd.f32 %v7887_v31, %v7886_v63 }
0x16d7   : > { %v7895_v24 = vadd.f32 %v7894_v46, %v7893_v34 }
0x16d8   : > { %v7889_v6 = vrot.slane %v7888_v27, 2 }
0x16d9   : > { %v7896_v62 = vrot.slane %v7895_v24, 2 }
0x16da   : > { %v7890_v23 = vadd.f32 %v7889_v6, %v7888_v27 }
0x16db   : > { %v7897_v44 = vadd.f32 %v7896_v62, %v7895_v24 }
0x16dc   : > { %v7891_v19 = vrot.slane %v7890_v23, 1 }
0x16dd   : > { %v7898_v12 = vrot.slane %v7897_v44, 1 }
0x16de   : > { %v7892_v40 = vadd.f32 %v7891_v19, %v7890_v23 }
0x16df   : > { %v7899_v7 = vadd.f32 %v7898_v12, %v7897_v44 }
0x16e0   : > { %9296 = vrcp.f32 %v7892_v40 }
0x16e1   : > { %9298 = vrcp.f32 %v7899_v7 }
0x16ea   : > { %v9297_v38 = vpop.eup %9296 }
0x16eb   : > { %v9299_v50 = vpop.eup %9298  ;;  %v7901_v39 = vmul.f32 %v9297_v38, %v9293_v58 }
0x16ec   : > { %v7903_v43 = vmul.f32 %v9299_v50, %v9295_v20 }
0x16ed   : > { %v7907_v51 = vrot.slane %v7901_v39, %v12996_v26  ;;  %v7919_v47 = vrot.slane %v7901_v39, %v12997_v28  ;;  %v7935_v16 = vrot.slane %v7901_v39, %v12998_v14  ;;  %v7951_v55 = vrot.slane %v7901_v39, %v11567_v37 }
0x16ee   : > { %v7911_v4 = vrot.slane %v7903_v43, %v12996_v26  ;;  %v7923_v3 = vrot.slane %v7903_v43, %v12997_v28  ;;  %v7939_v61 = vrot.slane %v7903_v43, %v12998_v14  ;;  %v7955_v52 = vrot.slane %v7903_v43, %v11567_v37 }
0x16ef   : > { %v7912_v56 = vmul.f32 %v7907_v51, %v7379_v53  ;;  %v7914_v42 = vmul.f32 %v7907_v51, %v7385_v17  ;;  %v7924_v25 = vmul.f32 %v7919_v47, %v7526_v30  ;;  %v7926_v8 = vmul.f32 %v7919_v47, %v7532_v0 }
0x16f0   : > { %v7913_v21 = vmul.f32 %v7911_v4, %v7381_v11  ;;  %v7915_v18 = vmul.f32 %v7911_v4, %v7387_v9  ;;  %v7925_v36 = vmul.f32 %v7923_v3, %v7528_v2  ;;  %v7927_v35 = vmul.f32 %v7923_v3, %v7534_v59 }
0x16f1   : > { %v7941_v45 = vmul.f32 %v7939_v61, %v7675_v33  ;;  %v7943_v10 = vmul.f32 %v7939_v61, %v7681_v54  ;;  %v7957_v32 = vmul.f32 %v7955_v52, %v7822_v1  ;;  %v7959_v13 = vmul.f32 %v7955_v52, %v7828_v29 }
0x16f2   : > { %v7929_v22 = vadd.f32 %v7925_v36, %v7913_v21  ;;  %v7931_v26 = vadd.f32 %v7927_v35, %v7915_v18  ;;  %v7928_v48 = vadd.f32 %v7924_v25, %v7912_v56  ;;  %v7930_v28 = vadd.f32 %v7926_v8, %v7914_v42 }
0x16f3   : > { %v7940_v58 = vmul.f32 %v7935_v16, %v7673_v41  ;;  %v7942_v14 = vmul.f32 %v7935_v16, %v7679_v57  ;;  %v7956_v37 = vmul.f32 %v7951_v55, %v7820_v5  ;;  %v7958_v20 = vmul.f32 %v7951_v55, %v7826_v60 }
0x16f4   : > { %v7945_v63 = vadd.f32 %v7941_v45, %v7929_v22  ;;  %v7947_v31 = vadd.f32 %v7943_v10, %v7931_v26 }
0x16f5   : > { %v7944_v34 = vadd.f32 %v7940_v58, %v7928_v48  ;;  %v7946_v46 = vadd.f32 %v7942_v14, %v7930_v28 }
0x16f6   : > { %v7961_v27 = vadd.f32 %v7957_v32, %v7945_v63  ;;  %v7963_v24 = vadd.f32 %v7959_v13, %v7947_v31 }
0x16f7   : > { %v7960_v6 = vadd.f32 %v7956_v37, %v7944_v34  ;;  %v7962_v62 = vadd.f32 %v7958_v20, %v7946_v46 }
0x16f8   : > { %v8989_v23 = vpack.c.bf16 %v7963_v24, %v7961_v27 }
0x16f9   : > { %v8991_v44 = vpack.c.bf16 %v7962_v62, %v7960_v6 }
0x16fa   : > { %8990 = vmatprep.subr.bf16.mxu1 %v8989_v23 }
0x16fb   : > { %8992 = vmatpush1.bf16.msra.mxu1 %v8991_v44 }
0x16fe   : > { %8402 = vmatmul.mubr.msk.f32.vlgmr.msra.gmra.mrb[110].mxu1 %vm4595_vm8, %v12275_v49 }
0x16ff   : > { %9347 = shalt.err (!%p9344_p3)
}
0x1700   : > { %s9348_s29 = scalar_lea.hbm %s12622_s3, 256  ;;  %s9352_s9 = scalar_lea.hbm %s12721_s20, 512 }
0x1701   : > { %p9349_p4 = scmp.ne.s32.totalorder %s12622_s3, %s9348_s29  ;;  %p9353_p9 = scmp.lt.u32.totalorder %s12622_s3, %s12721_s20 }
0x1702   : > { %p9354_p10 = scmp.lt.u32.totalorder %s9352_s9, %s9348_s29  ;;  %p9356_p12 = scmp.lt.u32.totalorder %s9348_s29, %s12622_s3 }
0x1703   : > { %p9350_p7 = pnand %p9349_p4, %p9601_p5 }
0x1704   : > { %p9355_p11 = por %p9354_p10, %p9353_p9 }
0x1705   : > { %p9351_p8 = pneg %p9350_p7 }
0x1706   : > { %p9357_p13 = por %p9356_p12, %p9355_p11 }
0x1708   : > { %p9358_p0 = pnand %p9357_p13, %p9351_p8 }
0x170a   : > { %9361 = shalt.err (!%p9358_p0)
}
0x170b   : > { %s9438_s1 = smov 64   ;;  %s9439_s6 = smov 4  }
0x170c   : > { %s13037_s24 = scalar_lea.sflag [#allocation4], %s11192_s21  ;;  %s8416_s8 = sshll.u32 %s9584_s5, 9 }
0x170d   : > { %8999 = dma.vmem_to_hbm [thread:$0]  (%p9601_p5), %s12616_s25, 256, %s12622_s3, %s13037_s24, %s9438_s1, %s9438_s1, %s9439_s6  }
0x170e   : > { %s8086_s4 = sshll.u32 %s11197_s2, 4  ;;  %s13038_s10 = sld [smem:[#allocation63_spill]]  ;;  %s12655_s4 = int_to_ptr.vmem [resolvable:$true] %s8086_s4 }
0x170f   : > { %s8047_s12 = scalar_lea.sflag [#allocation6], %s11192_s21  ;;  %s9362_s13 = scalar_lea.vmem %s12655_s4, 512 }
0x1710   : > { %p9363_p1 = scmp.ne.s32.totalorder %s12655_s4, %s9362_s13  ;;  %s9440_s14 = smov [#allocation5]  }
0x1711   : > { %s9366_s25 = sshll.u32 %s9440_s14, 4  ;;  %s9367_s25 = int_to_ptr.vmem [resolvable:$false] %s9366_s25 }
0x1712   : > { %p9364_p2 = pnand %p9363_p1, %p9601_p5  ;;  %s9368_s5 = scalar_lea.vmem %s9367_s25, 1024 }
0x1713   : > { %p9369_p4 = scmp.lt.s32.totalorder %s12655_s4, %s9367_s25  ;;  %p9370_p7 = scmp.lt.s32.totalorder %s9368_s5, %s9362_s13 }
0x1714   : > { %s12653_s11 = scalar_lea.hbm %s13038_s10, %s8416_s8  ;;  %p9365_p3 = pneg %p9364_p2 }
0x1715   : > { %p9371_p8 = por %p9370_p7, %p9369_p4 }
0x1717   : > { %p9372_p9 = pnand %p9371_p8, %p9365_p3 }
0x1719   : > { %9375 = shalt.err (!%p9372_p9)
}
0x171a   : > { %s9376_s2 = scalar_lea.hbm %s12653_s11, 512  ;;  %s9380_s14 = scalar_lea.hbm %s13038_s10, 1024 }
0x171b   : > { %p9377_p10 = scmp.ne.s32.totalorder %s12653_s11, %s9376_s2  ;;  %p9381_p13 = scmp.lt.u32.totalorder %s12653_s11, %s13038_s10 }
0x171c   : > { %p9382_p0 = scmp.lt.u32.totalorder %s9380_s14, %s9376_s2  ;;  %p9384_p2 = scmp.lt.u32.totalorder %s9376_s2, %s12653_s11 }
0x171d   : > { %p9378_p11 = pnand %p9377_p10, %p9601_p5 }
0x171e   : > { %p9383_p1 = por %p9382_p0, %p9381_p13 }
0x171f   : > { %p9379_p12 = pneg %p9378_p11 }
0x1720   : > { %p9385_p3 = por %p9384_p2, %p9383_p1 }
0x1722   : > { %p9386_p4 = pnand %p9385_p3, %p9379_p12 }
0x1724   : > { %9389 = shalt.err (!%p9386_p4)
}
0x1725   : > { %s9441_s13 = smov 128   ;;  %s9442_s8 = smov 8  }
0x1726   : > { %9000 = dma.vmem_to_hbm [thread:$0]  (%p9601_p5), %s12655_s4, 512, %s12653_s11, %s8047_s12, %s9441_s13, %s9441_s13, %s9442_s8  }
0x17d1   : > { %v8030_v49 = vpop.f32.mrb[110].mxu1 }
0x17d2   : > { %v8031_v19 = vadd.f32 %v8030_v49, %v12482_v15  ;;  %v8032_v12 = vpop.f32.mrb[111].mxu1 }
0x17d3   : > { %v8033_v40 = vadd.f32 %v8032_v12, %v12482_v15 }
0x17d5   : > { %v8037_v7 = vcombine.low %v8031_v19, %v8033_v40 }
0x17d7   : > { %8403 = vst [vmem:[%s12501_s0 + $0x18] sm:$0x77] %v8037_v7 }
0x17d8 PF: > { %s13039_s9 = sld [smem:[#allocation11_spill]]  ;;  %s13040_s29 = sld [smem:[#allocation9_spill]] }
0x17de   : > { %p9010_p7 = scmp.ge.s32.totalorder %s13039_s9, 2  ;;  %s8107_s5 = sand.u32 1, %s13040_s29  }
0x17df   : > { %s8108_s2 = scalar_lea.sflag [#allocation4], %s8107_s5 }
0x17e0   : > { %p9004_p8 = pnand %p9010_p7, %p9605_p6 }
0x17e2   : > { %9407 = dma.done.wait (!%p9004_p8), %s8108_s2, 256  }
0x17e3   : > { %9409 = vsyncadd (!%p9004_p8), %s8108_s2, 4294967040  ;;  %s8117_s11 = scalar_lea.sflag [#allocation6], %s8107_s5 }
0x17e4   : > { %9411 = dma.done.wait (!%p9004_p8), %s8117_s11, 512  }
0x17e5   : > { %9413 = vsyncadd (!%p9004_p8), %s8117_s11, 4294966784  ;;  %s13042_s25 = sld [smem:[#allocation12_spill]]  ;;  %s13043_s12 = sld [smem:[#allocation10_spill]] }
0x17e6   : > { %s13044_s24 = sld [smem:[#allocation13_spill]]  ;;  %s13045_s4 = smov %s9420_s30 }
0x17eb   : > { %p37_p5 = scmp.ge.s32.totalorder %s13042_s25, 4   ;;  %s13046_s30 = smov %s13043_s12 }
0x17ed   :  { %39 = sbr.rel (!%p37_p5) target bundleno = 22 (0x16), region = 194 }
0x17f4   :  { %8138 = vsyncpa [#allocation4], 1 }
0x17f5   :  { %8140 = vsyncpa [#allocation4 + $0x1], 1 }
0x17f6   :  { %8141 = vsyncpa [#allocation6], 1 }
0x17f7   :  { %8143 = vsyncpa [#allocation6 + $0x1], 1 }

</bundles_post_ra>
